<compile_context>
chip_gen: v5e
topology: v5e:2x2
jax: 0.10.0
libtpu: 0.0.40
codegen_flags: <defaults>
</compile_context>

<pallas_src>
import math

import jax
import jax.numpy as jnp
from jax.experimental import pallas as pl
from jax.experimental.pallas import tpu as pltpu

# ---- model hyper-parameters (small, consistent with the module) ----
D_MODEL = 32
N_HEADS = 4
N_LAYERS = 3
FFN_RATIO = 4
N_TOKEN = 11          # vocab size; fc maps d_model -> n_token - 1
MAX_LEN = 200
LN_EPS = 1e-5
OUT_PAD = 128         # lane-dense padded output width


# ----------------------------------------------------------------------------
# Pallas kernel: full decoder stack for one batch-block per grid step
# ----------------------------------------------------------------------------
def decoder_kernel(x_ref, mem_ref, sbias_ref, cbias_ref,
                   sa_w_ref, sa_b_ref, sa_ow_ref, sa_ob_ref,
                   ca_w_ref, ca_b_ref, ca_ow_ref, ca_ob_ref,
                   ff1_w_ref, ff1_b_ref, ff2_w_ref, ff2_b_ref,
                   ln_g_ref, ln_b_ref, fc_w_ref, fc_b_ref,
                   out_ref):
    Bb, T, D = x_ref.shape
    S = mem_ref.shape[1]
    H = N_HEADS
    hd = D // H
    N = Bb * T
    scale = 1.0 / math.sqrt(hd)

    # fused row slabs: all linear layers see (B*T, D) / (B*S, D)
    x = x_ref[...].reshape(N, D)
    mem2 = mem_ref[...].reshape(Bb * S, D)
    sbias = sbias_ref[...]            # (Bb, T, T) additive causal + tgt key-pad mask
    cbias = cbias_ref[...]            # (Bb, 1, S) additive memory key-pad mask

    def layernorm(h, g, b):
        mu = jnp.mean(h, axis=-1, keepdims=True)
        var = jnp.mean((h - mu) ** 2, axis=-1, keepdims=True)
        return (h - mu) * jax.lax.rsqrt(var + LN_EPS) * g + b

    def mha(x2, kv2, kv_len, bias, l, w_ref, b_ref, ow_ref, ob_ref):
        # fused projections over all rows of the batch-block (pre-transposed W)
        q = jnp.dot(x2, w_ref[l, 0], preferred_element_type=jnp.float32) + b_ref[l, 0]
        k = jnp.dot(kv2, w_ref[l, 1], preferred_element_type=jnp.float32) + b_ref[l, 1]
        v = jnp.dot(kv2, w_ref[l, 2], preferred_element_type=jnp.float32) + b_ref[l, 2]
        q3 = q.reshape(Bb, T, D)
        k3 = k.reshape(Bb, kv_len, D)
        v3 = v.reshape(Bb, kv_len, D)

        # per-head attention; head-concat is folded into the output projection
        out = jnp.zeros((N, D), jnp.float32) + ob_ref[l]
        for h in range(H):
            sl = slice(h * hd, (h + 1) * hd)
            s = jnp.einsum('bqd,bkd->bqk', q3[:, :, sl], k3[:, :, sl],
                           preferred_element_type=jnp.float32) * scale + bias
            m = jnp.max(s, axis=-1, keepdims=True)
            p = jnp.exp(s - m)
            p = p * pl.reciprocal(jnp.sum(p, axis=-1, keepdims=True), approx=True)
            oh = jnp.einsum('bqk,bkd->bqd', p, v3[:, :, sl],
                            preferred_element_type=jnp.float32).reshape(N, hd)
            out = out + jnp.dot(oh, ow_ref[l, sl, :],
                                preferred_element_type=jnp.float32)
        return out

    # TODO(synk): optionally cast matmul operands to bf16 on v6e/v7x; kept f32
    # to stay comfortably inside the 1e-2 correctness check.
    for l in range(N_LAYERS):
        # --- self attention + residual + norm1 (post-norm) ---
        x = layernorm(
            x + mha(x, x, T, sbias, l, sa_w_ref, sa_b_ref, sa_ow_ref, sa_ob_ref),
            ln_g_ref[l, 0], ln_b_ref[l, 0])
        # --- cross attention + residual + norm2 ---
        x = layernorm(
            x + mha(x, mem2, S, cbias, l, ca_w_ref, ca_b_ref, ca_ow_ref, ca_ob_ref),
            ln_g_ref[l, 1], ln_b_ref[l, 1])
        # --- feed-forward + residual + norm3 ---
        hdn = jnp.maximum(
            jnp.dot(x, ff1_w_ref[l], preferred_element_type=jnp.float32)
            + ff1_b_ref[l], 0.0)
        x = layernorm(
            x + jnp.dot(hdn, ff2_w_ref[l], preferred_element_type=jnp.float32)
            + ff2_b_ref[l],
            ln_g_ref[l, 2], ln_b_ref[l, 2])

    # lane-dense (128-wide) final FC; wrapper slices back to n_token - 1
    logits = (jnp.dot(x, fc_w_ref[...], preferred_element_type=jnp.float32)
              + fc_b_ref[...])
    out_ref[...] = logits.reshape(out_ref.shape)


# ----------------------------------------------------------------------------
# wrapper: embedding / PE / mask glue in JAX, decoder stack in the kernel
# ----------------------------------------------------------------------------
def trans_decoder_forward(params, tgt_ids, src_enc, src_lens, tgt_lens):
    B, T = tgt_ids.shape
    S = src_enc.shape[1]
    D = D_MODEL
    F = D * FFN_RATIO
    n_out = N_TOKEN - 1

    # token embedding * sqrt(d_model) + positional encoding (dropout = identity)
    x = (params["emb"][tgt_ids] * math.sqrt(D)
         + params["pe"][:T][None, :, :]).astype(jnp.float32)
    mem = src_enc.astype(jnp.float32)

    # additive float masks (0 / -inf), same convention as nn.TransformerDecoder.
    # Note: a batch element with tgt_len==0 or src_len==0 yields an all -inf
    # attention row -> NaN, matching the pure-JAX reference behavior.
    rows = jnp.arange(T)
    causal = jnp.where(rows[None, :] <= rows[:, None], 0.0, -jnp.inf).astype(jnp.float32)
    tkpm = jnp.where(jnp.arange(T)[None, :] < tgt_lens[:, None], 0.0,
                     -jnp.inf).astype(jnp.float32)
    skpm = jnp.where(jnp.arange(S)[None, :] < src_lens[:, None], 0.0,
                     -jnp.inf).astype(jnp.float32)
    sbias = causal[None, :, :] + tkpm[:, None, :]      # (B, T, T)
    cbias = skpm[:, None, :]                           # (B, 1, S)

    # Batch blocking: tiny batches -> single fused invocation (no grid overhead).
    # Larger batches -> >=2 blocks so the "parallel" axis shards across v7x's
    # two TensorCores (no-op on v5e/v6e).
    if B >= 4:
        B_BLK = min(8, (B + 1) // 2)
    else:
        B_BLK = B
    nblk = pl.cdiv(B, B_BLK)
    B_pad = nblk * B_BLK
    if B_pad != B:
        pad = B_pad - B
        x = jnp.pad(x, ((0, pad), (0, 0), (0, 0)))
        mem = jnp.pad(mem, ((0, pad), (0, 0), (0, 0)))
        sbias = jnp.pad(sbias, ((0, pad), (0, 0), (0, 0)))   # zero-pad == fully valid
        cbias = jnp.pad(cbias, ((0, pad), (0, 0), (0, 0)))

    # lane-dense padded final FC
    fc_wp = jnp.pad(params["fc_w"], ((0, 0), (0, OUT_PAD - n_out)))
    fc_bp = jnp.pad(params["fc_b"], ((0, 0), (0, OUT_PAD - n_out)))

    weight_args = [params[n] for n in ("sa_w", "sa_b", "sa_ow", "sa_ob",
                                       "ca_w", "ca_b", "ca_ow", "ca_ob",
                                       "ff1_w", "ff1_b", "ff2_w", "ff2_b",
                                       "ln_g", "ln_b")] + [fc_wp, fc_bp]

    def blk_spec(*dims):
        nd = len(dims)
        return pl.BlockSpec((B_BLK,) + dims, lambda i, _nd=nd: (i,) + (0,) * _nd)

    def full_spec(arr):
        nd = arr.ndim
        return pl.BlockSpec(arr.shape, lambda i, _nd=nd: (0,) * _nd)

    in_specs = ([blk_spec(T, D), blk_spec(S, D), blk_spec(T, T), blk_spec(1, S)]
                + [full_spec(w) for w in weight_args])
    out_spec = pl.BlockSpec((B_BLK, T, OUT_PAD), lambda i: (i, 0, 0))

    # rough cost estimate (advisory only)
    Nrows = B_pad * T
    flops_layer = (
        2 * Nrows * D * D * 3          # self QKV
        + 4 * B_pad * T * T * D        # self scores + PV (all heads)
        + 2 * Nrows * D * D            # self out-proj
        + 2 * Nrows * D * D            # cross Q
        + 2 * (B_pad * S) * D * D * 2  # cross K, V
        + 4 * B_pad * T * S * D        # cross scores + PV
        + 2 * Nrows * D * D            # cross out-proj
        + 2 * Nrows * D * F * 2        # FFN
    )
    flops = N_LAYERS * flops_layer + 2 * Nrows * D * OUT_PAD
    transc = N_LAYERS * B_pad * N_HEADS * T * (T + S)
    bytes_acc = 4 * (int(x.size) + int(mem.size) + int(sbias.size) + int(cbias.size)
                     + sum(int(w.size) for w in weight_args)
                     + B_pad * T * OUT_PAD)

    out = pl.pallas_call(
        decoder_kernel,
        out_shape=jax.ShapeDtypeStruct((B_pad, T, OUT_PAD), jnp.float32),
        grid_spec=pltpu.PrefetchScalarGridSpec(
            num_scalar_prefetch=0,
            grid=(nblk,),
            in_specs=in_specs,
            out_specs=out_spec,
        ),
        compiler_params=pltpu.CompilerParams(
            dimension_semantics=("parallel",),
            vmem_limit_bytes=32 * 1024 * 1024,
        ),
        cost_estimate=pl.CostEstimate(flops=flops, transcendentals=transc,
                                      bytes_accessed=bytes_acc),
    )(x, mem, sbias, cbias, *weight_args)

    return out[:B, :, :n_out]


# ----------------------------------------------------------------------------
# deterministic parameter initialization (synthetic, no checkpoint)
# weights are stored pre-transposed / packed in kernel-friendly layout:
#   y = x @ W   for every linear layer.
# ----------------------------------------------------------------------------
def make_positional_encoding(d_model, max_len):
    position = jnp.arange(max_len, dtype=jnp.float32)[:, None]
    div_term = jnp.exp(jnp.arange(0, d_model, 2, dtype=jnp.float32)
                       * (-math.log(10000.0) / d_model))
    ang = position * div_term
    pe = jnp.zeros((max_len, d_model), jnp.float32)
    pe = pe.at[:, 0::2].set(jnp.sin(ang))
    pe = pe.at[:, 1::2].set(jnp.cos(ang))
    return pe


def init_params(key):
    D, L, F, n_out = D_MODEL, N_LAYERS, D_MODEL * FFN_RATIO, N_TOKEN - 1
    ks = jax.random.split(key, 16)
    nrm = lambda k, shape, s=0.05: (s * jax.random.normal(k, shape)).astype(jnp.float32)
    return {
        "emb":   nrm(ks[0], (N_TOKEN, D), 1.0),
        "pe":    make_positional_encoding(D, MAX_LEN),
        "sa_w":  nrm(ks[1], (L, 3, D, D)),     # [q, k, v] pre-transposed
        "sa_b":  nrm(ks[2], (L, 3, 1, D)),
        "sa_ow": nrm(ks[3], (L, D, D)),        # pre-transposed out-proj
        "sa_ob": nrm(ks[4], (L, 1, D)),
        "ca_w":  nrm(ks[5], (L, 3, D, D)),
        "ca_b":  nrm(ks[6], (L, 3, 1, D)),
        "ca_ow": nrm(ks[7], (L, D, D)),
        "ca_ob": nrm(ks[8], (L, 1, D)),
        "ff1_w": nrm(ks[9], (L, D, F)),
        "ff1_b": nrm(ks[10], (L, 1, F)),
        "ff2_w": nrm(ks[11], (L, F, D)),
        "ff2_b": nrm(ks[12], (L, 1, D)),
        "ln_g":  jnp.ones((L, 3, 1, D), jnp.float32) + nrm(ks[13], (L, 3, 1, D)),
        "ln_b":  nrm(ks[14], (L, 3, 1, D)),
        "fc_w":  nrm(ks[15], (D, n_out)),
        "fc_b":  jnp.zeros((1, n_out), jnp.float32),
    }


# ----------------------------------------------------------------------------
# pure-JAX reference (same math, no Pallas) for a correctness check
# ----------------------------------------------------------------------------
def ref_forward(params, tgt_ids, src_enc, src_lens, tgt_lens):
    B, T = tgt_ids.shape
    S = src_enc.shape[1]
    D = D_MODEL
    H, hd = N_HEADS, D_MODEL // N_HEADS

    x = params["emb"][tgt_ids] * math.sqrt(D) + params["pe"][:T][None]
    rows = jnp.arange(T)
    causal = jnp.where(rows[None, :] <= rows[:, None], 0.0, -jnp.inf)
    tkpm = jnp.where(jnp.arange(T)[None, :] < tgt_lens[:, None], 0.0, -jnp.inf)
    skpm = jnp.where(jnp.arange(S)[None, :] < src_lens[:, None], 0.0, -jnp.inf)
    sbias = causal[None] + tkpm[:, None, :]   # (B, T, T)
    cbias = skpm[:, None, :]                  # (B, 1, S)

    def mha(xq, xkv, bias, w, b, ow, ob):
        q = xq @ w[0] + b[0]
        k = xkv @ w[1] + b[1]
        v = xkv @ w[2] + b[2]
        outs = []
        for h in range(H):
            sl = slice(h * hd, (h + 1) * hd)
            s = jnp.einsum('bqd,bkd->bqk', q[..., sl], k[..., sl]) / math.sqrt(hd) + bias
            p = jax.nn.softmax(s, axis=-1)
            outs.append(jnp.einsum('bqk,bkd->bqd', p, v[..., sl]))
        return jnp.concatenate(outs, axis=-1) @ ow + ob

    def ln(h, g, b):
        mu = h.mean(-1, keepdims=True)
        var = ((h - mu) ** 2).mean(-1, keepdims=True)
        return (h - mu) * jax.lax.rsqrt(var + LN_EPS) * g + b

    for l in range(N_LAYERS):
        x = ln(x + mha(x, x, sbias, params["sa_w"][l], params["sa_b"][l],
                       params["sa_ow"][l], params["sa_ob"][l]),
               params["ln_g"][l, 0], params["ln_b"][l, 0])
        x = ln(x + mha(x, src_enc, cbias, params["ca_w"][l], params["ca_b"][l],
                       params["ca_ow"][l], params["ca_ob"][l]),
               params["ln_g"][l, 1], params["ln_b"][l, 1])
        hdn = jnp.maximum(x @ params["ff1_w"][l] + params["ff1_b"][l], 0.0)
        x = ln(x + hdn @ params["ff2_w"][l] + params["ff2_b"][l],
               params["ln_g"][l, 2], params["ln_b"][l, 2])
    return x @ params["fc_w"] + params["fc_b"]


if __name__ == "__main__":
    key = jax.random.PRNGKey(0)
    k_params, k_tok, k_src = jax.random.split(key, 3)

    B, T, S = 2, 8, 16
    params = init_params(k_params)
    tgt_ids = jax.random.randint(k_tok, (B, T), 0, N_TOKEN, dtype=jnp.int32)
    src_enc = jax.random.normal(k_src, (B, S, D_MODEL), dtype=jnp.float32)
    src_lens = jnp.array([16, 11], dtype=jnp.int32)
    tgt_lens = jnp.array([8, 5], dtype=jnp.int32)

    out = trans_decoder_forward(params, tgt_ids, src_enc, src_lens, tgt_lens)
    out = jax.block_until_ready(out)

    ref = ref_forward(params, tgt_ids, src_enc, src_lens, tgt_lens)
    assert out.shape == (B, T, N_TOKEN - 1)
    assert float(jnp.max(jnp.abs(out - ref))) < 1e-2

    print("KERNEL_OK")
</pallas_src>

<mosaic_0001>
module attributes {stable_mosaic.version = 11 : i64} {
  func.func @decoder_kernel(%arg0: i32, %arg1: memref<2x8x32xf32, #tpu.memory_space<vmem>>, %arg2: memref<2x16x32xf32, #tpu.memory_space<vmem>>, %arg3: memref<2x8x8xf32, #tpu.memory_space<vmem>>, %arg4: memref<2x1x16xf32, #tpu.memory_space<vmem>>, %arg5: memref<3x3x32x32xf32, #tpu.memory_space<vmem>>, %arg6: memref<3x3x1x32xf32, #tpu.memory_space<vmem>>, %arg7: memref<3x32x32xf32, #tpu.memory_space<vmem>>, %arg8: memref<3x1x32xf32, #tpu.memory_space<vmem>>, %arg9: memref<3x3x32x32xf32, #tpu.memory_space<vmem>>, %arg10: memref<3x3x1x32xf32, #tpu.memory_space<vmem>>, %arg11: memref<3x32x32xf32, #tpu.memory_space<vmem>>, %arg12: memref<3x1x32xf32, #tpu.memory_space<vmem>>, %arg13: memref<3x32x128xf32, #tpu.memory_space<vmem>>, %arg14: memref<3x1x128xf32, #tpu.memory_space<vmem>>, %arg15: memref<3x128x32xf32, #tpu.memory_space<vmem>>, %arg16: memref<3x1x32xf32, #tpu.memory_space<vmem>>, %arg17: memref<3x3x1x32xf32, #tpu.memory_space<vmem>>, %arg18: memref<3x3x1x32xf32, #tpu.memory_space<vmem>>, %arg19: memref<32x128xf32, #tpu.memory_space<vmem>>, %arg20: memref<1x128xf32, #tpu.memory_space<vmem>>, %arg21: memref<2x8x128xf32, #tpu.memory_space<vmem>>) attributes {dimension_semantics = [#tpu.dimension_semantics<parallel>], iteration_bounds = array<i64: 1>, scalar_prefetch = 0 : i64, scratch_operands = 0 : i64, tpu.core_type = #tpu.core_type<tc>, window_params = [{transform_indices = @transform_0, window_bounds = array<i64: 2, 8, 32>}, {transform_indices = @transform_1, window_bounds = array<i64: 2, 16, 32>}, {transform_indices = @transform_2, window_bounds = array<i64: 2, 8, 8>}, {transform_indices = @transform_3, window_bounds = array<i64: 2, 1, 16>}, {pipeline_mode = #tpu.pipeline_mode<synchronous>, transform_indices = @transform_4, window_bounds = array<i64: 3, 3, 32, 32>}, {pipeline_mode = #tpu.pipeline_mode<synchronous>, transform_indices = @transform_5, window_bounds = array<i64: 3, 3, 1, 32>}, {pipeline_mode = #tpu.pipeline_mode<synchronous>, transform_indices = @transform_6, window_bounds = array<i64: 3, 32, 32>}, {pipeline_mode = #tpu.pipeline_mode<synchronous>, transform_indices = @transform_7, window_bounds = array<i64: 3, 1, 32>}, {pipeline_mode = #tpu.pipeline_mode<synchronous>, transform_indices = @transform_8, window_bounds = array<i64: 3, 3, 32, 32>}, {pipeline_mode = #tpu.pipeline_mode<synchronous>, transform_indices = @transform_9, window_bounds = array<i64: 3, 3, 1, 32>}, {pipeline_mode = #tpu.pipeline_mode<synchronous>, transform_indices = @transform_10, window_bounds = array<i64: 3, 32, 32>}, {pipeline_mode = #tpu.pipeline_mode<synchronous>, transform_indices = @transform_11, window_bounds = array<i64: 3, 1, 32>}, {pipeline_mode = #tpu.pipeline_mode<synchronous>, transform_indices = @transform_12, window_bounds = array<i64: 3, 32, 128>}, {pipeline_mode = #tpu.pipeline_mode<synchronous>, transform_indices = @transform_13, window_bounds = array<i64: 3, 1, 128>}, {pipeline_mode = #tpu.pipeline_mode<synchronous>, transform_indices = @transform_14, window_bounds = array<i64: 3, 128, 32>}, {pipeline_mode = #tpu.pipeline_mode<synchronous>, transform_indices = @transform_15, window_bounds = array<i64: 3, 1, 32>}, {pipeline_mode = #tpu.pipeline_mode<synchronous>, transform_indices = @transform_16, window_bounds = array<i64: 3, 3, 1, 32>}, {pipeline_mode = #tpu.pipeline_mode<synchronous>, transform_indices = @transform_17, window_bounds = array<i64: 3, 3, 1, 32>}, {pipeline_mode = #tpu.pipeline_mode<synchronous>, transform_indices = @transform_18, window_bounds = array<i64: 32, 128>}, {pipeline_mode = #tpu.pipeline_mode<synchronous>, transform_indices = @transform_19, window_bounds = array<i64: 1, 128>}, {transform_indices = @transform_20, window_bounds = array<i64: 2, 8, 128>}]} {
    %c0 = arith.constant 0 : index
    %c0_0 = arith.constant 0 : index
    %c0_1 = arith.constant 0 : index
    %0 = vector.load %arg1[%c0, %c0_0, %c0_1] : memref<2x8x32xf32, #tpu.memory_space<vmem>>, vector<2x8x32xf32>
    %1 = vector.shape_cast %0 : vector<2x8x32xf32> to vector<16x32xf32>
    %c0_2 = arith.constant 0 : index
    %c0_3 = arith.constant 0 : index
    %c0_4 = arith.constant 0 : index
    %2 = vector.load %arg2[%c0_2, %c0_3, %c0_4] : memref<2x16x32xf32, #tpu.memory_space<vmem>>, vector<2x16x32xf32>
    %3 = vector.shape_cast %2 : vector<2x16x32xf32> to vector<32x32xf32>
    %c0_5 = arith.constant 0 : index
    %c0_6 = arith.constant 0 : index
    %c0_7 = arith.constant 0 : index
    %4 = vector.load %arg3[%c0_5, %c0_6, %c0_7] : memref<2x8x8xf32, #tpu.memory_space<vmem>>, vector<2x8x8xf32>
    %c0_8 = arith.constant 0 : index
    %c0_9 = arith.constant 0 : index
    %c0_10 = arith.constant 0 : index
    %5 = vector.load %arg4[%c0_8, %c0_9, %c0_10] : memref<2x1x16xf32, #tpu.memory_space<vmem>>, vector<2x1x16xf32>
    %c0_11 = arith.constant 0 : index
    %c0_12 = arith.constant 0 : index
    %c0_13 = arith.constant 0 : index
    %c0_14 = arith.constant 0 : index
    %6 = vector.load %arg5[%c0_11, %c0_12, %c0_13, %c0_14] : memref<3x3x32x32xf32, #tpu.memory_space<vmem>>, vector<1x1x32x32xf32>
    %7 = vector.shape_cast %6 : vector<1x1x32x32xf32> to vector<32x32xf32>
    %cst = arith.constant dense<0.000000e+00> : vector<16x32xf32>
    %8 = tpu.matmul %1, %7, %cst {dimension_numbers = #tpu.dot_dimension_numbers<[1], [0], [0], [1], [0, 0, 1, 1], [], []>} : vector<16x32xf32>, vector<32x32xf32>, vector<16x32xf32> -> vector<16x32xf32>
    %c0_15 = arith.constant 0 : index
    %c0_16 = arith.constant 0 : index
    %c0_17 = arith.constant 0 : index
    %c0_18 = arith.constant 0 : index
    %9 = vector.load %arg6[%c0_15, %c0_16, %c0_17, %c0_18] : memref<3x3x1x32xf32, #tpu.memory_space<vmem>>, vector<1x1x1x32xf32>
    %10 = vector.shape_cast %9 : vector<1x1x1x32xf32> to vector<1x32xf32>
    %11 = vector.broadcast %10 : vector<1x32xf32> to vector<16x32xf32>
    %12 = arith.addf %8, %11 : vector<16x32xf32>
    %c0_19 = arith.constant 0 : index
    %c1 = arith.constant 1 : index
    %c0_20 = arith.constant 0 : index
    %c0_21 = arith.constant 0 : index
    %13 = vector.load %arg5[%c0_19, %c1, %c0_20, %c0_21] : memref<3x3x32x32xf32, #tpu.memory_space<vmem>>, vector<1x1x32x32xf32>
    %14 = vector.shape_cast %13 : vector<1x1x32x32xf32> to vector<32x32xf32>
    %cst_22 = arith.constant dense<0.000000e+00> : vector<16x32xf32>
    %15 = tpu.matmul %1, %14, %cst_22 {dimension_numbers = #tpu.dot_dimension_numbers<[1], [0], [0], [1], [0, 0, 1, 1], [], []>} : vector<16x32xf32>, vector<32x32xf32>, vector<16x32xf32> -> vector<16x32xf32>
    %c0_23 = arith.constant 0 : index
    %c1_24 = arith.constant 1 : index
    %c0_25 = arith.constant 0 : index
    %c0_26 = arith.constant 0 : index
    %16 = vector.load %arg6[%c0_23, %c1_24, %c0_25, %c0_26] : memref<3x3x1x32xf32, #tpu.memory_space<vmem>>, vector<1x1x1x32xf32>
    %17 = vector.shape_cast %16 : vector<1x1x1x32xf32> to vector<1x32xf32>
    %18 = vector.broadcast %17 : vector<1x32xf32> to vector<16x32xf32>
    %19 = arith.addf %15, %18 : vector<16x32xf32>
    %c0_27 = arith.constant 0 : index
    %c2 = arith.constant 2 : index
    %c0_28 = arith.constant 0 : index
    %c0_29 = arith.constant 0 : index
    %20 = vector.load %arg5[%c0_27, %c2, %c0_28, %c0_29] : memref<3x3x32x32xf32, #tpu.memory_space<vmem>>, vector<1x1x32x32xf32>
    %21 = vector.shape_cast %20 : vector<1x1x32x32xf32> to vector<32x32xf32>
    %cst_30 = arith.constant dense<0.000000e+00> : vector<16x32xf32>
    %22 = tpu.matmul %1, %21, %cst_30 {dimension_numbers = #tpu.dot_dimension_numbers<[1], [0], [0], [1], [0, 0, 1, 1], [], []>} : vector<16x32xf32>, vector<32x32xf32>, vector<16x32xf32> -> vector<16x32xf32>
    %c0_31 = arith.constant 0 : index
    %c2_32 = arith.constant 2 : index
    %c0_33 = arith.constant 0 : index
    %c0_34 = arith.constant 0 : index
    %23 = vector.load %arg6[%c0_31, %c2_32, %c0_33, %c0_34] : memref<3x3x1x32xf32, #tpu.memory_space<vmem>>, vector<1x1x1x32xf32>
    %24 = vector.shape_cast %23 : vector<1x1x1x32xf32> to vector<1x32xf32>
    %25 = vector.broadcast %24 : vector<1x32xf32> to vector<16x32xf32>
    %26 = arith.addf %22, %25 : vector<16x32xf32>
    %27 = vector.shape_cast %12 : vector<16x32xf32> to vector<2x8x32xf32>
    %28 = vector.shape_cast %19 : vector<16x32xf32> to vector<2x8x32xf32>
    %29 = vector.shape_cast %26 : vector<16x32xf32> to vector<2x8x32xf32>
    %cst_35 = arith.constant 0.000000e+00 : f32
    %30 = vector.broadcast %cst_35 : f32 to vector<16x32xf32>
    %c0_36 = arith.constant 0 : index
    %c0_37 = arith.constant 0 : index
    %c0_38 = arith.constant 0 : index
    %31 = vector.load %arg8[%c0_36, %c0_37, %c0_38] : memref<3x1x32xf32, #tpu.memory_space<vmem>>, vector<1x1x32xf32>
    %32 = vector.shape_cast %31 : vector<1x1x32xf32> to vector<1x32xf32>
    %33 = vector.broadcast %32 : vector<1x32xf32> to vector<16x32xf32>
    %34 = arith.addf %30, %33 : vector<16x32xf32>
    %35 = vector.extract_strided_slice %27 {offsets = [0, 0, 0], sizes = [2, 8, 8], strides = [1, 1, 1]} : vector<2x8x32xf32> to vector<2x8x8xf32>
    %36 = vector.extract_strided_slice %28 {offsets = [0, 0, 0], sizes = [2, 8, 8], strides = [1, 1, 1]} : vector<2x8x32xf32> to vector<2x8x8xf32>
    "tpu.trace_start"() <{level = 10 : i32, message = "bqd,bkd->bqk"}> : () -> ()
    %cst_39 = arith.constant dense<0.000000e+00> : vector<2x8x8xf32>
    %37 = tpu.matmul %35, %36, %cst_39 {dimension_numbers = #tpu.dot_dimension_numbers<[2], [2], [1], [1], [0, 0, 0, 1, 1, 1], [0], [0]>} : vector<2x8x8xf32>, vector<2x8x8xf32>, vector<2x8x8xf32> -> vector<2x8x8xf32>
    "tpu.trace_stop"() : () -> ()
    %cst_40 = arith.constant 0.353553385 : f32
    %38 = vector.broadcast %cst_40 : f32 to vector<2x8x8xf32>
    %39 = arith.mulf %37, %38 : vector<2x8x8xf32>
    %40 = arith.addf %39, %4 : vector<2x8x8xf32>
    %cst_41 = arith.constant dense<0xFF800000> : vector<2x8xf32>
    %41 = vector.multi_reduction <maximumf>, %40, %cst_41 [2] : vector<2x8x8xf32> to vector<2x8xf32>
    %42 = vector.shape_cast %41 : vector<2x8xf32> to vector<2x8x1xf32>
    %43 = vector.broadcast %42 : vector<2x8x1xf32> to vector<2x8x8xf32>
    %44 = arith.subf %40, %43 : vector<2x8x8xf32>
    %45 = math.exp %44 : vector<2x8x8xf32>
    %cst_42 = arith.constant dense<0.000000e+00> : vector<2x8xf32>
    %46 = vector.multi_reduction <add>, %45, %cst_42 [2] : vector<2x8x8xf32> to vector<2x8xf32>
    %47 = vector.shape_cast %46 : vector<2x8xf32> to vector<2x8x1xf32>
    %48 = tpu.reciprocal %47 {approx = true} : vector<2x8x1xf32> -> vector<2x8x1xf32>
    %49 = vector.broadcast %48 : vector<2x8x1xf32> to vector<2x8x8xf32>
    %50 = arith.mulf %45, %49 : vector<2x8x8xf32>
    %51 = vector.extract_strided_slice %29 {offsets = [0, 0, 0], sizes = [2, 8, 8], strides = [1, 1, 1]} : vector<2x8x32xf32> to vector<2x8x8xf32>
    "tpu.trace_start"() <{level = 10 : i32, message = "bqk,bkd->bqd"}> : () -> ()
    %cst_43 = arith.constant dense<0.000000e+00> : vector<2x8x8xf32>
    %52 = tpu.matmul %50, %51, %cst_43 {dimension_numbers = #tpu.dot_dimension_numbers<[2], [1], [1], [2], [0, 0, 0, 1, 1, 2], [0], [0]>} : vector<2x8x8xf32>, vector<2x8x8xf32>, vector<2x8x8xf32> -> vector<2x8x8xf32>
    "tpu.trace_stop"() : () -> ()
    %53 = vector.shape_cast %52 : vector<2x8x8xf32> to vector<16x8xf32>
    %c0_44 = arith.constant 0 : index
    %c0_45 = arith.constant 0 : index
    %c0_46 = arith.constant 0 : index
    %54 = vector.load %arg7[%c0_44, %c0_45, %c0_46] : memref<3x32x32xf32, #tpu.memory_space<vmem>>, vector<1x8x32xf32>
    %55 = vector.shape_cast %54 : vector<1x8x32xf32> to vector<8x32xf32>
    %cst_47 = arith.constant dense<0.000000e+00> : vector<16x32xf32>
    %56 = tpu.matmul %53, %55, %cst_47 {dimension_numbers = #tpu.dot_dimension_numbers<[1], [0], [0], [1], [0, 0, 1, 1], [], []>} : vector<16x8xf32>, vector<8x32xf32>, vector<16x32xf32> -> vector<16x32xf32>
    %57 = arith.addf %34, %56 : vector<16x32xf32>
    %58 = vector.extract_strided_slice %27 {offsets = [0, 0, 8], sizes = [2, 8, 8], strides = [1, 1, 1]} : vector<2x8x32xf32> to vector<2x8x8xf32>
    %59 = vector.extract_strided_slice %28 {offsets = [0, 0, 8], sizes = [2, 8, 8], strides = [1, 1, 1]} : vector<2x8x32xf32> to vector<2x8x8xf32>
    "tpu.trace_start"() <{level = 10 : i32, message = "bqd,bkd->bqk"}> : () -> ()
    %cst_48 = arith.constant dense<0.000000e+00> : vector<2x8x8xf32>
    %60 = tpu.matmul %58, %59, %cst_48 {dimension_numbers = #tpu.dot_dimension_numbers<[2], [2], [1], [1], [0, 0, 0, 1, 1, 1], [0], [0]>} : vector<2x8x8xf32>, vector<2x8x8xf32>, vector<2x8x8xf32> -> vector<2x8x8xf32>
    "tpu.trace_stop"() : () -> ()
    %cst_49 = arith.constant 0.353553385 : f32
    %61 = vector.broadcast %cst_49 : f32 to vector<2x8x8xf32>
    %62 = arith.mulf %60, %61 : vector<2x8x8xf32>
    %63 = arith.addf %62, %4 : vector<2x8x8xf32>
    %cst_50 = arith.constant dense<0xFF800000> : vector<2x8xf32>
    %64 = vector.multi_reduction <maximumf>, %63, %cst_50 [2] : vector<2x8x8xf32> to vector<2x8xf32>
    %65 = vector.shape_cast %64 : vector<2x8xf32> to vector<2x8x1xf32>
    %66 = vector.broadcast %65 : vector<2x8x1xf32> to vector<2x8x8xf32>
    %67 = arith.subf %63, %66 : vector<2x8x8xf32>
    %68 = math.exp %67 : vector<2x8x8xf32>
    %cst_51 = arith.constant dense<0.000000e+00> : vector<2x8xf32>
    %69 = vector.multi_reduction <add>, %68, %cst_51 [2] : vector<2x8x8xf32> to vector<2x8xf32>
    %70 = vector.shape_cast %69 : vector<2x8xf32> to vector<2x8x1xf32>
    %71 = tpu.reciprocal %70 {approx = true} : vector<2x8x1xf32> -> vector<2x8x1xf32>
    %72 = vector.broadcast %71 : vector<2x8x1xf32> to vector<2x8x8xf32>
    %73 = arith.mulf %68, %72 : vector<2x8x8xf32>
    %74 = vector.extract_strided_slice %29 {offsets = [0, 0, 8], sizes = [2, 8, 8], strides = [1, 1, 1]} : vector<2x8x32xf32> to vector<2x8x8xf32>
    "tpu.trace_start"() <{level = 10 : i32, message = "bqk,bkd->bqd"}> : () -> ()
    %cst_52 = arith.constant dense<0.000000e+00> : vector<2x8x8xf32>
    %75 = tpu.matmul %73, %74, %cst_52 {dimension_numbers = #tpu.dot_dimension_numbers<[2], [1], [1], [2], [0, 0, 0, 1, 1, 2], [0], [0]>} : vector<2x8x8xf32>, vector<2x8x8xf32>, vector<2x8x8xf32> -> vector<2x8x8xf32>
    "tpu.trace_stop"() : () -> ()
    %76 = vector.shape_cast %75 : vector<2x8x8xf32> to vector<16x8xf32>
    %c0_53 = arith.constant 0 : index
    %c8 = arith.constant 8 : index
    %c0_54 = arith.constant 0 : index
    %77 = vector.load %arg7[%c0_53, %c8, %c0_54] : memref<3x32x32xf32, #tpu.memory_space<vmem>>, vector<1x8x32xf32>
    %78 = vector.shape_cast %77 : vector<1x8x32xf32> to vector<8x32xf32>
    %cst_55 = arith.constant dense<0.000000e+00> : vector<16x32xf32>
    %79 = tpu.matmul %76, %78, %cst_55 {dimension_numbers = #tpu.dot_dimension_numbers<[1], [0], [0], [1], [0, 0, 1, 1], [], []>} : vector<16x8xf32>, vector<8x32xf32>, vector<16x32xf32> -> vector<16x32xf32>
    %80 = arith.addf %57, %79 : vector<16x32xf32>
    %81 = vector.extract_strided_slice %27 {offsets = [0, 0, 16], sizes = [2, 8, 8], strides = [1, 1, 1]} : vector<2x8x32xf32> to vector<2x8x8xf32>
    %82 = vector.extract_strided_slice %28 {offsets = [0, 0, 16], sizes = [2, 8, 8], strides = [1, 1, 1]} : vector<2x8x32xf32> to vector<2x8x8xf32>
    "tpu.trace_start"() <{level = 10 : i32, message = "bqd,bkd->bqk"}> : () -> ()
    %cst_56 = arith.constant dense<0.000000e+00> : vector<2x8x8xf32>
    %83 = tpu.matmul %81, %82, %cst_56 {dimension_numbers = #tpu.dot_dimension_numbers<[2], [2], [1], [1], [0, 0, 0, 1, 1, 1], [0], [0]>} : vector<2x8x8xf32>, vector<2x8x8xf32>, vector<2x8x8xf32> -> vector<2x8x8xf32>
    "tpu.trace_stop"() : () -> ()
    %cst_57 = arith.constant 0.353553385 : f32
    %84 = vector.broadcast %cst_57 : f32 to vector<2x8x8xf32>
    %85 = arith.mulf %83, %84 : vector<2x8x8xf32>
    %86 = arith.addf %85, %4 : vector<2x8x8xf32>
    %cst_58 = arith.constant dense<0xFF800000> : vector<2x8xf32>
    %87 = vector.multi_reduction <maximumf>, %86, %cst_58 [2] : vector<2x8x8xf32> to vector<2x8xf32>
    %88 = vector.shape_cast %87 : vector<2x8xf32> to vector<2x8x1xf32>
    %89 = vector.broadcast %88 : vector<2x8x1xf32> to vector<2x8x8xf32>
    %90 = arith.subf %86, %89 : vector<2x8x8xf32>
    %91 = math.exp %90 : vector<2x8x8xf32>
    %cst_59 = arith.constant dense<0.000000e+00> : vector<2x8xf32>
    %92 = vector.multi_reduction <add>, %91, %cst_59 [2] : vector<2x8x8xf32> to vector<2x8xf32>
    %93 = vector.shape_cast %92 : vector<2x8xf32> to vector<2x8x1xf32>
    %94 = tpu.reciprocal %93 {approx = true} : vector<2x8x1xf32> -> vector<2x8x1xf32>
    %95 = vector.broadcast %94 : vector<2x8x1xf32> to vector<2x8x8xf32>
    %96 = arith.mulf %91, %95 : vector<2x8x8xf32>
    %97 = vector.extract_strided_slice %29 {offsets = [0, 0, 16], sizes = [2, 8, 8], strides = [1, 1, 1]} : vector<2x8x32xf32> to vector<2x8x8xf32>
    "tpu.trace_start"() <{level = 10 : i32, message = "bqk,bkd->bqd"}> : () -> ()
    %cst_60 = arith.constant dense<0.000000e+00> : vector<2x8x8xf32>
    %98 = tpu.matmul %96, %97, %cst_60 {dimension_numbers = #tpu.dot_dimension_numbers<[2], [1], [1], [2], [0, 0, 0, 1, 1, 2], [0], [0]>} : vector<2x8x8xf32>, vector<2x8x8xf32>, vector<2x8x8xf32> -> vector<2x8x8xf32>
    "tpu.trace_stop"() : () -> ()
    %99 = vector.shape_cast %98 : vector<2x8x8xf32> to vector<16x8xf32>
    %c0_61 = arith.constant 0 : index
    %c16 = arith.constant 16 : index
    %c0_62 = arith.constant 0 : index
    %100 = vector.load %arg7[%c0_61, %c16, %c0_62] : memref<3x32x32xf32, #tpu.memory_space<vmem>>, vector<1x8x32xf32>
    %101 = vector.shape_cast %100 : vector<1x8x32xf32> to vector<8x32xf32>
    %cst_63 = arith.constant dense<0.000000e+00> : vector<16x32xf32>
    %102 = tpu.matmul %99, %101, %cst_63 {dimension_numbers = #tpu.dot_dimension_numbers<[1], [0], [0], [1], [0, 0, 1, 1], [], []>} : vector<16x8xf32>, vector<8x32xf32>, vector<16x32xf32> -> vector<16x32xf32>
    %103 = arith.addf %80, %102 : vector<16x32xf32>
    %104 = vector.extract_strided_slice %27 {offsets = [0, 0, 24], sizes = [2, 8, 8], strides = [1, 1, 1]} : vector<2x8x32xf32> to vector<2x8x8xf32>
    %105 = vector.extract_strided_slice %28 {offsets = [0, 0, 24], sizes = [2, 8, 8], strides = [1, 1, 1]} : vector<2x8x32xf32> to vector<2x8x8xf32>
    "tpu.trace_start"() <{level = 10 : i32, message = "bqd,bkd->bqk"}> : () -> ()
    %cst_64 = arith.constant dense<0.000000e+00> : vector<2x8x8xf32>
    %106 = tpu.matmul %104, %105, %cst_64 {dimension_numbers = #tpu.dot_dimension_numbers<[2], [2], [1], [1], [0, 0, 0, 1, 1, 1], [0], [0]>} : vector<2x8x8xf32>, vector<2x8x8xf32>, vector<2x8x8xf32> -> vector<2x8x8xf32>
    "tpu.trace_stop"() : () -> ()
    %cst_65 = arith.constant 0.353553385 : f32
    %107 = vector.broadcast %cst_65 : f32 to vector<2x8x8xf32>
    %108 = arith.mulf %106, %107 : vector<2x8x8xf32>
    %109 = arith.addf %108, %4 : vector<2x8x8xf32>
    %cst_66 = arith.constant dense<0xFF800000> : vector<2x8xf32>
    %110 = vector.multi_reduction <maximumf>, %109, %cst_66 [2] : vector<2x8x8xf32> to vector<2x8xf32>
    %111 = vector.shape_cast %110 : vector<2x8xf32> to vector<2x8x1xf32>
    %112 = vector.broadcast %111 : vector<2x8x1xf32> to vector<2x8x8xf32>
    %113 = arith.subf %109, %112 : vector<2x8x8xf32>
    %114 = math.exp %113 : vector<2x8x8xf32>
    %cst_67 = arith.constant dense<0.000000e+00> : vector<2x8xf32>
    %115 = vector.multi_reduction <add>, %114, %cst_67 [2] : vector<2x8x8xf32> to vector<2x8xf32>
    %116 = vector.shape_cast %115 : vector<2x8xf32> to vector<2x8x1xf32>
    %117 = tpu.reciprocal %116 {approx = true} : vector<2x8x1xf32> -> vector<2x8x1xf32>
    %118 = vector.broadcast %117 : vector<2x8x1xf32> to vector<2x8x8xf32>
    %119 = arith.mulf %114, %118 : vector<2x8x8xf32>
    %120 = vector.extract_strided_slice %29 {offsets = [0, 0, 24], sizes = [2, 8, 8], strides = [1, 1, 1]} : vector<2x8x32xf32> to vector<2x8x8xf32>
    "tpu.trace_start"() <{level = 10 : i32, message = "bqk,bkd->bqd"}> : () -> ()
    %cst_68 = arith.constant dense<0.000000e+00> : vector<2x8x8xf32>
    %121 = tpu.matmul %119, %120, %cst_68 {dimension_numbers = #tpu.dot_dimension_numbers<[2], [1], [1], [2], [0, 0, 0, 1, 1, 2], [0], [0]>} : vector<2x8x8xf32>, vector<2x8x8xf32>, vector<2x8x8xf32> -> vector<2x8x8xf32>
    "tpu.trace_stop"() : () -> ()
    %122 = vector.shape_cast %121 : vector<2x8x8xf32> to vector<16x8xf32>
    %c0_69 = arith.constant 0 : index
    %c24 = arith.constant 24 : index
    %c0_70 = arith.constant 0 : index
    %123 = vector.load %arg7[%c0_69, %c24, %c0_70] : memref<3x32x32xf32, #tpu.memory_space<vmem>>, vector<1x8x32xf32>
    %124 = vector.shape_cast %123 : vector<1x8x32xf32> to vector<8x32xf32>
    %cst_71 = arith.constant dense<0.000000e+00> : vector<16x32xf32>
    %125 = tpu.matmul %122, %124, %cst_71 {dimension_numbers = #tpu.dot_dimension_numbers<[1], [0], [0], [1], [0, 0, 1, 1], [], []>} : vector<16x8xf32>, vector<8x32xf32>, vector<16x32xf32> -> vector<16x32xf32>
    %126 = arith.addf %103, %125 : vector<16x32xf32>
    %127 = arith.addf %1, %126 : vector<16x32xf32>
    %c0_72 = arith.constant 0 : index
    %c0_73 = arith.constant 0 : index
    %c0_74 = arith.constant 0 : index
    %c0_75 = arith.constant 0 : index
    %128 = vector.load %arg17[%c0_72, %c0_73, %c0_74, %c0_75] : memref<3x3x1x32xf32, #tpu.memory_space<vmem>>, vector<1x1x1x32xf32>
    %129 = vector.shape_cast %128 : vector<1x1x1x32xf32> to vector<1x32xf32>
    %c0_76 = arith.constant 0 : index
    %c0_77 = arith.constant 0 : index
    %c0_78 = arith.constant 0 : index
    %c0_79 = arith.constant 0 : index
    %130 = vector.load %arg18[%c0_76, %c0_77, %c0_78, %c0_79] : memref<3x3x1x32xf32, #tpu.memory_space<vmem>>, vector<1x1x1x32xf32>
    %131 = vector.shape_cast %130 : vector<1x1x1x32xf32> to vector<1x32xf32>
    %cst_80 = arith.constant dense<0.000000e+00> : vector<16xf32>
    %132 = vector.multi_reduction <add>, %127, %cst_80 [1] : vector<16x32xf32> to vector<16xf32>
    %133 = vector.shape_cast %132 : vector<16xf32> to vector<16x1xf32>
    %cst_81 = arith.constant 3.200000e+01 : f32
    %134 = vector.broadcast %cst_81 : f32 to vector<16x1xf32>
    %135 = arith.divf %133, %134 : vector<16x1xf32>
    %136 = vector.broadcast %135 : vector<16x1xf32> to vector<16x32xf32>
    %137 = arith.subf %127, %136 : vector<16x32xf32>
    %138 = arith.mulf %137, %137 : vector<16x32xf32>
    %cst_82 = arith.constant dense<0.000000e+00> : vector<16xf32>
    %139 = vector.multi_reduction <add>, %138, %cst_82 [1] : vector<16x32xf32> to vector<16xf32>
    %140 = vector.shape_cast %139 : vector<16xf32> to vector<16x1xf32>
    %cst_83 = arith.constant 3.200000e+01 : f32
    %141 = vector.broadcast %cst_83 : f32 to vector<16x1xf32>
    %142 = arith.divf %140, %141 : vector<16x1xf32>
    %143 = vector.broadcast %135 : vector<16x1xf32> to vector<16x32xf32>
    %144 = arith.subf %127, %143 : vector<16x32xf32>
    %cst_84 = arith.constant 9.99999974E-6 : f32
    %145 = vector.broadcast %cst_84 : f32 to vector<16x1xf32>
    %146 = arith.addf %142, %145 : vector<16x1xf32>
    %147 = math.rsqrt %146 : vector<16x1xf32>
    %148 = vector.broadcast %147 : vector<16x1xf32> to vector<16x32xf32>
    %149 = arith.mulf %144, %148 : vector<16x32xf32>
    %150 = vector.broadcast %129 : vector<1x32xf32> to vector<16x32xf32>
    %151 = arith.mulf %149, %150 : vector<16x32xf32>
    %152 = vector.broadcast %131 : vector<1x32xf32> to vector<16x32xf32>
    %153 = arith.addf %151, %152 : vector<16x32xf32>
    %c0_85 = arith.constant 0 : index
    %c0_86 = arith.constant 0 : index
    %c0_87 = arith.constant 0 : index
    %c0_88 = arith.constant 0 : index
    %154 = vector.load %arg9[%c0_85, %c0_86, %c0_87, %c0_88] : memref<3x3x32x32xf32, #tpu.memory_space<vmem>>, vector<1x1x32x32xf32>
    %155 = vector.shape_cast %154 : vector<1x1x32x32xf32> to vector<32x32xf32>
    %cst_89 = arith.constant dense<0.000000e+00> : vector<16x32xf32>
    %156 = tpu.matmul %153, %155, %cst_89 {dimension_numbers = #tpu.dot_dimension_numbers<[1], [0], [0], [1], [0, 0, 1, 1], [], []>} : vector<16x32xf32>, vector<32x32xf32>, vector<16x32xf32> -> vector<16x32xf32>
    %c0_90 = arith.constant 0 : index
    %c0_91 = arith.constant 0 : index
    %c0_92 = arith.constant 0 : index
    %c0_93 = arith.constant 0 : index
    %157 = vector.load %arg10[%c0_90, %c0_91, %c0_92, %c0_93] : memref<3x3x1x32xf32, #tpu.memory_space<vmem>>, vector<1x1x1x32xf32>
    %158 = vector.shape_cast %157 : vector<1x1x1x32xf32> to vector<1x32xf32>
    %159 = vector.broadcast %158 : vector<1x32xf32> to vector<16x32xf32>
    %160 = arith.addf %156, %159 : vector<16x32xf32>
    %c0_94 = arith.constant 0 : index
    %c1_95 = arith.constant 1 : index
    %c0_96 = arith.constant 0 : index
    %c0_97 = arith.constant 0 : index
    %161 = vector.load %arg9[%c0_94, %c1_95, %c0_96, %c0_97] : memref<3x3x32x32xf32, #tpu.memory_space<vmem>>, vector<1x1x32x32xf32>
    %162 = vector.shape_cast %161 : vector<1x1x32x32xf32> to vector<32x32xf32>
    %cst_98 = arith.constant dense<0.000000e+00> : vector<32x32xf32>
    %163 = tpu.matmul %3, %162, %cst_98 {dimension_numbers = #tpu.dot_dimension_numbers<[1], [0], [0], [1], [0, 0, 1, 1], [], []>} : vector<32x32xf32>, vector<32x32xf32>, vector<32x32xf32> -> vector<32x32xf32>
    %c0_99 = arith.constant 0 : index
    %c1_100 = arith.constant 1 : index
    %c0_101 = arith.constant 0 : index
    %c0_102 = arith.constant 0 : index
    %164 = vector.load %arg10[%c0_99, %c1_100, %c0_101, %c0_102] : memref<3x3x1x32xf32, #tpu.memory_space<vmem>>, vector<1x1x1x32xf32>
    %165 = vector.shape_cast %164 : vector<1x1x1x32xf32> to vector<1x32xf32>
    %166 = vector.broadcast %165 : vector<1x32xf32> to vector<32x32xf32>
    %167 = arith.addf %163, %166 : vector<32x32xf32>
    %c0_103 = arith.constant 0 : index
    %c2_104 = arith.constant 2 : index
    %c0_105 = arith.constant 0 : index
    %c0_106 = arith.constant 0 : index
    %168 = vector.load %arg9[%c0_103, %c2_104, %c0_105, %c0_106] : memref<3x3x32x32xf32, #tpu.memory_space<vmem>>, vector<1x1x32x32xf32>
    %169 = vector.shape_cast %168 : vector<1x1x32x32xf32> to vector<32x32xf32>
    %cst_107 = arith.constant dense<0.000000e+00> : vector<32x32xf32>
    %170 = tpu.matmul %3, %169, %cst_107 {dimension_numbers = #tpu.dot_dimension_numbers<[1], [0], [0], [1], [0, 0, 1, 1], [], []>} : vector<32x32xf32>, vector<32x32xf32>, vector<32x32xf32> -> vector<32x32xf32>
    %c0_108 = arith.constant 0 : index
    %c2_109 = arith.constant 2 : index
    %c0_110 = arith.constant 0 : index
    %c0_111 = arith.constant 0 : index
    %171 = vector.load %arg10[%c0_108, %c2_109, %c0_110, %c0_111] : memref<3x3x1x32xf32, #tpu.memory_space<vmem>>, vector<1x1x1x32xf32>
    %172 = vector.shape_cast %171 : vector<1x1x1x32xf32> to vector<1x32xf32>
    %173 = vector.broadcast %172 : vector<1x32xf32> to vector<32x32xf32>
    %174 = arith.addf %170, %173 : vector<32x32xf32>
    %175 = vector.shape_cast %160 : vector<16x32xf32> to vector<2x8x32xf32>
    %176 = vector.shape_cast %167 : vector<32x32xf32> to vector<2x16x32xf32>
    %177 = vector.shape_cast %174 : vector<32x32xf32> to vector<2x16x32xf32>
    %cst_112 = arith.constant 0.000000e+00 : f32
    %178 = vector.broadcast %cst_112 : f32 to vector<16x32xf32>
    %c0_113 = arith.constant 0 : index
    %c0_114 = arith.constant 0 : index
    %c0_115 = arith.constant 0 : index
    %179 = vector.load %arg12[%c0_113, %c0_114, %c0_115] : memref<3x1x32xf32, #tpu.memory_space<vmem>>, vector<1x1x32xf32>
    %180 = vector.shape_cast %179 : vector<1x1x32xf32> to vector<1x32xf32>
    %181 = vector.broadcast %180 : vector<1x32xf32> to vector<16x32xf32>
    %182 = arith.addf %178, %181 : vector<16x32xf32>
    %183 = vector.extract_strided_slice %175 {offsets = [0, 0, 0], sizes = [2, 8, 8], strides = [1, 1, 1]} : vector<2x8x32xf32> to vector<2x8x8xf32>
    %184 = vector.extract_strided_slice %176 {offsets = [0, 0, 0], sizes = [2, 16, 8], strides = [1, 1, 1]} : vector<2x16x32xf32> to vector<2x16x8xf32>
    "tpu.trace_start"() <{level = 10 : i32, message = "bqd,bkd->bqk"}> : () -> ()
    %cst_116 = arith.constant dense<0.000000e+00> : vector<2x8x16xf32>
    %185 = tpu.matmul %183, %184, %cst_116 {dimension_numbers = #tpu.dot_dimension_numbers<[2], [2], [1], [1], [0, 0, 0, 1, 1, 1], [0], [0]>} : vector<2x8x8xf32>, vector<2x16x8xf32>, vector<2x8x16xf32> -> vector<2x8x16xf32>
    "tpu.trace_stop"() : () -> ()
    %cst_117 = arith.constant 0.353553385 : f32
    %186 = vector.broadcast %cst_117 : f32 to vector<2x8x16xf32>
    %187 = arith.mulf %185, %186 : vector<2x8x16xf32>
    %188 = vector.broadcast %5 : vector<2x1x16xf32> to vector<2x8x16xf32>
    %189 = arith.addf %187, %188 : vector<2x8x16xf32>
    %cst_118 = arith.constant dense<0xFF800000> : vector<2x8xf32>
    %190 = vector.multi_reduction <maximumf>, %189, %cst_118 [2] : vector<2x8x16xf32> to vector<2x8xf32>
    %191 = vector.shape_cast %190 : vector<2x8xf32> to vector<2x8x1xf32>
    %192 = vector.broadcast %191 : vector<2x8x1xf32> to vector<2x8x16xf32>
    %193 = arith.subf %189, %192 : vector<2x8x16xf32>
    %194 = math.exp %193 : vector<2x8x16xf32>
    %cst_119 = arith.constant dense<0.000000e+00> : vector<2x8xf32>
    %195 = vector.multi_reduction <add>, %194, %cst_119 [2] : vector<2x8x16xf32> to vector<2x8xf32>
    %196 = vector.shape_cast %195 : vector<2x8xf32> to vector<2x8x1xf32>
    %197 = tpu.reciprocal %196 {approx = true} : vector<2x8x1xf32> -> vector<2x8x1xf32>
    %198 = vector.broadcast %197 : vector<2x8x1xf32> to vector<2x8x16xf32>
    %199 = arith.mulf %194, %198 : vector<2x8x16xf32>
    %200 = vector.extract_strided_slice %177 {offsets = [0, 0, 0], sizes = [2, 16, 8], strides = [1, 1, 1]} : vector<2x16x32xf32> to vector<2x16x8xf32>
    "tpu.trace_start"() <{level = 10 : i32, message = "bqk,bkd->bqd"}> : () -> ()
    %cst_120 = arith.constant dense<0.000000e+00> : vector<2x8x8xf32>
    %201 = tpu.matmul %199, %200, %cst_120 {dimension_numbers = #tpu.dot_dimension_numbers<[2], [1], [1], [2], [0, 0, 0, 1, 1, 2], [0], [0]>} : vector<2x8x16xf32>, vector<2x16x8xf32>, vector<2x8x8xf32> -> vector<2x8x8xf32>
    "tpu.trace_stop"() : () -> ()
    %202 = vector.shape_cast %201 : vector<2x8x8xf32> to vector<16x8xf32>
    %c0_121 = arith.constant 0 : index
    %c0_122 = arith.constant 0 : index
    %c0_123 = arith.constant 0 : index
    %203 = vector.load %arg11[%c0_121, %c0_122, %c0_123] : memref<3x32x32xf32, #tpu.memory_space<vmem>>, vector<1x8x32xf32>
    %204 = vector.shape_cast %203 : vector<1x8x32xf32> to vector<8x32xf32>
    %cst_124 = arith.constant dense<0.000000e+00> : vector<16x32xf32>
    %205 = tpu.matmul %202, %204, %cst_124 {dimension_numbers = #tpu.dot_dimension_numbers<[1], [0], [0], [1], [0, 0, 1, 1], [], []>} : vector<16x8xf32>, vector<8x32xf32>, vector<16x32xf32> -> vector<16x32xf32>
    %206 = arith.addf %182, %205 : vector<16x32xf32>
    %207 = vector.extract_strided_slice %175 {offsets = [0, 0, 8], sizes = [2, 8, 8], strides = [1, 1, 1]} : vector<2x8x32xf32> to vector<2x8x8xf32>
    %208 = vector.extract_strided_slice %176 {offsets = [0, 0, 8], sizes = [2, 16, 8], strides = [1, 1, 1]} : vector<2x16x32xf32> to vector<2x16x8xf32>
    "tpu.trace_start"() <{level = 10 : i32, message = "bqd,bkd->bqk"}> : () -> ()
    %cst_125 = arith.constant dense<0.000000e+00> : vector<2x8x16xf32>
    %209 = tpu.matmul %207, %208, %cst_125 {dimension_numbers = #tpu.dot_dimension_numbers<[2], [2], [1], [1], [0, 0, 0, 1, 1, 1], [0], [0]>} : vector<2x8x8xf32>, vector<2x16x8xf32>, vector<2x8x16xf32> -> vector<2x8x16xf32>
    "tpu.trace_stop"() : () -> ()
    %cst_126 = arith.constant 0.353553385 : f32
    %210 = vector.broadcast %cst_126 : f32 to vector<2x8x16xf32>
    %211 = arith.mulf %209, %210 : vector<2x8x16xf32>
    %212 = vector.broadcast %5 : vector<2x1x16xf32> to vector<2x8x16xf32>
    %213 = arith.addf %211, %212 : vector<2x8x16xf32>
    %cst_127 = arith.constant dense<0xFF800000> : vector<2x8xf32>
    %214 = vector.multi_reduction <maximumf>, %213, %cst_127 [2] : vector<2x8x16xf32> to vector<2x8xf32>
    %215 = vector.shape_cast %214 : vector<2x8xf32> to vector<2x8x1xf32>
    %216 = vector.broadcast %215 : vector<2x8x1xf32> to vector<2x8x16xf32>
    %217 = arith.subf %213, %216 : vector<2x8x16xf32>
    %218 = math.exp %217 : vector<2x8x16xf32>
    %cst_128 = arith.constant dense<0.000000e+00> : vector<2x8xf32>
    %219 = vector.multi_reduction <add>, %218, %cst_128 [2] : vector<2x8x16xf32> to vector<2x8xf32>
    %220 = vector.shape_cast %219 : vector<2x8xf32> to vector<2x8x1xf32>
    %221 = tpu.reciprocal %220 {approx = true} : vector<2x8x1xf32> -> vector<2x8x1xf32>
    %222 = vector.broadcast %221 : vector<2x8x1xf32> to vector<2x8x16xf32>
    %223 = arith.mulf %218, %222 : vector<2x8x16xf32>
    %224 = vector.extract_strided_slice %177 {offsets = [0, 0, 8], sizes = [2, 16, 8], strides = [1, 1, 1]} : vector<2x16x32xf32> to vector<2x16x8xf32>
    "tpu.trace_start"() <{level = 10 : i32, message = "bqk,bkd->bqd"}> : () -> ()
    %cst_129 = arith.constant dense<0.000000e+00> : vector<2x8x8xf32>
    %225 = tpu.matmul %223, %224, %cst_129 {dimension_numbers = #tpu.dot_dimension_numbers<[2], [1], [1], [2], [0, 0, 0, 1, 1, 2], [0], [0]>} : vector<2x8x16xf32>, vector<2x16x8xf32>, vector<2x8x8xf32> -> vector<2x8x8xf32>
    "tpu.trace_stop"() : () -> ()
    %226 = vector.shape_cast %225 : vector<2x8x8xf32> to vector<16x8xf32>
    %c0_130 = arith.constant 0 : index
    %c8_131 = arith.constant 8 : index
    %c0_132 = arith.constant 0 : index
    %227 = vector.load %arg11[%c0_130, %c8_131, %c0_132] : memref<3x32x32xf32, #tpu.memory_space<vmem>>, vector<1x8x32xf32>
    %228 = vector.shape_cast %227 : vector<1x8x32xf32> to vector<8x32xf32>
    %cst_133 = arith.constant dense<0.000000e+00> : vector<16x32xf32>
    %229 = tpu.matmul %226, %228, %cst_133 {dimension_numbers = #tpu.dot_dimension_numbers<[1], [0], [0], [1], [0, 0, 1, 1], [], []>} : vector<16x8xf32>, vector<8x32xf32>, vector<16x32xf32> -> vector<16x32xf32>
    %230 = arith.addf %206, %229 : vector<16x32xf32>
    %231 = vector.extract_strided_slice %175 {offsets = [0, 0, 16], sizes = [2, 8, 8], strides = [1, 1, 1]} : vector<2x8x32xf32> to vector<2x8x8xf32>
    %232 = vector.extract_strided_slice %176 {offsets = [0, 0, 16], sizes = [2, 16, 8], strides = [1, 1, 1]} : vector<2x16x32xf32> to vector<2x16x8xf32>
    "tpu.trace_start"() <{level = 10 : i32, message = "bqd,bkd->bqk"}> : () -> ()
    %cst_134 = arith.constant dense<0.000000e+00> : vector<2x8x16xf32>
    %233 = tpu.matmul %231, %232, %cst_134 {dimension_numbers = #tpu.dot_dimension_numbers<[2], [2], [1], [1], [0, 0, 0, 1, 1, 1], [0], [0]>} : vector<2x8x8xf32>, vector<2x16x8xf32>, vector<2x8x16xf32> -> vector<2x8x16xf32>
    "tpu.trace_stop"() : () -> ()
    %cst_135 = arith.constant 0.353553385 : f32
    %234 = vector.broadcast %cst_135 : f32 to vector<2x8x16xf32>
    %235 = arith.mulf %233, %234 : vector<2x8x16xf32>
    %236 = vector.broadcast %5 : vector<2x1x16xf32> to vector<2x8x16xf32>
    %237 = arith.addf %235, %236 : vector<2x8x16xf32>
    %cst_136 = arith.constant dense<0xFF800000> : vector<2x8xf32>
    %238 = vector.multi_reduction <maximumf>, %237, %cst_136 [2] : vector<2x8x16xf32> to vector<2x8xf32>
    %239 = vector.shape_cast %238 : vector<2x8xf32> to vector<2x8x1xf32>
    %240 = vector.broadcast %239 : vector<2x8x1xf32> to vector<2x8x16xf32>
    %241 = arith.subf %237, %240 : vector<2x8x16xf32>
    %242 = math.exp %241 : vector<2x8x16xf32>
    %cst_137 = arith.constant dense<0.000000e+00> : vector<2x8xf32>
    %243 = vector.multi_reduction <add>, %242, %cst_137 [2] : vector<2x8x16xf32> to vector<2x8xf32>
    %244 = vector.shape_cast %243 : vector<2x8xf32> to vector<2x8x1xf32>
    %245 = tpu.reciprocal %244 {approx = true} : vector<2x8x1xf32> -> vector<2x8x1xf32>
    %246 = vector.broadcast %245 : vector<2x8x1xf32> to vector<2x8x16xf32>
    %247 = arith.mulf %242, %246 : vector<2x8x16xf32>
    %248 = vector.extract_strided_slice %177 {offsets = [0, 0, 16], sizes = [2, 16, 8], strides = [1, 1, 1]} : vector<2x16x32xf32> to vector<2x16x8xf32>
    "tpu.trace_start"() <{level = 10 : i32, message = "bqk,bkd->bqd"}> : () -> ()
    %cst_138 = arith.constant dense<0.000000e+00> : vector<2x8x8xf32>
    %249 = tpu.matmul %247, %248, %cst_138 {dimension_numbers = #tpu.dot_dimension_numbers<[2], [1], [1], [2], [0, 0, 0, 1, 1, 2], [0], [0]>} : vector<2x8x16xf32>, vector<2x16x8xf32>, vector<2x8x8xf32> -> vector<2x8x8xf32>
    "tpu.trace_stop"() : () -> ()
    %250 = vector.shape_cast %249 : vector<2x8x8xf32> to vector<16x8xf32>
    %c0_139 = arith.constant 0 : index
    %c16_140 = arith.constant 16 : index
    %c0_141 = arith.constant 0 : index
    %251 = vector.load %arg11[%c0_139, %c16_140, %c0_141] : memref<3x32x32xf32, #tpu.memory_space<vmem>>, vector<1x8x32xf32>
    %252 = vector.shape_cast %251 : vector<1x8x32xf32> to vector<8x32xf32>
    %cst_142 = arith.constant dense<0.000000e+00> : vector<16x32xf32>
    %253 = tpu.matmul %250, %252, %cst_142 {dimension_numbers = #tpu.dot_dimension_numbers<[1], [0], [0], [1], [0, 0, 1, 1], [], []>} : vector<16x8xf32>, vector<8x32xf32>, vector<16x32xf32> -> vector<16x32xf32>
    %254 = arith.addf %230, %253 : vector<16x32xf32>
    %255 = vector.extract_strided_slice %175 {offsets = [0, 0, 24], sizes = [2, 8, 8], strides = [1, 1, 1]} : vector<2x8x32xf32> to vector<2x8x8xf32>
    %256 = vector.extract_strided_slice %176 {offsets = [0, 0, 24], sizes = [2, 16, 8], strides = [1, 1, 1]} : vector<2x16x32xf32> to vector<2x16x8xf32>
    "tpu.trace_start"() <{level = 10 : i32, message = "bqd,bkd->bqk"}> : () -> ()
    %cst_143 = arith.constant dense<0.000000e+00> : vector<2x8x16xf32>
    %257 = tpu.matmul %255, %256, %cst_143 {dimension_numbers = #tpu.dot_dimension_numbers<[2], [2], [1], [1], [0, 0, 0, 1, 1, 1], [0], [0]>} : vector<2x8x8xf32>, vector<2x16x8xf32>, vector<2x8x16xf32> -> vector<2x8x16xf32>
    "tpu.trace_stop"() : () -> ()
    %cst_144 = arith.constant 0.353553385 : f32
    %258 = vector.broadcast %cst_144 : f32 to vector<2x8x16xf32>
    %259 = arith.mulf %257, %258 : vector<2x8x16xf32>
    %260 = vector.broadcast %5 : vector<2x1x16xf32> to vector<2x8x16xf32>
    %261 = arith.addf %259, %260 : vector<2x8x16xf32>
    %cst_145 = arith.constant dense<0xFF800000> : vector<2x8xf32>
    %262 = vector.multi_reduction <maximumf>, %261, %cst_145 [2] : vector<2x8x16xf32> to vector<2x8xf32>
    %263 = vector.shape_cast %262 : vector<2x8xf32> to vector<2x8x1xf32>
    %264 = vector.broadcast %263 : vector<2x8x1xf32> to vector<2x8x16xf32>
    %265 = arith.subf %261, %264 : vector<2x8x16xf32>
    %266 = math.exp %265 : vector<2x8x16xf32>
    %cst_146 = arith.constant dense<0.000000e+00> : vector<2x8xf32>
    %267 = vector.multi_reduction <add>, %266, %cst_146 [2] : vector<2x8x16xf32> to vector<2x8xf32>
    %268 = vector.shape_cast %267 : vector<2x8xf32> to vector<2x8x1xf32>
    %269 = tpu.reciprocal %268 {approx = true} : vector<2x8x1xf32> -> vector<2x8x1xf32>
    %270 = vector.broadcast %269 : vector<2x8x1xf32> to vector<2x8x16xf32>
    %271 = arith.mulf %266, %270 : vector<2x8x16xf32>
    %272 = vector.extract_strided_slice %177 {offsets = [0, 0, 24], sizes = [2, 16, 8], strides = [1, 1, 1]} : vector<2x16x32xf32> to vector<2x16x8xf32>
    "tpu.trace_start"() <{level = 10 : i32, message = "bqk,bkd->bqd"}> : () -> ()
    %cst_147 = arith.constant dense<0.000000e+00> : vector<2x8x8xf32>
    %273 = tpu.matmul %271, %272, %cst_147 {dimension_numbers = #tpu.dot_dimension_numbers<[2], [1], [1], [2], [0, 0, 0, 1, 1, 2], [0], [0]>} : vector<2x8x16xf32>, vector<2x16x8xf32>, vector<2x8x8xf32> -> vector<2x8x8xf32>
    "tpu.trace_stop"() : () -> ()
    %274 = vector.shape_cast %273 : vector<2x8x8xf32> to vector<16x8xf32>
    %c0_148 = arith.constant 0 : index
    %c24_149 = arith.constant 24 : index
    %c0_150 = arith.constant 0 : index
    %275 = vector.load %arg11[%c0_148, %c24_149, %c0_150] : memref<3x32x32xf32, #tpu.memory_space<vmem>>, vector<1x8x32xf32>
    %276 = vector.shape_cast %275 : vector<1x8x32xf32> to vector<8x32xf32>
    %cst_151 = arith.constant dense<0.000000e+00> : vector<16x32xf32>
    %277 = tpu.matmul %274, %276, %cst_151 {dimension_numbers = #tpu.dot_dimension_numbers<[1], [0], [0], [1], [0, 0, 1, 1], [], []>} : vector<16x8xf32>, vector<8x32xf32>, vector<16x32xf32> -> vector<16x32xf32>
    %278 = arith.addf %254, %277 : vector<16x32xf32>
    %279 = arith.addf %153, %278 : vector<16x32xf32>
    %c0_152 = arith.constant 0 : index
    %c1_153 = arith.constant 1 : index
    %c0_154 = arith.constant 0 : index
    %c0_155 = arith.constant 0 : index
    %280 = vector.load %arg17[%c0_152, %c1_153, %c0_154, %c0_155] : memref<3x3x1x32xf32, #tpu.memory_space<vmem>>, vector<1x1x1x32xf32>
    %281 = vector.shape_cast %280 : vector<1x1x1x32xf32> to vector<1x32xf32>
    %c0_156 = arith.constant 0 : index
    %c1_157 = arith.constant 1 : index
    %c0_158 = arith.constant 0 : index
    %c0_159 = arith.constant 0 : index
    %282 = vector.load %arg18[%c0_156, %c1_157, %c0_158, %c0_159] : memref<3x3x1x32xf32, #tpu.memory_space<vmem>>, vector<1x1x1x32xf32>
    %283 = vector.shape_cast %282 : vector<1x1x1x32xf32> to vector<1x32xf32>
    %cst_160 = arith.constant dense<0.000000e+00> : vector<16xf32>
    %284 = vector.multi_reduction <add>, %279, %cst_160 [1] : vector<16x32xf32> to vector<16xf32>
    %285 = vector.shape_cast %284 : vector<16xf32> to vector<16x1xf32>
    %cst_161 = arith.constant 3.200000e+01 : f32
    %286 = vector.broadcast %cst_161 : f32 to vector<16x1xf32>
    %287 = arith.divf %285, %286 : vector<16x1xf32>
    %288 = vector.broadcast %287 : vector<16x1xf32> to vector<16x32xf32>
    %289 = arith.subf %279, %288 : vector<16x32xf32>
    %290 = arith.mulf %289, %289 : vector<16x32xf32>
    %cst_162 = arith.constant dense<0.000000e+00> : vector<16xf32>
    %291 = vector.multi_reduction <add>, %290, %cst_162 [1] : vector<16x32xf32> to vector<16xf32>
    %292 = vector.shape_cast %291 : vector<16xf32> to vector<16x1xf32>
    %cst_163 = arith.constant 3.200000e+01 : f32
    %293 = vector.broadcast %cst_163 : f32 to vector<16x1xf32>
    %294 = arith.divf %292, %293 : vector<16x1xf32>
    %295 = vector.broadcast %287 : vector<16x1xf32> to vector<16x32xf32>
    %296 = arith.subf %279, %295 : vector<16x32xf32>
    %cst_164 = arith.constant 9.99999974E-6 : f32
    %297 = vector.broadcast %cst_164 : f32 to vector<16x1xf32>
    %298 = arith.addf %294, %297 : vector<16x1xf32>
    %299 = math.rsqrt %298 : vector<16x1xf32>
    %300 = vector.broadcast %299 : vector<16x1xf32> to vector<16x32xf32>
    %301 = arith.mulf %296, %300 : vector<16x32xf32>
    %302 = vector.broadcast %281 : vector<1x32xf32> to vector<16x32xf32>
    %303 = arith.mulf %301, %302 : vector<16x32xf32>
    %304 = vector.broadcast %283 : vector<1x32xf32> to vector<16x32xf32>
    %305 = arith.addf %303, %304 : vector<16x32xf32>
    %c0_165 = arith.constant 0 : index
    %c0_166 = arith.constant 0 : index
    %c0_167 = arith.constant 0 : index
    %306 = vector.load %arg13[%c0_165, %c0_166, %c0_167] : memref<3x32x128xf32, #tpu.memory_space<vmem>>, vector<1x32x128xf32>
    %307 = vector.shape_cast %306 : vector<1x32x128xf32> to vector<32x128xf32>
    %cst_168 = arith.constant dense<0.000000e+00> : vector<16x128xf32>
    %308 = tpu.matmul %305, %307, %cst_168 {dimension_numbers = #tpu.dot_dimension_numbers<[1], [0], [0], [1], [0, 0, 1, 1], [], []>} : vector<16x32xf32>, vector<32x128xf32>, vector<16x128xf32> -> vector<16x128xf32>
    %c0_169 = arith.constant 0 : index
    %c0_170 = arith.constant 0 : index
    %c0_171 = arith.constant 0 : index
    %309 = vector.load %arg14[%c0_169, %c0_170, %c0_171] : memref<3x1x128xf32, #tpu.memory_space<vmem>>, vector<1x1x128xf32>
    %310 = vector.shape_cast %309 : vector<1x1x128xf32> to vector<1x128xf32>
    %311 = vector.broadcast %310 : vector<1x128xf32> to vector<16x128xf32>
    %312 = arith.addf %308, %311 : vector<16x128xf32>
    %cst_172 = arith.constant 0.000000e+00 : f32
    %313 = vector.broadcast %cst_172 : f32 to vector<16x128xf32>
    %314 = arith.maximumf %312, %313 : vector<16x128xf32>
    %c0_173 = arith.constant 0 : index
    %c0_174 = arith.constant 0 : index
    %c0_175 = arith.constant 0 : index
    %315 = vector.load %arg15[%c0_173, %c0_174, %c0_175] : memref<3x128x32xf32, #tpu.memory_space<vmem>>, vector<1x128x32xf32>
    %316 = vector.shape_cast %315 : vector<1x128x32xf32> to vector<128x32xf32>
    %cst_176 = arith.constant dense<0.000000e+00> : vector<16x32xf32>
    %317 = tpu.matmul %314, %316, %cst_176 {dimension_numbers = #tpu.dot_dimension_numbers<[1], [0], [0], [1], [0, 0, 1, 1], [], []>} : vector<16x128xf32>, vector<128x32xf32>, vector<16x32xf32> -> vector<16x32xf32>
    %318 = arith.addf %305, %317 : vector<16x32xf32>
    %c0_177 = arith.constant 0 : index
    %c0_178 = arith.constant 0 : index
    %c0_179 = arith.constant 0 : index
    %319 = vector.load %arg16[%c0_177, %c0_178, %c0_179] : memref<3x1x32xf32, #tpu.memory_space<vmem>>, vector<1x1x32xf32>
    %320 = vector.shape_cast %319 : vector<1x1x32xf32> to vector<1x32xf32>
    %321 = vector.broadcast %320 : vector<1x32xf32> to vector<16x32xf32>
    %322 = arith.addf %318, %321 : vector<16x32xf32>
    %c0_180 = arith.constant 0 : index
    %c2_181 = arith.constant 2 : index
    %c0_182 = arith.constant 0 : index
    %c0_183 = arith.constant 0 : index
    %323 = vector.load %arg17[%c0_180, %c2_181, %c0_182, %c0_183] : memref<3x3x1x32xf32, #tpu.memory_space<vmem>>, vector<1x1x1x32xf32>
    %324 = vector.shape_cast %323 : vector<1x1x1x32xf32> to vector<1x32xf32>
    %c0_184 = arith.constant 0 : index
    %c2_185 = arith.constant 2 : index
    %c0_186 = arith.constant 0 : index
    %c0_187 = arith.constant 0 : index
    %325 = vector.load %arg18[%c0_184, %c2_185, %c0_186, %c0_187] : memref<3x3x1x32xf32, #tpu.memory_space<vmem>>, vector<1x1x1x32xf32>
    %326 = vector.shape_cast %325 : vector<1x1x1x32xf32> to vector<1x32xf32>
    %cst_188 = arith.constant dense<0.000000e+00> : vector<16xf32>
    %327 = vector.multi_reduction <add>, %322, %cst_188 [1] : vector<16x32xf32> to vector<16xf32>
    %328 = vector.shape_cast %327 : vector<16xf32> to vector<16x1xf32>
    %cst_189 = arith.constant 3.200000e+01 : f32
    %329 = vector.broadcast %cst_189 : f32 to vector<16x1xf32>
    %330 = arith.divf %328, %329 : vector<16x1xf32>
    %331 = vector.broadcast %330 : vector<16x1xf32> to vector<16x32xf32>
    %332 = arith.subf %322, %331 : vector<16x32xf32>
    %333 = arith.mulf %332, %332 : vector<16x32xf32>
    %cst_190 = arith.constant dense<0.000000e+00> : vector<16xf32>
    %334 = vector.multi_reduction <add>, %333, %cst_190 [1] : vector<16x32xf32> to vector<16xf32>
    %335 = vector.shape_cast %334 : vector<16xf32> to vector<16x1xf32>
    %cst_191 = arith.constant 3.200000e+01 : f32
    %336 = vector.broadcast %cst_191 : f32 to vector<16x1xf32>
    %337 = arith.divf %335, %336 : vector<16x1xf32>
    %338 = vector.broadcast %330 : vector<16x1xf32> to vector<16x32xf32>
    %339 = arith.subf %322, %338 : vector<16x32xf32>
    %cst_192 = arith.constant 9.99999974E-6 : f32
    %340 = vector.broadcast %cst_192 : f32 to vector<16x1xf32>
    %341 = arith.addf %337, %340 : vector<16x1xf32>
    %342 = math.rsqrt %341 : vector<16x1xf32>
    %343 = vector.broadcast %342 : vector<16x1xf32> to vector<16x32xf32>
    %344 = arith.mulf %339, %343 : vector<16x32xf32>
    %345 = vector.broadcast %324 : vector<1x32xf32> to vector<16x32xf32>
    %346 = arith.mulf %344, %345 : vector<16x32xf32>
    %347 = vector.broadcast %326 : vector<1x32xf32> to vector<16x32xf32>
    %348 = arith.addf %346, %347 : vector<16x32xf32>
    %c1_193 = arith.constant 1 : index
    %c0_194 = arith.constant 0 : index
    %c0_195 = arith.constant 0 : index
    %c0_196 = arith.constant 0 : index
    %349 = vector.load %arg5[%c1_193, %c0_194, %c0_195, %c0_196] : memref<3x3x32x32xf32, #tpu.memory_space<vmem>>, vector<1x1x32x32xf32>
    %350 = vector.shape_cast %349 : vector<1x1x32x32xf32> to vector<32x32xf32>
    %cst_197 = arith.constant dense<0.000000e+00> : vector<16x32xf32>
    %351 = tpu.matmul %348, %350, %cst_197 {dimension_numbers = #tpu.dot_dimension_numbers<[1], [0], [0], [1], [0, 0, 1, 1], [], []>} : vector<16x32xf32>, vector<32x32xf32>, vector<16x32xf32> -> vector<16x32xf32>
    %c1_198 = arith.constant 1 : index
    %c0_199 = arith.constant 0 : index
    %c0_200 = arith.constant 0 : index
    %c0_201 = arith.constant 0 : index
    %352 = vector.load %arg6[%c1_198, %c0_199, %c0_200, %c0_201] : memref<3x3x1x32xf32, #tpu.memory_space<vmem>>, vector<1x1x1x32xf32>
    %353 = vector.shape_cast %352 : vector<1x1x1x32xf32> to vector<1x32xf32>
    %354 = vector.broadcast %353 : vector<1x32xf32> to vector<16x32xf32>
    %355 = arith.addf %351, %354 : vector<16x32xf32>
    %c1_202 = arith.constant 1 : index
    %c1_203 = arith.constant 1 : index
    %c0_204 = arith.constant 0 : index
    %c0_205 = arith.constant 0 : index
    %356 = vector.load %arg5[%c1_202, %c1_203, %c0_204, %c0_205] : memref<3x3x32x32xf32, #tpu.memory_space<vmem>>, vector<1x1x32x32xf32>
    %357 = vector.shape_cast %356 : vector<1x1x32x32xf32> to vector<32x32xf32>
    %cst_206 = arith.constant dense<0.000000e+00> : vector<16x32xf32>
    %358 = tpu.matmul %348, %357, %cst_206 {dimension_numbers = #tpu.dot_dimension_numbers<[1], [0], [0], [1], [0, 0, 1, 1], [], []>} : vector<16x32xf32>, vector<32x32xf32>, vector<16x32xf32> -> vector<16x32xf32>
    %c1_207 = arith.constant 1 : index
    %c1_208 = arith.constant 1 : index
    %c0_209 = arith.constant 0 : index
    %c0_210 = arith.constant 0 : index
    %359 = vector.load %arg6[%c1_207, %c1_208, %c0_209, %c0_210] : memref<3x3x1x32xf32, #tpu.memory_space<vmem>>, vector<1x1x1x32xf32>
    %360 = vector.shape_cast %359 : vector<1x1x1x32xf32> to vector<1x32xf32>
    %361 = vector.broadcast %360 : vector<1x32xf32> to vector<16x32xf32>
    %362 = arith.addf %358, %361 : vector<16x32xf32>
    %c1_211 = arith.constant 1 : index
    %c2_212 = arith.constant 2 : index
    %c0_213 = arith.constant 0 : index
    %c0_214 = arith.constant 0 : index
    %363 = vector.load %arg5[%c1_211, %c2_212, %c0_213, %c0_214] : memref<3x3x32x32xf32, #tpu.memory_space<vmem>>, vector<1x1x32x32xf32>
    %364 = vector.shape_cast %363 : vector<1x1x32x32xf32> to vector<32x32xf32>
    %cst_215 = arith.constant dense<0.000000e+00> : vector<16x32xf32>
    %365 = tpu.matmul %348, %364, %cst_215 {dimension_numbers = #tpu.dot_dimension_numbers<[1], [0], [0], [1], [0, 0, 1, 1], [], []>} : vector<16x32xf32>, vector<32x32xf32>, vector<16x32xf32> -> vector<16x32xf32>
    %c1_216 = arith.constant 1 : index
    %c2_217 = arith.constant 2 : index
    %c0_218 = arith.constant 0 : index
    %c0_219 = arith.constant 0 : index
    %366 = vector.load %arg6[%c1_216, %c2_217, %c0_218, %c0_219] : memref<3x3x1x32xf32, #tpu.memory_space<vmem>>, vector<1x1x1x32xf32>
    %367 = vector.shape_cast %366 : vector<1x1x1x32xf32> to vector<1x32xf32>
    %368 = vector.broadcast %367 : vector<1x32xf32> to vector<16x32xf32>
    %369 = arith.addf %365, %368 : vector<16x32xf32>
    %370 = vector.shape_cast %355 : vector<16x32xf32> to vector<2x8x32xf32>
    %371 = vector.shape_cast %362 : vector<16x32xf32> to vector<2x8x32xf32>
    %372 = vector.shape_cast %369 : vector<16x32xf32> to vector<2x8x32xf32>
    %cst_220 = arith.constant 0.000000e+00 : f32
    %373 = vector.broadcast %cst_220 : f32 to vector<16x32xf32>
    %c1_221 = arith.constant 1 : index
    %c0_222 = arith.constant 0 : index
    %c0_223 = arith.constant 0 : index
    %374 = vector.load %arg8[%c1_221, %c0_222, %c0_223] : memref<3x1x32xf32, #tpu.memory_space<vmem>>, vector<1x1x32xf32>
    %375 = vector.shape_cast %374 : vector<1x1x32xf32> to vector<1x32xf32>
    %376 = vector.broadcast %375 : vector<1x32xf32> to vector<16x32xf32>
    %377 = arith.addf %373, %376 : vector<16x32xf32>
    %378 = vector.extract_strided_slice %370 {offsets = [0, 0, 0], sizes = [2, 8, 8], strides = [1, 1, 1]} : vector<2x8x32xf32> to vector<2x8x8xf32>
    %379 = vector.extract_strided_slice %371 {offsets = [0, 0, 0], sizes = [2, 8, 8], strides = [1, 1, 1]} : vector<2x8x32xf32> to vector<2x8x8xf32>
    "tpu.trace_start"() <{level = 10 : i32, message = "bqd,bkd->bqk"}> : () -> ()
    %cst_224 = arith.constant dense<0.000000e+00> : vector<2x8x8xf32>
    %380 = tpu.matmul %378, %379, %cst_224 {dimension_numbers = #tpu.dot_dimension_numbers<[2], [2], [1], [1], [0, 0, 0, 1, 1, 1], [0], [0]>} : vector<2x8x8xf32>, vector<2x8x8xf32>, vector<2x8x8xf32> -> vector<2x8x8xf32>
    "tpu.trace_stop"() : () -> ()
    %cst_225 = arith.constant 0.353553385 : f32
    %381 = vector.broadcast %cst_225 : f32 to vector<2x8x8xf32>
    %382 = arith.mulf %380, %381 : vector<2x8x8xf32>
    %383 = arith.addf %382, %4 : vector<2x8x8xf32>
    %cst_226 = arith.constant dense<0xFF800000> : vector<2x8xf32>
    %384 = vector.multi_reduction <maximumf>, %383, %cst_226 [2] : vector<2x8x8xf32> to vector<2x8xf32>
    %385 = vector.shape_cast %384 : vector<2x8xf32> to vector<2x8x1xf32>
    %386 = vector.broadcast %385 : vector<2x8x1xf32> to vector<2x8x8xf32>
    %387 = arith.subf %383, %386 : vector<2x8x8xf32>
    %388 = math.exp %387 : vector<2x8x8xf32>
    %cst_227 = arith.constant dense<0.000000e+00> : vector<2x8xf32>
    %389 = vector.multi_reduction <add>, %388, %cst_227 [2] : vector<2x8x8xf32> to vector<2x8xf32>
    %390 = vector.shape_cast %389 : vector<2x8xf32> to vector<2x8x1xf32>
    %391 = tpu.reciprocal %390 {approx = true} : vector<2x8x1xf32> -> vector<2x8x1xf32>
    %392 = vector.broadcast %391 : vector<2x8x1xf32> to vector<2x8x8xf32>
    %393 = arith.mulf %388, %392 : vector<2x8x8xf32>
    %394 = vector.extract_strided_slice %372 {offsets = [0, 0, 0], sizes = [2, 8, 8], strides = [1, 1, 1]} : vector<2x8x32xf32> to vector<2x8x8xf32>
    "tpu.trace_start"() <{level = 10 : i32, message = "bqk,bkd->bqd"}> : () -> ()
    %cst_228 = arith.constant dense<0.000000e+00> : vector<2x8x8xf32>
    %395 = tpu.matmul %393, %394, %cst_228 {dimension_numbers = #tpu.dot_dimension_numbers<[2], [1], [1], [2], [0, 0, 0, 1, 1, 2], [0], [0]>} : vector<2x8x8xf32>, vector<2x8x8xf32>, vector<2x8x8xf32> -> vector<2x8x8xf32>
    "tpu.trace_stop"() : () -> ()
    %396 = vector.shape_cast %395 : vector<2x8x8xf32> to vector<16x8xf32>
    %c1_229 = arith.constant 1 : index
    %c0_230 = arith.constant 0 : index
    %c0_231 = arith.constant 0 : index
    %397 = vector.load %arg7[%c1_229, %c0_230, %c0_231] : memref<3x32x32xf32, #tpu.memory_space<vmem>>, vector<1x8x32xf32>
    %398 = vector.shape_cast %397 : vector<1x8x32xf32> to vector<8x32xf32>
    %cst_232 = arith.constant dense<0.000000e+00> : vector<16x32xf32>
    %399 = tpu.matmul %396, %398, %cst_232 {dimension_numbers = #tpu.dot_dimension_numbers<[1], [0], [0], [1], [0, 0, 1, 1], [], []>} : vector<16x8xf32>, vector<8x32xf32>, vector<16x32xf32> -> vector<16x32xf32>
    %400 = arith.addf %377, %399 : vector<16x32xf32>
    %401 = vector.extract_strided_slice %370 {offsets = [0, 0, 8], sizes = [2, 8, 8], strides = [1, 1, 1]} : vector<2x8x32xf32> to vector<2x8x8xf32>
    %402 = vector.extract_strided_slice %371 {offsets = [0, 0, 8], sizes = [2, 8, 8], strides = [1, 1, 1]} : vector<2x8x32xf32> to vector<2x8x8xf32>
    "tpu.trace_start"() <{level = 10 : i32, message = "bqd,bkd->bqk"}> : () -> ()
    %cst_233 = arith.constant dense<0.000000e+00> : vector<2x8x8xf32>
    %403 = tpu.matmul %401, %402, %cst_233 {dimension_numbers = #tpu.dot_dimension_numbers<[2], [2], [1], [1], [0, 0, 0, 1, 1, 1], [0], [0]>} : vector<2x8x8xf32>, vector<2x8x8xf32>, vector<2x8x8xf32> -> vector<2x8x8xf32>
    "tpu.trace_stop"() : () -> ()
    %cst_234 = arith.constant 0.353553385 : f32
    %404 = vector.broadcast %cst_234 : f32 to vector<2x8x8xf32>
    %405 = arith.mulf %403, %404 : vector<2x8x8xf32>
    %406 = arith.addf %405, %4 : vector<2x8x8xf32>
    %cst_235 = arith.constant dense<0xFF800000> : vector<2x8xf32>
    %407 = vector.multi_reduction <maximumf>, %406, %cst_235 [2] : vector<2x8x8xf32> to vector<2x8xf32>
    %408 = vector.shape_cast %407 : vector<2x8xf32> to vector<2x8x1xf32>
    %409 = vector.broadcast %408 : vector<2x8x1xf32> to vector<2x8x8xf32>
    %410 = arith.subf %406, %409 : vector<2x8x8xf32>
    %411 = math.exp %410 : vector<2x8x8xf32>
    %cst_236 = arith.constant dense<0.000000e+00> : vector<2x8xf32>
    %412 = vector.multi_reduction <add>, %411, %cst_236 [2] : vector<2x8x8xf32> to vector<2x8xf32>
    %413 = vector.shape_cast %412 : vector<2x8xf32> to vector<2x8x1xf32>
    %414 = tpu.reciprocal %413 {approx = true} : vector<2x8x1xf32> -> vector<2x8x1xf32>
    %415 = vector.broadcast %414 : vector<2x8x1xf32> to vector<2x8x8xf32>
    %416 = arith.mulf %411, %415 : vector<2x8x8xf32>
    %417 = vector.extract_strided_slice %372 {offsets = [0, 0, 8], sizes = [2, 8, 8], strides = [1, 1, 1]} : vector<2x8x32xf32> to vector<2x8x8xf32>
    "tpu.trace_start"() <{level = 10 : i32, message = "bqk,bkd->bqd"}> : () -> ()
    %cst_237 = arith.constant dense<0.000000e+00> : vector<2x8x8xf32>
    %418 = tpu.matmul %416, %417, %cst_237 {dimension_numbers = #tpu.dot_dimension_numbers<[2], [1], [1], [2], [0, 0, 0, 1, 1, 2], [0], [0]>} : vector<2x8x8xf32>, vector<2x8x8xf32>, vector<2x8x8xf32> -> vector<2x8x8xf32>
    "tpu.trace_stop"() : () -> ()
    %419 = vector.shape_cast %418 : vector<2x8x8xf32> to vector<16x8xf32>
    %c1_238 = arith.constant 1 : index
    %c8_239 = arith.constant 8 : index
    %c0_240 = arith.constant 0 : index
    %420 = vector.load %arg7[%c1_238, %c8_239, %c0_240] : memref<3x32x32xf32, #tpu.memory_space<vmem>>, vector<1x8x32xf32>
    %421 = vector.shape_cast %420 : vector<1x8x32xf32> to vector<8x32xf32>
    %cst_241 = arith.constant dense<0.000000e+00> : vector<16x32xf32>
    %422 = tpu.matmul %419, %421, %cst_241 {dimension_numbers = #tpu.dot_dimension_numbers<[1], [0], [0], [1], [0, 0, 1, 1], [], []>} : vector<16x8xf32>, vector<8x32xf32>, vector<16x32xf32> -> vector<16x32xf32>
    %423 = arith.addf %400, %422 : vector<16x32xf32>
    %424 = vector.extract_strided_slice %370 {offsets = [0, 0, 16], sizes = [2, 8, 8], strides = [1, 1, 1]} : vector<2x8x32xf32> to vector<2x8x8xf32>
    %425 = vector.extract_strided_slice %371 {offsets = [0, 0, 16], sizes = [2, 8, 8], strides = [1, 1, 1]} : vector<2x8x32xf32> to vector<2x8x8xf32>
    "tpu.trace_start"() <{level = 10 : i32, message = "bqd,bkd->bqk"}> : () -> ()
    %cst_242 = arith.constant dense<0.000000e+00> : vector<2x8x8xf32>
    %426 = tpu.matmul %424, %425, %cst_242 {dimension_numbers = #tpu.dot_dimension_numbers<[2], [2], [1], [1], [0, 0, 0, 1, 1, 1], [0], [0]>} : vector<2x8x8xf32>, vector<2x8x8xf32>, vector<2x8x8xf32> -> vector<2x8x8xf32>
    "tpu.trace_stop"() : () -> ()
    %cst_243 = arith.constant 0.353553385 : f32
    %427 = vector.broadcast %cst_243 : f32 to vector<2x8x8xf32>
    %428 = arith.mulf %426, %427 : vector<2x8x8xf32>
    %429 = arith.addf %428, %4 : vector<2x8x8xf32>
    %cst_244 = arith.constant dense<0xFF800000> : vector<2x8xf32>
    %430 = vector.multi_reduction <maximumf>, %429, %cst_244 [2] : vector<2x8x8xf32> to vector<2x8xf32>
    %431 = vector.shape_cast %430 : vector<2x8xf32> to vector<2x8x1xf32>
    %432 = vector.broadcast %431 : vector<2x8x1xf32> to vector<2x8x8xf32>
    %433 = arith.subf %429, %432 : vector<2x8x8xf32>
    %434 = math.exp %433 : vector<2x8x8xf32>
    %cst_245 = arith.constant dense<0.000000e+00> : vector<2x8xf32>
    %435 = vector.multi_reduction <add>, %434, %cst_245 [2] : vector<2x8x8xf32> to vector<2x8xf32>
    %436 = vector.shape_cast %435 : vector<2x8xf32> to vector<2x8x1xf32>
    %437 = tpu.reciprocal %436 {approx = true} : vector<2x8x1xf32> -> vector<2x8x1xf32>
    %438 = vector.broadcast %437 : vector<2x8x1xf32> to vector<2x8x8xf32>
    %439 = arith.mulf %434, %438 : vector<2x8x8xf32>
    %440 = vector.extract_strided_slice %372 {offsets = [0, 0, 16], sizes = [2, 8, 8], strides = [1, 1, 1]} : vector<2x8x32xf32> to vector<2x8x8xf32>
    "tpu.trace_start"() <{level = 10 : i32, message = "bqk,bkd->bqd"}> : () -> ()
    %cst_246 = arith.constant dense<0.000000e+00> : vector<2x8x8xf32>
    %441 = tpu.matmul %439, %440, %cst_246 {dimension_numbers = #tpu.dot_dimension_numbers<[2], [1], [1], [2], [0, 0, 0, 1, 1, 2], [0], [0]>} : vector<2x8x8xf32>, vector<2x8x8xf32>, vector<2x8x8xf32> -> vector<2x8x8xf32>
    "tpu.trace_stop"() : () -> ()
    %442 = vector.shape_cast %441 : vector<2x8x8xf32> to vector<16x8xf32>
    %c1_247 = arith.constant 1 : index
    %c16_248 = arith.constant 16 : index
    %c0_249 = arith.constant 0 : index
    %443 = vector.load %arg7[%c1_247, %c16_248, %c0_249] : memref<3x32x32xf32, #tpu.memory_space<vmem>>, vector<1x8x32xf32>
    %444 = vector.shape_cast %443 : vector<1x8x32xf32> to vector<8x32xf32>
    %cst_250 = arith.constant dense<0.000000e+00> : vector<16x32xf32>
    %445 = tpu.matmul %442, %444, %cst_250 {dimension_numbers = #tpu.dot_dimension_numbers<[1], [0], [0], [1], [0, 0, 1, 1], [], []>} : vector<16x8xf32>, vector<8x32xf32>, vector<16x32xf32> -> vector<16x32xf32>
    %446 = arith.addf %423, %445 : vector<16x32xf32>
    %447 = vector.extract_strided_slice %370 {offsets = [0, 0, 24], sizes = [2, 8, 8], strides = [1, 1, 1]} : vector<2x8x32xf32> to vector<2x8x8xf32>
    %448 = vector.extract_strided_slice %371 {offsets = [0, 0, 24], sizes = [2, 8, 8], strides = [1, 1, 1]} : vector<2x8x32xf32> to vector<2x8x8xf32>
    "tpu.trace_start"() <{level = 10 : i32, message = "bqd,bkd->bqk"}> : () -> ()
    %cst_251 = arith.constant dense<0.000000e+00> : vector<2x8x8xf32>
    %449 = tpu.matmul %447, %448, %cst_251 {dimension_numbers = #tpu.dot_dimension_numbers<[2], [2], [1], [1], [0, 0, 0, 1, 1, 1], [0], [0]>} : vector<2x8x8xf32>, vector<2x8x8xf32>, vector<2x8x8xf32> -> vector<2x8x8xf32>
    "tpu.trace_stop"() : () -> ()
    %cst_252 = arith.constant 0.353553385 : f32
    %450 = vector.broadcast %cst_252 : f32 to vector<2x8x8xf32>
    %451 = arith.mulf %449, %450 : vector<2x8x8xf32>
    %452 = arith.addf %451, %4 : vector<2x8x8xf32>
    %cst_253 = arith.constant dense<0xFF800000> : vector<2x8xf32>
    %453 = vector.multi_reduction <maximumf>, %452, %cst_253 [2] : vector<2x8x8xf32> to vector<2x8xf32>
    %454 = vector.shape_cast %453 : vector<2x8xf32> to vector<2x8x1xf32>
    %455 = vector.broadcast %454 : vector<2x8x1xf32> to vector<2x8x8xf32>
    %456 = arith.subf %452, %455 : vector<2x8x8xf32>
    %457 = math.exp %456 : vector<2x8x8xf32>
    %cst_254 = arith.constant dense<0.000000e+00> : vector<2x8xf32>
    %458 = vector.multi_reduction <add>, %457, %cst_254 [2] : vector<2x8x8xf32> to vector<2x8xf32>
    %459 = vector.shape_cast %458 : vector<2x8xf32> to vector<2x8x1xf32>
    %460 = tpu.reciprocal %459 {approx = true} : vector<2x8x1xf32> -> vector<2x8x1xf32>
    %461 = vector.broadcast %460 : vector<2x8x1xf32> to vector<2x8x8xf32>
    %462 = arith.mulf %457, %461 : vector<2x8x8xf32>
    %463 = vector.extract_strided_slice %372 {offsets = [0, 0, 24], sizes = [2, 8, 8], strides = [1, 1, 1]} : vector<2x8x32xf32> to vector<2x8x8xf32>
    "tpu.trace_start"() <{level = 10 : i32, message = "bqk,bkd->bqd"}> : () -> ()
    %cst_255 = arith.constant dense<0.000000e+00> : vector<2x8x8xf32>
    %464 = tpu.matmul %462, %463, %cst_255 {dimension_numbers = #tpu.dot_dimension_numbers<[2], [1], [1], [2], [0, 0, 0, 1, 1, 2], [0], [0]>} : vector<2x8x8xf32>, vector<2x8x8xf32>, vector<2x8x8xf32> -> vector<2x8x8xf32>
    "tpu.trace_stop"() : () -> ()
    %465 = vector.shape_cast %464 : vector<2x8x8xf32> to vector<16x8xf32>
    %c1_256 = arith.constant 1 : index
    %c24_257 = arith.constant 24 : index
    %c0_258 = arith.constant 0 : index
    %466 = vector.load %arg7[%c1_256, %c24_257, %c0_258] : memref<3x32x32xf32, #tpu.memory_space<vmem>>, vector<1x8x32xf32>
    %467 = vector.shape_cast %466 : vector<1x8x32xf32> to vector<8x32xf32>
    %cst_259 = arith.constant dense<0.000000e+00> : vector<16x32xf32>
    %468 = tpu.matmul %465, %467, %cst_259 {dimension_numbers = #tpu.dot_dimension_numbers<[1], [0], [0], [1], [0, 0, 1, 1], [], []>} : vector<16x8xf32>, vector<8x32xf32>, vector<16x32xf32> -> vector<16x32xf32>
    %469 = arith.addf %446, %468 : vector<16x32xf32>
    %470 = arith.addf %348, %469 : vector<16x32xf32>
    %c1_260 = arith.constant 1 : index
    %c0_261 = arith.constant 0 : index
    %c0_262 = arith.constant 0 : index
    %c0_263 = arith.constant 0 : index
    %471 = vector.load %arg17[%c1_260, %c0_261, %c0_262, %c0_263] : memref<3x3x1x32xf32, #tpu.memory_space<vmem>>, vector<1x1x1x32xf32>
    %472 = vector.shape_cast %471 : vector<1x1x1x32xf32> to vector<1x32xf32>
    %c1_264 = arith.constant 1 : index
    %c0_265 = arith.constant 0 : index
    %c0_266 = arith.constant 0 : index
    %c0_267 = arith.constant 0 : index
    %473 = vector.load %arg18[%c1_264, %c0_265, %c0_266, %c0_267] : memref<3x3x1x32xf32, #tpu.memory_space<vmem>>, vector<1x1x1x32xf32>
    %474 = vector.shape_cast %473 : vector<1x1x1x32xf32> to vector<1x32xf32>
    %cst_268 = arith.constant dense<0.000000e+00> : vector<16xf32>
    %475 = vector.multi_reduction <add>, %470, %cst_268 [1] : vector<16x32xf32> to vector<16xf32>
    %476 = vector.shape_cast %475 : vector<16xf32> to vector<16x1xf32>
    %cst_269 = arith.constant 3.200000e+01 : f32
    %477 = vector.broadcast %cst_269 : f32 to vector<16x1xf32>
    %478 = arith.divf %476, %477 : vector<16x1xf32>
    %479 = vector.broadcast %478 : vector<16x1xf32> to vector<16x32xf32>
    %480 = arith.subf %470, %479 : vector<16x32xf32>
    %481 = arith.mulf %480, %480 : vector<16x32xf32>
    %cst_270 = arith.constant dense<0.000000e+00> : vector<16xf32>
    %482 = vector.multi_reduction <add>, %481, %cst_270 [1] : vector<16x32xf32> to vector<16xf32>
    %483 = vector.shape_cast %482 : vector<16xf32> to vector<16x1xf32>
    %cst_271 = arith.constant 3.200000e+01 : f32
    %484 = vector.broadcast %cst_271 : f32 to vector<16x1xf32>
    %485 = arith.divf %483, %484 : vector<16x1xf32>
    %486 = vector.broadcast %478 : vector<16x1xf32> to vector<16x32xf32>
    %487 = arith.subf %470, %486 : vector<16x32xf32>
    %cst_272 = arith.constant 9.99999974E-6 : f32
    %488 = vector.broadcast %cst_272 : f32 to vector<16x1xf32>
    %489 = arith.addf %485, %488 : vector<16x1xf32>
    %490 = math.rsqrt %489 : vector<16x1xf32>
    %491 = vector.broadcast %490 : vector<16x1xf32> to vector<16x32xf32>
    %492 = arith.mulf %487, %491 : vector<16x32xf32>
    %493 = vector.broadcast %472 : vector<1x32xf32> to vector<16x32xf32>
    %494 = arith.mulf %492, %493 : vector<16x32xf32>
    %495 = vector.broadcast %474 : vector<1x32xf32> to vector<16x32xf32>
    %496 = arith.addf %494, %495 : vector<16x32xf32>
    %c1_273 = arith.constant 1 : index
    %c0_274 = arith.constant 0 : index
    %c0_275 = arith.constant 0 : index
    %c0_276 = arith.constant 0 : index
    %497 = vector.load %arg9[%c1_273, %c0_274, %c0_275, %c0_276] : memref<3x3x32x32xf32, #tpu.memory_space<vmem>>, vector<1x1x32x32xf32>
    %498 = vector.shape_cast %497 : vector<1x1x32x32xf32> to vector<32x32xf32>
    %cst_277 = arith.constant dense<0.000000e+00> : vector<16x32xf32>
    %499 = tpu.matmul %496, %498, %cst_277 {dimension_numbers = #tpu.dot_dimension_numbers<[1], [0], [0], [1], [0, 0, 1, 1], [], []>} : vector<16x32xf32>, vector<32x32xf32>, vector<16x32xf32> -> vector<16x32xf32>
    %c1_278 = arith.constant 1 : index
    %c0_279 = arith.constant 0 : index
    %c0_280 = arith.constant 0 : index
    %c0_281 = arith.constant 0 : index
    %500 = vector.load %arg10[%c1_278, %c0_279, %c0_280, %c0_281] : memref<3x3x1x32xf32, #tpu.memory_space<vmem>>, vector<1x1x1x32xf32>
    %501 = vector.shape_cast %500 : vector<1x1x1x32xf32> to vector<1x32xf32>
    %502 = vector.broadcast %501 : vector<1x32xf32> to vector<16x32xf32>
    %503 = arith.addf %499, %502 : vector<16x32xf32>
    %c1_282 = arith.constant 1 : index
    %c1_283 = arith.constant 1 : index
    %c0_284 = arith.constant 0 : index
    %c0_285 = arith.constant 0 : index
    %504 = vector.load %arg9[%c1_282, %c1_283, %c0_284, %c0_285] : memref<3x3x32x32xf32, #tpu.memory_space<vmem>>, vector<1x1x32x32xf32>
    %505 = vector.shape_cast %504 : vector<1x1x32x32xf32> to vector<32x32xf32>
    %cst_286 = arith.constant dense<0.000000e+00> : vector<32x32xf32>
    %506 = tpu.matmul %3, %505, %cst_286 {dimension_numbers = #tpu.dot_dimension_numbers<[1], [0], [0], [1], [0, 0, 1, 1], [], []>} : vector<32x32xf32>, vector<32x32xf32>, vector<32x32xf32> -> vector<32x32xf32>
    %c1_287 = arith.constant 1 : index
    %c1_288 = arith.constant 1 : index
    %c0_289 = arith.constant 0 : index
    %c0_290 = arith.constant 0 : index
    %507 = vector.load %arg10[%c1_287, %c1_288, %c0_289, %c0_290] : memref<3x3x1x32xf32, #tpu.memory_space<vmem>>, vector<1x1x1x32xf32>
    %508 = vector.shape_cast %507 : vector<1x1x1x32xf32> to vector<1x32xf32>
    %509 = vector.broadcast %508 : vector<1x32xf32> to vector<32x32xf32>
    %510 = arith.addf %506, %509 : vector<32x32xf32>
    %c1_291 = arith.constant 1 : index
    %c2_292 = arith.constant 2 : index
    %c0_293 = arith.constant 0 : index
    %c0_294 = arith.constant 0 : index
    %511 = vector.load %arg9[%c1_291, %c2_292, %c0_293, %c0_294] : memref<3x3x32x32xf32, #tpu.memory_space<vmem>>, vector<1x1x32x32xf32>
    %512 = vector.shape_cast %511 : vector<1x1x32x32xf32> to vector<32x32xf32>
    %cst_295 = arith.constant dense<0.000000e+00> : vector<32x32xf32>
    %513 = tpu.matmul %3, %512, %cst_295 {dimension_numbers = #tpu.dot_dimension_numbers<[1], [0], [0], [1], [0, 0, 1, 1], [], []>} : vector<32x32xf32>, vector<32x32xf32>, vector<32x32xf32> -> vector<32x32xf32>
    %c1_296 = arith.constant 1 : index
    %c2_297 = arith.constant 2 : index
    %c0_298 = arith.constant 0 : index
    %c0_299 = arith.constant 0 : index
    %514 = vector.load %arg10[%c1_296, %c2_297, %c0_298, %c0_299] : memref<3x3x1x32xf32, #tpu.memory_space<vmem>>, vector<1x1x1x32xf32>
    %515 = vector.shape_cast %514 : vector<1x1x1x32xf32> to vector<1x32xf32>
    %516 = vector.broadcast %515 : vector<1x32xf32> to vector<32x32xf32>
    %517 = arith.addf %513, %516 : vector<32x32xf32>
    %518 = vector.shape_cast %503 : vector<16x32xf32> to vector<2x8x32xf32>
    %519 = vector.shape_cast %510 : vector<32x32xf32> to vector<2x16x32xf32>
    %520 = vector.shape_cast %517 : vector<32x32xf32> to vector<2x16x32xf32>
    %cst_300 = arith.constant 0.000000e+00 : f32
    %521 = vector.broadcast %cst_300 : f32 to vector<16x32xf32>
    %c1_301 = arith.constant 1 : index
    %c0_302 = arith.constant 0 : index
    %c0_303 = arith.constant 0 : index
    %522 = vector.load %arg12[%c1_301, %c0_302, %c0_303] : memref<3x1x32xf32, #tpu.memory_space<vmem>>, vector<1x1x32xf32>
    %523 = vector.shape_cast %522 : vector<1x1x32xf32> to vector<1x32xf32>
    %524 = vector.broadcast %523 : vector<1x32xf32> to vector<16x32xf32>
    %525 = arith.addf %521, %524 : vector<16x32xf32>
    %526 = vector.extract_strided_slice %518 {offsets = [0, 0, 0], sizes = [2, 8, 8], strides = [1, 1, 1]} : vector<2x8x32xf32> to vector<2x8x8xf32>
    %527 = vector.extract_strided_slice %519 {offsets = [0, 0, 0], sizes = [2, 16, 8], strides = [1, 1, 1]} : vector<2x16x32xf32> to vector<2x16x8xf32>
    "tpu.trace_start"() <{level = 10 : i32, message = "bqd,bkd->bqk"}> : () -> ()
    %cst_304 = arith.constant dense<0.000000e+00> : vector<2x8x16xf32>
    %528 = tpu.matmul %526, %527, %cst_304 {dimension_numbers = #tpu.dot_dimension_numbers<[2], [2], [1], [1], [0, 0, 0, 1, 1, 1], [0], [0]>} : vector<2x8x8xf32>, vector<2x16x8xf32>, vector<2x8x16xf32> -> vector<2x8x16xf32>
    "tpu.trace_stop"() : () -> ()
    %cst_305 = arith.constant 0.353553385 : f32
    %529 = vector.broadcast %cst_305 : f32 to vector<2x8x16xf32>
    %530 = arith.mulf %528, %529 : vector<2x8x16xf32>
    %531 = vector.broadcast %5 : vector<2x1x16xf32> to vector<2x8x16xf32>
    %532 = arith.addf %530, %531 : vector<2x8x16xf32>
    %cst_306 = arith.constant dense<0xFF800000> : vector<2x8xf32>
    %533 = vector.multi_reduction <maximumf>, %532, %cst_306 [2] : vector<2x8x16xf32> to vector<2x8xf32>
    %534 = vector.shape_cast %533 : vector<2x8xf32> to vector<2x8x1xf32>
    %535 = vector.broadcast %534 : vector<2x8x1xf32> to vector<2x8x16xf32>
    %536 = arith.subf %532, %535 : vector<2x8x16xf32>
    %537 = math.exp %536 : vector<2x8x16xf32>
    %cst_307 = arith.constant dense<0.000000e+00> : vector<2x8xf32>
    %538 = vector.multi_reduction <add>, %537, %cst_307 [2] : vector<2x8x16xf32> to vector<2x8xf32>
    %539 = vector.shape_cast %538 : vector<2x8xf32> to vector<2x8x1xf32>
    %540 = tpu.reciprocal %539 {approx = true} : vector<2x8x1xf32> -> vector<2x8x1xf32>
    %541 = vector.broadcast %540 : vector<2x8x1xf32> to vector<2x8x16xf32>
    %542 = arith.mulf %537, %541 : vector<2x8x16xf32>
    %543 = vector.extract_strided_slice %520 {offsets = [0, 0, 0], sizes = [2, 16, 8], strides = [1, 1, 1]} : vector<2x16x32xf32> to vector<2x16x8xf32>
    "tpu.trace_start"() <{level = 10 : i32, message = "bqk,bkd->bqd"}> : () -> ()
    %cst_308 = arith.constant dense<0.000000e+00> : vector<2x8x8xf32>
    %544 = tpu.matmul %542, %543, %cst_308 {dimension_numbers = #tpu.dot_dimension_numbers<[2], [1], [1], [2], [0, 0, 0, 1, 1, 2], [0], [0]>} : vector<2x8x16xf32>, vector<2x16x8xf32>, vector<2x8x8xf32> -> vector<2x8x8xf32>
    "tpu.trace_stop"() : () -> ()
    %545 = vector.shape_cast %544 : vector<2x8x8xf32> to vector<16x8xf32>
    %c1_309 = arith.constant 1 : index
    %c0_310 = arith.constant 0 : index
    %c0_311 = arith.constant 0 : index
    %546 = vector.load %arg11[%c1_309, %c0_310, %c0_311] : memref<3x32x32xf32, #tpu.memory_space<vmem>>, vector<1x8x32xf32>
    %547 = vector.shape_cast %546 : vector<1x8x32xf32> to vector<8x32xf32>
    %cst_312 = arith.constant dense<0.000000e+00> : vector<16x32xf32>
    %548 = tpu.matmul %545, %547, %cst_312 {dimension_numbers = #tpu.dot_dimension_numbers<[1], [0], [0], [1], [0, 0, 1, 1], [], []>} : vector<16x8xf32>, vector<8x32xf32>, vector<16x32xf32> -> vector<16x32xf32>
    %549 = arith.addf %525, %548 : vector<16x32xf32>
    %550 = vector.extract_strided_slice %518 {offsets = [0, 0, 8], sizes = [2, 8, 8], strides = [1, 1, 1]} : vector<2x8x32xf32> to vector<2x8x8xf32>
    %551 = vector.extract_strided_slice %519 {offsets = [0, 0, 8], sizes = [2, 16, 8], strides = [1, 1, 1]} : vector<2x16x32xf32> to vector<2x16x8xf32>
    "tpu.trace_start"() <{level = 10 : i32, message = "bqd,bkd->bqk"}> : () -> ()
    %cst_313 = arith.constant dense<0.000000e+00> : vector<2x8x16xf32>
    %552 = tpu.matmul %550, %551, %cst_313 {dimension_numbers = #tpu.dot_dimension_numbers<[2], [2], [1], [1], [0, 0, 0, 1, 1, 1], [0], [0]>} : vector<2x8x8xf32>, vector<2x16x8xf32>, vector<2x8x16xf32> -> vector<2x8x16xf32>
    "tpu.trace_stop"() : () -> ()
    %cst_314 = arith.constant 0.353553385 : f32
    %553 = vector.broadcast %cst_314 : f32 to vector<2x8x16xf32>
    %554 = arith.mulf %552, %553 : vector<2x8x16xf32>
    %555 = vector.broadcast %5 : vector<2x1x16xf32> to vector<2x8x16xf32>
    %556 = arith.addf %554, %555 : vector<2x8x16xf32>
    %cst_315 = arith.constant dense<0xFF800000> : vector<2x8xf32>
    %557 = vector.multi_reduction <maximumf>, %556, %cst_315 [2] : vector<2x8x16xf32> to vector<2x8xf32>
    %558 = vector.shape_cast %557 : vector<2x8xf32> to vector<2x8x1xf32>
    %559 = vector.broadcast %558 : vector<2x8x1xf32> to vector<2x8x16xf32>
    %560 = arith.subf %556, %559 : vector<2x8x16xf32>
    %561 = math.exp %560 : vector<2x8x16xf32>
    %cst_316 = arith.constant dense<0.000000e+00> : vector<2x8xf32>
    %562 = vector.multi_reduction <add>, %561, %cst_316 [2] : vector<2x8x16xf32> to vector<2x8xf32>
    %563 = vector.shape_cast %562 : vector<2x8xf32> to vector<2x8x1xf32>
    %564 = tpu.reciprocal %563 {approx = true} : vector<2x8x1xf32> -> vector<2x8x1xf32>
    %565 = vector.broadcast %564 : vector<2x8x1xf32> to vector<2x8x16xf32>
    %566 = arith.mulf %561, %565 : vector<2x8x16xf32>
    %567 = vector.extract_strided_slice %520 {offsets = [0, 0, 8], sizes = [2, 16, 8], strides = [1, 1, 1]} : vector<2x16x32xf32> to vector<2x16x8xf32>
    "tpu.trace_start"() <{level = 10 : i32, message = "bqk,bkd->bqd"}> : () -> ()
    %cst_317 = arith.constant dense<0.000000e+00> : vector<2x8x8xf32>
    %568 = tpu.matmul %566, %567, %cst_317 {dimension_numbers = #tpu.dot_dimension_numbers<[2], [1], [1], [2], [0, 0, 0, 1, 1, 2], [0], [0]>} : vector<2x8x16xf32>, vector<2x16x8xf32>, vector<2x8x8xf32> -> vector<2x8x8xf32>
    "tpu.trace_stop"() : () -> ()
    %569 = vector.shape_cast %568 : vector<2x8x8xf32> to vector<16x8xf32>
    %c1_318 = arith.constant 1 : index
    %c8_319 = arith.constant 8 : index
    %c0_320 = arith.constant 0 : index
    %570 = vector.load %arg11[%c1_318, %c8_319, %c0_320] : memref<3x32x32xf32, #tpu.memory_space<vmem>>, vector<1x8x32xf32>
    %571 = vector.shape_cast %570 : vector<1x8x32xf32> to vector<8x32xf32>
    %cst_321 = arith.constant dense<0.000000e+00> : vector<16x32xf32>
    %572 = tpu.matmul %569, %571, %cst_321 {dimension_numbers = #tpu.dot_dimension_numbers<[1], [0], [0], [1], [0, 0, 1, 1], [], []>} : vector<16x8xf32>, vector<8x32xf32>, vector<16x32xf32> -> vector<16x32xf32>
    %573 = arith.addf %549, %572 : vector<16x32xf32>
    %574 = vector.extract_strided_slice %518 {offsets = [0, 0, 16], sizes = [2, 8, 8], strides = [1, 1, 1]} : vector<2x8x32xf32> to vector<2x8x8xf32>
    %575 = vector.extract_strided_slice %519 {offsets = [0, 0, 16], sizes = [2, 16, 8], strides = [1, 1, 1]} : vector<2x16x32xf32> to vector<2x16x8xf32>
    "tpu.trace_start"() <{level = 10 : i32, message = "bqd,bkd->bqk"}> : () -> ()
    %cst_322 = arith.constant dense<0.000000e+00> : vector<2x8x16xf32>
    %576 = tpu.matmul %574, %575, %cst_322 {dimension_numbers = #tpu.dot_dimension_numbers<[2], [2], [1], [1], [0, 0, 0, 1, 1, 1], [0], [0]>} : vector<2x8x8xf32>, vector<2x16x8xf32>, vector<2x8x16xf32> -> vector<2x8x16xf32>
    "tpu.trace_stop"() : () -> ()
    %cst_323 = arith.constant 0.353553385 : f32
    %577 = vector.broadcast %cst_323 : f32 to vector<2x8x16xf32>
    %578 = arith.mulf %576, %577 : vector<2x8x16xf32>
    %579 = vector.broadcast %5 : vector<2x1x16xf32> to vector<2x8x16xf32>
    %580 = arith.addf %578, %579 : vector<2x8x16xf32>
    %cst_324 = arith.constant dense<0xFF800000> : vector<2x8xf32>
    %581 = vector.multi_reduction <maximumf>, %580, %cst_324 [2] : vector<2x8x16xf32> to vector<2x8xf32>
    %582 = vector.shape_cast %581 : vector<2x8xf32> to vector<2x8x1xf32>
    %583 = vector.broadcast %582 : vector<2x8x1xf32> to vector<2x8x16xf32>
    %584 = arith.subf %580, %583 : vector<2x8x16xf32>
    %585 = math.exp %584 : vector<2x8x16xf32>
    %cst_325 = arith.constant dense<0.000000e+00> : vector<2x8xf32>
    %586 = vector.multi_reduction <add>, %585, %cst_325 [2] : vector<2x8x16xf32> to vector<2x8xf32>
    %587 = vector.shape_cast %586 : vector<2x8xf32> to vector<2x8x1xf32>
    %588 = tpu.reciprocal %587 {approx = true} : vector<2x8x1xf32> -> vector<2x8x1xf32>
    %589 = vector.broadcast %588 : vector<2x8x1xf32> to vector<2x8x16xf32>
    %590 = arith.mulf %585, %589 : vector<2x8x16xf32>
    %591 = vector.extract_strided_slice %520 {offsets = [0, 0, 16], sizes = [2, 16, 8], strides = [1, 1, 1]} : vector<2x16x32xf32> to vector<2x16x8xf32>
    "tpu.trace_start"() <{level = 10 : i32, message = "bqk,bkd->bqd"}> : () -> ()
    %cst_326 = arith.constant dense<0.000000e+00> : vector<2x8x8xf32>
    %592 = tpu.matmul %590, %591, %cst_326 {dimension_numbers = #tpu.dot_dimension_numbers<[2], [1], [1], [2], [0, 0, 0, 1, 1, 2], [0], [0]>} : vector<2x8x16xf32>, vector<2x16x8xf32>, vector<2x8x8xf32> -> vector<2x8x8xf32>
    "tpu.trace_stop"() : () -> ()
    %593 = vector.shape_cast %592 : vector<2x8x8xf32> to vector<16x8xf32>
    %c1_327 = arith.constant 1 : index
    %c16_328 = arith.constant 16 : index
    %c0_329 = arith.constant 0 : index
    %594 = vector.load %arg11[%c1_327, %c16_328, %c0_329] : memref<3x32x32xf32, #tpu.memory_space<vmem>>, vector<1x8x32xf32>
    %595 = vector.shape_cast %594 : vector<1x8x32xf32> to vector<8x32xf32>
    %cst_330 = arith.constant dense<0.000000e+00> : vector<16x32xf32>
    %596 = tpu.matmul %593, %595, %cst_330 {dimension_numbers = #tpu.dot_dimension_numbers<[1], [0], [0], [1], [0, 0, 1, 1], [], []>} : vector<16x8xf32>, vector<8x32xf32>, vector<16x32xf32> -> vector<16x32xf32>
    %597 = arith.addf %573, %596 : vector<16x32xf32>
    %598 = vector.extract_strided_slice %518 {offsets = [0, 0, 24], sizes = [2, 8, 8], strides = [1, 1, 1]} : vector<2x8x32xf32> to vector<2x8x8xf32>
    %599 = vector.extract_strided_slice %519 {offsets = [0, 0, 24], sizes = [2, 16, 8], strides = [1, 1, 1]} : vector<2x16x32xf32> to vector<2x16x8xf32>
    "tpu.trace_start"() <{level = 10 : i32, message = "bqd,bkd->bqk"}> : () -> ()
    %cst_331 = arith.constant dense<0.000000e+00> : vector<2x8x16xf32>
    %600 = tpu.matmul %598, %599, %cst_331 {dimension_numbers = #tpu.dot_dimension_numbers<[2], [2], [1], [1], [0, 0, 0, 1, 1, 1], [0], [0]>} : vector<2x8x8xf32>, vector<2x16x8xf32>, vector<2x8x16xf32> -> vector<2x8x16xf32>
    "tpu.trace_stop"() : () -> ()
    %cst_332 = arith.constant 0.353553385 : f32
    %601 = vector.broadcast %cst_332 : f32 to vector<2x8x16xf32>
    %602 = arith.mulf %600, %601 : vector<2x8x16xf32>
    %603 = vector.broadcast %5 : vector<2x1x16xf32> to vector<2x8x16xf32>
    %604 = arith.addf %602, %603 : vector<2x8x16xf32>
    %cst_333 = arith.constant dense<0xFF800000> : vector<2x8xf32>
    %605 = vector.multi_reduction <maximumf>, %604, %cst_333 [2] : vector<2x8x16xf32> to vector<2x8xf32>
    %606 = vector.shape_cast %605 : vector<2x8xf32> to vector<2x8x1xf32>
    %607 = vector.broadcast %606 : vector<2x8x1xf32> to vector<2x8x16xf32>
    %608 = arith.subf %604, %607 : vector<2x8x16xf32>
    %609 = math.exp %608 : vector<2x8x16xf32>
    %cst_334 = arith.constant dense<0.000000e+00> : vector<2x8xf32>
    %610 = vector.multi_reduction <add>, %609, %cst_334 [2] : vector<2x8x16xf32> to vector<2x8xf32>
    %611 = vector.shape_cast %610 : vector<2x8xf32> to vector<2x8x1xf32>
    %612 = tpu.reciprocal %611 {approx = true} : vector<2x8x1xf32> -> vector<2x8x1xf32>
    %613 = vector.broadcast %612 : vector<2x8x1xf32> to vector<2x8x16xf32>
    %614 = arith.mulf %609, %613 : vector<2x8x16xf32>
    %615 = vector.extract_strided_slice %520 {offsets = [0, 0, 24], sizes = [2, 16, 8], strides = [1, 1, 1]} : vector<2x16x32xf32> to vector<2x16x8xf32>
    "tpu.trace_start"() <{level = 10 : i32, message = "bqk,bkd->bqd"}> : () -> ()
    %cst_335 = arith.constant dense<0.000000e+00> : vector<2x8x8xf32>
    %616 = tpu.matmul %614, %615, %cst_335 {dimension_numbers = #tpu.dot_dimension_numbers<[2], [1], [1], [2], [0, 0, 0, 1, 1, 2], [0], [0]>} : vector<2x8x16xf32>, vector<2x16x8xf32>, vector<2x8x8xf32> -> vector<2x8x8xf32>
    "tpu.trace_stop"() : () -> ()
    %617 = vector.shape_cast %616 : vector<2x8x8xf32> to vector<16x8xf32>
    %c1_336 = arith.constant 1 : index
    %c24_337 = arith.constant 24 : index
    %c0_338 = arith.constant 0 : index
    %618 = vector.load %arg11[%c1_336, %c24_337, %c0_338] : memref<3x32x32xf32, #tpu.memory_space<vmem>>, vector<1x8x32xf32>
    %619 = vector.shape_cast %618 : vector<1x8x32xf32> to vector<8x32xf32>
    %cst_339 = arith.constant dense<0.000000e+00> : vector<16x32xf32>
    %620 = tpu.matmul %617, %619, %cst_339 {dimension_numbers = #tpu.dot_dimension_numbers<[1], [0], [0], [1], [0, 0, 1, 1], [], []>} : vector<16x8xf32>, vector<8x32xf32>, vector<16x32xf32> -> vector<16x32xf32>
    %621 = arith.addf %597, %620 : vector<16x32xf32>
    %622 = arith.addf %496, %621 : vector<16x32xf32>
    %c1_340 = arith.constant 1 : index
    %c1_341 = arith.constant 1 : index
    %c0_342 = arith.constant 0 : index
    %c0_343 = arith.constant 0 : index
    %623 = vector.load %arg17[%c1_340, %c1_341, %c0_342, %c0_343] : memref<3x3x1x32xf32, #tpu.memory_space<vmem>>, vector<1x1x1x32xf32>
    %624 = vector.shape_cast %623 : vector<1x1x1x32xf32> to vector<1x32xf32>
    %c1_344 = arith.constant 1 : index
    %c1_345 = arith.constant 1 : index
    %c0_346 = arith.constant 0 : index
    %c0_347 = arith.constant 0 : index
    %625 = vector.load %arg18[%c1_344, %c1_345, %c0_346, %c0_347] : memref<3x3x1x32xf32, #tpu.memory_space<vmem>>, vector<1x1x1x32xf32>
    %626 = vector.shape_cast %625 : vector<1x1x1x32xf32> to vector<1x32xf32>
    %cst_348 = arith.constant dense<0.000000e+00> : vector<16xf32>
    %627 = vector.multi_reduction <add>, %622, %cst_348 [1] : vector<16x32xf32> to vector<16xf32>
    %628 = vector.shape_cast %627 : vector<16xf32> to vector<16x1xf32>
    %cst_349 = arith.constant 3.200000e+01 : f32
    %629 = vector.broadcast %cst_349 : f32 to vector<16x1xf32>
    %630 = arith.divf %628, %629 : vector<16x1xf32>
    %631 = vector.broadcast %630 : vector<16x1xf32> to vector<16x32xf32>
    %632 = arith.subf %622, %631 : vector<16x32xf32>
    %633 = arith.mulf %632, %632 : vector<16x32xf32>
    %cst_350 = arith.constant dense<0.000000e+00> : vector<16xf32>
    %634 = vector.multi_reduction <add>, %633, %cst_350 [1] : vector<16x32xf32> to vector<16xf32>
    %635 = vector.shape_cast %634 : vector<16xf32> to vector<16x1xf32>
    %cst_351 = arith.constant 3.200000e+01 : f32
    %636 = vector.broadcast %cst_351 : f32 to vector<16x1xf32>
    %637 = arith.divf %635, %636 : vector<16x1xf32>
    %638 = vector.broadcast %630 : vector<16x1xf32> to vector<16x32xf32>
    %639 = arith.subf %622, %638 : vector<16x32xf32>
    %cst_352 = arith.constant 9.99999974E-6 : f32
    %640 = vector.broadcast %cst_352 : f32 to vector<16x1xf32>
    %641 = arith.addf %637, %640 : vector<16x1xf32>
    %642 = math.rsqrt %641 : vector<16x1xf32>
    %643 = vector.broadcast %642 : vector<16x1xf32> to vector<16x32xf32>
    %644 = arith.mulf %639, %643 : vector<16x32xf32>
    %645 = vector.broadcast %624 : vector<1x32xf32> to vector<16x32xf32>
    %646 = arith.mulf %644, %645 : vector<16x32xf32>
    %647 = vector.broadcast %626 : vector<1x32xf32> to vector<16x32xf32>
    %648 = arith.addf %646, %647 : vector<16x32xf32>
    %c1_353 = arith.constant 1 : index
    %c0_354 = arith.constant 0 : index
    %c0_355 = arith.constant 0 : index
    %649 = vector.load %arg13[%c1_353, %c0_354, %c0_355] : memref<3x32x128xf32, #tpu.memory_space<vmem>>, vector<1x32x128xf32>
    %650 = vector.shape_cast %649 : vector<1x32x128xf32> to vector<32x128xf32>
    %cst_356 = arith.constant dense<0.000000e+00> : vector<16x128xf32>
    %651 = tpu.matmul %648, %650, %cst_356 {dimension_numbers = #tpu.dot_dimension_numbers<[1], [0], [0], [1], [0, 0, 1, 1], [], []>} : vector<16x32xf32>, vector<32x128xf32>, vector<16x128xf32> -> vector<16x128xf32>
    %c1_357 = arith.constant 1 : index
    %c0_358 = arith.constant 0 : index
    %c0_359 = arith.constant 0 : index
    %652 = vector.load %arg14[%c1_357, %c0_358, %c0_359] : memref<3x1x128xf32, #tpu.memory_space<vmem>>, vector<1x1x128xf32>
    %653 = vector.shape_cast %652 : vector<1x1x128xf32> to vector<1x128xf32>
    %654 = vector.broadcast %653 : vector<1x128xf32> to vector<16x128xf32>
    %655 = arith.addf %651, %654 : vector<16x128xf32>
    %cst_360 = arith.constant 0.000000e+00 : f32
    %656 = vector.broadcast %cst_360 : f32 to vector<16x128xf32>
    %657 = arith.maximumf %655, %656 : vector<16x128xf32>
    %c1_361 = arith.constant 1 : index
    %c0_362 = arith.constant 0 : index
    %c0_363 = arith.constant 0 : index
    %658 = vector.load %arg15[%c1_361, %c0_362, %c0_363] : memref<3x128x32xf32, #tpu.memory_space<vmem>>, vector<1x128x32xf32>
    %659 = vector.shape_cast %658 : vector<1x128x32xf32> to vector<128x32xf32>
    %cst_364 = arith.constant dense<0.000000e+00> : vector<16x32xf32>
    %660 = tpu.matmul %657, %659, %cst_364 {dimension_numbers = #tpu.dot_dimension_numbers<[1], [0], [0], [1], [0, 0, 1, 1], [], []>} : vector<16x128xf32>, vector<128x32xf32>, vector<16x32xf32> -> vector<16x32xf32>
    %661 = arith.addf %648, %660 : vector<16x32xf32>
    %c1_365 = arith.constant 1 : index
    %c0_366 = arith.constant 0 : index
    %c0_367 = arith.constant 0 : index
    %662 = vector.load %arg16[%c1_365, %c0_366, %c0_367] : memref<3x1x32xf32, #tpu.memory_space<vmem>>, vector<1x1x32xf32>
    %663 = vector.shape_cast %662 : vector<1x1x32xf32> to vector<1x32xf32>
    %664 = vector.broadcast %663 : vector<1x32xf32> to vector<16x32xf32>
    %665 = arith.addf %661, %664 : vector<16x32xf32>
    %c1_368 = arith.constant 1 : index
    %c2_369 = arith.constant 2 : index
    %c0_370 = arith.constant 0 : index
    %c0_371 = arith.constant 0 : index
    %666 = vector.load %arg17[%c1_368, %c2_369, %c0_370, %c0_371] : memref<3x3x1x32xf32, #tpu.memory_space<vmem>>, vector<1x1x1x32xf32>
    %667 = vector.shape_cast %666 : vector<1x1x1x32xf32> to vector<1x32xf32>
    %c1_372 = arith.constant 1 : index
    %c2_373 = arith.constant 2 : index
    %c0_374 = arith.constant 0 : index
    %c0_375 = arith.constant 0 : index
    %668 = vector.load %arg18[%c1_372, %c2_373, %c0_374, %c0_375] : memref<3x3x1x32xf32, #tpu.memory_space<vmem>>, vector<1x1x1x32xf32>
    %669 = vector.shape_cast %668 : vector<1x1x1x32xf32> to vector<1x32xf32>
    %cst_376 = arith.constant dense<0.000000e+00> : vector<16xf32>
    %670 = vector.multi_reduction <add>, %665, %cst_376 [1] : vector<16x32xf32> to vector<16xf32>
    %671 = vector.shape_cast %670 : vector<16xf32> to vector<16x1xf32>
    %cst_377 = arith.constant 3.200000e+01 : f32
    %672 = vector.broadcast %cst_377 : f32 to vector<16x1xf32>
    %673 = arith.divf %671, %672 : vector<16x1xf32>
    %674 = vector.broadcast %673 : vector<16x1xf32> to vector<16x32xf32>
    %675 = arith.subf %665, %674 : vector<16x32xf32>
    %676 = arith.mulf %675, %675 : vector<16x32xf32>
    %cst_378 = arith.constant dense<0.000000e+00> : vector<16xf32>
    %677 = vector.multi_reduction <add>, %676, %cst_378 [1] : vector<16x32xf32> to vector<16xf32>
    %678 = vector.shape_cast %677 : vector<16xf32> to vector<16x1xf32>
    %cst_379 = arith.constant 3.200000e+01 : f32
    %679 = vector.broadcast %cst_379 : f32 to vector<16x1xf32>
    %680 = arith.divf %678, %679 : vector<16x1xf32>
    %681 = vector.broadcast %673 : vector<16x1xf32> to vector<16x32xf32>
    %682 = arith.subf %665, %681 : vector<16x32xf32>
    %cst_380 = arith.constant 9.99999974E-6 : f32
    %683 = vector.broadcast %cst_380 : f32 to vector<16x1xf32>
    %684 = arith.addf %680, %683 : vector<16x1xf32>
    %685 = math.rsqrt %684 : vector<16x1xf32>
    %686 = vector.broadcast %685 : vector<16x1xf32> to vector<16x32xf32>
    %687 = arith.mulf %682, %686 : vector<16x32xf32>
    %688 = vector.broadcast %667 : vector<1x32xf32> to vector<16x32xf32>
    %689 = arith.mulf %687, %688 : vector<16x32xf32>
    %690 = vector.broadcast %669 : vector<1x32xf32> to vector<16x32xf32>
    %691 = arith.addf %689, %690 : vector<16x32xf32>
    %c2_381 = arith.constant 2 : index
    %c0_382 = arith.constant 0 : index
    %c0_383 = arith.constant 0 : index
    %c0_384 = arith.constant 0 : index
    %692 = vector.load %arg5[%c2_381, %c0_382, %c0_383, %c0_384] : memref<3x3x32x32xf32, #tpu.memory_space<vmem>>, vector<1x1x32x32xf32>
    %693 = vector.shape_cast %692 : vector<1x1x32x32xf32> to vector<32x32xf32>
    %cst_385 = arith.constant dense<0.000000e+00> : vector<16x32xf32>
    %694 = tpu.matmul %691, %693, %cst_385 {dimension_numbers = #tpu.dot_dimension_numbers<[1], [0], [0], [1], [0, 0, 1, 1], [], []>} : vector<16x32xf32>, vector<32x32xf32>, vector<16x32xf32> -> vector<16x32xf32>
    %c2_386 = arith.constant 2 : index
    %c0_387 = arith.constant 0 : index
    %c0_388 = arith.constant 0 : index
    %c0_389 = arith.constant 0 : index
    %695 = vector.load %arg6[%c2_386, %c0_387, %c0_388, %c0_389] : memref<3x3x1x32xf32, #tpu.memory_space<vmem>>, vector<1x1x1x32xf32>
    %696 = vector.shape_cast %695 : vector<1x1x1x32xf32> to vector<1x32xf32>
    %697 = vector.broadcast %696 : vector<1x32xf32> to vector<16x32xf32>
    %698 = arith.addf %694, %697 : vector<16x32xf32>
    %c2_390 = arith.constant 2 : index
    %c1_391 = arith.constant 1 : index
    %c0_392 = arith.constant 0 : index
    %c0_393 = arith.constant 0 : index
    %699 = vector.load %arg5[%c2_390, %c1_391, %c0_392, %c0_393] : memref<3x3x32x32xf32, #tpu.memory_space<vmem>>, vector<1x1x32x32xf32>
    %700 = vector.shape_cast %699 : vector<1x1x32x32xf32> to vector<32x32xf32>
    %cst_394 = arith.constant dense<0.000000e+00> : vector<16x32xf32>
    %701 = tpu.matmul %691, %700, %cst_394 {dimension_numbers = #tpu.dot_dimension_numbers<[1], [0], [0], [1], [0, 0, 1, 1], [], []>} : vector<16x32xf32>, vector<32x32xf32>, vector<16x32xf32> -> vector<16x32xf32>
    %c2_395 = arith.constant 2 : index
    %c1_396 = arith.constant 1 : index
    %c0_397 = arith.constant 0 : index
    %c0_398 = arith.constant 0 : index
    %702 = vector.load %arg6[%c2_395, %c1_396, %c0_397, %c0_398] : memref<3x3x1x32xf32, #tpu.memory_space<vmem>>, vector<1x1x1x32xf32>
    %703 = vector.shape_cast %702 : vector<1x1x1x32xf32> to vector<1x32xf32>
    %704 = vector.broadcast %703 : vector<1x32xf32> to vector<16x32xf32>
    %705 = arith.addf %701, %704 : vector<16x32xf32>
    %c2_399 = arith.constant 2 : index
    %c2_400 = arith.constant 2 : index
    %c0_401 = arith.constant 0 : index
    %c0_402 = arith.constant 0 : index
    %706 = vector.load %arg5[%c2_399, %c2_400, %c0_401, %c0_402] : memref<3x3x32x32xf32, #tpu.memory_space<vmem>>, vector<1x1x32x32xf32>
    %707 = vector.shape_cast %706 : vector<1x1x32x32xf32> to vector<32x32xf32>
    %cst_403 = arith.constant dense<0.000000e+00> : vector<16x32xf32>
    %708 = tpu.matmul %691, %707, %cst_403 {dimension_numbers = #tpu.dot_dimension_numbers<[1], [0], [0], [1], [0, 0, 1, 1], [], []>} : vector<16x32xf32>, vector<32x32xf32>, vector<16x32xf32> -> vector<16x32xf32>
    %c2_404 = arith.constant 2 : index
    %c2_405 = arith.constant 2 : index
    %c0_406 = arith.constant 0 : index
    %c0_407 = arith.constant 0 : index
    %709 = vector.load %arg6[%c2_404, %c2_405, %c0_406, %c0_407] : memref<3x3x1x32xf32, #tpu.memory_space<vmem>>, vector<1x1x1x32xf32>
    %710 = vector.shape_cast %709 : vector<1x1x1x32xf32> to vector<1x32xf32>
    %711 = vector.broadcast %710 : vector<1x32xf32> to vector<16x32xf32>
    %712 = arith.addf %708, %711 : vector<16x32xf32>
    %713 = vector.shape_cast %698 : vector<16x32xf32> to vector<2x8x32xf32>
    %714 = vector.shape_cast %705 : vector<16x32xf32> to vector<2x8x32xf32>
    %715 = vector.shape_cast %712 : vector<16x32xf32> to vector<2x8x32xf32>
    %cst_408 = arith.constant 0.000000e+00 : f32
    %716 = vector.broadcast %cst_408 : f32 to vector<16x32xf32>
    %c2_409 = arith.constant 2 : index
    %c0_410 = arith.constant 0 : index
    %c0_411 = arith.constant 0 : index
    %717 = vector.load %arg8[%c2_409, %c0_410, %c0_411] : memref<3x1x32xf32, #tpu.memory_space<vmem>>, vector<1x1x32xf32>
    %718 = vector.shape_cast %717 : vector<1x1x32xf32> to vector<1x32xf32>
    %719 = vector.broadcast %718 : vector<1x32xf32> to vector<16x32xf32>
    %720 = arith.addf %716, %719 : vector<16x32xf32>
    %721 = vector.extract_strided_slice %713 {offsets = [0, 0, 0], sizes = [2, 8, 8], strides = [1, 1, 1]} : vector<2x8x32xf32> to vector<2x8x8xf32>
    %722 = vector.extract_strided_slice %714 {offsets = [0, 0, 0], sizes = [2, 8, 8], strides = [1, 1, 1]} : vector<2x8x32xf32> to vector<2x8x8xf32>
    "tpu.trace_start"() <{level = 10 : i32, message = "bqd,bkd->bqk"}> : () -> ()
    %cst_412 = arith.constant dense<0.000000e+00> : vector<2x8x8xf32>
    %723 = tpu.matmul %721, %722, %cst_412 {dimension_numbers = #tpu.dot_dimension_numbers<[2], [2], [1], [1], [0, 0, 0, 1, 1, 1], [0], [0]>} : vector<2x8x8xf32>, vector<2x8x8xf32>, vector<2x8x8xf32> -> vector<2x8x8xf32>
    "tpu.trace_stop"() : () -> ()
    %cst_413 = arith.constant 0.353553385 : f32
    %724 = vector.broadcast %cst_413 : f32 to vector<2x8x8xf32>
    %725 = arith.mulf %723, %724 : vector<2x8x8xf32>
    %726 = arith.addf %725, %4 : vector<2x8x8xf32>
    %cst_414 = arith.constant dense<0xFF800000> : vector<2x8xf32>
    %727 = vector.multi_reduction <maximumf>, %726, %cst_414 [2] : vector<2x8x8xf32> to vector<2x8xf32>
    %728 = vector.shape_cast %727 : vector<2x8xf32> to vector<2x8x1xf32>
    %729 = vector.broadcast %728 : vector<2x8x1xf32> to vector<2x8x8xf32>
    %730 = arith.subf %726, %729 : vector<2x8x8xf32>
    %731 = math.exp %730 : vector<2x8x8xf32>
    %cst_415 = arith.constant dense<0.000000e+00> : vector<2x8xf32>
    %732 = vector.multi_reduction <add>, %731, %cst_415 [2] : vector<2x8x8xf32> to vector<2x8xf32>
    %733 = vector.shape_cast %732 : vector<2x8xf32> to vector<2x8x1xf32>
    %734 = tpu.reciprocal %733 {approx = true} : vector<2x8x1xf32> -> vector<2x8x1xf32>
    %735 = vector.broadcast %734 : vector<2x8x1xf32> to vector<2x8x8xf32>
    %736 = arith.mulf %731, %735 : vector<2x8x8xf32>
    %737 = vector.extract_strided_slice %715 {offsets = [0, 0, 0], sizes = [2, 8, 8], strides = [1, 1, 1]} : vector<2x8x32xf32> to vector<2x8x8xf32>
    "tpu.trace_start"() <{level = 10 : i32, message = "bqk,bkd->bqd"}> : () -> ()
    %cst_416 = arith.constant dense<0.000000e+00> : vector<2x8x8xf32>
    %738 = tpu.matmul %736, %737, %cst_416 {dimension_numbers = #tpu.dot_dimension_numbers<[2], [1], [1], [2], [0, 0, 0, 1, 1, 2], [0], [0]>} : vector<2x8x8xf32>, vector<2x8x8xf32>, vector<2x8x8xf32> -> vector<2x8x8xf32>
    "tpu.trace_stop"() : () -> ()
    %739 = vector.shape_cast %738 : vector<2x8x8xf32> to vector<16x8xf32>
    %c2_417 = arith.constant 2 : index
    %c0_418 = arith.constant 0 : index
    %c0_419 = arith.constant 0 : index
    %740 = vector.load %arg7[%c2_417, %c0_418, %c0_419] : memref<3x32x32xf32, #tpu.memory_space<vmem>>, vector<1x8x32xf32>
    %741 = vector.shape_cast %740 : vector<1x8x32xf32> to vector<8x32xf32>
    %cst_420 = arith.constant dense<0.000000e+00> : vector<16x32xf32>
    %742 = tpu.matmul %739, %741, %cst_420 {dimension_numbers = #tpu.dot_dimension_numbers<[1], [0], [0], [1], [0, 0, 1, 1], [], []>} : vector<16x8xf32>, vector<8x32xf32>, vector<16x32xf32> -> vector<16x32xf32>
    %743 = arith.addf %720, %742 : vector<16x32xf32>
    %744 = vector.extract_strided_slice %713 {offsets = [0, 0, 8], sizes = [2, 8, 8], strides = [1, 1, 1]} : vector<2x8x32xf32> to vector<2x8x8xf32>
    %745 = vector.extract_strided_slice %714 {offsets = [0, 0, 8], sizes = [2, 8, 8], strides = [1, 1, 1]} : vector<2x8x32xf32> to vector<2x8x8xf32>
    "tpu.trace_start"() <{level = 10 : i32, message = "bqd,bkd->bqk"}> : () -> ()
    %cst_421 = arith.constant dense<0.000000e+00> : vector<2x8x8xf32>
    %746 = tpu.matmul %744, %745, %cst_421 {dimension_numbers = #tpu.dot_dimension_numbers<[2], [2], [1], [1], [0, 0, 0, 1, 1, 1], [0], [0]>} : vector<2x8x8xf32>, vector<2x8x8xf32>, vector<2x8x8xf32> -> vector<2x8x8xf32>
    "tpu.trace_stop"() : () -> ()
    %cst_422 = arith.constant 0.353553385 : f32
    %747 = vector.broadcast %cst_422 : f32 to vector<2x8x8xf32>
    %748 = arith.mulf %746, %747 : vector<2x8x8xf32>
    %749 = arith.addf %748, %4 : vector<2x8x8xf32>
    %cst_423 = arith.constant dense<0xFF800000> : vector<2x8xf32>
    %750 = vector.multi_reduction <maximumf>, %749, %cst_423 [2] : vector<2x8x8xf32> to vector<2x8xf32>
    %751 = vector.shape_cast %750 : vector<2x8xf32> to vector<2x8x1xf32>
    %752 = vector.broadcast %751 : vector<2x8x1xf32> to vector<2x8x8xf32>
    %753 = arith.subf %749, %752 : vector<2x8x8xf32>
    %754 = math.exp %753 : vector<2x8x8xf32>
    %cst_424 = arith.constant dense<0.000000e+00> : vector<2x8xf32>
    %755 = vector.multi_reduction <add>, %754, %cst_424 [2] : vector<2x8x8xf32> to vector<2x8xf32>
    %756 = vector.shape_cast %755 : vector<2x8xf32> to vector<2x8x1xf32>
    %757 = tpu.reciprocal %756 {approx = true} : vector<2x8x1xf32> -> vector<2x8x1xf32>
    %758 = vector.broadcast %757 : vector<2x8x1xf32> to vector<2x8x8xf32>
    %759 = arith.mulf %754, %758 : vector<2x8x8xf32>
    %760 = vector.extract_strided_slice %715 {offsets = [0, 0, 8], sizes = [2, 8, 8], strides = [1, 1, 1]} : vector<2x8x32xf32> to vector<2x8x8xf32>
    "tpu.trace_start"() <{level = 10 : i32, message = "bqk,bkd->bqd"}> : () -> ()
    %cst_425 = arith.constant dense<0.000000e+00> : vector<2x8x8xf32>
    %761 = tpu.matmul %759, %760, %cst_425 {dimension_numbers = #tpu.dot_dimension_numbers<[2], [1], [1], [2], [0, 0, 0, 1, 1, 2], [0], [0]>} : vector<2x8x8xf32>, vector<2x8x8xf32>, vector<2x8x8xf32> -> vector<2x8x8xf32>
    "tpu.trace_stop"() : () -> ()
    %762 = vector.shape_cast %761 : vector<2x8x8xf32> to vector<16x8xf32>
    %c2_426 = arith.constant 2 : index
    %c8_427 = arith.constant 8 : index
    %c0_428 = arith.constant 0 : index
    %763 = vector.load %arg7[%c2_426, %c8_427, %c0_428] : memref<3x32x32xf32, #tpu.memory_space<vmem>>, vector<1x8x32xf32>
    %764 = vector.shape_cast %763 : vector<1x8x32xf32> to vector<8x32xf32>
    %cst_429 = arith.constant dense<0.000000e+00> : vector<16x32xf32>
    %765 = tpu.matmul %762, %764, %cst_429 {dimension_numbers = #tpu.dot_dimension_numbers<[1], [0], [0], [1], [0, 0, 1, 1], [], []>} : vector<16x8xf32>, vector<8x32xf32>, vector<16x32xf32> -> vector<16x32xf32>
    %766 = arith.addf %743, %765 : vector<16x32xf32>
    %767 = vector.extract_strided_slice %713 {offsets = [0, 0, 16], sizes = [2, 8, 8], strides = [1, 1, 1]} : vector<2x8x32xf32> to vector<2x8x8xf32>
    %768 = vector.extract_strided_slice %714 {offsets = [0, 0, 16], sizes = [2, 8, 8], strides = [1, 1, 1]} : vector<2x8x32xf32> to vector<2x8x8xf32>
    "tpu.trace_start"() <{level = 10 : i32, message = "bqd,bkd->bqk"}> : () -> ()
    %cst_430 = arith.constant dense<0.000000e+00> : vector<2x8x8xf32>
    %769 = tpu.matmul %767, %768, %cst_430 {dimension_numbers = #tpu.dot_dimension_numbers<[2], [2], [1], [1], [0, 0, 0, 1, 1, 1], [0], [0]>} : vector<2x8x8xf32>, vector<2x8x8xf32>, vector<2x8x8xf32> -> vector<2x8x8xf32>
    "tpu.trace_stop"() : () -> ()
    %cst_431 = arith.constant 0.353553385 : f32
    %770 = vector.broadcast %cst_431 : f32 to vector<2x8x8xf32>
    %771 = arith.mulf %769, %770 : vector<2x8x8xf32>
    %772 = arith.addf %771, %4 : vector<2x8x8xf32>
    %cst_432 = arith.constant dense<0xFF800000> : vector<2x8xf32>
    %773 = vector.multi_reduction <maximumf>, %772, %cst_432 [2] : vector<2x8x8xf32> to vector<2x8xf32>
    %774 = vector.shape_cast %773 : vector<2x8xf32> to vector<2x8x1xf32>
    %775 = vector.broadcast %774 : vector<2x8x1xf32> to vector<2x8x8xf32>
    %776 = arith.subf %772, %775 : vector<2x8x8xf32>
    %777 = math.exp %776 : vector<2x8x8xf32>
    %cst_433 = arith.constant dense<0.000000e+00> : vector<2x8xf32>
    %778 = vector.multi_reduction <add>, %777, %cst_433 [2] : vector<2x8x8xf32> to vector<2x8xf32>
    %779 = vector.shape_cast %778 : vector<2x8xf32> to vector<2x8x1xf32>
    %780 = tpu.reciprocal %779 {approx = true} : vector<2x8x1xf32> -> vector<2x8x1xf32>
    %781 = vector.broadcast %780 : vector<2x8x1xf32> to vector<2x8x8xf32>
    %782 = arith.mulf %777, %781 : vector<2x8x8xf32>
    %783 = vector.extract_strided_slice %715 {offsets = [0, 0, 16], sizes = [2, 8, 8], strides = [1, 1, 1]} : vector<2x8x32xf32> to vector<2x8x8xf32>
    "tpu.trace_start"() <{level = 10 : i32, message = "bqk,bkd->bqd"}> : () -> ()
    %cst_434 = arith.constant dense<0.000000e+00> : vector<2x8x8xf32>
    %784 = tpu.matmul %782, %783, %cst_434 {dimension_numbers = #tpu.dot_dimension_numbers<[2], [1], [1], [2], [0, 0, 0, 1, 1, 2], [0], [0]>} : vector<2x8x8xf32>, vector<2x8x8xf32>, vector<2x8x8xf32> -> vector<2x8x8xf32>
    "tpu.trace_stop"() : () -> ()
    %785 = vector.shape_cast %784 : vector<2x8x8xf32> to vector<16x8xf32>
    %c2_435 = arith.constant 2 : index
    %c16_436 = arith.constant 16 : index
    %c0_437 = arith.constant 0 : index
    %786 = vector.load %arg7[%c2_435, %c16_436, %c0_437] : memref<3x32x32xf32, #tpu.memory_space<vmem>>, vector<1x8x32xf32>
    %787 = vector.shape_cast %786 : vector<1x8x32xf32> to vector<8x32xf32>
    %cst_438 = arith.constant dense<0.000000e+00> : vector<16x32xf32>
    %788 = tpu.matmul %785, %787, %cst_438 {dimension_numbers = #tpu.dot_dimension_numbers<[1], [0], [0], [1], [0, 0, 1, 1], [], []>} : vector<16x8xf32>, vector<8x32xf32>, vector<16x32xf32> -> vector<16x32xf32>
    %789 = arith.addf %766, %788 : vector<16x32xf32>
    %790 = vector.extract_strided_slice %713 {offsets = [0, 0, 24], sizes = [2, 8, 8], strides = [1, 1, 1]} : vector<2x8x32xf32> to vector<2x8x8xf32>
    %791 = vector.extract_strided_slice %714 {offsets = [0, 0, 24], sizes = [2, 8, 8], strides = [1, 1, 1]} : vector<2x8x32xf32> to vector<2x8x8xf32>
    "tpu.trace_start"() <{level = 10 : i32, message = "bqd,bkd->bqk"}> : () -> ()
    %cst_439 = arith.constant dense<0.000000e+00> : vector<2x8x8xf32>
    %792 = tpu.matmul %790, %791, %cst_439 {dimension_numbers = #tpu.dot_dimension_numbers<[2], [2], [1], [1], [0, 0, 0, 1, 1, 1], [0], [0]>} : vector<2x8x8xf32>, vector<2x8x8xf32>, vector<2x8x8xf32> -> vector<2x8x8xf32>
    "tpu.trace_stop"() : () -> ()
    %cst_440 = arith.constant 0.353553385 : f32
    %793 = vector.broadcast %cst_440 : f32 to vector<2x8x8xf32>
    %794 = arith.mulf %792, %793 : vector<2x8x8xf32>
    %795 = arith.addf %794, %4 : vector<2x8x8xf32>
    %cst_441 = arith.constant dense<0xFF800000> : vector<2x8xf32>
    %796 = vector.multi_reduction <maximumf>, %795, %cst_441 [2] : vector<2x8x8xf32> to vector<2x8xf32>
    %797 = vector.shape_cast %796 : vector<2x8xf32> to vector<2x8x1xf32>
    %798 = vector.broadcast %797 : vector<2x8x1xf32> to vector<2x8x8xf32>
    %799 = arith.subf %795, %798 : vector<2x8x8xf32>
    %800 = math.exp %799 : vector<2x8x8xf32>
    %cst_442 = arith.constant dense<0.000000e+00> : vector<2x8xf32>
    %801 = vector.multi_reduction <add>, %800, %cst_442 [2] : vector<2x8x8xf32> to vector<2x8xf32>
    %802 = vector.shape_cast %801 : vector<2x8xf32> to vector<2x8x1xf32>
    %803 = tpu.reciprocal %802 {approx = true} : vector<2x8x1xf32> -> vector<2x8x1xf32>
    %804 = vector.broadcast %803 : vector<2x8x1xf32> to vector<2x8x8xf32>
    %805 = arith.mulf %800, %804 : vector<2x8x8xf32>
    %806 = vector.extract_strided_slice %715 {offsets = [0, 0, 24], sizes = [2, 8, 8], strides = [1, 1, 1]} : vector<2x8x32xf32> to vector<2x8x8xf32>
    "tpu.trace_start"() <{level = 10 : i32, message = "bqk,bkd->bqd"}> : () -> ()
    %cst_443 = arith.constant dense<0.000000e+00> : vector<2x8x8xf32>
    %807 = tpu.matmul %805, %806, %cst_443 {dimension_numbers = #tpu.dot_dimension_numbers<[2], [1], [1], [2], [0, 0, 0, 1, 1, 2], [0], [0]>} : vector<2x8x8xf32>, vector<2x8x8xf32>, vector<2x8x8xf32> -> vector<2x8x8xf32>
    "tpu.trace_stop"() : () -> ()
    %808 = vector.shape_cast %807 : vector<2x8x8xf32> to vector<16x8xf32>
    %c2_444 = arith.constant 2 : index
    %c24_445 = arith.constant 24 : index
    %c0_446 = arith.constant 0 : index
    %809 = vector.load %arg7[%c2_444, %c24_445, %c0_446] : memref<3x32x32xf32, #tpu.memory_space<vmem>>, vector<1x8x32xf32>
    %810 = vector.shape_cast %809 : vector<1x8x32xf32> to vector<8x32xf32>
    %cst_447 = arith.constant dense<0.000000e+00> : vector<16x32xf32>
    %811 = tpu.matmul %808, %810, %cst_447 {dimension_numbers = #tpu.dot_dimension_numbers<[1], [0], [0], [1], [0, 0, 1, 1], [], []>} : vector<16x8xf32>, vector<8x32xf32>, vector<16x32xf32> -> vector<16x32xf32>
    %812 = arith.addf %789, %811 : vector<16x32xf32>
    %813 = arith.addf %691, %812 : vector<16x32xf32>
    %c2_448 = arith.constant 2 : index
    %c0_449 = arith.constant 0 : index
    %c0_450 = arith.constant 0 : index
    %c0_451 = arith.constant 0 : index
    %814 = vector.load %arg17[%c2_448, %c0_449, %c0_450, %c0_451] : memref<3x3x1x32xf32, #tpu.memory_space<vmem>>, vector<1x1x1x32xf32>
    %815 = vector.shape_cast %814 : vector<1x1x1x32xf32> to vector<1x32xf32>
    %c2_452 = arith.constant 2 : index
    %c0_453 = arith.constant 0 : index
    %c0_454 = arith.constant 0 : index
    %c0_455 = arith.constant 0 : index
    %816 = vector.load %arg18[%c2_452, %c0_453, %c0_454, %c0_455] : memref<3x3x1x32xf32, #tpu.memory_space<vmem>>, vector<1x1x1x32xf32>
    %817 = vector.shape_cast %816 : vector<1x1x1x32xf32> to vector<1x32xf32>
    %cst_456 = arith.constant dense<0.000000e+00> : vector<16xf32>
    %818 = vector.multi_reduction <add>, %813, %cst_456 [1] : vector<16x32xf32> to vector<16xf32>
    %819 = vector.shape_cast %818 : vector<16xf32> to vector<16x1xf32>
    %cst_457 = arith.constant 3.200000e+01 : f32
    %820 = vector.broadcast %cst_457 : f32 to vector<16x1xf32>
    %821 = arith.divf %819, %820 : vector<16x1xf32>
    %822 = vector.broadcast %821 : vector<16x1xf32> to vector<16x32xf32>
    %823 = arith.subf %813, %822 : vector<16x32xf32>
    %824 = arith.mulf %823, %823 : vector<16x32xf32>
    %cst_458 = arith.constant dense<0.000000e+00> : vector<16xf32>
    %825 = vector.multi_reduction <add>, %824, %cst_458 [1] : vector<16x32xf32> to vector<16xf32>
    %826 = vector.shape_cast %825 : vector<16xf32> to vector<16x1xf32>
    %cst_459 = arith.constant 3.200000e+01 : f32
    %827 = vector.broadcast %cst_459 : f32 to vector<16x1xf32>
    %828 = arith.divf %826, %827 : vector<16x1xf32>
    %829 = vector.broadcast %821 : vector<16x1xf32> to vector<16x32xf32>
    %830 = arith.subf %813, %829 : vector<16x32xf32>
    %cst_460 = arith.constant 9.99999974E-6 : f32
    %831 = vector.broadcast %cst_460 : f32 to vector<16x1xf32>
    %832 = arith.addf %828, %831 : vector<16x1xf32>
    %833 = math.rsqrt %832 : vector<16x1xf32>
    %834 = vector.broadcast %833 : vector<16x1xf32> to vector<16x32xf32>
    %835 = arith.mulf %830, %834 : vector<16x32xf32>
    %836 = vector.broadcast %815 : vector<1x32xf32> to vector<16x32xf32>
    %837 = arith.mulf %835, %836 : vector<16x32xf32>
    %838 = vector.broadcast %817 : vector<1x32xf32> to vector<16x32xf32>
    %839 = arith.addf %837, %838 : vector<16x32xf32>
    %c2_461 = arith.constant 2 : index
    %c0_462 = arith.constant 0 : index
    %c0_463 = arith.constant 0 : index
    %c0_464 = arith.constant 0 : index
    %840 = vector.load %arg9[%c2_461, %c0_462, %c0_463, %c0_464] : memref<3x3x32x32xf32, #tpu.memory_space<vmem>>, vector<1x1x32x32xf32>
    %841 = vector.shape_cast %840 : vector<1x1x32x32xf32> to vector<32x32xf32>
    %cst_465 = arith.constant dense<0.000000e+00> : vector<16x32xf32>
    %842 = tpu.matmul %839, %841, %cst_465 {dimension_numbers = #tpu.dot_dimension_numbers<[1], [0], [0], [1], [0, 0, 1, 1], [], []>} : vector<16x32xf32>, vector<32x32xf32>, vector<16x32xf32> -> vector<16x32xf32>
    %c2_466 = arith.constant 2 : index
    %c0_467 = arith.constant 0 : index
    %c0_468 = arith.constant 0 : index
    %c0_469 = arith.constant 0 : index
    %843 = vector.load %arg10[%c2_466, %c0_467, %c0_468, %c0_469] : memref<3x3x1x32xf32, #tpu.memory_space<vmem>>, vector<1x1x1x32xf32>
    %844 = vector.shape_cast %843 : vector<1x1x1x32xf32> to vector<1x32xf32>
    %845 = vector.broadcast %844 : vector<1x32xf32> to vector<16x32xf32>
    %846 = arith.addf %842, %845 : vector<16x32xf32>
    %c2_470 = arith.constant 2 : index
    %c1_471 = arith.constant 1 : index
    %c0_472 = arith.constant 0 : index
    %c0_473 = arith.constant 0 : index
    %847 = vector.load %arg9[%c2_470, %c1_471, %c0_472, %c0_473] : memref<3x3x32x32xf32, #tpu.memory_space<vmem>>, vector<1x1x32x32xf32>
    %848 = vector.shape_cast %847 : vector<1x1x32x32xf32> to vector<32x32xf32>
    %cst_474 = arith.constant dense<0.000000e+00> : vector<32x32xf32>
    %849 = tpu.matmul %3, %848, %cst_474 {dimension_numbers = #tpu.dot_dimension_numbers<[1], [0], [0], [1], [0, 0, 1, 1], [], []>} : vector<32x32xf32>, vector<32x32xf32>, vector<32x32xf32> -> vector<32x32xf32>
    %c2_475 = arith.constant 2 : index
    %c1_476 = arith.constant 1 : index
    %c0_477 = arith.constant 0 : index
    %c0_478 = arith.constant 0 : index
    %850 = vector.load %arg10[%c2_475, %c1_476, %c0_477, %c0_478] : memref<3x3x1x32xf32, #tpu.memory_space<vmem>>, vector<1x1x1x32xf32>
    %851 = vector.shape_cast %850 : vector<1x1x1x32xf32> to vector<1x32xf32>
    %852 = vector.broadcast %851 : vector<1x32xf32> to vector<32x32xf32>
    %853 = arith.addf %849, %852 : vector<32x32xf32>
    %c2_479 = arith.constant 2 : index
    %c2_480 = arith.constant 2 : index
    %c0_481 = arith.constant 0 : index
    %c0_482 = arith.constant 0 : index
    %854 = vector.load %arg9[%c2_479, %c2_480, %c0_481, %c0_482] : memref<3x3x32x32xf32, #tpu.memory_space<vmem>>, vector<1x1x32x32xf32>
    %855 = vector.shape_cast %854 : vector<1x1x32x32xf32> to vector<32x32xf32>
    %cst_483 = arith.constant dense<0.000000e+00> : vector<32x32xf32>
    %856 = tpu.matmul %3, %855, %cst_483 {dimension_numbers = #tpu.dot_dimension_numbers<[1], [0], [0], [1], [0, 0, 1, 1], [], []>} : vector<32x32xf32>, vector<32x32xf32>, vector<32x32xf32> -> vector<32x32xf32>
    %c2_484 = arith.constant 2 : index
    %c2_485 = arith.constant 2 : index
    %c0_486 = arith.constant 0 : index
    %c0_487 = arith.constant 0 : index
    %857 = vector.load %arg10[%c2_484, %c2_485, %c0_486, %c0_487] : memref<3x3x1x32xf32, #tpu.memory_space<vmem>>, vector<1x1x1x32xf32>
    %858 = vector.shape_cast %857 : vector<1x1x1x32xf32> to vector<1x32xf32>
    %859 = vector.broadcast %858 : vector<1x32xf32> to vector<32x32xf32>
    %860 = arith.addf %856, %859 : vector<32x32xf32>
    %861 = vector.shape_cast %846 : vector<16x32xf32> to vector<2x8x32xf32>
    %862 = vector.shape_cast %853 : vector<32x32xf32> to vector<2x16x32xf32>
    %863 = vector.shape_cast %860 : vector<32x32xf32> to vector<2x16x32xf32>
    %cst_488 = arith.constant 0.000000e+00 : f32
    %864 = vector.broadcast %cst_488 : f32 to vector<16x32xf32>
    %c2_489 = arith.constant 2 : index
    %c0_490 = arith.constant 0 : index
    %c0_491 = arith.constant 0 : index
    %865 = vector.load %arg12[%c2_489, %c0_490, %c0_491] : memref<3x1x32xf32, #tpu.memory_space<vmem>>, vector<1x1x32xf32>
    %866 = vector.shape_cast %865 : vector<1x1x32xf32> to vector<1x32xf32>
    %867 = vector.broadcast %866 : vector<1x32xf32> to vector<16x32xf32>
    %868 = arith.addf %864, %867 : vector<16x32xf32>
    %869 = vector.extract_strided_slice %861 {offsets = [0, 0, 0], sizes = [2, 8, 8], strides = [1, 1, 1]} : vector<2x8x32xf32> to vector<2x8x8xf32>
    %870 = vector.extract_strided_slice %862 {offsets = [0, 0, 0], sizes = [2, 16, 8], strides = [1, 1, 1]} : vector<2x16x32xf32> to vector<2x16x8xf32>
    "tpu.trace_start"() <{level = 10 : i32, message = "bqd,bkd->bqk"}> : () -> ()
    %cst_492 = arith.constant dense<0.000000e+00> : vector<2x8x16xf32>
    %871 = tpu.matmul %869, %870, %cst_492 {dimension_numbers = #tpu.dot_dimension_numbers<[2], [2], [1], [1], [0, 0, 0, 1, 1, 1], [0], [0]>} : vector<2x8x8xf32>, vector<2x16x8xf32>, vector<2x8x16xf32> -> vector<2x8x16xf32>
    "tpu.trace_stop"() : () -> ()
    %cst_493 = arith.constant 0.353553385 : f32
    %872 = vector.broadcast %cst_493 : f32 to vector<2x8x16xf32>
    %873 = arith.mulf %871, %872 : vector<2x8x16xf32>
    %874 = vector.broadcast %5 : vector<2x1x16xf32> to vector<2x8x16xf32>
    %875 = arith.addf %873, %874 : vector<2x8x16xf32>
    %cst_494 = arith.constant dense<0xFF800000> : vector<2x8xf32>
    %876 = vector.multi_reduction <maximumf>, %875, %cst_494 [2] : vector<2x8x16xf32> to vector<2x8xf32>
    %877 = vector.shape_cast %876 : vector<2x8xf32> to vector<2x8x1xf32>
    %878 = vector.broadcast %877 : vector<2x8x1xf32> to vector<2x8x16xf32>
    %879 = arith.subf %875, %878 : vector<2x8x16xf32>
    %880 = math.exp %879 : vector<2x8x16xf32>
    %cst_495 = arith.constant dense<0.000000e+00> : vector<2x8xf32>
    %881 = vector.multi_reduction <add>, %880, %cst_495 [2] : vector<2x8x16xf32> to vector<2x8xf32>
    %882 = vector.shape_cast %881 : vector<2x8xf32> to vector<2x8x1xf32>
    %883 = tpu.reciprocal %882 {approx = true} : vector<2x8x1xf32> -> vector<2x8x1xf32>
    %884 = vector.broadcast %883 : vector<2x8x1xf32> to vector<2x8x16xf32>
    %885 = arith.mulf %880, %884 : vector<2x8x16xf32>
    %886 = vector.extract_strided_slice %863 {offsets = [0, 0, 0], sizes = [2, 16, 8], strides = [1, 1, 1]} : vector<2x16x32xf32> to vector<2x16x8xf32>
    "tpu.trace_start"() <{level = 10 : i32, message = "bqk,bkd->bqd"}> : () -> ()
    %cst_496 = arith.constant dense<0.000000e+00> : vector<2x8x8xf32>
    %887 = tpu.matmul %885, %886, %cst_496 {dimension_numbers = #tpu.dot_dimension_numbers<[2], [1], [1], [2], [0, 0, 0, 1, 1, 2], [0], [0]>} : vector<2x8x16xf32>, vector<2x16x8xf32>, vector<2x8x8xf32> -> vector<2x8x8xf32>
    "tpu.trace_stop"() : () -> ()
    %888 = vector.shape_cast %887 : vector<2x8x8xf32> to vector<16x8xf32>
    %c2_497 = arith.constant 2 : index
    %c0_498 = arith.constant 0 : index
    %c0_499 = arith.constant 0 : index
    %889 = vector.load %arg11[%c2_497, %c0_498, %c0_499] : memref<3x32x32xf32, #tpu.memory_space<vmem>>, vector<1x8x32xf32>
    %890 = vector.shape_cast %889 : vector<1x8x32xf32> to vector<8x32xf32>
    %cst_500 = arith.constant dense<0.000000e+00> : vector<16x32xf32>
    %891 = tpu.matmul %888, %890, %cst_500 {dimension_numbers = #tpu.dot_dimension_numbers<[1], [0], [0], [1], [0, 0, 1, 1], [], []>} : vector<16x8xf32>, vector<8x32xf32>, vector<16x32xf32> -> vector<16x32xf32>
    %892 = arith.addf %868, %891 : vector<16x32xf32>
    %893 = vector.extract_strided_slice %861 {offsets = [0, 0, 8], sizes = [2, 8, 8], strides = [1, 1, 1]} : vector<2x8x32xf32> to vector<2x8x8xf32>
    %894 = vector.extract_strided_slice %862 {offsets = [0, 0, 8], sizes = [2, 16, 8], strides = [1, 1, 1]} : vector<2x16x32xf32> to vector<2x16x8xf32>
    "tpu.trace_start"() <{level = 10 : i32, message = "bqd,bkd->bqk"}> : () -> ()
    %cst_501 = arith.constant dense<0.000000e+00> : vector<2x8x16xf32>
    %895 = tpu.matmul %893, %894, %cst_501 {dimension_numbers = #tpu.dot_dimension_numbers<[2], [2], [1], [1], [0, 0, 0, 1, 1, 1], [0], [0]>} : vector<2x8x8xf32>, vector<2x16x8xf32>, vector<2x8x16xf32> -> vector<2x8x16xf32>
    "tpu.trace_stop"() : () -> ()
    %cst_502 = arith.constant 0.353553385 : f32
    %896 = vector.broadcast %cst_502 : f32 to vector<2x8x16xf32>
    %897 = arith.mulf %895, %896 : vector<2x8x16xf32>
    %898 = vector.broadcast %5 : vector<2x1x16xf32> to vector<2x8x16xf32>
    %899 = arith.addf %897, %898 : vector<2x8x16xf32>
    %cst_503 = arith.constant dense<0xFF800000> : vector<2x8xf32>
    %900 = vector.multi_reduction <maximumf>, %899, %cst_503 [2] : vector<2x8x16xf32> to vector<2x8xf32>
    %901 = vector.shape_cast %900 : vector<2x8xf32> to vector<2x8x1xf32>
    %902 = vector.broadcast %901 : vector<2x8x1xf32> to vector<2x8x16xf32>
    %903 = arith.subf %899, %902 : vector<2x8x16xf32>
    %904 = math.exp %903 : vector<2x8x16xf32>
    %cst_504 = arith.constant dense<0.000000e+00> : vector<2x8xf32>
    %905 = vector.multi_reduction <add>, %904, %cst_504 [2] : vector<2x8x16xf32> to vector<2x8xf32>
    %906 = vector.shape_cast %905 : vector<2x8xf32> to vector<2x8x1xf32>
    %907 = tpu.reciprocal %906 {approx = true} : vector<2x8x1xf32> -> vector<2x8x1xf32>
    %908 = vector.broadcast %907 : vector<2x8x1xf32> to vector<2x8x16xf32>
    %909 = arith.mulf %904, %908 : vector<2x8x16xf32>
    %910 = vector.extract_strided_slice %863 {offsets = [0, 0, 8], sizes = [2, 16, 8], strides = [1, 1, 1]} : vector<2x16x32xf32> to vector<2x16x8xf32>
    "tpu.trace_start"() <{level = 10 : i32, message = "bqk,bkd->bqd"}> : () -> ()
    %cst_505 = arith.constant dense<0.000000e+00> : vector<2x8x8xf32>
    %911 = tpu.matmul %909, %910, %cst_505 {dimension_numbers = #tpu.dot_dimension_numbers<[2], [1], [1], [2], [0, 0, 0, 1, 1, 2], [0], [0]>} : vector<2x8x16xf32>, vector<2x16x8xf32>, vector<2x8x8xf32> -> vector<2x8x8xf32>
    "tpu.trace_stop"() : () -> ()
    %912 = vector.shape_cast %911 : vector<2x8x8xf32> to vector<16x8xf32>
    %c2_506 = arith.constant 2 : index
    %c8_507 = arith.constant 8 : index
    %c0_508 = arith.constant 0 : index
    %913 = vector.load %arg11[%c2_506, %c8_507, %c0_508] : memref<3x32x32xf32, #tpu.memory_space<vmem>>, vector<1x8x32xf32>
    %914 = vector.shape_cast %913 : vector<1x8x32xf32> to vector<8x32xf32>
    %cst_509 = arith.constant dense<0.000000e+00> : vector<16x32xf32>
    %915 = tpu.matmul %912, %914, %cst_509 {dimension_numbers = #tpu.dot_dimension_numbers<[1], [0], [0], [1], [0, 0, 1, 1], [], []>} : vector<16x8xf32>, vector<8x32xf32>, vector<16x32xf32> -> vector<16x32xf32>
    %916 = arith.addf %892, %915 : vector<16x32xf32>
    %917 = vector.extract_strided_slice %861 {offsets = [0, 0, 16], sizes = [2, 8, 8], strides = [1, 1, 1]} : vector<2x8x32xf32> to vector<2x8x8xf32>
    %918 = vector.extract_strided_slice %862 {offsets = [0, 0, 16], sizes = [2, 16, 8], strides = [1, 1, 1]} : vector<2x16x32xf32> to vector<2x16x8xf32>
    "tpu.trace_start"() <{level = 10 : i32, message = "bqd,bkd->bqk"}> : () -> ()
    %cst_510 = arith.constant dense<0.000000e+00> : vector<2x8x16xf32>
    %919 = tpu.matmul %917, %918, %cst_510 {dimension_numbers = #tpu.dot_dimension_numbers<[2], [2], [1], [1], [0, 0, 0, 1, 1, 1], [0], [0]>} : vector<2x8x8xf32>, vector<2x16x8xf32>, vector<2x8x16xf32> -> vector<2x8x16xf32>
    "tpu.trace_stop"() : () -> ()
    %cst_511 = arith.constant 0.353553385 : f32
    %920 = vector.broadcast %cst_511 : f32 to vector<2x8x16xf32>
    %921 = arith.mulf %919, %920 : vector<2x8x16xf32>
    %922 = vector.broadcast %5 : vector<2x1x16xf32> to vector<2x8x16xf32>
    %923 = arith.addf %921, %922 : vector<2x8x16xf32>
    %cst_512 = arith.constant dense<0xFF800000> : vector<2x8xf32>
    %924 = vector.multi_reduction <maximumf>, %923, %cst_512 [2] : vector<2x8x16xf32> to vector<2x8xf32>
    %925 = vector.shape_cast %924 : vector<2x8xf32> to vector<2x8x1xf32>
    %926 = vector.broadcast %925 : vector<2x8x1xf32> to vector<2x8x16xf32>
    %927 = arith.subf %923, %926 : vector<2x8x16xf32>
    %928 = math.exp %927 : vector<2x8x16xf32>
    %cst_513 = arith.constant dense<0.000000e+00> : vector<2x8xf32>
    %929 = vector.multi_reduction <add>, %928, %cst_513 [2] : vector<2x8x16xf32> to vector<2x8xf32>
    %930 = vector.shape_cast %929 : vector<2x8xf32> to vector<2x8x1xf32>
    %931 = tpu.reciprocal %930 {approx = true} : vector<2x8x1xf32> -> vector<2x8x1xf32>
    %932 = vector.broadcast %931 : vector<2x8x1xf32> to vector<2x8x16xf32>
    %933 = arith.mulf %928, %932 : vector<2x8x16xf32>
    %934 = vector.extract_strided_slice %863 {offsets = [0, 0, 16], sizes = [2, 16, 8], strides = [1, 1, 1]} : vector<2x16x32xf32> to vector<2x16x8xf32>
    "tpu.trace_start"() <{level = 10 : i32, message = "bqk,bkd->bqd"}> : () -> ()
    %cst_514 = arith.constant dense<0.000000e+00> : vector<2x8x8xf32>
    %935 = tpu.matmul %933, %934, %cst_514 {dimension_numbers = #tpu.dot_dimension_numbers<[2], [1], [1], [2], [0, 0, 0, 1, 1, 2], [0], [0]>} : vector<2x8x16xf32>, vector<2x16x8xf32>, vector<2x8x8xf32> -> vector<2x8x8xf32>
    "tpu.trace_stop"() : () -> ()
    %936 = vector.shape_cast %935 : vector<2x8x8xf32> to vector<16x8xf32>
    %c2_515 = arith.constant 2 : index
    %c16_516 = arith.constant 16 : index
    %c0_517 = arith.constant 0 : index
    %937 = vector.load %arg11[%c2_515, %c16_516, %c0_517] : memref<3x32x32xf32, #tpu.memory_space<vmem>>, vector<1x8x32xf32>
    %938 = vector.shape_cast %937 : vector<1x8x32xf32> to vector<8x32xf32>
    %cst_518 = arith.constant dense<0.000000e+00> : vector<16x32xf32>
    %939 = tpu.matmul %936, %938, %cst_518 {dimension_numbers = #tpu.dot_dimension_numbers<[1], [0], [0], [1], [0, 0, 1, 1], [], []>} : vector<16x8xf32>, vector<8x32xf32>, vector<16x32xf32> -> vector<16x32xf32>
    %940 = arith.addf %916, %939 : vector<16x32xf32>
    %941 = vector.extract_strided_slice %861 {offsets = [0, 0, 24], sizes = [2, 8, 8], strides = [1, 1, 1]} : vector<2x8x32xf32> to vector<2x8x8xf32>
    %942 = vector.extract_strided_slice %862 {offsets = [0, 0, 24], sizes = [2, 16, 8], strides = [1, 1, 1]} : vector<2x16x32xf32> to vector<2x16x8xf32>
    "tpu.trace_start"() <{level = 10 : i32, message = "bqd,bkd->bqk"}> : () -> ()
    %cst_519 = arith.constant dense<0.000000e+00> : vector<2x8x16xf32>
    %943 = tpu.matmul %941, %942, %cst_519 {dimension_numbers = #tpu.dot_dimension_numbers<[2], [2], [1], [1], [0, 0, 0, 1, 1, 1], [0], [0]>} : vector<2x8x8xf32>, vector<2x16x8xf32>, vector<2x8x16xf32> -> vector<2x8x16xf32>
    "tpu.trace_stop"() : () -> ()
    %cst_520 = arith.constant 0.353553385 : f32
    %944 = vector.broadcast %cst_520 : f32 to vector<2x8x16xf32>
    %945 = arith.mulf %943, %944 : vector<2x8x16xf32>
    %946 = vector.broadcast %5 : vector<2x1x16xf32> to vector<2x8x16xf32>
    %947 = arith.addf %945, %946 : vector<2x8x16xf32>
    %cst_521 = arith.constant dense<0xFF800000> : vector<2x8xf32>
    %948 = vector.multi_reduction <maximumf>, %947, %cst_521 [2] : vector<2x8x16xf32> to vector<2x8xf32>
    %949 = vector.shape_cast %948 : vector<2x8xf32> to vector<2x8x1xf32>
    %950 = vector.broadcast %949 : vector<2x8x1xf32> to vector<2x8x16xf32>
    %951 = arith.subf %947, %950 : vector<2x8x16xf32>
    %952 = math.exp %951 : vector<2x8x16xf32>
    %cst_522 = arith.constant dense<0.000000e+00> : vector<2x8xf32>
    %953 = vector.multi_reduction <add>, %952, %cst_522 [2] : vector<2x8x16xf32> to vector<2x8xf32>
    %954 = vector.shape_cast %953 : vector<2x8xf32> to vector<2x8x1xf32>
    %955 = tpu.reciprocal %954 {approx = true} : vector<2x8x1xf32> -> vector<2x8x1xf32>
    %956 = vector.broadcast %955 : vector<2x8x1xf32> to vector<2x8x16xf32>
    %957 = arith.mulf %952, %956 : vector<2x8x16xf32>
    %958 = vector.extract_strided_slice %863 {offsets = [0, 0, 24], sizes = [2, 16, 8], strides = [1, 1, 1]} : vector<2x16x32xf32> to vector<2x16x8xf32>
    "tpu.trace_start"() <{level = 10 : i32, message = "bqk,bkd->bqd"}> : () -> ()
    %cst_523 = arith.constant dense<0.000000e+00> : vector<2x8x8xf32>
    %959 = tpu.matmul %957, %958, %cst_523 {dimension_numbers = #tpu.dot_dimension_numbers<[2], [1], [1], [2], [0, 0, 0, 1, 1, 2], [0], [0]>} : vector<2x8x16xf32>, vector<2x16x8xf32>, vector<2x8x8xf32> -> vector<2x8x8xf32>
    "tpu.trace_stop"() : () -> ()
    %960 = vector.shape_cast %959 : vector<2x8x8xf32> to vector<16x8xf32>
    %c2_524 = arith.constant 2 : index
    %c24_525 = arith.constant 24 : index
    %c0_526 = arith.constant 0 : index
    %961 = vector.load %arg11[%c2_524, %c24_525, %c0_526] : memref<3x32x32xf32, #tpu.memory_space<vmem>>, vector<1x8x32xf32>
    %962 = vector.shape_cast %961 : vector<1x8x32xf32> to vector<8x32xf32>
    %cst_527 = arith.constant dense<0.000000e+00> : vector<16x32xf32>
    %963 = tpu.matmul %960, %962, %cst_527 {dimension_numbers = #tpu.dot_dimension_numbers<[1], [0], [0], [1], [0, 0, 1, 1], [], []>} : vector<16x8xf32>, vector<8x32xf32>, vector<16x32xf32> -> vector<16x32xf32>
    %964 = arith.addf %940, %963 : vector<16x32xf32>
    %965 = arith.addf %839, %964 : vector<16x32xf32>
    %c2_528 = arith.constant 2 : index
    %c1_529 = arith.constant 1 : index
    %c0_530 = arith.constant 0 : index
    %c0_531 = arith.constant 0 : index
    %966 = vector.load %arg17[%c2_528, %c1_529, %c0_530, %c0_531] : memref<3x3x1x32xf32, #tpu.memory_space<vmem>>, vector<1x1x1x32xf32>
    %967 = vector.shape_cast %966 : vector<1x1x1x32xf32> to vector<1x32xf32>
    %c2_532 = arith.constant 2 : index
    %c1_533 = arith.constant 1 : index
    %c0_534 = arith.constant 0 : index
    %c0_535 = arith.constant 0 : index
    %968 = vector.load %arg18[%c2_532, %c1_533, %c0_534, %c0_535] : memref<3x3x1x32xf32, #tpu.memory_space<vmem>>, vector<1x1x1x32xf32>
    %969 = vector.shape_cast %968 : vector<1x1x1x32xf32> to vector<1x32xf32>
    %cst_536 = arith.constant dense<0.000000e+00> : vector<16xf32>
    %970 = vector.multi_reduction <add>, %965, %cst_536 [1] : vector<16x32xf32> to vector<16xf32>
    %971 = vector.shape_cast %970 : vector<16xf32> to vector<16x1xf32>
    %cst_537 = arith.constant 3.200000e+01 : f32
    %972 = vector.broadcast %cst_537 : f32 to vector<16x1xf32>
    %973 = arith.divf %971, %972 : vector<16x1xf32>
    %974 = vector.broadcast %973 : vector<16x1xf32> to vector<16x32xf32>
    %975 = arith.subf %965, %974 : vector<16x32xf32>
    %976 = arith.mulf %975, %975 : vector<16x32xf32>
    %cst_538 = arith.constant dense<0.000000e+00> : vector<16xf32>
    %977 = vector.multi_reduction <add>, %976, %cst_538 [1] : vector<16x32xf32> to vector<16xf32>
    %978 = vector.shape_cast %977 : vector<16xf32> to vector<16x1xf32>
    %cst_539 = arith.constant 3.200000e+01 : f32
    %979 = vector.broadcast %cst_539 : f32 to vector<16x1xf32>
    %980 = arith.divf %978, %979 : vector<16x1xf32>
    %981 = vector.broadcast %973 : vector<16x1xf32> to vector<16x32xf32>
    %982 = arith.subf %965, %981 : vector<16x32xf32>
    %cst_540 = arith.constant 9.99999974E-6 : f32
    %983 = vector.broadcast %cst_540 : f32 to vector<16x1xf32>
    %984 = arith.addf %980, %983 : vector<16x1xf32>
    %985 = math.rsqrt %984 : vector<16x1xf32>
    %986 = vector.broadcast %985 : vector<16x1xf32> to vector<16x32xf32>
    %987 = arith.mulf %982, %986 : vector<16x32xf32>
    %988 = vector.broadcast %967 : vector<1x32xf32> to vector<16x32xf32>
    %989 = arith.mulf %987, %988 : vector<16x32xf32>
    %990 = vector.broadcast %969 : vector<1x32xf32> to vector<16x32xf32>
    %991 = arith.addf %989, %990 : vector<16x32xf32>
    %c2_541 = arith.constant 2 : index
    %c0_542 = arith.constant 0 : index
    %c0_543 = arith.constant 0 : index
    %992 = vector.load %arg13[%c2_541, %c0_542, %c0_543] : memref<3x32x128xf32, #tpu.memory_space<vmem>>, vector<1x32x128xf32>
    %993 = vector.shape_cast %992 : vector<1x32x128xf32> to vector<32x128xf32>
    %cst_544 = arith.constant dense<0.000000e+00> : vector<16x128xf32>
    %994 = tpu.matmul %991, %993, %cst_544 {dimension_numbers = #tpu.dot_dimension_numbers<[1], [0], [0], [1], [0, 0, 1, 1], [], []>} : vector<16x32xf32>, vector<32x128xf32>, vector<16x128xf32> -> vector<16x128xf32>
    %c2_545 = arith.constant 2 : index
    %c0_546 = arith.constant 0 : index
    %c0_547 = arith.constant 0 : index
    %995 = vector.load %arg14[%c2_545, %c0_546, %c0_547] : memref<3x1x128xf32, #tpu.memory_space<vmem>>, vector<1x1x128xf32>
    %996 = vector.shape_cast %995 : vector<1x1x128xf32> to vector<1x128xf32>
    %997 = vector.broadcast %996 : vector<1x128xf32> to vector<16x128xf32>
    %998 = arith.addf %994, %997 : vector<16x128xf32>
    %cst_548 = arith.constant 0.000000e+00 : f32
    %999 = vector.broadcast %cst_548 : f32 to vector<16x128xf32>
    %1000 = arith.maximumf %998, %999 : vector<16x128xf32>
    %c2_549 = arith.constant 2 : index
    %c0_550 = arith.constant 0 : index
    %c0_551 = arith.constant 0 : index
    %1001 = vector.load %arg15[%c2_549, %c0_550, %c0_551] : memref<3x128x32xf32, #tpu.memory_space<vmem>>, vector<1x128x32xf32>
    %1002 = vector.shape_cast %1001 : vector<1x128x32xf32> to vector<128x32xf32>
    %cst_552 = arith.constant dense<0.000000e+00> : vector<16x32xf32>
    %1003 = tpu.matmul %1000, %1002, %cst_552 {dimension_numbers = #tpu.dot_dimension_numbers<[1], [0], [0], [1], [0, 0, 1, 1], [], []>} : vector<16x128xf32>, vector<128x32xf32>, vector<16x32xf32> -> vector<16x32xf32>
    %1004 = arith.addf %991, %1003 : vector<16x32xf32>
    %c2_553 = arith.constant 2 : index
    %c0_554 = arith.constant 0 : index
    %c0_555 = arith.constant 0 : index
    %1005 = vector.load %arg16[%c2_553, %c0_554, %c0_555] : memref<3x1x32xf32, #tpu.memory_space<vmem>>, vector<1x1x32xf32>
    %1006 = vector.shape_cast %1005 : vector<1x1x32xf32> to vector<1x32xf32>
    %1007 = vector.broadcast %1006 : vector<1x32xf32> to vector<16x32xf32>
    %1008 = arith.addf %1004, %1007 : vector<16x32xf32>
    %c2_556 = arith.constant 2 : index
    %c2_557 = arith.constant 2 : index
    %c0_558 = arith.constant 0 : index
    %c0_559 = arith.constant 0 : index
    %1009 = vector.load %arg17[%c2_556, %c2_557, %c0_558, %c0_559] : memref<3x3x1x32xf32, #tpu.memory_space<vmem>>, vector<1x1x1x32xf32>
    %1010 = vector.shape_cast %1009 : vector<1x1x1x32xf32> to vector<1x32xf32>
    %c2_560 = arith.constant 2 : index
    %c2_561 = arith.constant 2 : index
    %c0_562 = arith.constant 0 : index
    %c0_563 = arith.constant 0 : index
    %1011 = vector.load %arg18[%c2_560, %c2_561, %c0_562, %c0_563] : memref<3x3x1x32xf32, #tpu.memory_space<vmem>>, vector<1x1x1x32xf32>
    %1012 = vector.shape_cast %1011 : vector<1x1x1x32xf32> to vector<1x32xf32>
    %cst_564 = arith.constant dense<0.000000e+00> : vector<16xf32>
    %1013 = vector.multi_reduction <add>, %1008, %cst_564 [1] : vector<16x32xf32> to vector<16xf32>
    %1014 = vector.shape_cast %1013 : vector<16xf32> to vector<16x1xf32>
    %cst_565 = arith.constant 3.200000e+01 : f32
    %1015 = vector.broadcast %cst_565 : f32 to vector<16x1xf32>
    %1016 = arith.divf %1014, %1015 : vector<16x1xf32>
    %1017 = vector.broadcast %1016 : vector<16x1xf32> to vector<16x32xf32>
    %1018 = arith.subf %1008, %1017 : vector<16x32xf32>
    %1019 = arith.mulf %1018, %1018 : vector<16x32xf32>
    %cst_566 = arith.constant dense<0.000000e+00> : vector<16xf32>
    %1020 = vector.multi_reduction <add>, %1019, %cst_566 [1] : vector<16x32xf32> to vector<16xf32>
    %1021 = vector.shape_cast %1020 : vector<16xf32> to vector<16x1xf32>
    %cst_567 = arith.constant 3.200000e+01 : f32
    %1022 = vector.broadcast %cst_567 : f32 to vector<16x1xf32>
    %1023 = arith.divf %1021, %1022 : vector<16x1xf32>
    %1024 = vector.broadcast %1016 : vector<16x1xf32> to vector<16x32xf32>
    %1025 = arith.subf %1008, %1024 : vector<16x32xf32>
    %cst_568 = arith.constant 9.99999974E-6 : f32
    %1026 = vector.broadcast %cst_568 : f32 to vector<16x1xf32>
    %1027 = arith.addf %1023, %1026 : vector<16x1xf32>
    %1028 = math.rsqrt %1027 : vector<16x1xf32>
    %1029 = vector.broadcast %1028 : vector<16x1xf32> to vector<16x32xf32>
    %1030 = arith.mulf %1025, %1029 : vector<16x32xf32>
    %1031 = vector.broadcast %1010 : vector<1x32xf32> to vector<16x32xf32>
    %1032 = arith.mulf %1030, %1031 : vector<16x32xf32>
    %1033 = vector.broadcast %1012 : vector<1x32xf32> to vector<16x32xf32>
    %1034 = arith.addf %1032, %1033 : vector<16x32xf32>
    %c0_569 = arith.constant 0 : index
    %c0_570 = arith.constant 0 : index
    %1035 = vector.load %arg19[%c0_569, %c0_570] : memref<32x128xf32, #tpu.memory_space<vmem>>, vector<32x128xf32>
    %cst_571 = arith.constant dense<0.000000e+00> : vector<16x128xf32>
    %1036 = tpu.matmul %1034, %1035, %cst_571 {dimension_numbers = #tpu.dot_dimension_numbers<[1], [0], [0], [1], [0, 0, 1, 1], [], []>} : vector<16x32xf32>, vector<32x128xf32>, vector<16x128xf32> -> vector<16x128xf32>
    %c0_572 = arith.constant 0 : index
    %c0_573 = arith.constant 0 : index
    %1037 = vector.load %arg20[%c0_572, %c0_573] : memref<1x128xf32, #tpu.memory_space<vmem>>, vector<1x128xf32>
    %1038 = vector.broadcast %1037 : vector<1x128xf32> to vector<16x128xf32>
    %1039 = arith.addf %1036, %1038 : vector<16x128xf32>
    %1040 = vector.shape_cast %1039 : vector<16x128xf32> to vector<2x8x128xf32>
    %c0_574 = arith.constant 0 : index
    %c0_575 = arith.constant 0 : index
    %c0_576 = arith.constant 0 : index
    %1041 = vector.load %arg21[%c0_574, %c0_575, %c0_576] : memref<2x8x128xf32, #tpu.memory_space<vmem>>, vector<2x8x128xf32>
    tpu.vector_store %arg21[%c0_574, %c0_575, %c0_576], %1040 {strides = array<i32>} : memref<2x8x128xf32, #tpu.memory_space<vmem>>, vector<2x8x128xf32>,
    return
  }
  func.func @transform_0(%arg0: i32) -> (i32, i32, i32) {
    %c0_i32 = arith.constant 0 : i32
    %c0_i32_0 = arith.constant 0 : i32
    %c0_i32_1 = arith.constant 0 : i32
    return %arg0, %c0_i32, %c0_i32_0 : i32, i32, i32
  }
  func.func @transform_1(%arg0: i32) -> (i32, i32, i32) {
    %c0_i32 = arith.constant 0 : i32
    %c0_i32_0 = arith.constant 0 : i32
    %c0_i32_1 = arith.constant 0 : i32
    return %arg0, %c0_i32, %c0_i32_0 : i32, i32, i32
  }
  func.func @transform_2(%arg0: i32) -> (i32, i32, i32) {
    %c0_i32 = arith.constant 0 : i32
    %c0_i32_0 = arith.constant 0 : i32
    %c0_i32_1 = arith.constant 0 : i32
    return %arg0, %c0_i32, %c0_i32_0 : i32, i32, i32
  }
  func.func @transform_3(%arg0: i32) -> (i32, i32, i32) {
    %c0_i32 = arith.constant 0 : i32
    %c0_i32_0 = arith.constant 0 : i32
    %c0_i32_1 = arith.constant 0 : i32
    return %arg0, %c0_i32, %c0_i32_0 : i32, i32, i32
  }
  func.func @transform_4(%arg0: i32) -> (i32, i32, i32, i32) {
    %c0_i32 = arith.constant 0 : i32
    %c0_i32_0 = arith.constant 0 : i32
    %c0_i32_1 = arith.constant 0 : i32
    %c0_i32_2 = arith.constant 0 : i32
    %c0_i32_3 = arith.constant 0 : i32
    return %c0_i32, %c0_i32_0, %c0_i32_1, %c0_i32_2 : i32, i32, i32, i32
  }
  func.func @transform_5(%arg0: i32) -> (i32, i32, i32, i32) {
    %c0_i32 = arith.constant 0 : i32
    %c0_i32_0 = arith.constant 0 : i32
    %c0_i32_1 = arith.constant 0 : i32
    %c0_i32_2 = arith.constant 0 : i32
    %c0_i32_3 = arith.constant 0 : i32
    return %c0_i32, %c0_i32_0, %c0_i32_1, %c0_i32_2 : i32, i32, i32, i32
  }
  func.func @transform_6(%arg0: i32) -> (i32, i32, i32) {
    %c0_i32 = arith.constant 0 : i32
    %c0_i32_0 = arith.constant 0 : i32
    %c0_i32_1 = arith.constant 0 : i32
    %c0_i32_2 = arith.constant 0 : i32
    return %c0_i32, %c0_i32_0, %c0_i32_1 : i32, i32, i32
  }
  func.func @transform_7(%arg0: i32) -> (i32, i32, i32) {
    %c0_i32 = arith.constant 0 : i32
    %c0_i32_0 = arith.constant 0 : i32
    %c0_i32_1 = arith.constant 0 : i32
    %c0_i32_2 = arith.constant 0 : i32
    return %c0_i32, %c0_i32_0, %c0_i32_1 : i32, i32, i32
  }
  func.func @transform_8(%arg0: i32) -> (i32, i32, i32, i32) {
    %c0_i32 = arith.constant 0 : i32
    %c0_i32_0 = arith.constant 0 : i32
    %c0_i32_1 = arith.constant 0 : i32
    %c0_i32_2 = arith.constant 0 : i32
    %c0_i32_3 = arith.constant 0 : i32
    return %c0_i32, %c0_i32_0, %c0_i32_1, %c0_i32_2 : i32, i32, i32, i32
  }
  func.func @transform_9(%arg0: i32) -> (i32, i32, i32, i32) {
    %c0_i32 = arith.constant 0 : i32
    %c0_i32_0 = arith.constant 0 : i32
    %c0_i32_1 = arith.constant 0 : i32
    %c0_i32_2 = arith.constant 0 : i32
    %c0_i32_3 = arith.constant 0 : i32
    return %c0_i32, %c0_i32_0, %c0_i32_1, %c0_i32_2 : i32, i32, i32, i32
  }
  func.func @transform_10(%arg0: i32) -> (i32, i32, i32) {
    %c0_i32 = arith.constant 0 : i32
    %c0_i32_0 = arith.constant 0 : i32
    %c0_i32_1 = arith.constant 0 : i32
    %c0_i32_2 = arith.constant 0 : i32
    return %c0_i32, %c0_i32_0, %c0_i32_1 : i32, i32, i32
  }
  func.func @transform_11(%arg0: i32) -> (i32, i32, i32) {
    %c0_i32 = arith.constant 0 : i32
    %c0_i32_0 = arith.constant 0 : i32
    %c0_i32_1 = arith.constant 0 : i32
    %c0_i32_2 = arith.constant 0 : i32
    return %c0_i32, %c0_i32_0, %c0_i32_1 : i32, i32, i32
  }
  func.func @transform_12(%arg0: i32) -> (i32, i32, i32) {
    %c0_i32 = arith.constant 0 : i32
    %c0_i32_0 = arith.constant 0 : i32
    %c0_i32_1 = arith.constant 0 : i32
    %c0_i32_2 = arith.constant 0 : i32
    return %c0_i32, %c0_i32_0, %c0_i32_1 : i32, i32, i32
  }
  func.func @transform_13(%arg0: i32) -> (i32, i32, i32) {
    %c0_i32 = arith.constant 0 : i32
    %c0_i32_0 = arith.constant 0 : i32
    %c0_i32_1 = arith.constant 0 : i32
    %c0_i32_2 = arith.constant 0 : i32
    return %c0_i32, %c0_i32_0, %c0_i32_1 : i32, i32, i32
  }
  func.func @transform_14(%arg0: i32) -> (i32, i32, i32) {
    %c0_i32 = arith.constant 0 : i32
    %c0_i32_0 = arith.constant 0 : i32
    %c0_i32_1 = arith.constant 0 : i32
    %c0_i32_2 = arith.constant 0 : i32
    return %c0_i32, %c0_i32_0, %c0_i32_1 : i32, i32, i32
  }
  func.func @transform_15(%arg0: i32) -> (i32, i32, i32) {
    %c0_i32 = arith.constant 0 : i32
    %c0_i32_0 = arith.constant 0 : i32
    %c0_i32_1 = arith.constant 0 : i32
    %c0_i32_2 = arith.constant 0 : i32
    return %c0_i32, %c0_i32_0, %c0_i32_1 : i32, i32, i32
  }
  func.func @transform_16(%arg0: i32) -> (i32, i32, i32, i32) {
    %c0_i32 = arith.constant 0 : i32
    %c0_i32_0 = arith.constant 0 : i32
    %c0_i32_1 = arith.constant 0 : i32
    %c0_i32_2 = arith.constant 0 : i32
    %c0_i32_3 = arith.constant 0 : i32
    return %c0_i32, %c0_i32_0, %c0_i32_1, %c0_i32_2 : i32, i32, i32, i32
  }
  func.func @transform_17(%arg0: i32) -> (i32, i32, i32, i32) {
    %c0_i32 = arith.constant 0 : i32
    %c0_i32_0 = arith.constant 0 : i32
    %c0_i32_1 = arith.constant 0 : i32
    %c0_i32_2 = arith.constant 0 : i32
    %c0_i32_3 = arith.constant 0 : i32
    return %c0_i32, %c0_i32_0, %c0_i32_1, %c0_i32_2 : i32, i32, i32, i32
  }
  func.func @transform_18(%arg0: i32) -> (i32, i32) {
    %c0_i32 = arith.constant 0 : i32
    %c0_i32_0 = arith.constant 0 : i32
    %c0_i32_1 = arith.constant 0 : i32
    return %c0_i32, %c0_i32_0 : i32, i32
  }
  func.func @transform_19(%arg0: i32) -> (i32, i32) {
    %c0_i32 = arith.constant 0 : i32
    %c0_i32_0 = arith.constant 0 : i32
    %c0_i32_1 = arith.constant 0 : i32
    return %c0_i32, %c0_i32_0 : i32, i32
  }
  func.func @transform_20(%arg0: i32) -> (i32, i32, i32) {
    %c0_i32 = arith.constant 0 : i32
    %c0_i32_0 = arith.constant 0 : i32
    %c0_i32_1 = arith.constant 0 : i32
    return %arg0, %c0_i32, %c0_i32_0 : i32, i32, i32
  }
}

</mosaic_0001>

<bundles_post_ra>
// kernel: tpu_custom_call.1
= control target key start
LH: loop header
LB: loop body
LE: loop exit
PB: predicated region body
PF: predicated region fallthrough
CT: control target
= control target key end

     0   :  { %s8751_s0 = inlined_call_operand.hbm [shape: f32[2,8,32], index: 0, kind: input, shape index: {}]   ;;  %s8752_s1 = inlined_call_operand.hbm [shape: f32[2,16,32], index: 1, kind: input, shape index: {}]   ;;  %s8753_s2 = inlined_call_operand.hbm [shape: f32[2,8,8], index: 2, kind: input, shape index: {}]   ;;  %s8754_s3 = inlined_call_operand.vmem [shape: f32[2,1,16], index: 3, kind: input, shape index: {}]   ;;  %s8755_s4 = inlined_call_operand.vmem [shape: f32[3,3,32,32], index: 4, kind: input, shape index: {}]   ;;  %s8756_s5 = inlined_call_operand.hbm [shape: f32[3,3,1,32], index: 5, kind: input, shape index: {}]   ;;  %s8757_s6 = inlined_call_operand.vmem [shape: f32[3,32,32], index: 6, kind: input, shape index: {}]   ;;  %s8758_s7 = inlined_call_operand.hbm [shape: f32[3,1,32], index: 7, kind: input, shape index: {}]   ;;  %s8759_s8 = inlined_call_operand.hbm [shape: f32[3,3,32,32], index: 8, kind: input, shape index: {}]   ;;  %s8760_s9 = inlined_call_operand.hbm [shape: f32[3,3,1,32], index: 9, kind: input, shape index: {}]   ;;  %s8761_s10 = inlined_call_operand.vmem [shape: f32[3,32,32], index: 10, kind: input, shape index: {}]   ;;  %s8762_s11 = inlined_call_operand.hbm [shape: f32[3,1,32], index: 11, kind: input, shape index: {}]   ;;  %s8763_s12 = inlined_call_operand.hbm [shape: f32[3,32,128], index: 12, kind: input, shape index: {}]   ;;  %s8764_s13 = inlined_call_operand.hbm [shape: f32[3,1,128], index: 13, kind: input, shape index: {}]   ;;  %s8765_s14 = inlined_call_operand.vmem [shape: f32[3,128,32], index: 14, kind: input, shape index: {}]   ;;  %s8766_s15 = inlined_call_operand.hbm [shape: f32[3,1,32], index: 15, kind: input, shape index: {}]   ;;  %s8767_s16 = inlined_call_operand.vmem [shape: f32[3,3,1,32], index: 16, kind: input, shape index: {}]   ;;  %s8768_s17 = inlined_call_operand.hbm [shape: f32[3,3,1,32], index: 17, kind: input, shape index: {}]   ;;  %s8769_s18 = inlined_call_operand.hbm [shape: f32[32,128], index: 18, kind: input, shape index: {}]   ;;  %s8770_s19 = inlined_call_operand.vmem [shape: f32[1,128], index: 19, kind: input, shape index: {}]   ;;  %s8771_s20 = inlined_call_operand.hbm [shape: f32[2,8,128], index: 20, kind: output, shape index: {}]  }
   0x1   :  { %8774 = sst [smem:[#allocation32_spill]] %s8751_s0 }
   0x2   :  { %8775 = sst [smem:[#allocation33_spill]] %s8752_s1 }
   0x3   :  { %8776 = sst [smem:[#allocation34_spill]] %s8753_s2 }
   0x4   :  { %8777 = sst [smem:[#allocation35_spill]] %s8754_s3 }
   0x5   :  { %8778 = sst [smem:[#allocation36_spill]] %s8755_s4 }
   0x6   :  { %25 = vsyncpa [#allocation3], 0 }
   0x7   :  { %26 = vsyncpa [#allocation6], 0 }
   0x8   :  { %27 = vsyncpa [#allocation9], 0 }
   0x9   :  { %28 = vsyncpa [#allocation12], 0 }
   0xa   :  { %29 = vsyncpa [#allocation15], 0 }
   0xb   :  { %30 = vsyncpa [#allocation18], 0 }
   0xc   :  { %31 = vsyncpa [#allocation21], 0 }
   0xd   :  { %32 = vsyncpa [#allocation4], 0  ;;  %s8779_s23 = sld [smem:[#allocation33_spill]]  ;;  %s7085_s2 = smov [#allocation5]  }
   0xe   :  { %s52_s25 = sshll.u32 %s7085_s2, 4  ;;  %s80_s27 = sshll.u32 %s8756_s5, 4  ;;  %s53_s25 = int_to_ptr.vmem [resolvable:$true] %s52_s25  ;;  %s81_s27 = int_to_ptr.hbm [resolvable:$true] %s80_s27 }
   0xf   :  { %s7086_s28 = smov 128   ;;  %s7087_s4 = smov 8  }
  0x10   :  { %s7088_s29 = smov [#allocation8]   ;;  %s7089_s0 = smov 16  }
  0x11   :  { %s82_s30 = sshll.u32 %s7088_s29, 4  ;;  %s7090_s21 = smov 1   ;;  %s83_s30 = int_to_ptr.vmem [resolvable:$true] %s82_s30 }
  0x12   :  { %88 = dma.hbm_to_vmem [thread:$0]  %s81_s27, 144, %s83_s30, [#allocation9], %s7089_s0, %s7089_s0, %s7090_s21  }
  0x13   :  { %s50_s24 = sshll.u32 %s8779_s23, 4  ;;  %s108_s5 = sshll.u32 %s8759_s8, 4  ;;  %s51_s24 = int_to_ptr.hbm [resolvable:$true] %s50_s24  ;;  %s109_s5 = int_to_ptr.hbm [resolvable:$true] %s108_s5 }
  0x14   :  { %58 = dma.hbm_to_vmem [thread:$0]  %s51_s24, 512, %s53_s25, [#allocation6], %s7086_s28, %s7086_s28, %s7087_s4  }
  0x15   :  { %s7091_s23 = smov [#allocation11]   ;;  %s136_s25 = sshll.u32 %s8762_s11, 4  ;;  %s137_s25 = int_to_ptr.hbm [resolvable:$true] %s136_s25 }
  0x16   :  { %s110_s2 = sshll.u32 %s7091_s23, 4  ;;  %s7092_s26 = smov [#allocation14]   ;;  %s111_s2 = int_to_ptr.vmem [resolvable:$true] %s110_s2 }
  0x17   :  { %116 = dma.hbm_to_vmem [thread:$0]  %s109_s5, 4608, %s111_s2, [#allocation12], %s7086_s28, %s7086_s28, %s7087_s4  }
  0x18   :  { %s138_s29 = sshll.u32 %s7092_s26, 4  ;;  %s162_s1 = sshll.u32 %s8764_s13, 4  ;;  %s139_s29 = int_to_ptr.vmem [resolvable:$true] %s138_s29  ;;  %s163_s1 = int_to_ptr.hbm [resolvable:$true] %s162_s1 }
  0x19   :  { %144 = dma.hbm_to_vmem [thread:$0]  %s137_s25, 48, %s139_s29, [#allocation15], %s7089_s0, %s7089_s0, %s7090_s21  }
  0x1a   :  { %s192_s11 = sshll.u32 %s8768_s17, 4  ;;  %s7093_s23 = smov [#allocation17]   ;;  %s193_s11 = int_to_ptr.hbm [resolvable:$true] %s192_s11 }
  0x1b   :  { %s164_s3 = sshll.u32 %s7093_s23, 4  ;;  %s7094_s5 = smov [#allocation20]   ;;  %s165_s3 = int_to_ptr.vmem [resolvable:$true] %s164_s3 }
  0x1c   :  { %170 = dma.hbm_to_vmem [thread:$0]  %s163_s1, 48, %s165_s3, [#allocation18], %s7089_s0, %s7089_s0, %s7090_s21  }
  0x1d   :  { %s194_s13 = sshll.u32 %s7094_s5, 4  ;;  %s8780_s26 = sld [smem:[#allocation32_spill]]  ;;  %s195_s13 = int_to_ptr.vmem [resolvable:$true] %s194_s13 }
  0x1e   :  { %200 = dma.hbm_to_vmem [thread:$0]  %s193_s11, 144, %s195_s13, [#allocation21], %s7089_s0, %s7089_s0, %s7090_s21  }
  0x1f   :  { %s8781_s29 = sld [smem:[#allocation34_spill]]  ;;  %s7095_s8 = smov [#allocation2]  }
  0x20   :  { %s39_s22 = sshll.u32 %s7095_s8, 4  ;;  %s7096_s1 = smov [#allocation7]   ;;  %s40_s22 = int_to_ptr.vmem [resolvable:$true] %s39_s22 }
  0x21   :  { %s65_s23 = sshll.u32 %s7096_s1, 4  ;;  %s95_s2 = sshll.u32 %s8758_s7, 4  ;;  %s66_s23 = int_to_ptr.vmem [resolvable:$true] %s65_s23  ;;  %s96_s2 = int_to_ptr.hbm [resolvable:$true] %s95_s2 }
  0x22   :  { %s121_s24 = sshll.u32 %s8760_s9, 4  ;;  %s149_s8 = sshll.u32 %s8763_s12, 4  ;;  %s122_s24 = int_to_ptr.hbm [resolvable:$true] %s121_s24  ;;  %s150_s8 = int_to_ptr.hbm [resolvable:$true] %s149_s8 }
  0x23   :  { %s37_s27 = sshll.u32 %s8780_s26, 4  ;;  %s7097_s26 = smov [#allocation10]   ;;  %s38_s27 = int_to_ptr.hbm [resolvable:$true] %s37_s27 }
  0x24   :  { %45 = dma.hbm_to_vmem [thread:$0]  %s38_s27, 256, %s40_s22, [#allocation3], %s7086_s28, %s7086_s28, %s7087_s4  }
  0x25   :  { %s63_s30 = sshll.u32 %s8781_s29, 4  ;;  %s97_s17 = sshll.u32 %s7097_s26, 4  ;;  %s64_s30 = int_to_ptr.hbm [resolvable:$true] %s63_s30  ;;  %s98_s17 = int_to_ptr.vmem [resolvable:$true] %s97_s17 }
  0x26   :  { %71 = dma.hbm_to_vmem [thread:$0]  %s64_s30, 256, %s66_s23, [#allocation6], %s7086_s28, %s7086_s28, %s7087_s4  }
  0x27   :  { %103 = dma.hbm_to_vmem [thread:$0]  %s96_s2, 48, %s98_s17, [#allocation9], %s7089_s0, %s7089_s0, %s7090_s21  }
  0x28   :  { %s7098_s27 = smov [#allocation13]   ;;  %s177_s22 = sshll.u32 %s8766_s15, 4  ;;  %s178_s22 = int_to_ptr.hbm [resolvable:$true] %s177_s22 }
  0x29   :  { %s123_s7 = sshll.u32 %s7098_s27, 4  ;;  %s7099_s1 = smov [#allocation16]   ;;  %s124_s7 = int_to_ptr.vmem [resolvable:$true] %s123_s7 }
  0x2a   :  { %129 = dma.hbm_to_vmem [thread:$0]  %s122_s24, 144, %s124_s7, [#allocation12], %s7089_s0, %s7089_s0, %s7090_s21  }
  0x2b   :  { %s151_s23 = sshll.u32 %s7099_s1, 4  ;;  %s7100_s3 = smov [#allocation19]   ;;  %s152_s23 = int_to_ptr.vmem [resolvable:$true] %s151_s23 }
  0x2c   :  { %157 = dma.hbm_to_vmem [thread:$0]  %s150_s8, 1536, %s152_s23, [#allocation15], %s7086_s28, %s7086_s28, %s7087_s4  }
  0x2d   :  { %s179_s12 = sshll.u32 %s7100_s3, 4  ;;  %s205_s11 = sshll.u32 %s8769_s18, 4  ;;  %s180_s12 = int_to_ptr.vmem [resolvable:$true] %s179_s12  ;;  %s206_s11 = int_to_ptr.hbm [resolvable:$true] %s205_s11 }
  0x2e   :  { %185 = dma.hbm_to_vmem [thread:$0]  %s178_s22, 48, %s180_s12, [#allocation18], %s7089_s0, %s7089_s0, %s7090_s21  }
  0x2f   :  { %s7101_s15 = smov [#allocation22]  }
  0x30   :  { %s207_s13 = sshll.u32 %s7101_s15, 4  ;;  %s208_s13 = int_to_ptr.vmem [resolvable:$true] %s207_s13 }
  0x31   :  { %213 = dma.hbm_to_vmem [thread:$0]  %s206_s11, 512, %s208_s13, [#allocation21], %s7086_s28, %s7086_s28, %s7087_s4  }
  0x32   :  { %7069 = dma.done.wait [#allocation3], 256  }
  0x33   :  { %7070 = vsyncadd [#allocation3], 4294967040 }
  0x34   :  { %7071 = dma.done.wait [#allocation6], 768  }
  0x35   :  { %7072 = vsyncadd [#allocation6], 4294966528 }
  0x36   :  { %7073 = dma.done.wait [#allocation9], 192  }
  0x37   :  { %7074 = vsyncadd [#allocation9], 4294967104 }
  0x38   :  { %7075 = dma.done.wait [#allocation12], 4752  }
  0x39   :  { %7076 = vsyncadd [#allocation12], 4294962544 }
  0x3a   :  { %7077 = dma.done.wait [#allocation15], 1584  }
  0x3b   :  { %7078 = vsyncadd [#allocation15], 4294965712 }
  0x3c   :  { %7079 = dma.done.wait [#allocation18], 96  }
  0x3d   :  { %7080 = vsyncadd [#allocation18], 4294967200 }
  0x3e   :  { %7081 = dma.done.wait [#allocation21], 656  }
  0x3f   :  { %7082 = vsyncadd [#allocation21], 4294966640  ;;  %s8782_s21 = sld [smem:[#allocation36_spill]]  ;;  %v7317_v9 = vld [vmem:[#allocation2] sm:$0xff]  ;;  %vm286_vm0 = vcmask 261120   ;;  %v7332_v13 = vld [vmem:[#allocation2 + $0x8] sm:$0xff] }
  0x40   :  { %v6436_v14 = vld [vmem:[#allocation8 + $0x1] ss:$0 sm:$0xff]  ;;  %v6437_v15 = vld [vmem:[#allocation8] ss:$0 sm:$0xff]  ;;  %vm387_vm1 = vcmask 64512   ;;  %s7102_s24 = smov 120  }
  0x41   :  { %v6438_v24 = vld [vmem:[#allocation8 + $0x2] ss:$0 sm:$0xff]  ;;  %v7375_v33 = vld [vmem:[#allocation7] sm:$0xff]  ;;  %v7379_v38 = vld [vmem:[#allocation7 + $0x8] sm:$0xff]  ;;  %s7103_s26 = smov 112   ;;  %s7104_s7 = smov 104  }
  0x42   :  { %s8783_s5 = sld [smem:[#allocation35_spill]]  ;;  %vm1309_vm9 = vcmask 130048   ;;  %s5935_s2 = sshll.u32 %s8771_s20, 4  ;;  %s5936_s2 = int_to_ptr.hbm [resolvable:$true] %s5935_s2 }
  0x45   :  { %v5959_v0 = vld [vmem:[%s8782_s21 + $0x38] sm:$0xff]  ;;  %v5958_v1 = vld [vmem:[%s8782_s21 + $0x30] sm:$0xff]  ;;  %v5957_v4 = vld [vmem:[%s8782_s21 + $0x28] sm:$0xff] }
  0x46   :  { %v281_v2 = vld [vmem:[%s8782_s21 + $0x18] sm:$0xff]  ;;  %338 = vmatpush.msra.mxu1 %v5959_v0  ;;  %v280_v3 = vld [vmem:[%s8782_s21 + $0x10] sm:$0xff]  ;;  %v279_v5 = vld [vmem:[%s8782_s21 + $0x8] sm:$0xff] }
  0x47   :  { %305 = vmatpush.msra.mxu0 %v281_v2  ;;  %v5956_v6 = vld [vmem:[%s8782_s21 + $0x20] sm:$0xff]  ;;  %v5965_v7 = vld [vmem:[%s8782_s21 + $0x58] sm:$0xff]  ;;  %v5964_v8 = vld [vmem:[%s8782_s21 + $0x50] sm:$0xff] }
  0x48   :  { %339 = vmatpush.msra.mxu1 %v5958_v1  ;;  %v278_v10 = vld [vmem:[%s8782_s21] sm:$0xff]  ;;  %371 = vmatpush.msra.mxu2 %v5965_v7  ;;  %v5963_v11 = vld [vmem:[%s8782_s21 + $0x48] sm:$0xff] }
  0x49   :  { %306 = vmatpush.msra.mxu0 %v280_v3  ;;  %v5962_v12 = vld [vmem:[%s8782_s21 + $0x40] sm:$0xff] }
  0x4a   :  { %340 = vmatpush.msra.mxu1 %v5957_v4  ;;  %372 = vmatpush.msra.mxu2 %v5964_v8 }
  0x4b   :  { %307 = vmatpush.msra.mxu0 %v279_v5  ;;  %v512_v5 = vld [vmem:[%s8757_s6] sm:$0xff] }
  0x4c   :  { %341 = vmatpush.msra.mxu1 %v5956_v6  ;;  %373 = vmatpush.msra.mxu2 %v5963_v11 }
  0x4d   :  { %308 = vmatpush.msra.mxu0 %v278_v10  ;;  %5960 = vmatmul.msk.f32.vlgmr.msra.gmra.mxu1 %vm286_vm0, %v7317_v9 }
  0x4e   :  { %5954 = vmatmul.msk.f32.vlgmr.msra.gmra.mxu0 %vm286_vm0, %v7317_v9  ;;  %374 = vmatpush.msra.mxu2 %v5962_v12 }
  0x4f   :  { %5966 = vmatmul.msk.f32.vlgmr.msra.gmra.mxu2 %vm286_vm0, %v7317_v9 }
  0x55   :  { %5961 = vmatmul.msk.f32.gmra.mxu1 %vm286_vm0, %v7332_v13 }
  0x56   :  { %5955 = vmatmul.msk.f32.gmra.mxu0 %vm286_vm0, %v7332_v13 }
  0x57   :  { %5967 = vmatmul.msk.f32.gmra.mxu2 %vm286_vm0, %v7332_v13 }
  0xca   :  { %v343_v16 = vpop.f32.mrf.mxu1 }
  0xcb   :  { %v310_v17 = vpop.f32.mrf.mxu0  ;;  %v7342_v18 = vadd.f32 %v6436_v14, %v343_v16 }
  0xcc   :  { %v7344_v19 = vadd.f32 %v6437_v15, %v310_v17 }
  0xcd   :  { %546 = vrot.lane.b32.xlu0 %v7342_v18, %s7102_s24  ;;  %5968 = vmatpush.xpose.msk.msrb.mxu1 %vm387_vm1, %v7342_v18 }
  0xd0   :  { %5969 = vmatmul.msk.f32.vlgmr.msrb.gmra.mxu1 %vm387_vm1, %v7344_v19 }
  0xd1   :  { %534 = vmatpush.msra.mxu1 %v512_v5 }
  0xd2   :  { %v346_v20 = vpop.f32.mrf.mxu1  ;;  %v376_v25 = vpop.f32.mrf.mxu2 }
  0xd3   :  { %v313_v21 = vpop.f32.mrf.mxu0  ;;  %v7352_v22 = vadd.f32 %v6436_v14, %v346_v20  ;;  %v7366_v26 = vadd.f32 %v6438_v24, %v376_v25 }
  0xd4   :  { %v7354_v23 = vadd.f32 %v6437_v15, %v313_v21  ;;  %v680_v21 = vld [vmem:[%s8757_s6 + $0x8] sm:$0xff] }
  0xd5   :  { %5970 = vmatpush.xpose.msk.msrb.mxu2 %vm387_vm1, %v7352_v22  ;;  %544 = vrot.lane.b32.xlu0 %v7344_v19, %s7102_s24 }
  0xd6   :  { %574 = vrot.lane.b32.xlu2 %v7352_v22, %s7102_s24  ;;  %484 = vmatpush.msra.mxu3 %v7366_v26 }
  0xd8   :  { %5971 = vmatmul.msk.f32.vlgmr.msrb.gmra.mxu2 %vm387_vm1, %v7354_v23 }
  0xda   :  { %v379_v27 = vpop.f32.mrf.mxu2 }
  0xdb   :  { %v7369_v28 = vadd.f32 %v6438_v24, %v379_v27 }
  0xdd   :  { %507 = vmatpush.msrb.mxu0 %v7369_v28 }
  0xde   :  { %572 = vrot.lane.b32.xlu2 %v7354_v23, %s7102_s24 }
 0x130   :  { %v575_v30 = vpop.permute.xlu2 %574 }
 0x131   :  { %5978 = vmatpush.xpose.msk.msrb.mxu3 %vm387_vm1, %v575_v30 }
 0x138   :  { %v573_v57 = vpop.permute.xlu2 %572 }
 0x13f   :  { %v547_v29 = vpop.permute.xlu0 %546 }
 0x140   :  { %5976 = vmatpush.xpose.msk.msra.mxu2 %vm387_vm1, %v547_v29 }
 0x147   :  { %v545_v31 = vpop.permute.xlu0 %544 }
 0x148   :  { %5977 = vmatmul.msk.f32.vlgmr.msra.gmra.mxu2 %vm387_vm1, %v545_v31 }
 0x14d   :  { %v411_v32 = vpop.f32.mrf.mxu1 }
 0x14e   :  { %v440_v34 = vmul.f32 0.35355338, %v411_v32 }
 0x150   :  { %v442_v35 = vadd.f32 %v440_v34, %v7375_v33 }
 0x152   :  { %v444_v36 = vsel %vm387_vm1, %v442_v35, -inf }
 0x153   :  { %445 = vmax.xlane.f32.xlu1 %v444_v36 }
 0x15b   :  { %v437_v37 = vpop.f32.mrf.mxu2 }
 0x15c   :  { %v441_v39 = vmul.f32 0.35355338, %v437_v37 }
 0x15e   :  { %v443_v40 = vadd.f32 %v441_v39, %v7379_v38 }
 0x160   :  { %v447_v41 = vsel %vm387_vm1, %v443_v40, -inf }
 0x161   :  { %448 = vmax.xlane.f32.xlu0 %v447_v41 }
 0x1c6   :  { %v446_v42 = vpop.xlane.xlu1 %445 }
 0x1c7   :  { %v450_v43 = vsub.f32 %v442_v35, %v446_v42 }
 0x1c9   :  { %v452_v44 = vmul.f32 1.442695, %v450_v43 }
 0x1cb   :  { %6487 = vpow2.f32 %v452_v44  ;;  %v569_v45 = vpop.f32.mrf.mxu2 }
 0x1cc   :  { %v600_v47 = vmul.f32 0.35355338, %v569_v45 }
 0x1ce   :  { %v602_v51 = vadd.f32 %v600_v47, %v7375_v33 }
 0x1d0   :  { %v604_v53 = vsel %vm387_vm1, %v602_v51, -inf }
 0x1d1   :  { %v6488_v46 = vpop.eup %6487 }
 0x1d2   :  { %v456_v48 = vsel %vm387_vm1, %v6488_v46, 0.0 }
 0x1d3   :  { %457 = vadd.xlane.f32.xlu1 %v456_v48 }
 0x1d4   :  { %v449_v49 = vpop.xlane.xlu0 %448 }
 0x1d5   :  { %v451_v50 = vsub.f32 %v443_v40, %v449_v49 }
 0x1d7   :  { %v454_v52 = vmul.f32 1.442695, %v451_v50 }
 0x1d9   :  { %6489 = vpow2.f32 %v454_v52 }
 0x1db   :  { %605 = vmax.xlane.f32.xlu1 %v604_v53 }
 0x1df   :  { %v6490_v54 = vpop.eup %6489 }
 0x1e0   :  { %v459_v55 = vsel %vm387_vm1, %v6490_v54, 0.0 }
 0x1e1   :  { %460 = vadd.xlane.f32.xlu2 %v459_v55 }
 0x1f4   :  { %627 = vrot.lane.b32.xlu1 %v7366_v26, %s7102_s24 }
 0x1f9   :  { %712 = vrot.lane.b32.xlu2 %v7344_v19, %s7103_s26 }
 0x246   :  { %v458_v56 = vpop.xlane.xlu1 %457 }
 0x247   :  { %6491 = vrcp.f32 %v458_v56 }
 0x24d   :  { %v6492_v58 = vpop.eup %6491 }
 0x24e   :  { %v606_v59 = vpop.xlane.xlu1 %605  ;;  %v464_v60 = vmul.f32 %v6492_v58, %v6488_v46 }
 0x24f   :  { %v610_v61 = vsub.f32 %v602_v51, %v606_v59 }
 0x250   :  { %5972 = vmatmul.msk.f32.vlgmr.msra.gmra.mxu3 %vm387_vm1, %v464_v60  ;;  %v846_v60 = vld [vmem:[%s8757_s6 + $0x10] sm:$0xff] }
 0x251   :  { %v612_v62 = vmul.f32 1.442695, %v610_v61  ;;  %702 = vmatpush.msra.mxu3 %v680_v21 }
 0x253   :  { %6493 = vpow2.f32 %v612_v62 }
 0x254   :  { %v461_v63 = vpop.xlane.xlu2 %460 }
 0x255   :  { %6495 = vrcp.f32 %v461_v63 }
 0x258   :  { %5979 = vmatmul.msk.f32.vlgmr.msrb.gmra.mxu3 %vm387_vm1, %v573_v57 }
 0x259   :  { %v6494_v0 = vpop.eup %6493 }
 0x25a   :  { %v616_v1 = vsel %vm387_vm1, %v6494_v0, 0.0 }
 0x25b   :  { %v6496_v2 = vpop.eup %6495  ;;  %617 = vadd.xlane.f32.xlu1 %v616_v1 }
 0x25c   :  { %v465_v3 = vmul.f32 %v6496_v2, %v6490_v54  ;;  %v713_v20 = vpop.permute.xlu2 %712 }
 0x25e   :  { %5973 = vmatmul.msk.f32.vlgmr.msrb.gmra.mxu0 %vm387_vm1, %v465_v3 }
 0x266   :  { %v628_v4 = vpop.permute.xlu1 %627 }
 0x267   :  { %648 = vmatpush.msra.mxu0 %v628_v4 }
 0x274   :  { %714 = vrot.lane.b32.xlu1 %v7342_v18, %s7103_s26 }
 0x2ce   :  { %v618_v6 = vpop.xlane.xlu1 %617 }
 0x2cf   :  { %6497 = vrcp.f32 %v618_v6 }
 0x2d3   :  { %v486_v7 = vpop.f32.mrf.mxu3 }
 0x2d4   :  { %5974 = vmatmul.msk.f32.vlgmr.msra.gmra.mxu1 %vm387_vm1, %v486_v7 }
 0x2d5   :  { %v6498_v8 = vpop.eup %6497 }
 0x2d6   :  { %v624_v10 = vmul.f32 %v6498_v8, %v6494_v0 }
 0x2d8   :  { %5980 = vmatmul.msk.f32.vlgmr.msra.gmra.mxu0 %vm387_vm1, %v624_v10 }
 0x2db   :  { %v509_v11 = vpop.f32.mrf.mxu0  ;;  %v597_v12 = vpop.f32.mrf.mxu3 }
 0x2dc   :  { %v601_v14 = vmul.f32 0.35355338, %v597_v12  ;;  %5975 = vmatmul.msk.f32.gmra.mxu1 %vm387_vm1, %v509_v11 }
 0x2de   :  { %v603_v15 = vadd.f32 %v601_v14, %v7379_v38 }
 0x2e0   :  { %v607_v16 = vsel %vm387_vm1, %v603_v15, -inf }
 0x2e1   :  { %608 = vmax.xlane.f32.xlu0 %v607_v16 }
 0x2e6   :  { %v715_v17 = vpop.permute.xlu1 %714 }
 0x2e7   :  { %5984 = vmatpush.xpose.msk.msrb.mxu0 %vm387_vm1, %v715_v17 }
 0x2ea   :  { %5985 = vmatmul.msk.f32.vlgmr.msrb.gmra.mxu0 %vm387_vm1, %v713_v20 }
 0x2f5   :  { %654 = vrot.lane.b32.xlu0 %v7369_v28, %s7102_s24 }
 0x2fd   :  { %880 = vrot.lane.b32.xlu0 %v7342_v18, %s7104_s7 }
 0x351   :  { %v7436_v49 = vpop.f32.mrf.mxu1 }
 0x354   :  { %v609_v24 = vpop.xlane.xlu0 %608 }
 0x355   :  { %v611_v25 = vsub.f32 %v603_v15, %v609_v24  ;;  %v650_v27 = vpop.f32.mrf.mxu0 }
 0x356   :  { %5982 = vmatmul.msk.f32.vlgmr.msra.gmra.mxu3 %vm387_vm1, %v650_v27 }
 0x357   :  { %v614_v29 = vmul.f32 1.442695, %v611_v25 }
 0x359   :  { %6499 = vpow2.f32 %v614_v29  ;;  %v7439_v54 = vpop.f32.mrf.mxu1 }
 0x35f   :  { %v6500_v30 = vpop.eup %6499 }
 0x360   :  { %v619_v31 = vsel %vm387_vm1, %v6500_v30, 0.0 }
 0x361   :  { %620 = vadd.xlane.f32.xlu1 %v619_v31 }
 0x367   :  { %v655_v32 = vpop.permute.xlu0 %654  ;;  %v737_v34 = vpop.f32.mrf.mxu0 }
 0x368   :  { %v768_v35 = vmul.f32 0.35355338, %v737_v34  ;;  %675 = vmatpush.msrb.mxu2 %v655_v32  ;;  %v6336_v34 = vpack.i.bf16 %v7369_v28, %v7366_v26 }
 0x36a   :  { %v770_v18 = vadd.f32 %v768_v35, %v7375_v33 }
 0x36c   :  { %v772_v36 = vsel %vm387_vm1, %v770_v18, -inf }
 0x36d   :  { %773 = vmax.xlane.f32.xlu2 %v772_v36 }
 0x36f   :  { %v881_v47 = vpop.permute.xlu0 %880 }
 0x37a   :  { %794 = vrot.lane.b32.xlu1 %v7366_v26, %s7103_s26 }
 0x382   :  { %740 = vrot.lane.b32.xlu1 %v7354_v23, %s7103_s26 }
 0x385   :  { %742 = vrot.lane.b32.xlu2 %v7352_v22, %s7103_s26 }
 0x38a   :  { %908 = vrot.lane.b32.xlu1 %v7352_v22, %s7104_s7 }
 0x38d   :  { %878 = vrot.lane.b32.xlu2 %v7344_v19, %s7104_s7 }
 0x3d4   :  { %v621_v37 = vpop.xlane.xlu1 %620 }
 0x3d5   :  { %6501 = vrcp.f32 %v621_v37 }
 0x3d9   :  { %v7449_v61 = vpop.f32.mrf.mxu3 }
 0x3db   :  { %v6502_v39 = vpop.eup %6501 }
 0x3dc   :  { %v625_v40 = vmul.f32 %v6502_v39, %v6500_v30 }
 0x3de   :  { %5981 = vmatmul.msk.f32.vlgmr.msrb.gmra.mxu2 %vm387_vm1, %v625_v40 }
 0x3e0   :  { %v774_v41 = vpop.xlane.xlu2 %773 }
 0x3e1   :  { %v778_v42 = vsub.f32 %v770_v18, %v774_v41 }
 0x3e3   :  { %v780_v43 = vmul.f32 1.442695, %v778_v42 }
 0x3e5   :  { %6503 = vpow2.f32 %v780_v43 }
 0x3e8   :  { %v743_v44 = vpop.permute.xlu2 %742 }
 0x3e9   :  { %5986 = vmatpush.xpose.msk.msrb.mxu1 %vm387_vm1, %v743_v44 }
 0x3eb   :  { %v6504_v45 = vpop.eup %6503 }
 0x3ec   :  { %v795_v46 = vpop.permute.xlu1 %794  ;;  %v784_v22 = vsel %vm387_vm1, %v6504_v45, 0.0 }
 0x3ed   :  { %785 = vadd.xlane.f32.xlu0 %v784_v22  ;;  %815 = vmatpush.msra.mxu2 %v795_v46  ;;  %v6439_v46 = vld [vmem:[#allocation10] ss:$0 sm:$0xff] }
 0x3ee   :  { %868 = vmatpush.msra.mxu1 %v846_v60  ;;  %v542_v22 = vadd.f32 %v6439_v46, %v7436_v49 }
 0x3ef   :  { %5992 = vmatpush.xpose.msk.msrb.mxu2 %vm387_vm1, %v881_v47 }
 0x3f0   :  { %v879_v55 = vpop.permute.xlu2 %878 }
 0x3f4   :  { %v741_v19 = vpop.permute.xlu1 %740 }
 0x3f5   :  { %5987 = vmatmul.msk.f32.vlgmr.msrb.gmra.mxu1 %vm387_vm1, %v741_v19  ;;  %v710_v19 = vadd.f32 %v7449_v61, %v542_v22  ;;  %v7105_v61 = vmov 32.0  }
 0x3fc   :  { %v909_v48 = vpop.permute.xlu1 %908 }
 0x3fd   :  { %5994 = vmatpush.xpose.msk.msrb.mxu3 %vm387_vm1, %v909_v48 }
 0x401   :  { %906 = vrot.lane.b32.xlu0 %v7354_v23, %s7104_s7 }
 0x460   :  { %v786_v50 = vpop.xlane.xlu0 %785 }
 0x461   :  { %6505 = vrcp.f32 %v786_v50  ;;  %v677_v51 = vpop.f32.mrf.mxu2 }
 0x462   :  { %5983 = vmatmul.msk.f32.gmra.mxu3 %vm387_vm1, %v677_v51 }
 0x467   :  { %v6506_v52 = vpop.eup %6505 }
 0x468   :  { %v792_v53 = vmul.f32 %v6506_v52, %v6504_v45  ;;  %v543_v52 = vadd.f32 %v6439_v46, %v7439_v54 }
 0x46a   :  { %5988 = vmatmul.msk.f32.vlgmr.msra.gmra.mxu2 %vm387_vm1, %v792_v53 }
 0x472   :  { %v765_v56 = vpop.f32.mrf.mxu1  ;;  %5993 = vmatmul.msk.f32.vlgmr.msrb.gmra.mxu2 %vm387_vm1, %v879_v55 }
 0x473   :  { %v769_v57 = vmul.f32 0.35355338, %v765_v56  ;;  %v907_v58 = vpop.permute.xlu0 %906 }
 0x474   :  { %5995 = vmatmul.msk.f32.vlgmr.msrb.gmra.mxu3 %vm387_vm1, %v907_v58 }
 0x475   :  { %v771_v23 = vadd.f32 %v769_v57, %v7379_v38 }
 0x477   :  { %v775_v59 = vsel %vm387_vm1, %v771_v23, -inf }
 0x478   :  { %776 = vmax.xlane.f32.xlu1 %v775_v59 }
 0x4e5   :  { %v7452_v2 = vpop.f32.mrf.mxu3 }
 0x4e6   :  { %v711_v56 = vadd.f32 %v7452_v2, %v543_v52  ;;  %v1147_v2 = vld [vmem:[#allocation11 + $0x20] sm:$0xff]  ;;  %v6441_v52 = vld [vmem:[#allocation20] ss:$0 sm:$0xff] }
 0x4eb   :  { %v777_v62 = vpop.xlane.xlu1 %776 }
 0x4ec   :  { %v779_v63 = vsub.f32 %v771_v23, %v777_v62 }
 0x4ed   :  { %v817_v0 = vpop.f32.mrf.mxu2 }
 0x4ee   :  { %v782_v1 = vmul.f32 1.442695, %v779_v63  ;;  %5990 = vmatmul.msk.f32.vlgmr.msra.gmra.mxu1 %vm387_vm1, %v817_v0  ;;  %v1150_v63 = vld [vmem:[#allocation11 + $0x38] sm:$0xff] }
 0x4ef   :  { %1180 = vmatpush.msrb.mxu1 %v1150_v63 }
 0x4f0   :  { %6507 = vpow2.f32 %v782_v1  ;;  %v1148_v1 = vld [vmem:[#allocation11 + $0x28] sm:$0xff] }
 0x4f5   :  { %v903_v3 = vpop.f32.mrf.mxu2 }
 0x4f6   :  { %v6508_v4 = vpop.eup %6507  ;;  %v934_v5 = vmul.f32 0.35355338, %v903_v3  ;;  %v270_v3 = vld [vmem:[#allocation5] sm:$0xff] }
 0x4f7   :  { %v931_v6 = vpop.f32.mrf.mxu3  ;;  %v787_v7 = vsel %vm387_vm1, %v6508_v4, 0.0 }
 0x4f8   :  { %v935_v8 = vmul.f32 0.35355338, %v931_v6  ;;  %788 = vadd.xlane.f32.xlu1 %v787_v7  ;;  %v936_v10 = vadd.f32 %v934_v5, %v7375_v33 }
 0x4fa   :  { %v938_v11 = vsel %vm387_vm1, %v936_v10, -inf  ;;  %v937_v12 = vadd.f32 %v935_v8, %v7379_v38 }
 0x4fb   :  { %939 = vmax.xlane.f32.xlu2 %v938_v11 }
 0x4fc   :  { %v941_v14 = vsel %vm387_vm1, %v937_v12, -inf }
 0x4fd   :  { %942 = vmax.xlane.f32.xlu0 %v941_v14 }
 0x511   :  { %820 = vrot.lane.b32.xlu0 %v7369_v28, %s7103_s26  ;;  %v1012_v28 = vld [vmem:[%s8757_s6 + $0x18] sm:$0xff] }
 0x512   :  { %1034 = vmatpush.msra.mxu3 %v1012_v28 }
 0x56b   :  { %v789_v33 = vpop.xlane.xlu1 %788  ;;  %v870_v47 = vpop.f32.mrf.mxu1 }
 0x56c   :  { %v876_v48 = vadd.f32 %v870_v47, %v710_v19  ;;  %v6440_v19 = vld [vmem:[%s8767_s16] ss:$0 sm:$0xff] }
 0x56e   :  { %v940_v15 = vpop.xlane.xlu2 %939 }
 0x56f   :  { %v944_v16 = vsub.f32 %v936_v10, %v940_v15 }
 0x570   :  { %v943_v17 = vpop.xlane.xlu0 %942 }
 0x571   :  { %v946_v20 = vmul.f32 1.442695, %v944_v16  ;;  %v945_v21 = vsub.f32 %v937_v12, %v943_v17 }
 0x573   :  { %6509 = vpow2.f32 %v946_v20  ;;  %v948_v24 = vmul.f32 1.442695, %v945_v21  ;;  %v271_v20 = vld [vmem:[#allocation5 + $0x8] sm:$0xff]  ;;  %v272_v21 = vld [vmem:[#allocation5 + $0x10] sm:$0xff] }
 0x575   :  { %6511 = vpow2.f32 %v948_v24  ;;  %v273_v24 = vld [vmem:[#allocation5 + $0x18] sm:$0xff] }
 0x576   :  { %6513 = vrcp.f32 %v789_v33  ;;  %v1112_v33 = vld [vmem:[#allocation11 + $0x18] sm:$0xff] }
 0x579   :  { %v6510_v25 = vpop.eup %6509 }
 0x57a   :  { %v950_v38 = vsel %vm387_vm1, %v6510_v25, 0.0 }
 0x57b   :  { %v6512_v27 = vpop.eup %6511  ;;  %951 = vadd.xlane.f32.xlu2 %v950_v38  ;;  %v1111_v38 = vld [vmem:[#allocation11 + $0x10] sm:$0xff] }
 0x57c   :  { %v953_v29 = vsel %vm387_vm1, %v6512_v27, 0.0  ;;  %v6514_v30 = vpop.eup %6513 }
 0x57d   :  { %954 = vadd.xlane.f32.xlu1 %v953_v29  ;;  %v793_v31 = vmul.f32 %v6514_v30, %v6508_v4  ;;  %v1110_v29 = vld [vmem:[#allocation11 + $0x8] sm:$0xff] }
 0x57e   :  { %v1199_v30 = vld [vmem:[#allocation11 + $0x48] sm:$0xff] }
 0x583   :  { %v821_v32 = vpop.permute.xlu0 %820 }
 0x584   :  { %841 = vmatpush.msra.mxu0 %v821_v32  ;;  %v1198_v32 = vld [vmem:[#allocation11 + $0x40] sm:$0xff] }
 0x585   :  { %5989 = vmatmul.msk.f32.vlgmr.msra.gmra.mxu0 %vm387_vm1, %v793_v31  ;;  %v1109_v31 = vld [vmem:[#allocation11] sm:$0xff] }
 0x593   :  { %6337 = vrot.lane.b32.xlu2 %v6336_v34, %s7104_s7 }
 0x5ee   :  { %v952_v35 = vpop.xlane.xlu2 %951 }
 0x5ef   :  { %6515 = vrcp.f32 %v952_v35 }
 0x5f0   :  { %v955_v18 = vpop.xlane.xlu1 %954 }
 0x5f1   :  { %6517 = vrcp.f32 %v955_v18 }
 0x5f2   :  { %6519 = vrcp.f32 %v7105_v61 }
 0x5f5   :  { %v6516_v36 = vpop.eup %6515 }
 0x5f6   :  { %v6338_v37 = vpop.permute.xlu2 %6337  ;;  %v958_v42 = vmul.f32 %v6516_v36, %v6510_v25  ;;  %v1201_v25 = vld [vmem:[#allocation11 + $0x58] sm:$0xff]  ;;  %v6442_v36 = vld [vmem:[#allocation13 + $0x1] ss:$0 sm:$0xff] }
 0x5f7   :  { %v6518_v39 = vpop.eup %6517  ;;  %v6340_v40 = vunpack.i.h.bf16 %v6338_v37  ;;  %v6339_v41 = vunpack.i.l.bf16 %v6338_v37 }
 0x5f8   :  { %v959_v43 = vmul.f32 %v6518_v39, %v6512_v27  ;;  %v6520_v62 = vpop.eup %6519  ;;  %v1200_v27 = vld [vmem:[#allocation11 + $0x50] sm:$0xff] }
 0x5f9   :  { %981 = vmatpush.msrb.mxu0 %v6339_v41  ;;  %1007 = vmatpush.msra.mxu2 %v6340_v40  ;;  %v1055_v54 = vmul.f32 32.0, %v6520_v62  ;;  %vm1059_vm2 = vweird.f32 %v6520_v62 }
 0x5fa   :  { %5996 = vmatmul.msk.f32.vlgmr.msrb.gmra.mxu0 %vm387_vm1, %v958_v42  ;;  %5997 = vmatmul.msk.f32.vlgmr.msra.gmra.mxu2 %vm387_vm1, %v959_v43 }
 0x5fb   :  { %v1056_v0 = vsub.f32 1.0, %v1055_v54  ;;  %1135 = vmatpush.msra.mxu0 %v1112_v33  ;;  %1219 = vmatpush.msrb.mxu2 %v1201_v25 }
 0x5fd   :  { %v1057_v4 = vmul.f32 %v6520_v62, %v1056_v0  ;;  %1136 = vmatpush.msra.mxu0 %v1111_v38  ;;  %1220 = vmatpush.msrb.mxu2 %v1200_v27  ;;  %v7564_v27 = vld [vmem:[%s8783_s5 + $0x1] ss:$0 sm:$0xff] }
 0x5ff   :  { %1137 = vmatpush.msra.mxu0 %v1110_v29  ;;  %1221 = vmatpush.msrb.mxu2 %v1199_v30 }
 0x601   :  { %1138 = vmatpush.msra.mxu0 %v1109_v31  ;;  %1222 = vmatpush.msrb.mxu2 %v1198_v32 }
 0x602   :  { %v843_v26 = vpop.f32.mrf.mxu0  ;;  %6006 = vmatmul.msk.f32.vlgmr.msrb.gmra.mxu2 %vm286_vm0, %v270_v3 }
 0x603   :  { %5991 = vmatmul.msk.f32.gmra.mxu1 %vm387_vm1, %v843_v26 }
 0x60a   :  { %6007 = vmatmul.msk.f32.gmra.mxu2 %vm286_vm0, %v271_v20 }
 0x612   :  { %6008 = vmatmul.msk.f32.gmra.mxu2 %vm286_vm0, %v272_v21 }
 0x61a   :  { %6009 = vmatmul.msk.f32.gmra.mxu2 %vm286_vm0, %v273_v24 }
 0x677   :  { %v983_v44 = vpop.f32.mrf.mxu0 }
 0x678   :  { %5998 = vmatmul.msk.f32.vlgmr.msra.gmra.mxu3 %vm387_vm1, %v983_v44 }
 0x67d   :  { %v1009_v45 = vpop.f32.mrf.mxu2 }
 0x680   :  { %5999 = vmatmul.msk.f32.gmra.mxu3 %vm387_vm1, %v1009_v45  ;;  %v873_v55 = vpop.f32.mrf.mxu1 }
 0x681   :  { %v877_v58 = vadd.f32 %v873_v55, %v711_v56 }
 0x6fb   :  { %v1036_v50 = vpop.f32.mrf.mxu3 }
 0x6fc   :  { %v1042_v51 = vadd.f32 %v1036_v50, %v876_v48 }
 0x6fe   :  { %v1044_v53 = vadd.f32 %v1042_v51, %v7317_v9  ;;  %v1149_v9 = vld [vmem:[#allocation11 + $0x30] sm:$0xff] }
 0x6ff   :  { %1181 = vmatpush.msrb.mxu1 %v1149_v9 }
 0x700   :  { %v1048_v57 = vsel %vm286_vm0, %v1044_v53, 0.0 }
 0x701   :  { %1049 = vadd.xlane.f32.xlu1 %v1048_v57  ;;  %1182 = vmatpush.msrb.mxu1 %v1148_v1  ;;  %v1224_v1 = vpop.f32.mrf.mxu2 }
 0x703   :  { %v1039_v23 = vpop.f32.mrf.mxu3  ;;  %1183 = vmatpush.msrb.mxu1 %v1147_v2  ;;  %v6444_v2 = vld [vmem:[#allocation13 + $0x2] ss:$0 sm:$0xff] }
 0x704   :  { %v1043_v59 = vadd.f32 %v1039_v23, %v877_v58  ;;  %6002 = vmatmul.msk.f32.vlgmr.msrb.gmra.mxu1 %vm286_vm0, %v270_v3 }
 0x706   :  { %v1045_v49 = vadd.f32 %v1043_v59, %v7332_v13  ;;  %v1058_v13 = vadd.f32 %v6520_v62, %v1057_v4 }
 0x708   :  { %v1051_v60 = vsel %vm286_vm0, %v1045_v49, 0.0  ;;  %v7484_v5 = vsel %vm1059_vm2, %v6520_v62, %v1058_v13  ;;  %v1225_v13 = vadd.f32 %v6444_v2, %v1224_v1 }
 0x709   :  { %1052 = vadd.xlane.f32.xlu1 %v1051_v60  ;;  %v1227_v3 = vpop.f32.mrf.mxu2 }
 0x70a   :  { %v1228_v4 = vadd.f32 %v6444_v2, %v1227_v3 }
 0x70c   :  { %6003 = vmatmul.msk.f32.gmra.mxu1 %vm286_vm0, %v271_v20 }
 0x714   :  { %6004 = vmatmul.msk.f32.gmra.mxu1 %vm286_vm0, %v272_v21 }
 0x71c   :  { %6005 = vmatmul.msk.f32.gmra.mxu1 %vm286_vm0, %v273_v24 }
 0x774   :  { %v1050_v6 = vpop.xlane.xlu1 %1049 }
 0x775   :  { %v1061_v7 = vmul.f32 %v7484_v5, %v1050_v6  ;;  %v6443_v6 = vld [vmem:[#allocation13] ss:$0 sm:$0xff] }
 0x777   :  { %v1063_v8 = vsub.f32 %v1044_v53, %v1061_v7 }
 0x779   :  { %v1065_v10 = vmul.f32 %v1063_v8, %v1063_v8 }
 0x77b   :  { %v1067_v11 = vsel %vm286_vm0, %v1065_v10, 0.0  ;;  %v1230_v10 = vpop.f32.mrf.mxu2 }
 0x77c   :  { %1068 = vadd.xlane.f32.xlu0 %v1067_v11  ;;  %v1053_v12 = vpop.xlane.xlu1 %1052 }
 0x77d   :  { %v1062_v14 = vmul.f32 %v7484_v5, %v1053_v12 }
 0x77f   :  { %v7489_v15 = vsub.f32 %v1045_v49, %v1062_v14 }
 0x781   :  { %v1066_v16 = vmul.f32 %v7489_v15, %v7489_v15  ;;  %v1185_v37 = vpop.f32.mrf.mxu1 }
 0x782   :  { %v7500_v39 = vadd.f32 %v6442_v36, %v1185_v37 }
 0x783   :  { %v1070_v17 = vsel %vm286_vm0, %v1066_v16, 0.0  ;;  %v1233_v14 = vpop.f32.mrf.mxu2 }
 0x784   :  { %1071 = vadd.xlane.f32.xlu1 %v1070_v17  ;;  %v7547_v16 = vadd.f32 %v6444_v2, %v1233_v14  ;;  %v7550_v17 = vpack.i.bf16 %v1225_v13, %v1228_v4 }
 0x789   :  { %v1188_v61 = vpop.f32.mrf.mxu1 }
 0x78a   :  { %v7519_v62 = vadd.f32 %v6442_v36, %v1188_v61 }
 0x78c   :  { %6010 = vmatpush.xpose.msk.msrb.mxu3 %vm387_vm1, %v7519_v62 }
 0x790   :  { %1412 = vrot.lane.b32.xlu0 %v7500_v39, %s7102_s24  ;;  %6011 = vmatpush.xpose.msk.msrb.mxu3 %vm387_vm1, %v7500_v39 }
 0x791   :  { %v1191_v54 = vpop.f32.mrf.mxu1 }
 0x792   :  { %v7529_v0 = vadd.f32 %v6442_v36, %v1191_v54 }
 0x794   :  { %1349 = vmatpush.msra.mxu3 %v1228_v4 }
 0x796   :  { %1350 = vmatpush.msra.mxu3 %v1225_v13 }
 0x799   :  { %v1194_v63 = vpop.f32.mrf.mxu1 }
 0x79a   :  { %v7527_v9 = vadd.f32 %v6442_v36, %v1194_v63 }
 0x79c   :  { %6013 = vmatpush.xpose.msk.msrb.mxu0 %vm387_vm1, %v7527_v9 }
 0x79d   :  { %1414 = vrot.lane.b32.xlu1 %v7519_v62, %s7102_s24 }
 0x7a0   :  { %6014 = vmatpush.xpose.msk.msrb.mxu0 %vm387_vm1, %v7529_v0 }
 0x7ef   :  { %v1069_v34 = vpop.xlane.xlu0 %1068 }
 0x7f0   :  { %v1073_v35 = vmul.f32 %v1069_v34, %v7484_v5 }
 0x7f2   :  { %v1075_v18 = vadd.f32 1e-05, %v1073_v35 }
 0x7f4   :  { %6521 = vrsqrt.f32 %v1075_v18  ;;  %vm1083_vm4 = vweird.f32 %v1075_v18 }
 0x7f7   :  { %v1072_v40 = vpop.xlane.xlu1 %1071 }
 0x7f8   :  { %v1074_v41 = vmul.f32 %v1072_v40, %v7484_v5 }
 0x7fa   :  { %v6522_v42 = vpop.eup %6521  ;;  %v1076_v43 = vadd.f32 1e-05, %v1074_v41 }
 0x7fb   :  { %v1078_v26 = vmul.f32 %v6522_v42, %v1075_v18  ;;  %vm1084_vm3 = vweird.f32 %v6522_v42 }
 0x7fc   :  { %6523 = vrsqrt.f32 %v1076_v43  ;;  %vm1085_vm5 = vmor %vm1083_vm4, %vm1084_vm3  ;;  %vm1093_vm7 = vweird.f32 %v1076_v43 }
 0x7fd   :  { %v1079_v28 = vmul.f32 %v6522_v42, %v1078_v26 }
 0x7ff   :  { %v1080_v44 = vmul.f32 0.5, %v1079_v28 }
 0x801   :  { %v1081_v45 = vsub.f32 1.5, %v1080_v44 }
 0x802   :  { %v6524_v46 = vpop.eup %6523  ;;  %v1413_v21 = vpop.permute.xlu0 %1412 }
 0x803   :  { %v1082_v22 = vmul.f32 %v6522_v42, %v1081_v45  ;;  %v1088_v47 = vmul.f32 %v6524_v46, %v1076_v43  ;;  %vm1094_vm6 = vweird.f32 %v6524_v46 }
 0x804   :  { %vm1095_vm8 = vmor %vm1093_vm7, %vm1094_vm6 }
 0x805   :  { %v1086_v48 = vsel %vm1085_vm5, %v6522_v42, %v1082_v22  ;;  %v1089_v50 = vmul.f32 %v6524_v46, %v1088_v47  ;;  %v7582_v22 = vld [vmem:[%s8783_s5] ss:$0 sm:$0xff] }
 0x806   :  { %v1097_v51 = vmul.f32 %v1086_v48, %v1063_v8 }
 0x807   :  { %v1090_v53 = vmul.f32 0.5, %v1089_v50 }
 0x808   :  { %v1102_v55 = vmul.f32 %v6440_v19, %v1097_v51 }
 0x809   :  { %v1091_v56 = vsub.f32 1.5, %v1090_v53 }
 0x80a   :  { %v7510_v57 = vadd.f32 %v6441_v52, %v1102_v55 }
 0x80b   :  { %v1092_v58 = vmul.f32 %v6524_v46, %v1091_v56 }
 0x80c   :  { %6000 = vmatmul.msk.f32.vlgmr.msra.gmra.mxu0 %vm286_vm0, %v7510_v57 }
 0x80d   :  { %v1096_v23 = vsel %vm1095_vm8, %v6524_v46, %v1092_v58  ;;  %1372 = vmatpush.msra.mxu0 %v7547_v16 }
 0x80e   :  { %v1098_v59 = vmul.f32 %v1096_v23, %v7489_v15  ;;  %v7545_v15 = vadd.f32 %v6444_v2, %v1230_v10 }
 0x80f   :  { %v1415_v20 = vpop.permute.xlu1 %1414 }
 0x810   :  { %v1103_v49 = vmul.f32 %v6440_v19, %v1098_v59  ;;  %1373 = vmatpush.msra.mxu0 %v7545_v15 }
 0x812   :  { %v7515_v60 = vadd.f32 %v6441_v52, %v1103_v49 }
 0x814   :  { %6001 = vmatmul.msk.f32.gmra.mxu0 %vm286_vm0, %v7515_v60 }
 0x889   :  { %v1140_v7 = vpop.f32.mrf.mxu0 }
 0x88a   :  { %v7535_v8 = vadd.f32 %v6443_v6, %v1140_v7 }
 0x88c   :  { %6012 = vmatmul.msk.f32.vlgmr.msrb.gmra.mxu3 %vm387_vm1, %v7535_v8 }
 0x891   :  { %v1143_v11 = vpop.f32.mrf.mxu0 }
 0x892   :  { %v7539_v12 = vadd.f32 %v6443_v6, %v1143_v11 }
 0x894   :  { %1442 = vrot.lane.b32.xlu0 %v7539_v12, %s7102_s24  ;;  %6015 = vmatmul.msk.f32.vlgmr.msrb.gmra.mxu0 %vm387_vm1, %v7539_v12 }
 0x895   :  { %6020 = vmatpush.xpose.msk.msrb.mxu0 %vm387_vm1, %v1415_v20 }
 0x899   :  { %6021 = vmatpush.xpose.msk.msrb.mxu0 %vm387_vm1, %v1413_v21 }
 0x89c   :  { %6342 = vrot.lane.b32.xlu0 %v7550_v17, %s7102_s24 }
 0x8a4   :  { %1598 = vrot.lane.b32.xlu0 %v7519_v62, %s7103_s26 }
 0x8ac   :  { %1594 = vrot.lane.b32.xlu0 %v7535_v8, %s7103_s26 }
 0x906   :  { %v1443_v24 = vpop.permute.xlu0 %1442 }
 0x90e   :  { %v6343_v33 = vpop.permute.xlu0 %6342 }
 0x90f   :  { %v6345_v25 = vunpack.i.h.bf16 %v6343_v33  ;;  %v6344_v38 = vunpack.i.l.bf16 %v6343_v33  ;;  %v1267_v48 = vpop.f32.mrf.mxu3 }
 0x910   :  { %v1299_v50 = vmul.f32 0.35355338, %v1267_v48 }
 0x911   :  { %v1296_v29 = vpop.f32.mrf.mxu0  ;;  %1525 = vmatpush.msra.mxu2 %v6344_v38 }
 0x912   :  { %v1300_v30 = vmul.f32 0.35355338, %v1296_v29  ;;  %v1307_v51 = vadd.f32 %v7582_v22, %v1299_v50 }
 0x913   :  { %1526 = vmatpush.msra.mxu2 %v6345_v25  ;;  %v1562_v25 = vld [vmem:[%s8761_s10 + $0x8] sm:$0xff] }
 0x914   :  { %v1308_v31 = vadd.f32 %v7564_v27, %v1300_v30  ;;  %v1310_v52 = vsel %vm1309_vm9, %v1307_v51, -inf }
 0x916   :  { %v1599_v32 = vpop.permute.xlu0 %1598  ;;  %v1313_v34 = vsel %vm1309_vm9, %v1308_v31, -inf }
 0x917   :  { %6030 = vmatpush.xpose.msk.msrb.mxu2 %vm387_vm1, %v1599_v32  ;;  %1314 = vmax.xlane.f32.xlu2 %v1313_v34 }
 0x91e   :  { %v1595_v11 = vpop.permute.xlu0 %1594 }
 0x98a   :  { %v1315_v35 = vpop.xlane.xlu2 %1314 }
 0x98b   :  { %v1317_v18 = vsub.f32 %v1308_v31, %v1315_v35 }
 0x98d   :  { %v1320_v36 = vmul.f32 1.442695, %v1317_v18 }
 0x98f   :  { %6525 = vpow2.f32 %v1320_v36 }
 0x995   :  { %v6526_v37 = vpop.eup %6525 }
 0x996   :  { %v1325_v40 = vsel %vm1309_vm9, %v6526_v37, 0.0 }
 0x997   :  { %1326 = vadd.xlane.f32.xlu1 %v1325_v40  ;;  %v7626_v40 = vpack.i.bf16 %v7545_v15, %v7547_v16 }
 0x9b0   :  { %1410 = vrot.lane.b32.xlu1 %v7535_v8, %s7102_s24 }
 0x9b8   :  { %1446 = vrot.lane.b32.xlu1 %v7527_v9, %s7102_s24 }
 0xa0a   :  { %v1327_v41 = vpop.xlane.xlu1 %1326 }
 0xa0b   :  { %6527 = vrcp.f32 %v1327_v41 }
 0xa11   :  { %v6528_v42 = vpop.eup %6527 }
 0xa12   :  { %v1331_v43 = vmul.f32 %v6528_v42, %v6526_v37 }
 0xa14   :  { %6017 = vmatmul.msk.f32.vlgmr.msra.gmra.mxu0 %vm1309_vm9, %v1331_v43 }
 0xa22   :  { %v1411_v26 = vpop.permute.xlu1 %1410 }
 0xa23   :  { %6022 = vmatmul.msk.f32.vlgmr.msrb.gmra.mxu0 %vm387_vm1, %v1411_v26 }
 0xa2a   :  { %v1447_v28 = vpop.permute.xlu1 %1446 }
 0xa2b   :  { %6023 = vmatpush.xpose.msk.msra.mxu1 %vm387_vm1, %v1447_v28 }
 0xa91   :  { %v7577_v44 = vpop.f32.mrf.mxu0 }
 0xaa0   :  { %v1439_v45 = vpop.f32.mrf.mxu0 }
 0xaa1   :  { %v1474_v46 = vmul.f32 0.35355338, %v1439_v45 }
 0xaa3   :  { %v1476_v47 = vadd.f32 %v7582_v22, %v1474_v46 }
 0xaa5   :  { %v1478_v19 = vsel %vm1309_vm9, %v1476_v47, -inf }
 0xaa6   :  { %1479 = vmax.xlane.f32.xlu2 %v1478_v19 }
 0xabe   :  { %1444 = vrot.lane.b32.xlu2 %v7529_v0, %s7102_s24 }
 0xac6   :  { %1596 = vrot.lane.b32.xlu2 %v7500_v39, %s7103_s26 }
 0xaef   :  { %1311 = vmax.xlane.f32.xlu2 %v1310_v52 }
 0xb07   :  { %1630 = vrot.lane.b32.xlu2 %v7527_v9, %s7103_s26 }
 0xb0f   :  { %6352 = vrot.lane.b32.xlu2 %v7550_v17, %s7103_s26 }
 0xb17   :  { %1776 = vrot.lane.b32.xlu2 %v7500_v39, %s7104_s7 }
 0xb19   :  { %v1480_v53 = vpop.xlane.xlu2 %1479 }
 0xb1a   :  { %v1484_v55 = vsub.f32 %v1476_v47, %v1480_v53 }
 0xb1c   :  { %v1486_v56 = vmul.f32 1.442695, %v1484_v55 }
 0xb1e   :  { %6529 = vpow2.f32 %v1486_v56 }
 0xb1f   :  { %1808 = vrot.lane.b32.xlu2 %v7529_v0, %s7104_s7 }
 0xb21   :  { %v1445_v58 = vpop.permute.xlu2 %1444 }
 0xb22   :  { %6024 = vmatpush.xpose.msk.msra.mxu1 %vm387_vm1, %v1445_v58 }
 0xb24   :  { %v6530_v23 = vpop.eup %6529 }
 0xb25   :  { %6025 = vmatmul.msk.f32.vlgmr.msra.gmra.mxu1 %vm387_vm1, %v1443_v24  ;;  %v1490_v59 = vsel %vm1309_vm9, %v6530_v23, 0.0 }
 0xb26   :  { %1491 = vadd.xlane.f32.xlu1 %v1490_v59  ;;  %1584 = vmatpush.msrb.mxu1 %v1562_v25 }
 0xb29   :  { %v1597_v49 = vpop.permute.xlu2 %1596 }
 0xb2a   :  { %6031 = vmatpush.xpose.msk.msrb.mxu2 %vm387_vm1, %v1597_v49 }
 0xb62   :  { %v1312_v39 = vpop.xlane.xlu2 %1311 }
 0xb63   :  { %v1316_v61 = vsub.f32 %v1307_v51, %v1312_v39 }
 0xb65   :  { %v1318_v54 = vmul.f32 1.442695, %v1316_v61 }
 0xb67   :  { %6531 = vpow2.f32 %v1318_v54 }
 0xb6a   :  { %v1631_v24 = vpop.permute.xlu2 %1630 }
 0xb6d   :  { %v6532_v63 = vpop.eup %6531 }
 0xb6e   :  { %v1322_v1 = vsel %vm1309_vm9, %v6532_v63, 0.0 }
 0xb6f   :  { %1323 = vadd.xlane.f32.xlu0 %v1322_v1 }
 0xb83   :  { %1628 = vrot.lane.b32.xlu0 %v7529_v0, %s7103_s26  ;;  %v1378_v0 = vld [vmem:[%s8761_s10] sm:$0xff] }
 0xb84   :  { %1400 = vmatpush.msrb.mxu3 %v1378_v0 }
 0xb99   :  { %v1492_v2 = vpop.xlane.xlu1 %1491 }
 0xb9a   :  { %6533 = vrcp.f32 %v1492_v2  ;;  %v1742_v2 = vld [vmem:[%s8761_s10 + $0x10] sm:$0xff] }
 0xba0   :  { %v6534_v3 = vpop.eup %6533 }
 0xba1   :  { %v1498_v4 = vmul.f32 %v6534_v3, %v6530_v23 }
 0xba2   :  { %v1471_v13 = vpop.f32.mrf.mxu1 }
 0xba3   :  { %v1475_v6 = vmul.f32 0.35355338, %v1471_v13  ;;  %6026 = vmatmul.msk.f32.vlgmr.msra.gmra.mxu2 %vm1309_vm9, %v1498_v4 }
 0xba5   :  { %v1477_v7 = vadd.f32 %v7564_v27, %v1475_v6 }
 0xba7   :  { %v1481_v10 = vsel %vm1309_vm9, %v1477_v7, -inf }
 0xba8   :  { %1482 = vmax.xlane.f32.xlu1 %v1481_v10 }
 0xbab   :  { %6032 = vmatmul.msk.f32.vlgmr.msrb.gmra.mxu2 %vm387_vm1, %v1595_v11 }
 0xbe2   :  { %v1324_v14 = vpop.xlane.xlu0 %1323 }
 0xbe3   :  { %6535 = vrcp.f32 %v1324_v14 }
 0xbe9   :  { %v6536_v20 = vpop.eup %6535 }
 0xbea   :  { %v1330_v21 = vmul.f32 %v6536_v20, %v6532_v63 }
 0xbec   :  { %6016 = vmatmul.msk.f32.vlgmr.msra.gmra.mxu3 %vm1309_vm9, %v1330_v21 }
 0xbed   :  { %6033 = vmatpush.xpose.msk.msra.mxu3 %vm387_vm1, %v1631_v24 }
 0xbf5   :  { %v1629_v33 = vpop.permute.xlu0 %1628 }
 0xbf6   :  { %6034 = vmatpush.xpose.msk.msra.mxu3 %vm387_vm1, %v1629_v33 }
 0xc1b   :  { %v1483_v38 = vpop.xlane.xlu1 %1482 }
 0xc1c   :  { %v1485_v29 = vsub.f32 %v1477_v7, %v1483_v38 }
 0xc1e   :  { %v1488_v30 = vmul.f32 1.442695, %v1485_v29 }
 0xc20   :  { %6537 = vpow2.f32 %v1488_v30 }
 0xc26   :  { %v6538_v31 = vpop.eup %6537  ;;  %v1528_v32 = vpop.f32.mrf.mxu2 }
 0xc27   :  { %6028 = vmatmul.msk.f32.vlgmr.msrb.gmra.mxu1 %vm387_vm1, %v1528_v32  ;;  %v1493_v34 = vsel %vm1309_vm9, %v6538_v31, 0.0 }
 0xc28   :  { %1494 = vadd.xlane.f32.xlu1 %v1493_v34 }
 0xc2e   :  { %v1623_v35 = vpop.f32.mrf.mxu2 }
 0xc2f   :  { %v1658_v18 = vmul.f32 0.35355338, %v1623_v35 }
 0xc31   :  { %v1660_v36 = vadd.f32 %v7582_v22, %v1658_v18 }
 0xc33   :  { %v1662_v37 = vsel %vm1309_vm9, %v1660_v36, -inf }
 0xc34   :  { %1663 = vmax.xlane.f32.xlu1 %v1662_v37 }
 0xc4d   :  { %6347 = vrot.lane.b32.xlu1 %v7626_v40, %s7102_s24 }
 0xc55   :  { %1626 = vrot.lane.b32.xlu1 %v7539_v12, %s7103_s26 }
 0xc5d   :  { %1778 = vrot.lane.b32.xlu1 %v7519_v62, %s7104_s7 }
 0xc65   :  { %1810 = vrot.lane.b32.xlu1 %v7527_v9, %s7104_s7  ;;  %v6353_v9 = vpop.permute.xlu2 %6352 }
 0xc66   :  { %v6354_v48 = vunpack.i.l.bf16 %v6353_v9 }
 0xc6d   :  { %v1777_v52 = vpop.permute.xlu2 %1776 }
 0xc6f   :  { %v1352_v41 = vpop.f32.mrf.mxu3 }
 0xc70   :  { %6018 = vmatmul.msk.f32.vlgmr.msrb.gmra.mxu3 %vm387_vm1, %v1352_v41 }
 0xc71   :  { %1764 = vmatpush.msrb.mxu3 %v1742_v2 }
 0xc75   :  { %v1809_v55 = vpop.permute.xlu2 %1808 }
 0xc78   :  { %6019 = vmatmul.msk.f32.gmra.mxu3 %vm387_vm1, %v7577_v44  ;;  %v6355_v44 = vunpack.i.h.bf16 %v6353_v9 }
 0xc9b   :  { %v1495_v15 = vpop.xlane.xlu1 %1494 }
 0xca7   :  { %v1664_v16 = vpop.xlane.xlu1 %1663 }
 0xca8   :  { %v1668_v42 = vsub.f32 %v1660_v36, %v1664_v16 }
 0xcaa   :  { %v1670_v43 = vmul.f32 1.442695, %v1668_v42 }
 0xcac   :  { %6539 = vpow2.f32 %v1670_v43 }
 0xcad   :  { %6541 = vrcp.f32 %v1495_v15 }
 0xcb2   :  { %v6540_v26 = vpop.eup %6539 }
 0xcb3   :  { %v1674_v28 = vsel %vm1309_vm9, %v6540_v26, 0.0  ;;  %v6542_v45 = vpop.eup %6541 }
 0xcb4   :  { %1675 = vadd.xlane.f32.xlu0 %v1674_v28  ;;  %v1499_v19 = vmul.f32 %v6542_v45, %v6538_v31 }
 0xcbf   :  { %v6348_v62 = vpop.permute.xlu1 %6347 }
 0xcc0   :  { %v6349_v46 = vunpack.i.l.bf16 %v6348_v62  ;;  %v6350_v47 = vunpack.i.h.bf16 %v6348_v62 }
 0xcc2   :  { %1556 = vmatpush.msra.mxu0 %v6349_v46 }
 0xcc4   :  { %1557 = vmatpush.msra.mxu0 %v6350_v47 }
 0xcc5   :  { %6027 = vmatmul.msk.f32.vlgmr.msra.gmra.mxu0 %vm1309_vm9, %v1499_v19 }
 0xcc6   :  { %1707 = vmatpush.msrb.mxu0 %v6354_v48 }
 0xcc7   :  { %v1627_v50 = vpop.permute.xlu1 %1626 }
 0xcc8   :  { %1708 = vmatpush.msrb.mxu0 %v6355_v44  ;;  %1774 = vrot.lane.b32.xlu0 %v7535_v8, %s7104_s7  ;;  %v1922_v44 = vld [vmem:[%s8761_s10 + $0x18] sm:$0xff] }
 0xcc9   :  { %6035 = vmatmul.msk.f32.vlgmr.msra.gmra.mxu3 %vm387_vm1, %v1627_v50 }
 0xccf   :  { %v1779_v51 = vpop.permute.xlu1 %1778 }
 0xcd0   :  { %1806 = vrot.lane.b32.xlu0 %v7539_v12, %s7104_s7  ;;  %6040 = vmatpush.xpose.msk.msra.mxu0 %vm387_vm1, %v1779_v51 }
 0xcd4   :  { %6041 = vmatpush.xpose.msk.msra.mxu0 %vm387_vm1, %v1777_v52 }
 0xcd7   :  { %v1811_v53 = vpop.permute.xlu1 %1810 }
 0xcd8   :  { %6043 = vmatpush.xpose.msk.msra.mxu1 %vm387_vm1, %v1811_v53 }
 0xcdc   :  { %6044 = vmatpush.xpose.msk.msra.mxu1 %vm387_vm1, %v1809_v55  ;;  %v6447_v55 = vld [vmem:[#allocation14] ss:$0 sm:$0xff] }
 0xce0   :  { %1944 = vmatpush.msrb.mxu1 %v1922_v44  ;;  %v2057_v44 = vld [vmem:[%s8765_s14 + $0x20] sm:$0xff] }
 0xcf3   :  { %v7651_v23 = vpop.f32.mrf.mxu3 }
 0xcfb   :  { %v7655_v49 = vpop.f32.mrf.mxu3 }
 0xd27   :  { %v1676_v56 = vpop.xlane.xlu0 %1675 }
 0xd28   :  { %6543 = vrcp.f32 %v1676_v56  ;;  %v1408_v56 = vadd.f32 %v6447_v55, %v7651_v23 }
 0xd2e   :  { %v6544_v8 = vpop.eup %6543 }
 0xd2f   :  { %v1682_v58 = vmul.f32 %v6544_v8, %v6540_v26 }
 0xd31   :  { %6036 = vmatmul.msk.f32.vlgmr.msrb.gmra.mxu0 %vm1309_vm9, %v1682_v58 }
 0xd3a   :  { %v1775_v12 = vpop.permute.xlu0 %1774 }
 0xd3b   :  { %6042 = vmatmul.msk.f32.vlgmr.msra.gmra.mxu0 %vm387_vm1, %v1775_v12 }
 0xd42   :  { %v1559_v59 = vpop.f32.mrf.mxu0  ;;  %v1807_v39 = vpop.permute.xlu0 %1806 }
 0xd43   :  { %6029 = vmatmul.msk.f32.gmra.mxu1 %vm387_vm1, %v1559_v59 }
 0xd4b   :  { %6045 = vmatmul.msk.f32.vlgmr.msra.gmra.mxu1 %vm387_vm1, %v1807_v39 }
 0xd4c   :  { %v1655_v61 = vpop.f32.mrf.mxu3 }
 0xd4d   :  { %v1659_v54 = vmul.f32 0.35355338, %v1655_v61 }
 0xd4f   :  { %v1661_v63 = vadd.f32 %v7564_v27, %v1659_v54 }
 0xd51   :  { %v1665_v1 = vsel %vm1309_vm9, %v1661_v63, -inf }
 0xd52   :  { %1666 = vmax.xlane.f32.xlu1 %v1665_v1 }
 0xd6b   :  { %6357 = vrot.lane.b32.xlu1 %v7626_v40, %s7103_s26 }
 0xdae   :  { %v1710_v3 = vpop.f32.mrf.mxu0 }
 0xdaf   :  { %6038 = vmatmul.msk.f32.vlgmr.msrb.gmra.mxu3 %vm387_vm1, %v1710_v3 }
 0xdb8   :  { %v1803_v4 = vpop.f32.mrf.mxu0 }
 0xdb9   :  { %v1838_v13 = vmul.f32 0.35355338, %v1803_v4  ;;  %v1409_v4 = vadd.f32 %v6447_v55, %v7655_v49  ;;  %v2015_v49 = vld [vmem:[#allocation16 + $0x8] sm:$0xff] }
 0xdbb   :  { %v1840_v6 = vadd.f32 %v7582_v22, %v1838_v13  ;;  %v1586_v22 = vpop.f32.mrf.mxu1 }
 0xdbc   :  { %v1592_v58 = vadd.f32 %v1586_v22, %v1408_v56  ;;  %v2053_v56 = vld [vmem:[%s8765_s14] sm:$0xff] }
 0xdbd   :  { %v1842_v7 = vsel %vm1309_vm9, %v1840_v6, -inf }
 0xdbe   :  { %1843 = vmax.xlane.f32.xlu2 %v1842_v7 }
 0xdc3   :  { %v7673_v25 = vpop.f32.mrf.mxu1 }
 0xdc5   :  { %v1667_v10 = vpop.xlane.xlu1 %1666 }
 0xdc6   :  { %v1669_v11 = vsub.f32 %v1661_v63, %v1667_v10 }
 0xdc8   :  { %v1672_v0 = vmul.f32 1.442695, %v1669_v11 }
 0xdca   :  { %6545 = vpow2.f32 %v1672_v0 }
 0xdcb   :  { %v1835_v31 = vpop.f32.mrf.mxu1 }
 0xdcc   :  { %v1839_v34 = vmul.f32 0.35355338, %v1835_v31 }
 0xdce   :  { %v1841_v18 = vadd.f32 %v7564_v27, %v1839_v34 }
 0xdd0   :  { %v6546_v14 = vpop.eup %6545 }
 0xdd1   :  { %v1677_v20 = vsel %vm1309_vm9, %v6546_v14, 0.0 }
 0xdd2   :  { %1678 = vadd.xlane.f32.xlu0 %v1677_v20  ;;  %v2017_v20 = vld [vmem:[#allocation16 + $0x18] sm:$0xff] }
 0xddd   :  { %v6358_v21 = vpop.permute.xlu1 %6357 }
 0xdde   :  { %v6359_v24 = vunpack.i.l.bf16 %v6358_v21  ;;  %v6360_v33 = vunpack.i.h.bf16 %v6358_v21  ;;  %v2016_v21 = vld [vmem:[#allocation16 + $0x10] sm:$0xff] }
 0xde0   :  { %1736 = vmatpush.msra.mxu2 %v6359_v24  ;;  %v2014_v24 = vld [vmem:[#allocation16] sm:$0xff] }
 0xde2   :  { %1737 = vmatpush.msra.mxu2 %v6360_v33 }
 0xde6   :  { %6362 = vrot.lane.b32.xlu0 %v7550_v17, %s7104_s7  ;;  %v1845_v17 = vsel %vm1309_vm9, %v1841_v18, -inf }
 0xdee   :  { %6367 = vrot.lane.b32.xlu0 %v7626_v40, %s7104_s7 }
 0xe31   :  { %v1844_v38 = vpop.xlane.xlu2 %1843 }
 0xe32   :  { %v1848_v29 = vsub.f32 %v1840_v6, %v1844_v38  ;;  %v1766_v8 = vpop.f32.mrf.mxu3  ;;  %v1593_v6 = vadd.f32 %v7673_v25, %v1409_v4  ;;  %v6450_v4 = vld [vmem:[#allocation17] ss:$0 sm:$0xff] }
 0xe33   :  { %v1772_v12 = vadd.f32 %v1766_v8, %v1592_v58 }
 0xe34   :  { %v1850_v30 = vmul.f32 1.442695, %v1848_v29 }
 0xe36   :  { %6547 = vpow2.f32 %v1850_v30 }
 0xe3c   :  { %v6548_v32 = vpop.eup %6547 }
 0xe3d   :  { %v1854_v35 = vsel %vm1309_vm9, %v6548_v32, 0.0 }
 0xe3e   :  { %1855 = vadd.xlane.f32.xlu2 %v1854_v35 }
 0xe45   :  { %v1679_v36 = vpop.xlane.xlu0 %1678 }
 0xe46   :  { %6549 = vrcp.f32 %v1679_v36  ;;  %1846 = vmax.xlane.f32.xlu2 %v1845_v17 }
 0xe4c   :  { %v6550_v37 = vpop.eup %6549 }
 0xe4d   :  { %v1683_v40 = vmul.f32 %v6550_v37, %v6546_v14  ;;  %v6448_v37 = vld [vmem:[%s8767_s16 + $0x1] ss:$0 sm:$0xff] }
 0xe4f   :  { %6037 = vmatmul.msk.f32.vlgmr.msra.gmra.mxu2 %vm1309_vm9, %v1683_v40 }
 0xe58   :  { %v6363_v41 = vpop.permute.xlu0 %6362 }
 0xe59   :  { %v6364_v15 = vunpack.i.l.bf16 %v6363_v41  ;;  %v6365_v16 = vunpack.i.h.bf16 %v6363_v41 }
 0xe5b   :  { %1887 = vmatpush.msrb.mxu2 %v6364_v15  ;;  %v6449_v15 = vld [vmem:[#allocation20 + $0x1] ss:$0 sm:$0xff] }
 0xe5d   :  { %1888 = vmatpush.msrb.mxu2 %v6365_v16 }
 0xe5f   :  { %2040 = vmatpush.msra.mxu2 %v2017_v20 }
 0xe60   :  { %v6368_v42 = vpop.permute.xlu0 %6367 }
 0xe61   :  { %v6369_v43 = vunpack.i.l.bf16 %v6368_v42  ;;  %v6370_v26 = vunpack.i.h.bf16 %v6368_v42  ;;  %2041 = vmatpush.msra.mxu2 %v2016_v21 }
 0xe63   :  { %1916 = vmatpush.msrb.mxu0 %v6369_v43  ;;  %2042 = vmatpush.msra.mxu2 %v2015_v49  ;;  %v2068_v43 = vld [vmem:[%s8765_s14 + $0x78] sm:$0xff] }
 0xe64   :  { %2069 = vmatpush.msra.mxu3 %v2068_v43 }
 0xe65   :  { %1917 = vmatpush.msrb.mxu0 %v6370_v26  ;;  %2043 = vmatpush.msra.mxu2 %v2014_v24  ;;  %v2067_v26 = vld [vmem:[%s8765_s14 + $0x70] sm:$0xff] }
 0xe66   :  { %2070 = vmatpush.msra.mxu3 %v2067_v26 }
 0xeb1   :  { %v1856_v27 = vpop.xlane.xlu2 %1855 }
 0xeb2   :  { %6551 = vrcp.f32 %v1856_v27  ;;  %v2066_v27 = vld [vmem:[%s8765_s14 + $0x68] sm:$0xff] }
 0xeb3   :  { %2071 = vmatpush.msra.mxu3 %v2066_v27 }
 0xeb8   :  { %v6552_v28 = vpop.eup %6551 }
 0xeb9   :  { %v1862_v62 = vmul.f32 %v6552_v28, %v6548_v32  ;;  %v1847_v45 = vpop.xlane.xlu2 %1846  ;;  %v2065_v28 = vld [vmem:[%s8765_s14 + $0x60] sm:$0xff] }
 0xeba   :  { %v1849_v46 = vsub.f32 %v1841_v18, %v1847_v45  ;;  %2072 = vmatpush.msra.mxu3 %v2065_v28  ;;  %v2063_v45 = vld [vmem:[%s8765_s14 + $0x50] sm:$0xff] }
 0xebb   :  { %6046 = vmatmul.msk.f32.vlgmr.msrb.gmra.mxu2 %vm1309_vm9, %v1862_v62  ;;  %v2064_v62 = vld [vmem:[%s8765_s14 + $0x58] sm:$0xff] }
 0xebc   :  { %v1852_v9 = vmul.f32 1.442695, %v1849_v46  ;;  %2073 = vmatpush.msra.mxu3 %v2064_v62  ;;  %v2062_v46 = vld [vmem:[%s8765_s14 + $0x48] sm:$0xff] }
 0xebe   :  { %6553 = vpow2.f32 %v1852_v9  ;;  %2074 = vmatpush.msra.mxu3 %v2063_v45  ;;  %v2061_v9 = vld [vmem:[%s8765_s14 + $0x40] sm:$0xff] }
 0xec0   :  { %2075 = vmatpush.msra.mxu3 %v2062_v46 }
 0xec2   :  { %2076 = vmatpush.msra.mxu3 %v2061_v9 }
 0xec4   :  { %v6554_v47 = vpop.eup %6553 }
 0xec5   :  { %v1857_v19 = vsel %vm1309_vm9, %v6554_v47, 0.0 }
 0xec6   :  { %1858 = vadd.xlane.f32.xlu2 %v1857_v19  ;;  %v2059_v19 = vld [vmem:[%s8765_s14 + $0x30] sm:$0xff] }
 0xed2   :  { %v1739_v48 = vpop.f32.mrf.mxu2 }
 0xed3   :  { %6039 = vmatmul.msk.f32.gmra.mxu3 %vm387_vm1, %v1739_v48  ;;  %v2058_v48 = vld [vmem:[%s8765_s14 + $0x28] sm:$0xff] }
 0xf39   :  { %v1859_v50 = vpop.xlane.xlu2 %1858 }
 0xf3a   :  { %6555 = vrcp.f32 %v1859_v50  ;;  %v2056_v50 = vld [vmem:[%s8765_s14 + $0x18] sm:$0xff] }
 0xf3e   :  { %v1890_v51 = vpop.f32.mrf.mxu2 }
 0xf3f   :  { %6048 = vmatmul.msk.f32.vlgmr.msrb.gmra.mxu1 %vm387_vm1, %v1890_v51  ;;  %v2055_v51 = vld [vmem:[%s8765_s14 + $0x10] sm:$0xff] }
 0xf40   :  { %v6556_v52 = vpop.eup %6555 }
 0xf41   :  { %v1863_v53 = vmul.f32 %v6556_v52, %v6554_v47  ;;  %v2060_v47 = vld [vmem:[%s8765_s14 + $0x38] sm:$0xff] }
 0xf42   :  { %2077 = vmatpush.msra.mxu3 %v2060_v47 }
 0xf43   :  { %6047 = vmatmul.msk.f32.vlgmr.msrb.gmra.mxu0 %vm1309_vm9, %v1863_v53  ;;  %v2054_v53 = vld [vmem:[%s8765_s14 + $0x8] sm:$0xff] }
 0xf44   :  { %2078 = vmatpush.msra.mxu3 %v2059_v19 }
 0xf46   :  { %2079 = vmatpush.msra.mxu3 %v2058_v48 }
 0xf48   :  { %2080 = vmatpush.msra.mxu3 %v2057_v44 }
 0xf4a   :  { %2081 = vmatpush.msra.mxu3 %v2056_v50 }
 0xf4c   :  { %2082 = vmatpush.msra.mxu3 %v2055_v51  ;;  %v6452_v51 = vld [vmem:[%s8767_s16 + $0x2] ss:$0 sm:$0xff] }
 0xf4e   :  { %2083 = vmatpush.msra.mxu3 %v2054_v53 }
 0xf50   :  { %2084 = vmatpush.msra.mxu3 %v2053_v56 }
 0xf56   :  { %v1769_v23 = vpop.f32.mrf.mxu3 }
 0xf57   :  { %v1773_v10 = vadd.f32 %v1769_v23, %v1593_v6 }
 0xfbc   :  { %v1946_v59 = vpop.f32.mrf.mxu1 }
 0xfbd   :  { %v1952_v39 = vadd.f32 %v1946_v59, %v1772_v12 }
 0xfbf   :  { %v1954_v61 = vadd.f32 %v1952_v39, %v7510_v57 }
 0xfc0   :  { %v1919_v54 = vpop.f32.mrf.mxu0 }
 0xfc1   :  { %6049 = vmatmul.msk.f32.gmra.mxu1 %vm387_vm1, %v1919_v54  ;;  %v1960_v63 = vsel %vm286_vm0, %v1954_v61, 0.0 }
 0xfc2   :  { %1961 = vadd.xlane.f32.xlu1 %v1960_v63 }
0x1035   :  { %v1962_v1 = vpop.xlane.xlu1 %1961 }
0x1036   :  { %v1966_v2 = vmul.f32 %v1962_v1, %v7484_v5 }
0x1038   :  { %v1968_v3 = vsub.f32 %v1954_v61, %v1966_v2 }
0x103a   :  { %v1970_v13 = vmul.f32 %v1968_v3, %v1968_v3 }
0x103c   :  { %v1972_v7 = vsel %vm286_vm0, %v1970_v13, 0.0 }
0x103d   :  { %1973 = vadd.xlane.f32.xlu2 %v1972_v7 }
0x103e   :  { %v1949_v57 = vpop.f32.mrf.mxu1 }
0x103f   :  { %v1953_v11 = vadd.f32 %v1949_v57, %v1773_v10 }
0x1041   :  { %v1955_v0 = vadd.f32 %v1953_v11, %v7515_v60  ;;  %v6451_v11 = vld [vmem:[#allocation19] ss:$0 sm:$0xff] }
0x1043   :  { %v1963_v14 = vsel %vm286_vm0, %v1955_v0, 0.0 }
0x1044   :  { %1964 = vadd.xlane.f32.xlu0 %v1963_v14 }
0x10b0   :  { %v1974_v33 = vpop.xlane.xlu2 %1973 }
0x10b1   :  { %v1978_v22 = vmul.f32 %v1974_v33, %v7484_v5 }
0x10b3   :  { %v1980_v25 = vadd.f32 1e-05, %v1978_v22 }
0x10b5   :  { %6557 = vrsqrt.f32 %v1980_v25  ;;  %vm1988_vm11 = vweird.f32 %v1980_v25 }
0x10b7   :  { %v1965_v38 = vpop.xlane.xlu0 %1964 }
0x10b8   :  { %v1967_v29 = vmul.f32 %v1965_v38, %v7484_v5 }
0x10ba   :  { %v7699_v60 = vsub.f32 %v1955_v0, %v1967_v29 }
0x10bb   :  { %v6558_v30 = vpop.eup %6557 }
0x10bc   :  { %v1983_v31 = vmul.f32 %v6558_v30, %v1980_v25  ;;  %v1971_v32 = vmul.f32 %v7699_v60, %v7699_v60  ;;  %vm1989_vm10 = vweird.f32 %v6558_v30 }
0x10bd   :  { %vm1990_vm12 = vmor %vm1988_vm11, %vm1989_vm10 }
0x10be   :  { %v1984_v34 = vmul.f32 %v6558_v30, %v1983_v31  ;;  %v1975_v35 = vsel %vm286_vm0, %v1971_v32, 0.0  ;;  %v6057_v31 = vld [vmem:[%s8782_s21 + $0x78] sm:$0xff] }
0x10bf   :  { %1976 = vadd.xlane.f32.xlu2 %v1975_v35  ;;  %v6063_v32 = vld [vmem:[%s8782_s21 + $0x98] sm:$0xff]  ;;  %2186 = vmatpush.msra.mxu0 %v6057_v31  ;;  %v6056_v35 = vld [vmem:[%s8782_s21 + $0x70] sm:$0xff] }
0x10c0   :  { %v1985_v18 = vmul.f32 0.5, %v1984_v34  ;;  %v6069_v34 = vld [vmem:[%s8782_s21 + $0xb8] sm:$0xff]  ;;  %2219 = vmatpush.msra.mxu1 %v6063_v32  ;;  %v7855_v31 = vld [vmem:[#allocation7] sm:$0xff] }
0x10c1   :  { %2252 = vmatpush.msrb.mxu2 %v6069_v34  ;;  %2187 = vmatpush.msra.mxu0 %v6056_v35 }
0x10c2   :  { %v1986_v36 = vsub.f32 1.5, %v1985_v18  ;;  %v6062_v18 = vld [vmem:[%s8782_s21 + $0x90] sm:$0xff] }
0x10c3   :  { %2220 = vmatpush.msra.mxu1 %v6062_v18 }
0x10c4   :  { %v1987_v17 = vmul.f32 %v6558_v30, %v1986_v36  ;;  %v6068_v36 = vld [vmem:[%s8782_s21 + $0xb0] sm:$0xff] }
0x10c5   :  { %2253 = vmatpush.msrb.mxu2 %v6068_v36 }
0x10c6   :  { %v1991_v40 = vsel %vm1990_vm12, %v6558_v30, %v1987_v17  ;;  %v6055_v17 = vld [vmem:[%s8782_s21 + $0x68] sm:$0xff] }
0x10c7   :  { %v2002_v41 = vmul.f32 %v1991_v40, %v1968_v3  ;;  %v6067_v40 = vld [vmem:[%s8782_s21 + $0xa8] sm:$0xff]  ;;  %2188 = vmatpush.msra.mxu0 %v6055_v17 }
0x10c8   :  { %2254 = vmatpush.msrb.mxu2 %v6067_v40 }
0x10c9   :  { %v2007_v16 = vmul.f32 %v6448_v37, %v2002_v41  ;;  %v6054_v41 = vld [vmem:[%s8782_s21 + $0x60] sm:$0xff] }
0x10ca   :  { %2189 = vmatpush.msra.mxu0 %v6054_v41  ;;  %v7860_v41 = vld [vmem:[#allocation7 + $0x8] sm:$0xff] }
0x10cb   :  { %v7707_v42 = vadd.f32 %v6449_v15, %v2007_v16  ;;  %v6066_v16 = vld [vmem:[%s8782_s21 + $0xa0] sm:$0xff] }
0x10cc   :  { %2255 = vmatpush.msrb.mxu2 %v6066_v16 }
0x10cd   :  { %6051 = vmatmul.msk.f32.vlgmr.msra.gmra.mxu2 %vm286_vm0, %v7707_v42 }
0x1132   :  { %v1977_v52 = vpop.xlane.xlu2 %1976 }
0x1133   :  { %v1979_v55 = vmul.f32 %v1977_v52, %v7484_v5 }
0x1135   :  { %v1981_v8 = vadd.f32 1e-05, %v1979_v55  ;;  %v6453_v55 = vld [vmem:[#allocation20 + $0x2] ss:$0 sm:$0xff] }
0x1137   :  { %6559 = vrsqrt.f32 %v1981_v8  ;;  %vm1998_vm14 = vweird.f32 %v1981_v8 }
0x113d   :  { %v6560_v58 = vpop.eup %6559 }
0x113e   :  { %v1993_v12 = vmul.f32 %v6560_v58, %v1981_v8  ;;  %vm1999_vm13 = vweird.f32 %v6560_v58 }
0x113f   :  { %vm2000_vm15 = vmor %vm1998_vm14, %vm1999_vm13 }
0x1140   :  { %v1994_v59 = vmul.f32 %v6560_v58, %v1993_v12 }
0x1142   :  { %v1995_v39 = vmul.f32 0.5, %v1994_v59 }
0x1144   :  { %v1996_v61 = vsub.f32 1.5, %v1995_v39 }
0x1146   :  { %v1997_v54 = vmul.f32 %v6560_v58, %v1996_v61 }
0x1148   :  { %v2001_v63 = vsel %vm2000_vm15, %v6560_v58, %v1997_v54 }
0x1149   :  { %v2003_v1 = vmul.f32 %v2001_v63, %v7699_v60 }
0x114b   :  { %v2008_v2 = vmul.f32 %v6448_v37, %v2003_v1  ;;  %v6061_v37 = vld [vmem:[%s8782_s21 + $0x88] sm:$0xff] }
0x114c   :  { %2221 = vmatpush.msra.mxu1 %v6061_v37 }
0x114d   :  { %v2013_v3 = vadd.f32 %v6449_v15, %v2008_v2  ;;  %v6060_v15 = vld [vmem:[%s8782_s21 + $0x80] sm:$0xff] }
0x114e   :  { %2222 = vmatpush.msra.mxu1 %v6060_v15 }
0x114f   :  { %6052 = vmatmul.msk.f32.gmra.mxu2 %vm286_vm0, %v2013_v3 }
0x1150   :  { %v2045_v23 = vpop.f32.mrf.mxu2 }
0x1151   :  { %v2046_v13 = vadd.f32 %v6450_v4, %v2045_v23 }
0x1153   :  { %v2051_v6 = vmax.f32 %v2046_v13, 0.0 }
0x1155   :  { %2085 = vmatmul.f32.vlgmr.msra.gmra.mxu3 %v2051_v6 }
0x11d2   :  { %v2048_v7 = vpop.f32.mrf.mxu2 }
0x11d3   :  { %v2049_v10 = vadd.f32 %v6450_v4, %v2048_v7  ;;  %v6455_v4 = vld [vmem:[#allocation8 + $0x4] ss:$0 sm:$0xff] }
0x11d5   :  { %v2052_v57 = vmax.f32 %v2049_v10, 0.0 }
0x11d7   :  { %2088 = vmatmul.f32.gmra.mxu3 %v2052_v57 }
0x11d8   :  { %v2086_v0 = vpop.f32.mrf.mxu3 }
0x11d9   :  { %v2092_v14 = vadd.f32 %v2086_v0, %v7707_v42 }
0x11db   :  { %v2098_v20 = vadd.f32 %v6451_v11, %v2092_v14  ;;  %v6456_v14 = vld [vmem:[#allocation8 + $0x5] ss:$0 sm:$0xff] }
0x11dd   :  { %v2104_v21 = vsel %vm286_vm0, %v2098_v20, 0.0 }
0x11de   :  { %2105 = vadd.xlane.f32.xlu2 %v2104_v21 }
0x1251   :  { %v2106_v49 = vpop.xlane.xlu2 %2105 }
0x1252   :  { %v2110_v24 = vmul.f32 %v2106_v49, %v7484_v5 }
0x1254   :  { %v2112_v33 = vsub.f32 %v2098_v20, %v2110_v24 }
0x1256   :  { %v2114_v22 = vmul.f32 %v2112_v33, %v2112_v33 }
0x1258   :  { %v2116_v25 = vsel %vm286_vm0, %v2114_v22, 0.0 }
0x1259   :  { %2117 = vadd.xlane.f32.xlu2 %v2116_v25 }
0x125a   :  { %v2089_v38 = vpop.f32.mrf.mxu3 }
0x125b   :  { %v2093_v29 = vadd.f32 %v2089_v38, %v2013_v3  ;;  %v6454_v3 = vld [vmem:[#allocation8 + $0x3] ss:$0 sm:$0xff] }
0x125d   :  { %v2099_v60 = vadd.f32 %v6451_v11, %v2093_v29 }
0x125f   :  { %v2107_v30 = vsel %vm286_vm0, %v2099_v60, 0.0 }
0x1261   :  { %2108 = vadd.xlane.f32.xlu2 %v2107_v30 }
0x12cc   :  { %v2118_v42 = vpop.xlane.xlu2 %2117 }
0x12cd   :  { %v2122_v43 = vmul.f32 %v2118_v42, %v7484_v5 }
0x12cf   :  { %v2124_v26 = vadd.f32 1e-05, %v2122_v43 }
0x12d1   :  { %6561 = vrsqrt.f32 %v2124_v26  ;;  %vm2132_vm3 = vweird.f32 %v2124_v26 }
0x12d4   :  { %v2109_v27 = vpop.xlane.xlu2 %2108 }
0x12d5   :  { %v2111_v28 = vmul.f32 %v2109_v27, %v7484_v5 }
0x12d7   :  { %v6562_v62 = vpop.eup %6561  ;;  %v2113_v45 = vsub.f32 %v2099_v60, %v2111_v28 }
0x12d8   :  { %v2127_v46 = vmul.f32 %v6562_v62, %v2124_v26  ;;  %vm2133_vm2 = vweird.f32 %v6562_v62 }
0x12d9   :  { %v2115_v9 = vmul.f32 %v2113_v45, %v2113_v45  ;;  %vm2134_vm4 = vmor %vm2132_vm3, %vm2133_vm2 }
0x12da   :  { %v2128_v47 = vmul.f32 %v6562_v62, %v2127_v46 }
0x12db   :  { %v2119_v19 = vsel %vm286_vm0, %v2115_v9, 0.0 }
0x12dc   :  { %v2129_v48 = vmul.f32 0.5, %v2128_v47  ;;  %2120 = vadd.xlane.f32.xlu2 %v2119_v19 }
0x12de   :  { %v2130_v44 = vsub.f32 1.5, %v2129_v48 }
0x12e0   :  { %v2131_v50 = vmul.f32 %v6562_v62, %v2130_v44 }
0x12e2   :  { %v2135_v52 = vsel %vm2134_vm4, %v6562_v62, %v2131_v50 }
0x12e3   :  { %v2146_v53 = vmul.f32 %v2135_v52, %v2112_v33 }
0x12e5   :  { %v2151_v56 = vmul.f32 %v6452_v51, %v2146_v53 }
0x12e7   :  { %v7809_v8 = vadd.f32 %v6453_v55, %v2151_v56 }
0x12e9   :  { %6058 = vmatmul.msk.f32.vlgmr.msra.gmra.mxu0 %vm286_vm0, %v7809_v8  ;;  %6064 = vmatmul.msk.f32.vlgmr.msra.gmra.mxu1 %vm286_vm0, %v7809_v8 }
0x12ea   :  { %6070 = vmatmul.msk.f32.vlgmr.msrb.gmra.mxu2 %vm286_vm0, %v7809_v8 }
0x134f   :  { %v2121_v58 = vpop.xlane.xlu2 %2120 }
0x1350   :  { %v2123_v12 = vmul.f32 %v2121_v58, %v7484_v5 }
0x1352   :  { %v2125_v59 = vadd.f32 1e-05, %v2123_v12 }
0x1354   :  { %6563 = vrsqrt.f32 %v2125_v59  ;;  %vm2142_vm6 = vweird.f32 %v2125_v59 }
0x135a   :  { %v6564_v39 = vpop.eup %6563 }
0x135b   :  { %v2137_v61 = vmul.f32 %v6564_v39, %v2125_v59  ;;  %vm2143_vm5 = vweird.f32 %v6564_v39 }
0x135c   :  { %vm2144_vm7 = vmor %vm2142_vm6, %vm2143_vm5 }
0x135d   :  { %v2138_v54 = vmul.f32 %v6564_v39, %v2137_v61 }
0x135f   :  { %v2139_v63 = vmul.f32 0.5, %v2138_v54 }
0x1361   :  { %v2140_v1 = vsub.f32 1.5, %v2139_v63 }
0x1363   :  { %v2141_v2 = vmul.f32 %v6564_v39, %v2140_v1 }
0x1365   :  { %v2145_v23 = vsel %vm2144_vm7, %v6564_v39, %v2141_v2  ;;  %v6078_v39 = vld [vmem:[%s8757_s6 + $0x20] sm:$0xff] }
0x1366   :  { %v2147_v13 = vmul.f32 %v2145_v23, %v2113_v45  ;;  %v2191_v6 = vpop.f32.mrf.mxu0  ;;  %v2224_v7 = vpop.f32.mrf.mxu1  ;;  %2416 = vmatpush.msrb.mxu3 %v6078_v39 }
0x1367   :  { %v7818_v10 = vadd.f32 %v6454_v3, %v2191_v6  ;;  %v7820_v57 = vadd.f32 %v6455_v4, %v2224_v7 }
0x1368   :  { %v2152_v11 = vmul.f32 %v6452_v51, %v2147_v13 }
0x1369   :  { %2428 = vrot.lane.b32.xlu1 %v7820_v57, %s7102_s24  ;;  %6072 = vmatpush.xpose.msk.msrb.mxu0 %vm387_vm1, %v7820_v57 }
0x136a   :  { %2426 = vrot.lane.b32.xlu0 %v7818_v10, %s7102_s24  ;;  %v7828_v0 = vadd.f32 %v6453_v55, %v2152_v11 }
0x136c   :  { %6059 = vmatmul.msk.f32.gmra.mxu0 %vm286_vm0, %v7828_v0  ;;  %6065 = vmatmul.msk.f32.gmra.mxu1 %vm286_vm0, %v7828_v0 }
0x136d   :  { %v2257_v20 = vpop.f32.mrf.mxu2  ;;  %6071 = vmatmul.msk.f32.gmra.mxu2 %vm286_vm0, %v7828_v0 }
0x136e   :  { %v7836_v21 = vadd.f32 %v6456_v14, %v2257_v20 }
0x1370   :  { %2365 = vmatpush.msrb.mxu1 %v7836_v21 }
0x1374   :  { %6073 = vmatmul.msk.f32.vlgmr.msrb.gmra.mxu0 %vm387_vm1, %v7818_v10 }
0x13db   :  { %v2429_v25 = vpop.permute.xlu1 %2428 }
0x13dc   :  { %v2427_v34 = vpop.permute.xlu0 %2426 }
0x13e9   :  { %v2194_v49 = vpop.f32.mrf.mxu0  ;;  %v2227_v24 = vpop.f32.mrf.mxu1 }
0x13ea   :  { %v7841_v33 = vadd.f32 %v6454_v3, %v2194_v49  ;;  %v7843_v22 = vadd.f32 %v6455_v4, %v2227_v24  ;;  %v6087_v49 = vld [vmem:[%s8757_s6 + $0x28] sm:$0xff] }
0x13ec   :  { %6074 = vmatpush.xpose.msk.msra.mxu0 %vm387_vm1, %v7843_v22  ;;  %2454 = vrot.lane.b32.xlu1 %v7841_v33, %s7102_s24 }
0x13ef   :  { %6075 = vmatmul.msk.f32.vlgmr.msra.gmra.mxu0 %vm387_vm1, %v7841_v33 }
0x13f0   :  { %6081 = vmatpush.xpose.msk.msrb.mxu0 %vm387_vm1, %v2429_v25  ;;  %v2260_v38 = vpop.f32.mrf.mxu2 }
0x13f1   :  { %v7852_v29 = vadd.f32 %v6456_v14, %v2260_v38  ;;  %v2292_v60 = vpop.f32.mrf.mxu0 }
0x13f2   :  { %v2321_v30 = vmul.f32 0.35355338, %v2292_v60 }
0x13f3   :  { %2388 = vmatpush.msra.mxu2 %v7852_v29 }
0x13f4   :  { %v2323_v32 = vadd.f32 %v7855_v31, %v2321_v30 }
0x13f6   :  { %v2325_v35 = vsel %vm387_vm1, %v2323_v32, -inf }
0x13f7   :  { %2326 = vmax.xlane.f32.xlu2 %v2325_v35  ;;  %6082 = vmatmul.msk.f32.vlgmr.msrb.gmra.mxu0 %vm387_vm1, %v2427_v34 }
0x145e   :  { %v2455_v45 = vpop.permute.xlu1 %2454 }
0x146a   :  { %v2327_v18 = vpop.xlane.xlu2 %2326 }
0x146b   :  { %v2331_v36 = vsub.f32 %v2323_v32, %v2327_v18 }
0x146c   :  { %v2318_v17 = vpop.f32.mrf.mxu0 }
0x146d   :  { %v2333_v37 = vmul.f32 1.442695, %v2331_v36  ;;  %v2322_v40 = vmul.f32 0.35355338, %v2318_v17 }
0x146f   :  { %6565 = vpow2.f32 %v2333_v37  ;;  %v2324_v15 = vadd.f32 %v7860_v41, %v2322_v40 }
0x1471   :  { %v2328_v16 = vsel %vm387_vm1, %v2324_v15, -inf }
0x1472   :  { %2329 = vmax.xlane.f32.xlu0 %v2328_v16 }
0x1474   :  { %v2451_v42 = vpop.f32.mrf.mxu0 }
0x1475   :  { %v6566_v43 = vpop.eup %6565  ;;  %v2482_v26 = vmul.f32 0.35355338, %v2451_v42 }
0x1476   :  { %v2337_v27 = vsel %vm387_vm1, %v6566_v43, 0.0 }
0x1477   :  { %2338 = vadd.xlane.f32.xlu2 %v2337_v27  ;;  %v2484_v28 = vadd.f32 %v7855_v31, %v2482_v26 }
0x1479   :  { %v2486_v62 = vsel %vm387_vm1, %v2484_v28, -inf }
0x147a   :  { %2487 = vmax.xlane.f32.xlu1 %v2486_v62 }
0x148f   :  { %2456 = vrot.lane.b32.xlu2 %v7843_v22, %s7102_s24 }
0x1493   :  { %2509 = vrot.lane.b32.xlu1 %v7836_v21, %s7102_s24 }
0x14e5   :  { %v2330_v46 = vpop.xlane.xlu0 %2329 }
0x14e6   :  { %v2332_v9 = vsub.f32 %v2324_v15, %v2330_v46 }
0x14e8   :  { %v2335_v47 = vmul.f32 1.442695, %v2332_v9 }
0x14ea   :  { %6567 = vpow2.f32 %v2335_v47  ;;  %v2339_v19 = vpop.xlane.xlu2 %2338 }
0x14eb   :  { %6569 = vrcp.f32 %v2339_v19 }
0x14ed   :  { %v2488_v48 = vpop.xlane.xlu1 %2487 }
0x14ee   :  { %v2492_v44 = vsub.f32 %v2484_v28, %v2488_v48 }
0x14f0   :  { %v6568_v50 = vpop.eup %6567  ;;  %v2494_v51 = vmul.f32 1.442695, %v2492_v44 }
0x14f1   :  { %v6570_v52 = vpop.eup %6569  ;;  %v2340_v53 = vsel %vm387_vm1, %v6568_v50, 0.0 }
0x14f2   :  { %v2345_v55 = vmul.f32 %v6570_v52, %v6566_v43  ;;  %6571 = vpow2.f32 %v2494_v51  ;;  %v2457_v56 = vpop.permute.xlu2 %2456  ;;  %2341 = vadd.xlane.f32.xlu2 %v2340_v53 }
0x14f3   :  { %6083 = vmatpush.xpose.msk.msra.mxu1 %vm387_vm1, %v2457_v56 }
0x14f4   :  { %6076 = vmatmul.msk.f32.vlgmr.msrb.gmra.mxu1 %vm387_vm1, %v2345_v55  ;;  %v6096_v55 = vld [vmem:[%s8757_s6 + $0x30] sm:$0xff] }
0x14f7   :  { %2584 = vmatpush.msrb.mxu1 %v6087_v49 }
0x14f8   :  { %v6572_v58 = vpop.eup %6571 }
0x14f9   :  { %v2498_v12 = vsel %vm387_vm1, %v6572_v58, 0.0 }
0x14fa   :  { %2499 = vadd.xlane.f32.xlu0 %v2498_v12 }
0x14fc   :  { %6084 = vmatmul.msk.f32.vlgmr.msra.gmra.mxu1 %vm387_vm1, %v2455_v45 }
0x1505   :  { %v2510_v59 = vpop.permute.xlu1 %2509 }
0x1506   :  { %2530 = vmatpush.msrb.mxu2 %v2510_v59 }
0x150a   :  { %2594 = vrot.lane.b32.xlu2 %v7818_v10, %s7103_s26 }
0x150e   :  { %2596 = vrot.lane.b32.xlu0 %v7820_v57, %s7103_s26 }
0x1512   :  { %2536 = vrot.lane.b32.xlu2 %v7852_v29, %s7102_s24 }
0x1565   :  { %v2342_v61 = vpop.xlane.xlu2 %2341 }
0x1566   :  { %6573 = vrcp.f32 %v2342_v61 }
0x156c   :  { %v6574_v54 = vpop.eup %6573 }
0x156d   :  { %v2346_v63 = vmul.f32 %v6574_v54, %v6568_v50  ;;  %v2595_v1 = vpop.permute.xlu2 %2594  ;;  %v2500_v2 = vpop.xlane.xlu0 %2499 }
0x156e   :  { %6575 = vrcp.f32 %v2500_v2 }
0x156f   :  { %6077 = vmatmul.msk.f32.vlgmr.msra.gmra.mxu2 %vm387_vm1, %v2346_v63 }
0x1571   :  { %v2367_v3 = vpop.f32.mrf.mxu1 }
0x1572   :  { %6079 = vmatmul.msk.f32.vlgmr.msrb.gmra.mxu3 %vm387_vm1, %v2367_v3 }
0x1574   :  { %v6576_v4 = vpop.eup %6575 }
0x1575   :  { %v2506_v23 = vmul.f32 %v6576_v4, %v6572_v58  ;;  %v2537_v13 = vpop.permute.xlu2 %2536 }
0x1576   :  { %2557 = vmatpush.msra.mxu0 %v2537_v13 }
0x1577   :  { %6085 = vmatmul.msk.f32.vlgmr.msrb.gmra.mxu2 %vm387_vm1, %v2506_v23 }
0x1579   :  { %v2479_v6 = vpop.f32.mrf.mxu1 }
0x157a   :  { %v2483_v7 = vmul.f32 0.35355338, %v2479_v6 }
0x157c   :  { %v2485_v11 = vadd.f32 %v7860_v41, %v2483_v7 }
0x157e   :  { %v2489_v14 = vsel %vm387_vm1, %v2485_v11, -inf }
0x157f   :  { %2490 = vmax.xlane.f32.xlu0 %v2489_v14 }
0x1580   :  { %v2597_v20 = vpop.permute.xlu0 %2596 }
0x1581   :  { %6090 = vmatpush.xpose.msk.msra.mxu2 %vm387_vm1, %v2597_v20 }
0x1584   :  { %6091 = vmatmul.msk.f32.vlgmr.msra.gmra.mxu2 %vm387_vm1, %v2595_v1 }
0x1593   :  { %2622 = vrot.lane.b32.xlu0 %v7841_v33, %s7103_s26 }
0x159b   :  { %2762 = vrot.lane.b32.xlu0 %v7820_v57, %s7104_s7 }
0x15f2   :  { %v2390_v24 = vpop.f32.mrf.mxu2  ;;  %v2491_v25 = vpop.xlane.xlu0 %2490 }
0x15f3   :  { %v2493_v38 = vsub.f32 %v2485_v11, %v2491_v25  ;;  %6080 = vmatmul.msk.f32.gmra.mxu3 %vm387_vm1, %v2390_v24 }
0x15f5   :  { %v2496_v60 = vmul.f32 1.442695, %v2493_v38  ;;  %v7920_v46 = vpop.f32.mrf.mxu3 }
0x15f7   :  { %6577 = vpow2.f32 %v2496_v60 }
0x15fa   :  { %v2532_v30 = vpop.f32.mrf.mxu2 }
0x15fb   :  { %6088 = vmatmul.msk.f32.vlgmr.msrb.gmra.mxu1 %vm387_vm1, %v2532_v30 }
0x15fd   :  { %v6578_v32 = vpop.eup %6577 }
0x15fe   :  { %v2501_v34 = vsel %vm387_vm1, %v6578_v32, 0.0 }
0x15ff   :  { %2502 = vadd.xlane.f32.xlu1 %v2501_v34 }
0x1605   :  { %v2623_v15 = vpop.permute.xlu0 %2622 }
0x1607   :  { %v2619_v57 = vpop.f32.mrf.mxu2 }
0x1608   :  { %v2650_v35 = vmul.f32 0.35355338, %v2619_v57 }
0x160a   :  { %v2652_v18 = vadd.f32 %v7855_v31, %v2650_v35 }
0x160c   :  { %v2654_v36 = vsel %vm387_vm1, %v2652_v18, -inf }
0x160d   :  { %2655 = vmax.xlane.f32.xlu2 %v2654_v36  ;;  %v2763_v27 = vpop.permute.xlu0 %2762 }
0x1618   :  { %2624 = vrot.lane.b32.xlu1 %v7843_v22, %s7103_s26 }
0x1620   :  { %2760 = vrot.lane.b32.xlu1 %v7818_v10, %s7104_s7 }
0x1625   :  { %2676 = vrot.lane.b32.xlu2 %v7836_v21, %s7103_s26 }
0x1628   :  { %2788 = vrot.lane.b32.xlu1 %v7841_v33, %s7104_s7 }
0x1672   :  { %v2503_v17 = vpop.xlane.xlu1 %2502 }
0x1673   :  { %6579 = vrcp.f32 %v2503_v17 }
0x1676   :  { %v7922_v19 = vpop.f32.mrf.mxu3 }
0x1678   :  { %v7933_v56 = vpop.f32.mrf.mxu1 }
0x1679   :  { %v6580_v37 = vpop.eup %6579 }
0x167a   :  { %v2507_v40 = vmul.f32 %v6580_v37, %v6578_v32 }
0x167c   :  { %6086 = vmatmul.msk.f32.vlgmr.msra.gmra.mxu0 %vm387_vm1, %v2507_v40 }
0x1680   :  { %v2656_v16 = vpop.xlane.xlu2 %2655 }
0x1681   :  { %v2660_v42 = vsub.f32 %v2652_v18, %v2656_v16 }
0x1683   :  { %v2662_v43 = vmul.f32 1.442695, %v2660_v42 }
0x1685   :  { %6581 = vpow2.f32 %v2662_v43 }
0x1688   :  { %v2677_v26 = vpop.permute.xlu2 %2676 }
0x1689   :  { %2697 = vmatpush.msrb.mxu0 %v2677_v26  ;;  %v6457_v26 = vld [vmem:[#allocation10 + $0x1] ss:$0 sm:$0xff] }
0x168a   :  { %v2625_v10 = vpop.permute.xlu1 %2624 }
0x168b   :  { %6099 = vmatpush.xpose.msk.msra.mxu0 %vm387_vm1, %v2763_v27  ;;  %v6582_v28 = vpop.eup %6581  ;;  %6092 = vmatpush.xpose.msk.msra.mxu3 %vm387_vm1, %v2625_v10  ;;  %v2424_v27 = vadd.f32 %v6457_v26, %v7920_v46 }
0x168c   :  { %v2666_v33 = vsel %vm387_vm1, %v6582_v28, 0.0 }
0x168d   :  { %2667 = vadd.xlane.f32.xlu0 %v2666_v33 }
0x168e   :  { %6093 = vmatmul.msk.f32.vlgmr.msra.gmra.mxu3 %vm387_vm1, %v2623_v15 }
0x168f   :  { %2750 = vmatpush.msrb.mxu3 %v6096_v55 }
0x1692   :  { %v2761_v48 = vpop.permute.xlu1 %2760 }
0x169a   :  { %v2789_v52 = vpop.permute.xlu1 %2788 }
0x16a1   :  { %2790 = vrot.lane.b32.xlu0 %v7843_v22, %s7104_s7 }
0x16f9   :  { %v2559_v62 = vpop.f32.mrf.mxu0 }
0x16fa   :  { %6089 = vmatmul.msk.f32.gmra.mxu1 %vm387_vm1, %v2559_v62 }
0x1700   :  { %v2668_v45 = vpop.xlane.xlu0 %2667 }
0x1701   :  { %6583 = vrcp.f32 %v2668_v45 }
0x1707   :  { %v6584_v9 = vpop.eup %6583 }
0x1708   :  { %v2674_v47 = vmul.f32 %v6584_v9, %v6582_v28  ;;  %v2592_v28 = vadd.f32 %v7933_v56, %v2424_v27 }
0x170a   :  { %6094 = vmatmul.msk.f32.vlgmr.msrb.gmra.mxu0 %vm387_vm1, %v2674_v47 }
0x1711   :  { %v2647_v44 = vpop.f32.mrf.mxu3 }
0x1712   :  { %v2651_v50 = vmul.f32 0.35355338, %v2647_v44  ;;  %6100 = vmatmul.msk.f32.vlgmr.msra.gmra.mxu0 %vm387_vm1, %v2761_v48  ;;  %v2425_v48 = vadd.f32 %v6457_v26, %v7922_v19 }
0x1713   :  { %v2791_v51 = vpop.permute.xlu0 %2790 }
0x1714   :  { %6101 = vmatpush.xpose.msk.msra.mxu1 %vm387_vm1, %v2791_v51  ;;  %v2653_v22 = vadd.f32 %v7860_v41, %v2651_v50 }
0x1716   :  { %v2657_v53 = vsel %vm387_vm1, %v2653_v22, -inf }
0x1717   :  { %2658 = vmax.xlane.f32.xlu0 %v2657_v53  ;;  %6102 = vmatmul.msk.f32.vlgmr.msra.gmra.mxu1 %vm387_vm1, %v2789_v52 }
0x1777   :  { %v7936_v39 = vpop.f32.mrf.mxu1 }
0x1778   :  { %v2593_v50 = vadd.f32 %v7936_v39, %v2425_v48  ;;  %v6460_v48 = vld [vmem:[#allocation13 + $0x4] ss:$0 sm:$0xff] }
0x1787   :  { %v2699_v58 = vpop.f32.mrf.mxu0 }
0x1788   :  { %6097 = vmatmul.msk.f32.vlgmr.msrb.gmra.mxu3 %vm387_vm1, %v2699_v58 }
0x178a   :  { %v2659_v12 = vpop.xlane.xlu0 %2658 }
0x178b   :  { %v2661_v59 = vsub.f32 %v2653_v22, %v2659_v12 }
0x178d   :  { %v2664_v61 = vmul.f32 1.442695, %v2661_v59 }
0x178f   :  { %6585 = vpow2.f32 %v2664_v61  ;;  %v2785_v54 = vpop.f32.mrf.mxu0 }
0x1790   :  { %v2816_v63 = vmul.f32 0.35355338, %v2785_v54  ;;  %v3029_v54 = vld [vmem:[#allocation11 + $0x98] sm:$0xff] }
0x1791   :  { %3047 = vmatpush.msra.mxu3 %v3029_v54 }
0x1792   :  { %v2818_v1 = vadd.f32 %v7855_v31, %v2816_v63  ;;  %v3028_v63 = vld [vmem:[#allocation11 + $0x90] sm:$0xff] }
0x1793   :  { %3048 = vmatpush.msra.mxu3 %v3028_v63 }
0x1794   :  { %v2813_v2 = vpop.f32.mrf.mxu1  ;;  %v2820_v3 = vsel %vm387_vm1, %v2818_v1, -inf }
0x1795   :  { %v6586_v4 = vpop.eup %6585  ;;  %v2817_v23 = vmul.f32 0.35355338, %v2813_v2  ;;  %2821 = vmax.xlane.f32.xlu1 %v2820_v3  ;;  %v3026_v2 = vld [vmem:[#allocation11 + $0x80] sm:$0xff] }
0x1796   :  { %v2669_v13 = vsel %vm387_vm1, %v6586_v4, 0.0  ;;  %v6719_v3 = vld [vmem:[#allocation5] sm:$0xff] }
0x1797   :  { %2670 = vadd.xlane.f32.xlu0 %v2669_v13  ;;  %v2819_v6 = vadd.f32 %v7860_v41, %v2817_v23  ;;  %v6721_v23 = vld [vmem:[#allocation5 + $0x10] sm:$0xff] }
0x1798   :  { %v2990_v13 = vld [vmem:[#allocation11 + $0x78] sm:$0xff] }
0x1799   :  { %v2823_v7 = vsel %vm387_vm1, %v2819_v6, -inf }
0x179a   :  { %2824 = vmax.xlane.f32.xlu2 %v2823_v7  ;;  %v2988_v7 = vld [vmem:[#allocation11 + $0x68] sm:$0xff] }
0x17ab   :  { %2842 = vrot.lane.b32.xlu0 %v7836_v21, %s7104_s7 }
0x17b2   :  { %2702 = vrot.lane.b32.xlu2 %v7852_v29, %s7103_s26 }
0x1808   :  { %v2822_v31 = vpop.xlane.xlu1 %2821 }
0x1809   :  { %v2826_v11 = vsub.f32 %v2818_v1, %v2822_v31  ;;  %v3027_v1 = vld [vmem:[#allocation11 + $0x88] sm:$0xff]  ;;  %v2987_v31 = vld [vmem:[#allocation11 + $0x60] sm:$0xff] }
0x180a   :  { %v2671_v14 = vpop.xlane.xlu0 %2670  ;;  %3049 = vmatpush.msra.mxu3 %v3027_v1 }
0x180b   :  { %v2828_v20 = vmul.f32 1.442695, %v2826_v11  ;;  %6587 = vrcp.f32 %v2671_v14  ;;  %v2752_v10 = vpop.f32.mrf.mxu3  ;;  %v6722_v11 = vld [vmem:[#allocation5 + $0x18] sm:$0xff] }
0x180c   :  { %v2758_v33 = vadd.f32 %v2752_v10, %v2592_v28  ;;  %3050 = vmatpush.msra.mxu3 %v3026_v2 }
0x180d   :  { %6589 = vpow2.f32 %v2828_v20  ;;  %v2825_v49 = vpop.xlane.xlu2 %2824 }
0x180e   :  { %v2827_v24 = vsub.f32 %v2819_v6, %v2825_v49  ;;  %v2989_v6 = vld [vmem:[#allocation11 + $0x70] sm:$0xff] }
0x1810   :  { %v2830_v25 = vmul.f32 1.442695, %v2827_v24  ;;  %v3068_v24 = vld [vmem:[#allocation11 + $0xb8] sm:$0xff] }
0x1811   :  { %v6588_v38 = vpop.eup %6587 }
0x1812   :  { %6591 = vpow2.f32 %v2830_v25  ;;  %v2675_v30 = vmul.f32 %v6588_v38, %v6586_v4  ;;  %v6720_v4 = vld [vmem:[#allocation5 + $0x8] sm:$0xff] }
0x1813   :  { %v6590_v41 = vpop.eup %6589  ;;  %v3067_v25 = vld [vmem:[#allocation11 + $0xb0] sm:$0xff] }
0x1814   :  { %v2832_v60 = vsel %vm387_vm1, %v6590_v41, 0.0 }
0x1815   :  { %2833 = vadd.xlane.f32.xlu1 %v2832_v60  ;;  %v2703_v21 = vpop.permute.xlu2 %2702 }
0x1816   :  { %2723 = vmatpush.msrb.mxu2 %v2703_v21  ;;  %v3065_v21 = vld [vmem:[#allocation11 + $0xa0] sm:$0xff] }
0x1817   :  { %6095 = vmatmul.msk.f32.vlgmr.msrb.gmra.mxu2 %vm387_vm1, %v2675_v30  ;;  %v3066_v30 = vld [vmem:[#allocation11 + $0xa8] sm:$0xff] }
0x1818   :  { %v6592_v32 = vpop.eup %6591 }
0x1819   :  { %v2835_v34 = vsel %vm387_vm1, %v6592_v32, 0.0 }
0x181d   :  { %2836 = vadd.xlane.f32.xlu1 %v2835_v34  ;;  %v2843_v57 = vpop.permute.xlu0 %2842 }
0x181e   :  { %2863 = vmatpush.msra.mxu2 %v2843_v57 }
0x1820   :  { %3014 = vmatpush.msrb.mxu2 %v2990_v13 }
0x1822   :  { %3015 = vmatpush.msrb.mxu2 %v2989_v6 }
0x1824   :  { %3016 = vmatpush.msrb.mxu2 %v2988_v7 }
0x1826   :  { %3017 = vmatpush.msrb.mxu2 %v2987_v31 }
0x1836   :  { %2868 = vrot.lane.b32.xlu1 %v7852_v29, %s7104_s7  ;;  %v6105_v29 = vld [vmem:[%s8757_s6 + $0x38] sm:$0xff] }
0x1837   :  { %2916 = vmatpush.msrb.mxu1 %v6105_v29 }
0x1888   :  { %v2834_v35 = vpop.xlane.xlu1 %2833 }
0x1889   :  { %6593 = vrcp.f32 %v2834_v35 }
0x188f   :  { %v6594_v18 = vpop.eup %6593 }
0x1890   :  { %v2840_v36 = vmul.f32 %v6594_v18, %v6590_v41  ;;  %v2837_v37 = vpop.xlane.xlu1 %2836 }
0x1891   :  { %6595 = vrcp.f32 %v2837_v37 }
0x1892   :  { %6103 = vmatmul.msk.f32.vlgmr.msra.gmra.mxu2 %vm387_vm1, %v2840_v36  ;;  %v6458_v36 = vld [vmem:[%s8767_s16 + $0x3] ss:$0 sm:$0xff] }
0x1897   :  { %v6596_v40 = vpop.eup %6595 }
0x1898   :  { %v2841_v15 = vmul.f32 %v6596_v40, %v6592_v32  ;;  %v6459_v40 = vld [vmem:[#allocation20 + $0x3] ss:$0 sm:$0xff] }
0x189a   :  { %v2725_v17 = vpop.f32.mrf.mxu2 }
0x189b   :  { %6098 = vmatmul.msk.f32.gmra.mxu3 %vm387_vm1, %v2725_v17 }
0x18a3   :  { %6111 = vmatmul.msk.f32.vlgmr.msra.gmra.mxu3 %vm286_vm0, %v6719_v3 }
0x18a8   :  { %v2869_v16 = vpop.permute.xlu1 %2868 }
0x18a9   :  { %2889 = vmatpush.msrb.mxu0 %v2869_v16 }
0x18aa   :  { %6104 = vmatmul.msk.f32.vlgmr.msrb.gmra.mxu0 %vm387_vm1, %v2841_v15 }
0x18ab   :  { %6112 = vmatmul.msk.f32.gmra.mxu3 %vm286_vm0, %v6720_v4  ;;  %3086 = vmatpush.msra.mxu0 %v3068_v24  ;;  %v8050_v24 = vld [vmem:[%s8783_s5 + $0x1] ss:$0 sm:$0xff] }
0x18ad   :  { %3087 = vmatpush.msra.mxu0 %v3067_v25 }
0x18af   :  { %3088 = vmatpush.msra.mxu0 %v3066_v30 }
0x18b1   :  { %3089 = vmatpush.msra.mxu0 %v3065_v21 }
0x18b2   :  { %6115 = vmatmul.msk.f32.vlgmr.msra.gmra.mxu0 %vm286_vm0, %v6719_v3 }
0x18b3   :  { %6113 = vmatmul.msk.f32.gmra.mxu3 %vm286_vm0, %v6721_v23 }
0x18ba   :  { %6116 = vmatmul.msk.f32.gmra.mxu0 %vm286_vm0, %v6720_v4  ;;  %v8039_v4 = vld [vmem:[%s8783_s5] ss:$0 sm:$0xff] }
0x18bb   :  { %6114 = vmatmul.msk.f32.gmra.mxu3 %vm286_vm0, %v6722_v11 }
0x18c2   :  { %6117 = vmatmul.msk.f32.gmra.mxu0 %vm286_vm0, %v6721_v23 }
0x18ca   :  { %6118 = vmatmul.msk.f32.gmra.mxu0 %vm286_vm0, %v6722_v11 }
0x1915   :  { %v2865_v42 = vpop.f32.mrf.mxu2 }
0x1916   :  { %6106 = vmatmul.msk.f32.vlgmr.msrb.gmra.mxu1 %vm387_vm1, %v2865_v42 }
0x191e   :  { %v2755_v44 = vpop.f32.mrf.mxu3 }
0x191f   :  { %v2759_v51 = vadd.f32 %v2755_v44, %v2593_v50 }
0x1927   :  { %v2891_v43 = vpop.f32.mrf.mxu0 }
0x1928   :  { %6107 = vmatmul.msk.f32.gmra.mxu1 %vm387_vm1, %v2891_v43 }
0x1993   :  { %v2918_v62 = vpop.f32.mrf.mxu1 }
0x1994   :  { %v2924_v45 = vadd.f32 %v2918_v62, %v2758_v33 }
0x1996   :  { %v2926_v9 = vadd.f32 %v2924_v45, %v7809_v8 }
0x1998   :  { %v2932_v47 = vsel %vm286_vm0, %v2926_v9, 0.0 }
0x1999   :  { %2933 = vadd.xlane.f32.xlu2 %v2932_v47  ;;  %v3052_v47 = vpop.f32.mrf.mxu3 }
0x19a1   :  { %v3055_v44 = vpop.f32.mrf.mxu3 }
0x19a2   :  { %v7998_v50 = vadd.f32 %v6460_v48, %v3055_v44 }
0x19a4   :  { %6119 = vmatpush.xpose.msk.msra.mxu1 %vm387_vm1, %v7998_v50 }
0x19a5   :  { %v2921_v22 = vpop.f32.mrf.mxu1 }
0x19a6   :  { %v2925_v52 = vadd.f32 %v2921_v22, %v2759_v51  ;;  %v8000_v51 = vadd.f32 %v6460_v48, %v3052_v47 }
0x19a8   :  { %v2927_v46 = vadd.f32 %v2925_v52, %v7828_v0  ;;  %6120 = vmatpush.xpose.msk.msra.mxu1 %vm387_vm1, %v8000_v51 }
0x19a9   :  { %v3058_v22 = vpop.f32.mrf.mxu3 }
0x19aa   :  { %v2935_v53 = vsel %vm286_vm0, %v2927_v46, 0.0 }
0x19ab   :  { %2936 = vadd.xlane.f32.xlu0 %v2935_v53  ;;  %v8008_v53 = vadd.f32 %v6460_v48, %v3058_v22 }
0x19b1   :  { %v3061_v52 = vpop.f32.mrf.mxu3 }
0x1a0c   :  { %v2934_v55 = vpop.xlane.xlu2 %2933 }
0x1a0d   :  { %v2938_v56 = vmul.f32 %v2934_v55, %v7484_v5  ;;  %v3091_v55 = vpop.f32.mrf.mxu0 }
0x1a0f   :  { %v2940_v8 = vsub.f32 %v2926_v9, %v2938_v56  ;;  %v6462_v56 = vld [vmem:[#allocation13 + $0x5] ss:$0 sm:$0xff] }
0x1a11   :  { %v2942_v58 = vmul.f32 %v2940_v8, %v2940_v8 }
0x1a13   :  { %v2944_v12 = vsel %vm286_vm0, %v2942_v58, 0.0 }
0x1a14   :  { %2945 = vadd.xlane.f32.xlu1 %v2944_v12  ;;  %v3092_v12 = vadd.f32 %v6462_v56, %v3091_v55 }
0x1a1e   :  { %v2937_v19 = vpop.xlane.xlu0 %2936 }
0x1a1f   :  { %v2939_v59 = vmul.f32 %v2937_v19, %v7484_v5  ;;  %v6461_v19 = vld [vmem:[#allocation13 + $0x3] ss:$0 sm:$0xff] }
0x1a21   :  { %v7971_v39 = vsub.f32 %v2927_v46, %v2939_v59  ;;  %v8006_v46 = vadd.f32 %v6460_v48, %v3061_v52 }
0x1a23   :  { %v2943_v61 = vmul.f32 %v7971_v39, %v7971_v39  ;;  %6122 = vmatpush.xpose.msk.msra.mxu2 %vm387_vm1, %v8006_v46 }
0x1a25   :  { %v2947_v0 = vsel %vm286_vm0, %v2943_v61, 0.0 }
0x1a26   :  { %2948 = vadd.xlane.f32.xlu2 %v2947_v0 }
0x1a27   :  { %6123 = vmatpush.xpose.msk.msra.mxu2 %vm387_vm1, %v8008_v53 }
0x1a87   :  { %v2946_v14 = vpop.xlane.xlu1 %2945 }
0x1a88   :  { %v2950_v20 = vmul.f32 %v2946_v14, %v7484_v5 }
0x1a8a   :  { %v2952_v49 = vadd.f32 1e-05, %v2950_v20 }
0x1a8c   :  { %6597 = vrsqrt.f32 %v2952_v49  ;;  %vm2960_vm10 = vweird.f32 %v2952_v49 }
0x1a92   :  { %v6598_v38 = vpop.eup %6597 }
0x1a93   :  { %v2955_v41 = vmul.f32 %v6598_v38, %v2952_v49  ;;  %vm2961_vm8 = vweird.f32 %v6598_v38 }
0x1a94   :  { %vm2962_vm11 = vmor %vm2960_vm10, %vm2961_vm8 }
0x1a95   :  { %v2956_v60 = vmul.f32 %v6598_v38, %v2955_v41 }
0x1a97   :  { %v2957_v32 = vmul.f32 0.5, %v2956_v60 }
0x1a99   :  { %v2958_v34 = vsub.f32 1.5, %v2957_v32  ;;  %v2949_v57 = vpop.xlane.xlu2 %2948 }
0x1a9a   :  { %v2951_v35 = vmul.f32 %v2949_v57, %v7484_v5 }
0x1a9b   :  { %v2959_v18 = vmul.f32 %v6598_v38, %v2958_v34 }
0x1a9c   :  { %v2953_v17 = vadd.f32 1e-05, %v2951_v35 }
0x1a9d   :  { %v2963_v37 = vsel %vm2962_vm11, %v6598_v38, %v2959_v18 }
0x1a9e   :  { %v2974_v15 = vmul.f32 %v2963_v37, %v2940_v8  ;;  %6599 = vrsqrt.f32 %v2953_v17  ;;  %vm2970_vm13 = vweird.f32 %v2953_v17  ;;  %v3094_v8 = vpop.f32.mrf.mxu0 }
0x1a9f   :  { %v3095_v58 = vadd.f32 %v6462_v56, %v3094_v8 }
0x1aa0   :  { %v2979_v16 = vmul.f32 %v6458_v36, %v2974_v15 }
0x1aa1   :  { %3210 = vmatpush.msrb.mxu1 %v3095_v58  ;;  %v8028_v54 = vpack.i.bf16 %v3092_v12, %v3095_v58 }
0x1aa2   :  { %v7986_v29 = vadd.f32 %v6459_v40, %v2979_v16 }
0x1aa3   :  { %3211 = vmatpush.msrb.mxu1 %v3092_v12 }
0x1aa4   :  { %v6600_v42 = vpop.eup %6599  ;;  %6109 = vmatmul.msk.f32.vlgmr.msrb.gmra.mxu2 %vm286_vm0, %v7986_v29 }
0x1aa5   :  { %v2965_v43 = vmul.f32 %v6600_v42, %v2953_v17  ;;  %vm2971_vm12 = vweird.f32 %v6600_v42 }
0x1aa6   :  { %vm2972_vm14 = vmor %vm2970_vm13, %vm2971_vm12  ;;  %v3097_v41 = vpop.f32.mrf.mxu0 }
0x1aa7   :  { %v2966_v26 = vmul.f32 %v6600_v42, %v2965_v43  ;;  %v8056_v30 = vadd.f32 %v6462_v56, %v3097_v41 }
0x1aa9   :  { %v2967_v27 = vmul.f32 0.5, %v2966_v26 }
0x1aab   :  { %v2968_v10 = vsub.f32 1.5, %v2967_v27 }
0x1aad   :  { %v2969_v28 = vmul.f32 %v6600_v42, %v2968_v10 }
0x1aae   :  { %v3100_v60 = vpop.f32.mrf.mxu0 }
0x1aaf   :  { %v2973_v33 = vsel %vm2972_vm14, %v6600_v42, %v2969_v28  ;;  %v8058_v21 = vadd.f32 %v6462_v56, %v3100_v60 }
0x1ab0   :  { %v2975_v62 = vmul.f32 %v2973_v33, %v7971_v39 }
0x1ab1   :  { %3233 = vmatpush.msrb.mxu2 %v8058_v21 }
0x1ab2   :  { %v2980_v45 = vmul.f32 %v6458_v36, %v2975_v62 }
0x1ab3   :  { %3234 = vmatpush.msrb.mxu2 %v8056_v30 }
0x1ab4   :  { %v7994_v9 = vadd.f32 %v6459_v40, %v2980_v45 }
0x1ab6   :  { %6110 = vmatmul.msk.f32.gmra.mxu2 %vm286_vm0, %v7994_v9 }
0x1b27   :  { %v3019_v59 = vpop.f32.mrf.mxu2 }
0x1b28   :  { %v8014_v39 = vadd.f32 %v6461_v19, %v3019_v59 }
0x1b2a   :  { %3272 = vrot.lane.b32.xlu1 %v8014_v39, %s7102_s24  ;;  %6121 = vmatmul.msk.f32.vlgmr.msra.gmra.mxu1 %vm387_vm1, %v8014_v39 }
0x1b32   :  { %3306 = vrot.lane.b32.xlu1 %v8008_v53, %s7102_s24 }
0x1b39   :  { %v3022_v61 = vpop.f32.mrf.mxu2 }
0x1b3a   :  { %v8022_v0 = vadd.f32 %v6461_v19, %v3022_v61  ;;  %v6127_v61 = vld [vmem:[%s8761_s10 + $0x20] sm:$0xff] }
0x1b3b   :  { %3262 = vmatpush.msra.mxu1 %v6127_v61 }
0x1b3c   :  { %3304 = vrot.lane.b32.xlu1 %v8022_v0, %s7102_s24  ;;  %6124 = vmatmul.msk.f32.vlgmr.msra.gmra.mxu2 %vm387_vm1, %v8022_v0 }
0x1b44   :  { %6372 = vrot.lane.b32.xlu1 %v8028_v54, %s7102_s24 }
0x1b4c   :  { %3460 = vrot.lane.b32.xlu1 %v7998_v50, %s7103_s26 }
0x1b54   :  { %3456 = vrot.lane.b32.xlu1 %v8014_v39, %s7103_s26 }
0x1b9c   :  { %v3273_v63 = vpop.permute.xlu1 %3272 }
0x1ba4   :  { %v3307_v1 = vpop.permute.xlu1 %3306 }
0x1ba7   :  { %v3135_v2 = vpop.f32.mrf.mxu1 }
0x1ba8   :  { %v3167_v3 = vmul.f32 0.35355338, %v3135_v2 }
0x1baa   :  { %v8042_v23 = vadd.f32 %v8039_v4, %v3167_v3 }
0x1bac   :  { %v3171_v13 = vsel %vm1309_vm9, %v8042_v23, -inf }
0x1bad   :  { %3172 = vmax.xlane.f32.xlu1 %v3171_v13 }
0x1bae   :  { %v3305_v6 = vpop.permute.xlu1 %3304 }
0x1bb6   :  { %v6373_v7 = vpop.permute.xlu1 %6372 }
0x1bb7   :  { %v6375_v31 = vunpack.i.h.bf16 %v6373_v7  ;;  %v6374_v11 = vunpack.i.l.bf16 %v6373_v7 }
0x1bb9   :  { %3387 = vmatpush.msrb.mxu0 %v6374_v11 }
0x1bbb   :  { %3388 = vmatpush.msrb.mxu0 %v6375_v31  ;;  %v6138_v31 = vld [vmem:[%s8761_s10 + $0x28] sm:$0xff] }
0x1bbe   :  { %v3461_v14 = vpop.permute.xlu1 %3460 }
0x1bbf   :  { %v3164_v20 = vpop.f32.mrf.mxu2  ;;  %6141 = vmatpush.xpose.msk.msra.mxu0 %vm387_vm1, %v3461_v14 }
0x1bc0   :  { %v3168_v49 = vmul.f32 0.35355338, %v3164_v20 }
0x1bc2   :  { %v3170_v25 = vadd.f32 %v8050_v24, %v3168_v49 }
0x1bc4   :  { %v3174_v38 = vsel %vm1309_vm9, %v3170_v25, -inf }
0x1bc5   :  { %3175 = vmax.xlane.f32.xlu0 %v3174_v38 }
0x1bc6   :  { %6382 = vrot.lane.b32.xlu1 %v8028_v54, %s7103_s26  ;;  %v3457_v47 = vpop.permute.xlu1 %3456 }
0x1bd9   :  { %3276 = vrot.lane.b32.xlu0 %v7998_v50, %s7102_s24 }
0x1c20   :  { %v3173_v48 = vpop.xlane.xlu1 %3172 }
0x1c21   :  { %v3177_v52 = vsub.f32 %v8042_v23, %v3173_v48 }
0x1c23   :  { %v3179_v56 = vmul.f32 1.442695, %v3177_v52 }
0x1c38   :  { %v3176_v32 = vpop.xlane.xlu0 %3175 }
0x1c39   :  { %v3178_v34 = vsub.f32 %v3170_v25, %v3176_v32 }
0x1c3b   :  { %v3181_v57 = vmul.f32 1.442695, %v3178_v34 }
0x1c3d   :  { %6601 = vpow2.f32 %v3181_v57  ;;  %v6376_v57 = vpack.i.bf16 %v8056_v30, %v8058_v21 }
0x1c43   :  { %v6602_v35 = vpop.eup %6601 }
0x1c44   :  { %v3186_v18 = vsel %vm1309_vm9, %v6602_v35, 0.0 }
0x1c45   :  { %3187 = vadd.xlane.f32.xlu2 %v3186_v18 }
0x1c4b   :  { %v3277_v36 = vpop.permute.xlu0 %3276 }
0x1c4c   :  { %6130 = vmatpush.xpose.msk.msra.mxu2 %vm387_vm1, %v3277_v36 }
0x1c5d   :  { %3274 = vrot.lane.b32.xlu2 %v8000_v51, %s7102_s24 }
0x1c65   :  { %3308 = vrot.lane.b32.xlu2 %v8006_v46, %s7102_s24 }
0x1cb8   :  { %v3188_v17 = vpop.xlane.xlu2 %3187 }
0x1cb9   :  { %6603 = vrcp.f32 %v3188_v17 }
0x1cbf   :  { %v6604_v37 = vpop.eup %6603 }
0x1cc0   :  { %v3192_v40 = vmul.f32 %v6604_v37, %v6602_v35  ;;  %v3275_v15 = vpop.permute.xlu2 %3274 }
0x1cc1   :  { %6131 = vmatpush.xpose.msk.msra.mxu2 %vm387_vm1, %v3275_v15 }
0x1cc2   :  { %6126 = vmatmul.msk.f32.vlgmr.msrb.gmra.mxu2 %vm1309_vm9, %v3192_v40 }
0x1cc8   :  { %v3309_v16 = vpop.permute.xlu2 %3308 }
0x1cc9   :  { %6133 = vmatpush.xpose.msk.msrb.mxu3 %vm387_vm1, %v3309_v16 }
0x1cca   :  { %6132 = vmatmul.msk.f32.vlgmr.msra.gmra.mxu2 %vm387_vm1, %v3273_v63 }
0x1ccd   :  { %6134 = vmatpush.xpose.msk.msrb.mxu3 %vm387_vm1, %v3307_v1 }
0x1cd0   :  { %6135 = vmatmul.msk.f32.vlgmr.msrb.gmra.mxu3 %vm387_vm1, %v3305_v6 }
0x1cd1   :  { %3446 = vmatpush.msra.mxu3 %v6138_v31 }
0x1d45   :  { %v3236_v42 = vpop.f32.mrf.mxu2 }
0x1d4d   :  { %v3301_v43 = vpop.f32.mrf.mxu2 }
0x1d4e   :  { %v3336_v26 = vmul.f32 0.35355338, %v3301_v43 }
0x1d50   :  { %v3338_v27 = vadd.f32 %v8039_v4, %v3336_v26 }
0x1d52   :  { %v3340_v10 = vsel %vm1309_vm9, %v3338_v27, -inf }
0x1d53   :  { %3341 = vmax.xlane.f32.xlu0 %v3340_v10  ;;  %v3333_v28 = vpop.f32.mrf.mxu3 }
0x1d54   :  { %v3337_v33 = vmul.f32 0.35355338, %v3333_v28 }
0x1d56   :  { %v3339_v62 = vadd.f32 %v8050_v24, %v3337_v33 }
0x1d58   :  { %v3343_v45 = vsel %vm1309_vm9, %v3339_v62, -inf }
0x1d67   :  { %3458 = vrot.lane.b32.xlu0 %v8000_v51, %s7103_s26 }
0x1d91   :  { %3344 = vmax.xlane.f32.xlu0 %v3343_v45 }
0x1da5   :  { %3492 = vrot.lane.b32.xlu0 %v8006_v46, %s7103_s26 }
0x1dad   :  { %3488 = vrot.lane.b32.xlu0 %v8022_v0, %s7103_s26 }
0x1db5   :  { %3670 = vrot.lane.b32.xlu0 %v8008_v53, %s7104_s7 }
0x1dc6   :  { %v3342_v44 = vpop.xlane.xlu0 %3341 }
0x1dc7   :  { %v3346_v22 = vsub.f32 %v3338_v27, %v3342_v44 }
0x1dc9   :  { %v3348_v55 = vmul.f32 1.442695, %v3346_v22 }
0x1dcb   :  { %6605 = vpow2.f32 %v3348_v55 }
0x1dcc   :  { %6607 = vpow2.f32 %v3179_v56 }
0x1dd1   :  { %v6606_v8 = vpop.eup %6605 }
0x1dd2   :  { %v3352_v58 = vsel %vm1309_vm9, %v6606_v8, 0.0  ;;  %v6608_v12 = vpop.eup %6607 }
0x1dd3   :  { %3353 = vadd.xlane.f32.xlu2 %v3352_v58  ;;  %v3183_v59 = vsel %vm1309_vm9, %v6608_v12, 0.0 }
0x1dd9   :  { %v3459_v19 = vpop.permute.xlu0 %3458 }
0x1dda   :  { %6142 = vmatpush.xpose.msk.msra.mxu0 %vm387_vm1, %v3459_v19  ;;  %v8147_v19 = vld [vmem:[#allocation14 + $0x1] ss:$0 sm:$0xff] }
0x1ddb   :  { %3184 = vadd.xlane.f32.xlu2 %v3183_v59 }
0x1e04   :  { %v3345_v23 = vpop.xlane.xlu0 %3344 }
0x1e05   :  { %v3347_v14 = vsub.f32 %v3339_v62, %v3345_v23 }
0x1e07   :  { %v3350_v20 = vmul.f32 1.442695, %v3347_v14 }
0x1e17   :  { %v3493_v7 = vpop.permute.xlu0 %3492 }
0x1e1f   :  { %v3489_v26 = vpop.permute.xlu0 %3488 }
0x1e27   :  { %v3671_v28 = vpop.permute.xlu0 %3670 }
0x1e46   :  { %v3354_v63 = vpop.xlane.xlu2 %3353 }
0x1e47   :  { %6609 = vrcp.f32 %v3354_v63 }
0x1e4d   :  { %v6610_v1 = vpop.eup %6609 }
0x1e4e   :  { %v3360_v2 = vmul.f32 %v6610_v1, %v6606_v8  ;;  %v3185_v3 = vpop.xlane.xlu2 %3184  ;;  %v6149_v8 = vld [vmem:[%s8761_s10 + $0x30] sm:$0xff] }
0x1e4f   :  { %6611 = vrcp.f32 %v3185_v3 }
0x1e50   :  { %6136 = vmatmul.msk.f32.vlgmr.msrb.gmra.mxu0 %vm1309_vm9, %v3360_v2  ;;  %6613 = vpow2.f32 %v3350_v20 }
0x1e55   :  { %v6612_v13 = vpop.eup %6611 }
0x1e56   :  { %v3191_v6 = vmul.f32 %v6612_v13, %v6608_v12  ;;  %v6614_v32 = vpop.eup %6613 }
0x1e57   :  { %v3355_v34 = vsel %vm1309_vm9, %v6614_v32, 0.0 }
0x1e58   :  { %6125 = vmatmul.msk.f32.vlgmr.msrb.gmra.mxu1 %vm1309_vm9, %v3191_v6  ;;  %6143 = vmatmul.msk.f32.vlgmr.msra.gmra.mxu0 %vm387_vm1, %v3457_v47 }
0x1e59   :  { %6144 = vmatpush.xpose.msk.msrb.mxu1 %vm387_vm1, %v3493_v7 }
0x1ecd   :  { %v3390_v11 = vpop.f32.mrf.mxu0 }
0x1ece   :  { %6139 = vmatmul.msk.f32.vlgmr.msra.gmra.mxu3 %vm387_vm1, %v3390_v11 }
0x1ed5   :  { %v3213_v49 = vpop.f32.mrf.mxu1  ;;  %v3485_v25 = vpop.f32.mrf.mxu0 }
0x1ed6   :  { %v3520_v38 = vmul.f32 0.35355338, %v3485_v25  ;;  %6128 = vmatmul.msk.f32.vlgmr.msra.gmra.mxu1 %vm387_vm1, %v3213_v49 }
0x1ed8   :  { %v3522_v41 = vadd.f32 %v8039_v4, %v3520_v38 }
0x1eda   :  { %v3524_v60 = vsel %vm1309_vm9, %v3522_v41, -inf }
0x1edb   :  { %3525 = vmax.xlane.f32.xlu2 %v3524_v60 }
0x1ede   :  { %6129 = vmatmul.msk.f32.gmra.mxu1 %vm387_vm1, %v3236_v42 }
0x1ee3   :  { %3356 = vadd.xlane.f32.xlu2 %v3355_v34 }
0x1efb   :  { %6377 = vrot.lane.b32.xlu2 %v6376_v57, %s7102_s24 }
0x1f03   :  { %3640 = vrot.lane.b32.xlu2 %v7998_v50, %s7104_s7 }
0x1f0b   :  { %3490 = vrot.lane.b32.xlu2 %v8008_v53, %s7103_s26  ;;  %v6383_v53 = vpop.permute.xlu1 %6382 }
0x1f0c   :  { %v6384_v16 = vunpack.i.l.bf16 %v6383_v53 }
0x1f13   :  { %3638 = vrot.lane.b32.xlu2 %v8000_v51, %s7104_s7 }
0x1f1b   :  { %3672 = vrot.lane.b32.xlu2 %v8006_v46, %s7104_s7  ;;  %v6385_v46 = vunpack.i.h.bf16 %v6383_v53 }
0x1f4e   :  { %v3526_v35 = vpop.xlane.xlu2 %3525 }
0x1f4f   :  { %v3530_v18 = vsub.f32 %v3522_v41, %v3526_v35 }
0x1f51   :  { %v3532_v36 = vmul.f32 1.442695, %v3530_v18  ;;  %v8145_v12 = vpop.f32.mrf.mxu3 }
0x1f53   :  { %6615 = vpow2.f32 %v3532_v36  ;;  %v8132_v47 = vpop.f32.mrf.mxu1 }
0x1f56   :  { %v3357_v17 = vpop.xlane.xlu2 %3356 }
0x1f57   :  { %6617 = vrcp.f32 %v3357_v17 }
0x1f59   :  { %v6616_v30 = vpop.eup %6615 }
0x1f5a   :  { %v3536_v21 = vsel %vm1309_vm9, %v6616_v30, 0.0 }
0x1f5b   :  { %3537 = vadd.xlane.f32.xlu1 %v3536_v21  ;;  %v3267_v48 = vpop.f32.mrf.mxu1 }
0x1f5c   :  { %v3271_v63 = vadd.f32 %v8147_v19, %v3267_v48 }
0x1f5d   :  { %v6618_v37 = vpop.eup %6617 }
0x1f5e   :  { %v6378_v50 = vpop.permute.xlu2 %6377  ;;  %v3361_v51 = vmul.f32 %v6618_v37, %v6614_v32 }
0x1f5f   :  { %v6379_v40 = vunpack.i.l.bf16 %v6378_v50  ;;  %v6380_v15 = vunpack.i.h.bf16 %v6378_v50 }
0x1f61   :  { %3418 = vmatpush.msrb.mxu2 %v6379_v40 }
0x1f63   :  { %3419 = vmatpush.msrb.mxu2 %v6380_v15 }
0x1f64   :  { %6137 = vmatmul.msk.f32.vlgmr.msrb.gmra.mxu2 %vm1309_vm9, %v3361_v51 }
0x1f65   :  { %3569 = vmatpush.msra.mxu2 %v6384_v16 }
0x1f66   :  { %v3641_v42 = vpop.permute.xlu2 %3640 }
0x1f67   :  { %3570 = vmatpush.msra.mxu2 %v6385_v46 }
0x1f69   :  { %6152 = vmatpush.xpose.msk.msrb.mxu2 %vm387_vm1, %v3641_v42 }
0x1f6e   :  { %v3491_v43 = vpop.permute.xlu2 %3490 }
0x1f6f   :  { %6145 = vmatpush.xpose.msk.msrb.mxu1 %vm387_vm1, %v3491_v43 }
0x1f72   :  { %6146 = vmatmul.msk.f32.vlgmr.msrb.gmra.mxu1 %vm387_vm1, %v3489_v26 }
0x1f73   :  { %3626 = vmatpush.msra.mxu1 %v6149_v8 }
0x1f74   :  { %3636 = vrot.lane.b32.xlu1 %v8014_v39, %s7104_s7 }
0x1f76   :  { %v3639_v27 = vpop.permute.xlu2 %3638 }
0x1f77   :  { %6153 = vmatpush.xpose.msk.msrb.mxu2 %vm387_vm1, %v3639_v27  ;;  %v6160_v27 = vld [vmem:[%s8761_s10 + $0x38] sm:$0xff] }
0x1f7c   :  { %3668 = vrot.lane.b32.xlu1 %v8022_v0, %s7104_s7 }
0x1f7e   :  { %v3673_v10 = vpop.permute.xlu2 %3672 }
0x1f7f   :  { %6155 = vmatpush.xpose.msk.msrb.mxu3 %vm387_vm1, %v3673_v10 }
0x1f83   :  { %6156 = vmatpush.xpose.msk.msrb.mxu3 %vm387_vm1, %v3671_v28 }
0x1f87   :  { %3806 = vmatpush.msra.mxu3 %v6160_v27  ;;  %v6167_v27 = vld [vmem:[%s8765_s14 + $0x88] sm:$0xff] }
0x1fce   :  { %v3538_v33 = vpop.xlane.xlu1 %3537 }
0x1fcf   :  { %6619 = vrcp.f32 %v3538_v33 }
0x1fd5   :  { %v6620_v62 = vpop.eup %6619 }
0x1fd6   :  { %v3544_v45 = vmul.f32 %v6620_v62, %v6616_v30 }
0x1fd8   :  { %6147 = vmatmul.msk.f32.vlgmr.msra.gmra.mxu2 %vm1309_vm9, %v3544_v45  ;;  %v3270_v45 = vadd.f32 %v8147_v19, %v8132_v47 }
0x1fda   :  { %v3454_v48 = vadd.f32 %v8145_v12, %v3270_v45  ;;  %v6466_v45 = vld [vmem:[#allocation17 + $0x1] ss:$0 sm:$0xff] }
0x1fe6   :  { %v3637_v39 = vpop.permute.xlu1 %3636 }
0x1fe7   :  { %v3421_v44 = vpop.f32.mrf.mxu2  ;;  %6154 = vmatmul.msk.f32.vlgmr.msrb.gmra.mxu2 %vm387_vm1, %v3637_v39 }
0x1fe8   :  { %6140 = vmatmul.msk.f32.gmra.mxu3 %vm387_vm1, %v3421_v44 }
0x1fee   :  { %v3669_v0 = vpop.permute.xlu1 %3668 }
0x1fef   :  { %v3517_v22 = vpop.f32.mrf.mxu1 }
0x1ff0   :  { %v3521_v52 = vmul.f32 0.35355338, %v3517_v22  ;;  %6157 = vmatmul.msk.f32.vlgmr.msrb.gmra.mxu3 %vm387_vm1, %v3669_v0 }
0x1ff2   :  { %v3523_v55 = vadd.f32 %v8050_v24, %v3521_v52 }
0x1ff4   :  { %v3527_v56 = vsel %vm1309_vm9, %v3523_v55, -inf }
0x1ff5   :  { %3528 = vmax.xlane.f32.xlu2 %v3527_v56 }
0x200d   :  { %6387 = vrot.lane.b32.xlu2 %v6376_v57, %s7103_s26 }
0x2015   :  { %6397 = vrot.lane.b32.xlu2 %v6376_v57, %s7104_s7 }
0x205b   :  { %v3572_v58 = vpop.f32.mrf.mxu2 }
0x205c   :  { %6150 = vmatmul.msk.f32.vlgmr.msra.gmra.mxu1 %vm387_vm1, %v3572_v58 }
0x2068   :  { %v3529_v59 = vpop.xlane.xlu2 %3528 }
0x2069   :  { %v3531_v61 = vsub.f32 %v3523_v55, %v3529_v59 }
0x206a   :  { %v3665_v1 = vpop.f32.mrf.mxu2 }
0x206b   :  { %v3534_v2 = vmul.f32 1.442695, %v3531_v61  ;;  %v3700_v3 = vmul.f32 0.35355338, %v3665_v1  ;;  %v3451_v23 = vpop.f32.mrf.mxu3 }
0x206c   :  { %v8150_v13 = vadd.f32 %v3451_v23, %v3271_v63  ;;  %v3879_v23 = vld [vmem:[#allocation16 + $0x30] sm:$0xff] }
0x206d   :  { %6621 = vpow2.f32 %v3534_v2  ;;  %v3702_v6 = vadd.f32 %v8039_v4, %v3700_v3  ;;  %v3880_v3 = vld [vmem:[#allocation16 + $0x38] sm:$0xff] }
0x206f   :  { %v3704_v7 = vsel %vm1309_vm9, %v3702_v6, -inf }
0x2070   :  { %3705 = vmax.xlane.f32.xlu0 %v3704_v7  ;;  %v6388_v31 = vpop.permute.xlu2 %6387  ;;  %v3877_v7 = vld [vmem:[#allocation16 + $0x20] sm:$0xff] }
0x2071   :  { %v6389_v11 = vunpack.i.l.bf16 %v6388_v31  ;;  %v6390_v20 = vunpack.i.h.bf16 %v6388_v31  ;;  %v6181_v31 = vld [vmem:[%s8765_s14 + $0xf8] sm:$0xff] }
0x2072   :  { %3934 = vmatpush.msrb.mxu1 %v6181_v31 }
0x2073   :  { %v6622_v14 = vpop.eup %6621  ;;  %3598 = vmatpush.msrb.mxu0 %v6389_v11  ;;  %v3697_v57 = vpop.f32.mrf.mxu3 }
0x2074   :  { %v3539_v49 = vsel %vm1309_vm9, %v6622_v14, 0.0  ;;  %v3701_v36 = vmul.f32 0.35355338, %v3697_v57 }
0x2075   :  { %3540 = vadd.xlane.f32.xlu1 %v3539_v49  ;;  %3599 = vmatpush.msrb.mxu0 %v6390_v20  ;;  %v6178_v20 = vld [vmem:[%s8765_s14 + $0xe0] sm:$0xff] }
0x2076   :  { %v3703_v21 = vadd.f32 %v8050_v24, %v3701_v36 }
0x2078   :  { %v6398_v25 = vpop.permute.xlu2 %6397 }
0x2079   :  { %v6399_v38 = vunpack.i.l.bf16 %v6398_v25  ;;  %v6400_v41 = vunpack.i.h.bf16 %v6398_v25  ;;  %v6177_v25 = vld [vmem:[%s8765_s14 + $0xd8] sm:$0xff] }
0x207b   :  { %3778 = vmatpush.msra.mxu2 %v6399_v38  ;;  %v6176_v38 = vld [vmem:[%s8765_s14 + $0xd0] sm:$0xff] }
0x207d   :  { %3779 = vmatpush.msra.mxu2 %v6400_v41  ;;  %v6175_v41 = vld [vmem:[%s8765_s14 + $0xc8] sm:$0xff] }
0x208e   :  { %6392 = vrot.lane.b32.xlu1 %v8028_v54, %s7104_s7  ;;  %v3707_v54 = vsel %vm1309_vm9, %v3703_v21, -inf }
0x20d9   :  { %v3628_v39 = vpop.f32.mrf.mxu1 }
0x20da   :  { %v3634_v44 = vadd.f32 %v3628_v39, %v3454_v48 }
0x20e3   :  { %v3706_v4 = vpop.xlane.xlu0 %3705 }
0x20e4   :  { %v3710_v60 = vsub.f32 %v3702_v6, %v3706_v4  ;;  %v3878_v6 = vld [vmem:[#allocation16 + $0x28] sm:$0xff] }
0x20e5   :  { %v6174_v4 = vld [vmem:[%s8765_s14 + $0xc0] sm:$0xff] }
0x20e6   :  { %v3712_v32 = vmul.f32 1.442695, %v3710_v60 }
0x20e8   :  { %6623 = vpow2.f32 %v3712_v32  ;;  %v3541_v34 = vpop.xlane.xlu1 %3540 }
0x20e9   :  { %6625 = vrcp.f32 %v3541_v34 }
0x20ee   :  { %v6624_v35 = vpop.eup %6623 }
0x20ef   :  { %v6626_v18 = vpop.eup %6625  ;;  %v3716_v17 = vsel %vm1309_vm9, %v6624_v35, 0.0 }
0x20f0   :  { %v3545_v30 = vmul.f32 %v6626_v18, %v6622_v14  ;;  %3717 = vadd.xlane.f32.xlu0 %v3716_v17 }
0x20f2   :  { %6148 = vmatmul.msk.f32.vlgmr.msrb.gmra.mxu0 %vm1309_vm9, %v3545_v30  ;;  %v6464_v30 = vld [vmem:[%s8767_s16 + $0x4] ss:$0 sm:$0xff] }
0x20f8   :  { %3708 = vmax.xlane.f32.xlu0 %v3707_v54 }
0x2100   :  { %v6393_v50 = vpop.permute.xlu1 %6392 }
0x2101   :  { %v6394_v37 = vunpack.i.l.bf16 %v6393_v50  ;;  %v6395_v40 = vunpack.i.h.bf16 %v6393_v50  ;;  %v6465_v50 = vld [vmem:[#allocation20 + $0x4] ss:$0 sm:$0xff] }
0x2103   :  { %3749 = vmatpush.msra.mxu0 %v6394_v37 }
0x2105   :  { %3750 = vmatpush.msra.mxu0 %v6395_v40 }
0x2107   :  { %3904 = vmatpush.msrb.mxu0 %v3880_v3 }
0x2109   :  { %3905 = vmatpush.msrb.mxu0 %v3879_v23 }
0x210b   :  { %3906 = vmatpush.msrb.mxu0 %v3878_v6 }
0x210d   :  { %3907 = vmatpush.msrb.mxu0 %v3877_v7 }
0x2163   :  { %v3718_v53 = vpop.xlane.xlu0 %3717 }
0x2164   :  { %6627 = vrcp.f32 %v3718_v53 }
0x216a   :  { %v6628_v15 = vpop.eup %6627 }
0x216b   :  { %v3724_v51 = vmul.f32 %v6628_v15, %v6624_v35  ;;  %v3709_v16 = vpop.xlane.xlu0 %3708 }
0x216c   :  { %v3711_v46 = vsub.f32 %v3703_v21, %v3709_v16  ;;  %v6173_v16 = vld [vmem:[%s8765_s14 + $0xb8] sm:$0xff] }
0x216d   :  { %6158 = vmatmul.msk.f32.vlgmr.msra.gmra.mxu0 %vm1309_vm9, %v3724_v51 }
0x216e   :  { %v3714_v42 = vmul.f32 1.442695, %v3711_v46  ;;  %v6172_v46 = vld [vmem:[%s8765_s14 + $0xb0] sm:$0xff] }
0x216f   :  { %v3601_v43 = vpop.f32.mrf.mxu0 }
0x2170   :  { %6629 = vpow2.f32 %v3714_v42  ;;  %6151 = vmatmul.msk.f32.gmra.mxu1 %vm387_vm1, %v3601_v43  ;;  %v6171_v42 = vld [vmem:[%s8765_s14 + $0xa8] sm:$0xff]  ;;  %v6170_v43 = vld [vmem:[%s8765_s14 + $0xa0] sm:$0xff] }
0x2176   :  { %v6630_v24 = vpop.eup %6629 }
0x2177   :  { %v3719_v26 = vsel %vm1309_vm9, %v6630_v24, 0.0 }
0x2178   :  { %3720 = vadd.xlane.f32.xlu0 %v3719_v26  ;;  %v6168_v26 = vld [vmem:[%s8765_s14 + $0x90] sm:$0xff] }
0x21ea   :  { %v3752_v10 = vpop.f32.mrf.mxu0 }
0x21eb   :  { %6161 = vmatmul.msk.f32.vlgmr.msra.gmra.mxu3 %vm387_vm1, %v3752_v10  ;;  %v3721_v28 = vpop.xlane.xlu0 %3720  ;;  %v6166_v10 = vld [vmem:[%s8765_s14 + $0x80] sm:$0xff] }
0x21ec   :  { %6631 = vrcp.f32 %v3721_v28 }
0x21ed   :  { %v3631_v12 = vpop.f32.mrf.mxu1 }
0x21ee   :  { %v3635_v19 = vadd.f32 %v3631_v12, %v8150_v13  ;;  %v6180_v13 = vld [vmem:[%s8765_s14 + $0xf0] sm:$0xff]  ;;  %v6467_v12 = vld [vmem:[#allocation19 + $0x1] ss:$0 sm:$0xff] }
0x21ef   :  { %3935 = vmatpush.msrb.mxu1 %v6180_v13 }
0x21f2   :  { %v6632_v33 = vpop.eup %6631 }
0x21f3   :  { %v3725_v62 = vmul.f32 %v6632_v33, %v6630_v24  ;;  %v6169_v24 = vld [vmem:[%s8765_s14 + $0x98] sm:$0xff] }
0x21f5   :  { %6159 = vmatmul.msk.f32.vlgmr.msra.gmra.mxu2 %vm1309_vm9, %v3725_v62 }
0x226e   :  { %v3808_v0 = vpop.f32.mrf.mxu3 }
0x226f   :  { %v3814_v22 = vadd.f32 %v3808_v0, %v3634_v44 }
0x2271   :  { %v3816_v52 = vadd.f32 %v3814_v22, %v7986_v29 }
0x2273   :  { %v3822_v55 = vsel %vm286_vm0, %v3816_v52, 0.0 }
0x2274   :  { %3823 = vadd.xlane.f32.xlu0 %v3822_v55 }
0x2278   :  { %v3781_v56 = vpop.f32.mrf.mxu2 }
0x2279   :  { %6162 = vmatmul.msk.f32.gmra.mxu3 %vm387_vm1, %v3781_v56 }
0x22e7   :  { %v3824_v8 = vpop.xlane.xlu0 %3823 }
0x22e8   :  { %v3828_v58 = vmul.f32 %v3824_v8, %v7484_v5 }
0x22ea   :  { %v3830_v59 = vsub.f32 %v3816_v52, %v3828_v58 }
0x22ec   :  { %v3832_v61 = vmul.f32 %v3830_v59, %v3830_v59 }
0x22ee   :  { %v3834_v47 = vsel %vm286_vm0, %v3832_v61, 0.0 }
0x22ef   :  { %3835 = vadd.xlane.f32.xlu1 %v3834_v47 }
0x22fc   :  { %v3811_v63 = vpop.f32.mrf.mxu3 }
0x22fd   :  { %v3815_v1 = vadd.f32 %v3811_v63, %v3635_v19 }
0x22ff   :  { %v3817_v29 = vadd.f32 %v3815_v1, %v7994_v9  ;;  %v6179_v9 = vld [vmem:[%s8765_s14 + $0xe8] sm:$0xff] }
0x2300   :  { %3936 = vmatpush.msrb.mxu1 %v6179_v9 }
0x2301   :  { %v3825_v2 = vsel %vm286_vm0, %v3817_v29, 0.0 }
0x2302   :  { %3826 = vadd.xlane.f32.xlu2 %v3825_v2  ;;  %3937 = vmatpush.msrb.mxu1 %v6178_v20 }
0x2304   :  { %3938 = vmatpush.msrb.mxu1 %v6177_v25  ;;  %v6186_v25 = vld [vmem:[%s8782_s21 + $0xd8] sm:$0xff] }
0x2305   :  { %4052 = vmatpush.msrb.mxu2 %v6186_v25  ;;  %v8329_v25 = vld [vmem:[#allocation7] sm:$0xff] }
0x2306   :  { %3939 = vmatpush.msrb.mxu1 %v6176_v38  ;;  %v6192_v38 = vld [vmem:[%s8782_s21 + $0xf8] sm:$0xff] }
0x2307   :  { %4085 = vmatpush.msrb.mxu3 %v6192_v38 }
0x2308   :  { %3940 = vmatpush.msrb.mxu1 %v6175_v41  ;;  %v6198_v41 = vld [vmem:[%s8782_s21 + $0x118] sm:$0xff] }
0x2309   :  { %4118 = vmatpush.msra.mxu0 %v6198_v41 }
0x230a   :  { %3941 = vmatpush.msrb.mxu1 %v6174_v4  ;;  %v6185_v4 = vld [vmem:[%s8782_s21 + $0xd0] sm:$0xff] }
0x230b   :  { %4053 = vmatpush.msrb.mxu2 %v6185_v4 }
0x230c   :  { %3942 = vmatpush.msrb.mxu1 %v6173_v16 }
0x230e   :  { %3943 = vmatpush.msrb.mxu1 %v6172_v46 }
0x2310   :  { %3944 = vmatpush.msrb.mxu1 %v6171_v42  ;;  %v6468_v42 = vld [vmem:[%s8767_s16 + $0x5] ss:$0 sm:$0xff] }
0x2312   :  { %3945 = vmatpush.msrb.mxu1 %v6170_v43 }
0x2314   :  { %3946 = vmatpush.msrb.mxu1 %v6169_v24 }
0x2316   :  { %3947 = vmatpush.msrb.mxu1 %v6168_v26  ;;  %v6469_v26 = vld [vmem:[#allocation20 + $0x5] ss:$0 sm:$0xff] }
0x2318   :  { %3948 = vmatpush.msrb.mxu1 %v6167_v27 }
0x231a   :  { %3949 = vmatpush.msrb.mxu1 %v6166_v10 }
0x2362   :  { %v3836_v11 = vpop.xlane.xlu1 %3835 }
0x2363   :  { %v3840_v14 = vmul.f32 %v3836_v11, %v7484_v5 }
0x2365   :  { %v3842_v49 = vadd.f32 1e-05, %v3840_v14 }
0x2367   :  { %6633 = vrsqrt.f32 %v3842_v49  ;;  %vm3850_vm2 = vweird.f32 %v3842_v49 }
0x236d   :  { %v6634_v60 = vpop.eup %6633 }
0x236e   :  { %v3845_v32 = vmul.f32 %v6634_v60, %v3842_v49  ;;  %vm3851_vm15 = vweird.f32 %v6634_v60 }
0x236f   :  { %vm3852_vm3 = vmor %vm3850_vm2, %vm3851_vm15 }
0x2370   :  { %v3846_v34 = vmul.f32 %v6634_v60, %v3845_v32  ;;  %v6197_v32 = vld [vmem:[%s8782_s21 + $0x110] sm:$0xff] }
0x2371   :  { %4119 = vmatpush.msra.mxu0 %v6197_v32 }
0x2372   :  { %v3847_v57 = vmul.f32 0.5, %v3846_v34  ;;  %v6184_v34 = vld [vmem:[%s8782_s21 + $0xc8] sm:$0xff] }
0x2373   :  { %4054 = vmatpush.msrb.mxu2 %v6184_v34 }
0x2374   :  { %v3848_v35 = vsub.f32 1.5, %v3847_v57  ;;  %v6190_v57 = vld [vmem:[%s8782_s21 + $0xe8] sm:$0xff] }
0x2375   :  { %v3827_v18 = vpop.xlane.xlu2 %3826 }
0x2376   :  { %v3849_v36 = vmul.f32 %v6634_v60, %v3848_v35  ;;  %v3829_v17 = vmul.f32 %v3827_v18, %v7484_v5  ;;  %v6196_v35 = vld [vmem:[%s8782_s21 + $0x108] sm:$0xff]  ;;  %v6183_v18 = vld [vmem:[%s8782_s21 + $0xc0] sm:$0xff] }
0x2377   :  { %4120 = vmatpush.msra.mxu0 %v6196_v35  ;;  %4055 = vmatpush.msrb.mxu2 %v6183_v18 }
0x2378   :  { %v3853_v21 = vsel %vm3852_vm3, %v6634_v60, %v3849_v36  ;;  %v3831_v54 = vsub.f32 %v3817_v29, %v3829_v17  ;;  %v6191_v60 = vld [vmem:[%s8782_s21 + $0xf0] sm:$0xff]  ;;  %v6189_v36 = vld [vmem:[%s8782_s21 + $0xe0] sm:$0xff] }
0x2379   :  { %v3864_v37 = vmul.f32 %v3853_v21, %v3830_v59  ;;  %4086 = vmatpush.msrb.mxu3 %v6191_v60  ;;  %v6195_v17 = vld [vmem:[%s8782_s21 + $0x100] sm:$0xff] }
0x237a   :  { %v3833_v40 = vmul.f32 %v3831_v54, %v3831_v54  ;;  %4121 = vmatpush.msra.mxu0 %v6195_v17 }
0x237b   :  { %v3869_v53 = vmul.f32 %v6464_v30, %v3864_v37  ;;  %4087 = vmatpush.msrb.mxu3 %v6190_v57 }
0x237c   :  { %v3837_v15 = vsel %vm286_vm0, %v3833_v40, 0.0 }
0x237d   :  { %v3874_v51 = vadd.f32 %v6465_v50, %v3869_v53  ;;  %3838 = vadd.xlane.f32.xlu0 %v3837_v15  ;;  %4088 = vmatpush.msrb.mxu3 %v6189_v36  ;;  %v8334_v36 = vld [vmem:[#allocation7 + $0x8] sm:$0xff] }
0x237f   :  { %6164 = vmatmul.msk.f32.vlgmr.msrb.gmra.mxu0 %vm286_vm0, %v3874_v51 }
0x23f0   :  { %v3839_v28 = vpop.xlane.xlu0 %3838 }
0x23f1   :  { %v3841_v33 = vmul.f32 %v3839_v28, %v7484_v5 }
0x23f3   :  { %v3843_v62 = vadd.f32 1e-05, %v3841_v33 }
0x23f5   :  { %6635 = vrsqrt.f32 %v3843_v62  ;;  %vm3860_vm5 = vweird.f32 %v3843_v62 }
0x23fb   :  { %v6636_v39 = vpop.eup %6635 }
0x23fc   :  { %v3855_v48 = vmul.f32 %v6636_v39, %v3843_v62  ;;  %v3909_v44 = vpop.f32.mrf.mxu0  ;;  %vm3861_vm4 = vweird.f32 %v6636_v39 }
0x23fd   :  { %v3910_v0 = vadd.f32 %v6466_v45, %v3909_v44  ;;  %vm3862_vm6 = vmor %vm3860_vm5, %vm3861_vm4  ;;  %v6470_v44 = vld [vmem:[#allocation8 + $0x8] ss:$0 sm:$0xff] }
0x23fe   :  { %v3856_v22 = vmul.f32 %v6636_v39, %v3855_v48 }
0x23ff   :  { %v3915_v52 = vmax.f32 %v3910_v0, 0.0 }
0x2400   :  { %v3857_v55 = vmul.f32 0.5, %v3856_v22 }
0x2401   :  { %3950 = vmatmul.f32.vlgmr.msrb.gmra.mxu1 %v3915_v52 }
0x2402   :  { %v3858_v56 = vsub.f32 1.5, %v3857_v55 }
0x2404   :  { %v3859_v8 = vmul.f32 %v6636_v39, %v3858_v56 }
0x2406   :  { %v3863_v58 = vsel %vm3862_vm6, %v6636_v39, %v3859_v8  ;;  %v6471_v8 = vld [vmem:[#allocation8 + $0x6] ss:$0 sm:$0xff] }
0x2407   :  { %v3865_v59 = vmul.f32 %v3863_v58, %v3831_v54  ;;  %v6472_v58 = vld [vmem:[#allocation8 + $0x7] ss:$0 sm:$0xff] }
0x2409   :  { %v3870_v61 = vmul.f32 %v6464_v30, %v3865_v59 }
0x240b   :  { %v3875_v47 = vadd.f32 %v6465_v50, %v3870_v61 }
0x240d   :  { %6165 = vmatmul.msk.f32.gmra.mxu0 %vm286_vm0, %v3875_v47 }
0x247e   :  { %v3951_v19 = vpop.f32.mrf.mxu1 }
0x247f   :  { %v3957_v63 = vadd.f32 %v3951_v19, %v3874_v51 }
0x2481   :  { %v3964_v1 = vadd.f32 %v6467_v12, %v3957_v63 }
0x2483   :  { %v3970_v29 = vsel %vm286_vm0, %v3964_v1, 0.0 }
0x2484   :  { %3971 = vadd.xlane.f32.xlu0 %v3970_v29 }
0x248a   :  { %v3912_v2 = vpop.f32.mrf.mxu0 }
0x248b   :  { %v3913_v3 = vadd.f32 %v6466_v45, %v3912_v2 }
0x248d   :  { %v3916_v23 = vmax.f32 %v3913_v3, 0.0 }
0x248f   :  { %3953 = vmatmul.f32.gmra.mxu1 %v3916_v23 }
0x24f7   :  { %v3972_v6 = vpop.xlane.xlu0 %3971 }
0x24f8   :  { %v3976_v7 = vmul.f32 %v3972_v6, %v7484_v5 }
0x24fa   :  { %v3978_v31 = vsub.f32 %v3964_v1, %v3976_v7 }
0x24fc   :  { %v3980_v13 = vmul.f32 %v3978_v31, %v3978_v31 }
0x24fe   :  { %v3982_v9 = vsel %vm286_vm0, %v3980_v13, 0.0 }
0x24ff   :  { %3983 = vadd.xlane.f32.xlu0 %v3982_v9 }
0x250c   :  { %v3954_v11 = vpop.f32.mrf.mxu1 }
0x250d   :  { %v3958_v14 = vadd.f32 %v3954_v11, %v3875_v47 }
0x250f   :  { %v3965_v20 = vadd.f32 %v6467_v12, %v3958_v14 }
0x2511   :  { %v3973_v49 = vsel %vm286_vm0, %v3965_v20, 0.0 }
0x2512   :  { %3974 = vadd.xlane.f32.xlu0 %v3973_v49 }
0x2572   :  { %v3984_v30 = vpop.xlane.xlu0 %3983 }
0x2573   :  { %v3988_v21 = vmul.f32 %v3984_v30, %v7484_v5 }
0x2575   :  { %v3990_v54 = vadd.f32 1e-05, %v3988_v21 }
0x2577   :  { %6637 = vrsqrt.f32 %v3990_v54  ;;  %vm3998_vm8 = vweird.f32 %v3990_v54 }
0x257d   :  { %v6638_v50 = vpop.eup %6637 }
0x257e   :  { %v3993_v37 = vmul.f32 %v6638_v50, %v3990_v54  ;;  %vm3999_vm7 = vweird.f32 %v6638_v50 }
0x257f   :  { %vm4000_vm10 = vmor %vm3998_vm8, %vm3999_vm7 }
0x2580   :  { %v3994_v40 = vmul.f32 %v6638_v50, %v3993_v37 }
0x2582   :  { %v3995_v53 = vmul.f32 0.5, %v3994_v40 }
0x2584   :  { %v3996_v15 = vsub.f32 1.5, %v3995_v53 }
0x2585   :  { %v3975_v51 = vpop.xlane.xlu0 %3974 }
0x2586   :  { %v3997_v16 = vmul.f32 %v6638_v50, %v3996_v15  ;;  %v3977_v46 = vmul.f32 %v3975_v51, %v7484_v5 }
0x2588   :  { %v4001_v43 = vsel %vm4000_vm10, %v6638_v50, %v3997_v16  ;;  %v3979_v24 = vsub.f32 %v3965_v20, %v3977_v46 }
0x2589   :  { %v4012_v27 = vmul.f32 %v4001_v43, %v3978_v31 }
0x258a   :  { %v3981_v10 = vmul.f32 %v3979_v24, %v3979_v24 }
0x258b   :  { %v4017_v28 = vmul.f32 %v6468_v42, %v4012_v27 }
0x258c   :  { %v3985_v33 = vsel %vm286_vm0, %v3981_v10, 0.0 }
0x258d   :  { %v8283_v62 = vadd.f32 %v6469_v26, %v4017_v28  ;;  %3986 = vadd.xlane.f32.xlu0 %v3985_v33 }
0x258f   :  { %6187 = vmatmul.msk.f32.vlgmr.msrb.gmra.mxu2 %vm286_vm0, %v8283_v62  ;;  %6193 = vmatmul.msk.f32.vlgmr.msrb.gmra.mxu3 %vm286_vm0, %v8283_v62 }
0x2590   :  { %6199 = vmatmul.msk.f32.vlgmr.msra.gmra.mxu0 %vm286_vm0, %v8283_v62 }
0x2600   :  { %v3987_v45 = vpop.xlane.xlu0 %3986 }
0x2601   :  { %v3989_v39 = vmul.f32 %v3987_v45, %v7484_v5 }
0x2603   :  { %v3991_v48 = vadd.f32 1e-05, %v3989_v39 }
0x2605   :  { %6639 = vrsqrt.f32 %v3991_v48  ;;  %vm4008_vm12 = vweird.f32 %v3991_v48 }
0x260b   :  { %v6640_v0 = vpop.eup %6639 }
0x260c   :  { %v4003_v22 = vmul.f32 %v6640_v0, %v3991_v48  ;;  %vm4009_vm11 = vweird.f32 %v6640_v0  ;;  %v6207_v48 = vld [vmem:[%s8757_s6 + $0x40] sm:$0xff] }
0x260d   :  { %v4123_v52 = vpop.f32.mrf.mxu0  ;;  %vm4010_vm13 = vmor %vm4008_vm12, %vm4009_vm11  ;;  %4282 = vmatpush.msra.mxu1 %v6207_v48 }
0x260e   :  { %v4004_v55 = vmul.f32 %v6640_v0, %v4003_v22  ;;  %v8292_v56 = vadd.f32 %v6470_v44, %v4123_v52 }
0x2610   :  { %v4005_v59 = vmul.f32 0.5, %v4004_v55  ;;  %4231 = vmatpush.msra.mxu3 %v8292_v56 }
0x2612   :  { %v4006_v61 = vsub.f32 1.5, %v4005_v59  ;;  %v4057_v47 = vpop.f32.mrf.mxu2  ;;  %v4090_v12 = vpop.f32.mrf.mxu3 }
0x2613   :  { %v8295_v19 = vadd.f32 %v6471_v8, %v4057_v47  ;;  %v8297_v63 = vadd.f32 %v6472_v58, %v4090_v12 }
0x2614   :  { %v4007_v1 = vmul.f32 %v6640_v0, %v4006_v61 }
0x2615   :  { %4294 = vrot.lane.b32.xlu1 %v8297_v63, %s7102_s24  ;;  %6201 = vmatpush.xpose.msk.msra.mxu2 %vm387_vm1, %v8297_v63 }
0x2616   :  { %v4011_v29 = vsel %vm4010_vm13, %v6640_v0, %v4007_v1  ;;  %4292 = vrot.lane.b32.xlu2 %v8295_v19, %s7102_s24 }
0x2617   :  { %v4013_v2 = vmul.f32 %v4011_v29, %v3979_v24 }
0x2619   :  { %v4018_v3 = vmul.f32 %v6468_v42, %v4013_v2 }
0x261b   :  { %v8305_v23 = vadd.f32 %v6469_v26, %v4018_v3 }
0x261d   :  { %6188 = vmatmul.msk.f32.gmra.mxu2 %vm286_vm0, %v8305_v23  ;;  %6194 = vmatmul.msk.f32.gmra.mxu3 %vm286_vm0, %v8305_v23 }
0x261e   :  { %6200 = vmatmul.msk.f32.gmra.mxu0 %vm286_vm0, %v8305_v23 }
0x2625   :  { %6202 = vmatmul.msk.f32.vlgmr.msra.gmra.mxu2 %vm387_vm1, %v8295_v19 }
0x2670   :  { %v4293_v41 = vpop.permute.xlu2 %4292 }
0x2687   :  { %v4295_v14 = vpop.permute.xlu1 %4294 }
0x269b   :  { %v4126_v6 = vpop.f32.mrf.mxu0 }
0x269c   :  { %v8315_v7 = vadd.f32 %v6470_v44, %v4126_v6  ;;  %v6216_v6 = vld [vmem:[%s8757_s6 + $0x48] sm:$0xff] }
0x269e   :  { %4254 = vmatpush.msrb.mxu0 %v8315_v7 }
0x26a0   :  { %v4060_v31 = vpop.f32.mrf.mxu2  ;;  %v4093_v13 = vpop.f32.mrf.mxu3 }
0x26a1   :  { %v8318_v9 = vadd.f32 %v6471_v8, %v4060_v31  ;;  %v8320_v11 = vadd.f32 %v6472_v58, %v4093_v13 }
0x26a3   :  { %6203 = vmatpush.xpose.msk.msrb.mxu2 %vm387_vm1, %v8320_v11  ;;  %4320 = vrot.lane.b32.xlu1 %v8318_v9, %s7102_s24 }
0x26a6   :  { %6204 = vmatmul.msk.f32.vlgmr.msrb.gmra.mxu2 %vm387_vm1, %v8318_v9 }
0x26a7   :  { %6210 = vmatpush.xpose.msk.msra.mxu2 %vm387_vm1, %v4295_v14 }
0x26a8   :  { %v4158_v20 = vpop.f32.mrf.mxu2 }
0x26a9   :  { %v4187_v49 = vmul.f32 0.35355338, %v4158_v20 }
0x26ab   :  { %v4189_v38 = vadd.f32 %v8329_v25, %v4187_v49 }
0x26ad   :  { %v4191_v4 = vsel %vm387_vm1, %v4189_v38, -inf }
0x26ae   :  { %4192 = vmax.xlane.f32.xlu0 %v4191_v4  ;;  %6211 = vmatmul.msk.f32.vlgmr.msra.gmra.mxu2 %vm387_vm1, %v4293_v41 }
0x2715   :  { %v4321_v15 = vpop.permute.xlu1 %4320 }
0x2721   :  { %v4193_v60 = vpop.xlane.xlu0 %4192 }
0x2722   :  { %v4197_v32 = vsub.f32 %v4189_v38, %v4193_v60 }
0x2724   :  { %v4199_v34 = vmul.f32 1.442695, %v4197_v32 }
0x2726   :  { %6641 = vpow2.f32 %v4199_v34 }
0x2729   :  { %v4184_v57 = vpop.f32.mrf.mxu2 }
0x272a   :  { %v4188_v35 = vmul.f32 0.35355338, %v4184_v57 }
0x272c   :  { %v6642_v18 = vpop.eup %6641  ;;  %v4190_v17 = vadd.f32 %v8334_v36, %v4188_v35 }
0x272d   :  { %v4203_v30 = vsel %vm387_vm1, %v6642_v18, 0.0 }
0x272e   :  { %4204 = vadd.xlane.f32.xlu0 %v4203_v30  ;;  %v4194_v21 = vsel %vm387_vm1, %v4190_v17, -inf }
0x272f   :  { %4195 = vmax.xlane.f32.xlu2 %v4194_v21 }
0x2731   :  { %v4317_v54 = vpop.f32.mrf.mxu2 }
0x2732   :  { %v4348_v50 = vmul.f32 0.35355338, %v4317_v54 }
0x2734   :  { %v4350_v37 = vadd.f32 %v8329_v25, %v4348_v50 }
0x2736   :  { %v4352_v40 = vsel %vm387_vm1, %v4350_v37, -inf }
0x2737   :  { %4353 = vmax.xlane.f32.xlu1 %v4352_v40 }
0x2742   :  { %4322 = vrot.lane.b32.xlu0 %v8320_v11, %s7102_s24 }
0x2750   :  { %4462 = vrot.lane.b32.xlu1 %v8297_v63, %s7103_s26 }
0x27a1   :  { %v4205_v53 = vpop.xlane.xlu0 %4204 }
0x27a2   :  { %6643 = vrcp.f32 %v4205_v53  ;;  %v4196_v51 = vpop.xlane.xlu2 %4195 }
0x27a3   :  { %v4198_v16 = vsub.f32 %v4190_v17, %v4196_v51 }
0x27a5   :  { %v4201_v46 = vmul.f32 1.442695, %v4198_v16 }
0x27a7   :  { %6645 = vpow2.f32 %v4201_v46 }
0x27a8   :  { %v6644_v42 = vpop.eup %6643 }
0x27a9   :  { %v4211_v43 = vmul.f32 %v6644_v42, %v6642_v18 }
0x27aa   :  { %v4354_v24 = vpop.xlane.xlu1 %4353 }
0x27ab   :  { %v4358_v26 = vsub.f32 %v4350_v37, %v4354_v24  ;;  %6205 = vmatmul.msk.f32.vlgmr.msra.gmra.mxu3 %vm387_vm1, %v4211_v43 }
0x27ad   :  { %v6646_v27 = vpop.eup %6645  ;;  %v4360_v10 = vmul.f32 1.442695, %v4358_v26 }
0x27ae   :  { %v4206_v28 = vsel %vm387_vm1, %v6646_v27, 0.0 }
0x27af   :  { %6647 = vpow2.f32 %v4360_v10  ;;  %4207 = vadd.xlane.f32.xlu0 %v4206_v28  ;;  %v6225_v28 = vld [vmem:[%s8757_s6 + $0x50] sm:$0xff] }
0x27b4   :  { %v4323_v33 = vpop.permute.xlu0 %4322 }
0x27b5   :  { %v6648_v45 = vpop.eup %6647  ;;  %6212 = vmatpush.xpose.msk.msrb.mxu3 %vm387_vm1, %v4323_v33 }
0x27b6   :  { %v4364_v39 = vsel %vm387_vm1, %v6648_v45, 0.0 }
0x27b7   :  { %4365 = vadd.xlane.f32.xlu2 %v4364_v39 }
0x27b8   :  { %6213 = vmatmul.msk.f32.vlgmr.msrb.gmra.mxu3 %vm387_vm1, %v4321_v15 }
0x27b9   :  { %4450 = vmatpush.msra.mxu3 %v6216_v6 }
0x27c2   :  { %v4463_v61 = vpop.permute.xlu1 %4462 }
0x27c3   :  { %4460 = vrot.lane.b32.xlu0 %v8295_v19, %s7103_s26 }
0x27cb   :  { %4402 = vrot.lane.b32.xlu0 %v8315_v7, %s7102_s24 }
0x27cf   :  { %4375 = vrot.lane.b32.xlu2 %v8292_v56, %s7102_s24 }
0x2822   :  { %v4208_v44 = vpop.xlane.xlu0 %4207 }
0x2823   :  { %6649 = vrcp.f32 %v4208_v44 }
0x2829   :  { %v6650_v0 = vpop.eup %6649 }
0x282a   :  { %v4212_v22 = vmul.f32 %v6650_v0, %v6646_v27  ;;  %v4366_v52 = vpop.xlane.xlu2 %4365 }
0x282b   :  { %6651 = vrcp.f32 %v4366_v52 }
0x282c   :  { %6206 = vmatmul.msk.f32.vlgmr.msrb.gmra.mxu0 %vm387_vm1, %v4212_v22 }
0x282e   :  { %v4233_v55 = vpop.f32.mrf.mxu3 }
0x282f   :  { %6208 = vmatmul.msk.f32.vlgmr.msra.gmra.mxu1 %vm387_vm1, %v4233_v55 }
0x2831   :  { %v6652_v8 = vpop.eup %6651 }
0x2832   :  { %v4372_v58 = vmul.f32 %v6652_v8, %v6648_v45  ;;  %v4376_v59 = vpop.permute.xlu2 %4375 }
0x2833   :  { %4396 = vmatpush.msra.mxu0 %v4376_v59 }
0x2834   :  { %6214 = vmatmul.msk.f32.vlgmr.msra.gmra.mxu0 %vm387_vm1, %v4372_v58 }
0x2835   :  { %6219 = vmatpush.xpose.msk.msrb.mxu0 %vm387_vm1, %v4463_v61  ;;  %v4461_v47 = vpop.permute.xlu0 %4460 }
0x283b   :  { %v4345_v12 = vpop.f32.mrf.mxu3 }
0x283c   :  { %v4349_v1 = vmul.f32 0.35355338, %v4345_v12  ;;  %6220 = vmatmul.msk.f32.vlgmr.msrb.gmra.mxu0 %vm387_vm1, %v4461_v47 }
0x283d   :  { %v4403_v29 = vpop.permute.xlu0 %4402 }
0x283e   :  { %v4351_v2 = vadd.f32 %v8334_v36, %v4349_v1  ;;  %4423 = vmatpush.msrb.mxu2 %v4403_v29 }
0x2840   :  { %v4355_v3 = vsel %vm387_vm1, %v4351_v2, -inf }
0x2841   :  { %4356 = vmax.xlane.f32.xlu2 %v4355_v3 }
0x2859   :  { %4490 = vrot.lane.b32.xlu2 %v8320_v11, %s7103_s26 }
0x28a9   :  { %v4256_v31 = vpop.f32.mrf.mxu0 }
0x28aa   :  { %6209 = vmatmul.msk.f32.gmra.mxu1 %vm387_vm1, %v4256_v31 }
0x28ac   :  { %v8395_v46 = vpop.f32.mrf.mxu1 }
0x28b1   :  { %v4398_v13 = vpop.f32.mrf.mxu0 }
0x28b2   :  { %6217 = vmatmul.msk.f32.vlgmr.msra.gmra.mxu3 %vm387_vm1, %v4398_v13 }
0x28b4   :  { %v4357_v14 = vpop.xlane.xlu2 %4356 }
0x28b5   :  { %v4359_v20 = vsub.f32 %v4351_v2, %v4357_v14 }
0x28b7   :  { %v4362_v49 = vmul.f32 1.442695, %v4359_v20 }
0x28b9   :  { %6653 = vpow2.f32 %v4362_v49  ;;  %v4485_v38 = vpop.f32.mrf.mxu0 }
0x28ba   :  { %v4516_v41 = vmul.f32 0.35355338, %v4485_v38 }
0x28bc   :  { %v4518_v4 = vadd.f32 %v8329_v25, %v4516_v41  ;;  %v4491_v60 = vpop.permute.xlu2 %4490 }
0x28bd   :  { %6221 = vmatpush.xpose.msk.msrb.mxu1 %vm387_vm1, %v4491_v60  ;;  %v6401_v60 = vpack.i.bf16 %v8315_v7, %v8292_v56 }
0x28be   :  { %v4520_v32 = vsel %vm387_vm1, %v4518_v4, -inf }
0x28bf   :  { %v6654_v34 = vpop.eup %6653  ;;  %4521 = vmax.xlane.f32.xlu0 %v4520_v32 }
0x28c0   :  { %v4367_v57 = vsel %vm387_vm1, %v6654_v34, 0.0 }
0x28c1   :  { %4368 = vadd.xlane.f32.xlu1 %v4367_v57  ;;  %4616 = vmatpush.msra.mxu1 %v6225_v28 }
0x28d3   :  { %4628 = vrot.lane.b32.xlu0 %v8297_v63, %s7104_s7 }
0x28da   :  { %4542 = vrot.lane.b32.xlu1 %v8292_v56, %s7103_s26 }
0x28db   :  { %4626 = vrot.lane.b32.xlu0 %v8295_v19, %s7104_s7 }
0x28e2   :  { %4488 = vrot.lane.b32.xlu1 %v8318_v9, %s7103_s26 }
0x28ea   :  { %4654 = vrot.lane.b32.xlu1 %v8318_v9, %s7104_s7 }
0x2927   :  { %v8399_v24 = vpop.f32.mrf.mxu1 }
0x2932   :  { %v4522_v35 = vpop.xlane.xlu0 %4521 }
0x2933   :  { %v4526_v18 = vsub.f32 %v4518_v4, %v4522_v35 }
0x2934   :  { %v4369_v17 = vpop.xlane.xlu1 %4368 }
0x2935   :  { %v4528_v30 = vmul.f32 1.442695, %v4526_v18  ;;  %6655 = vrcp.f32 %v4369_v17  ;;  %v8407_v33 = vpop.f32.mrf.mxu3 }
0x2937   :  { %6657 = vpow2.f32 %v4528_v30 }
0x293b   :  { %v6656_v21 = vpop.eup %6655 }
0x293c   :  { %v4373_v63 = vmul.f32 %v6656_v21, %v6654_v34 }
0x293d   :  { %v6658_v54 = vpop.eup %6657 }
0x293e   :  { %6215 = vmatmul.msk.f32.vlgmr.msrb.gmra.mxu2 %vm387_vm1, %v4373_v63  ;;  %v4532_v50 = vsel %vm387_vm1, %v6658_v54, 0.0 }
0x293f   :  { %4533 = vadd.xlane.f32.xlu2 %v4532_v50 }
0x2945   :  { %v4629_v37 = vpop.permute.xlu0 %4628 }
0x294c   :  { %v4543_v19 = vpop.permute.xlu1 %4542 }
0x294d   :  { %4563 = vmatpush.msra.mxu2 %v4543_v19  ;;  %v4627_v42 = vpop.permute.xlu0 %4626  ;;  %v6473_v19 = vld [vmem:[#allocation10 + $0x2] ss:$0 sm:$0xff] }
0x294f   :  { %6228 = vmatpush.xpose.msk.msrb.mxu2 %vm387_vm1, %v4629_v37  ;;  %v4290_v37 = vadd.f32 %v6473_v19, %v8395_v46 }
0x2954   :  { %v4489_v9 = vpop.permute.xlu1 %4488 }
0x2955   :  { %6222 = vmatmul.msk.f32.vlgmr.msrb.gmra.mxu1 %vm387_vm1, %v4489_v9 }
0x2957   :  { %4656 = vrot.lane.b32.xlu2 %v8320_v11, %s7104_s7 }
0x295c   :  { %v4655_v43 = vpop.permute.xlu1 %4654 }
0x29b2   :  { %v4534_v40 = vpop.xlane.xlu2 %4533 }
0x29b3   :  { %6659 = vrcp.f32 %v4534_v40  ;;  %v4458_v40 = vadd.f32 %v8407_v33, %v4290_v37 }
0x29b9   :  { %v6660_v53 = vpop.eup %6659 }
0x29ba   :  { %v4540_v15 = vmul.f32 %v6660_v53, %v6658_v54  ;;  %v4657_v51 = vpop.permute.xlu2 %4656 }
0x29bb   :  { %6230 = vmatpush.xpose.msk.msrb.mxu3 %vm387_vm1, %v4657_v51 }
0x29bc   :  { %6223 = vmatmul.msk.f32.vlgmr.msra.gmra.mxu2 %vm387_vm1, %v4540_v15 }
0x29c1   :  { %v4425_v16 = vpop.f32.mrf.mxu2 }
0x29c2   :  { %6218 = vmatmul.msk.f32.gmra.mxu3 %vm387_vm1, %v4425_v16  ;;  %v4291_v16 = vadd.f32 %v6473_v19, %v8399_v24  ;;  %v4893_v24 = vld [vmem:[#allocation11 + $0xe8] sm:$0xff] }
0x29c4   :  { %6229 = vmatmul.msk.f32.vlgmr.msrb.gmra.mxu2 %vm387_vm1, %v4627_v42 }
0x29ca   :  { %6231 = vmatmul.msk.f32.vlgmr.msrb.gmra.mxu3 %vm387_vm1, %v4655_v43 }
0x29d2   :  { %v4513_v11 = vpop.f32.mrf.mxu1 }
0x29d3   :  { %v4517_v26 = vmul.f32 0.35355338, %v4513_v11 }
0x29d5   :  { %v4519_v27 = vadd.f32 %v8334_v36, %v4517_v26 }
0x29d7   :  { %v4523_v10 = vsel %vm387_vm1, %v4519_v27, -inf }
0x29d8   :  { %4524 = vmax.xlane.f32.xlu2 %v4523_v10 }
0x2a3f   :  { %v4565_v45 = vpop.f32.mrf.mxu2 }
0x2a40   :  { %6226 = vmatmul.msk.f32.vlgmr.msra.gmra.mxu1 %vm387_vm1, %v4565_v45  ;;  %v4895_v45 = vld [vmem:[#allocation11 + $0xf8] sm:$0xff] }
0x2a41   :  { %4913 = vmatpush.msrb.mxu1 %v4895_v45 }
0x2a45   :  { %v8410_v39 = vpop.f32.mrf.mxu3 }
0x2a46   :  { %v4459_v11 = vadd.f32 %v8410_v39, %v4291_v16  ;;  %v6727_v39 = vld [vmem:[#allocation5] sm:$0xff] }
0x2a47   :  { %v4651_v48 = vpop.f32.mrf.mxu2 }
0x2a48   :  { %v4682_v44 = vmul.f32 0.35355338, %v4651_v48  ;;  %v4894_v48 = vld [vmem:[#allocation11 + $0xf0] sm:$0xff] }
0x2a49   :  { %4914 = vmatpush.msrb.mxu1 %v4894_v48  ;;  %v6477_v48 = vld [vmem:[#allocation13 + $0x8] ss:$0 sm:$0xff] }
0x2a4a   :  { %v4684_v0 = vadd.f32 %v8329_v25, %v4682_v44 }
0x2a4b   :  { %v4525_v22 = vpop.xlane.xlu2 %4524  ;;  %4915 = vmatpush.msrb.mxu1 %v4893_v24 }
0x2a4c   :  { %v4527_v52 = vsub.f32 %v4519_v27, %v4525_v22  ;;  %v4686_v55 = vsel %vm387_vm1, %v4684_v0, -inf }
0x2a4d   :  { %4687 = vmax.xlane.f32.xlu0 %v4686_v55  ;;  %v4679_v8 = vpop.f32.mrf.mxu3 }
0x2a4e   :  { %v4530_v58 = vmul.f32 1.442695, %v4527_v52  ;;  %v4683_v59 = vmul.f32 0.35355338, %v4679_v8 }
0x2a50   :  { %6661 = vpow2.f32 %v4530_v58  ;;  %v4685_v61 = vadd.f32 %v8334_v36, %v4683_v59  ;;  %v6729_v58 = vld [vmem:[#allocation5 + $0x10] sm:$0xff] }
0x2a52   :  { %v4689_v47 = vsel %vm387_vm1, %v4685_v61, -inf }
0x2a53   :  { %4690 = vmax.xlane.f32.xlu1 %v4689_v47 }
0x2a56   :  { %v6662_v12 = vpop.eup %6661 }
0x2a57   :  { %v4535_v1 = vsel %vm387_vm1, %v6662_v12, 0.0 }
0x2a58   :  { %4536 = vadd.xlane.f32.xlu2 %v4535_v1  ;;  %v6730_v1 = vld [vmem:[#allocation5 + $0x18] sm:$0xff] }
0x2a6c   :  { %4568 = vrot.lane.b32.xlu1 %v8315_v7, %s7103_s26  ;;  %v6234_v7 = vld [vmem:[%s8757_s6 + $0x58] sm:$0xff]  ;;  %s7106_s6 = smov [#allocation23]  }
0x2a6d   :  { %4782 = vmatpush.msra.mxu3 %v6234_v7  ;;  %s5933_s23 = sshll.u32 %s7106_s6, 4  ;;  %s5934_s23 = int_to_ptr.vmem [resolvable:$true] %s5933_s23 }
0x2abd   :  { %v4618_v9 = vpop.f32.mrf.mxu1 }
0x2abe   :  { %v4624_v53 = vadd.f32 %v4618_v9, %v4458_v40  ;;  %v6475_v40 = vld [vmem:[#allocation20 + $0x6] ss:$0 sm:$0xff] }
0x2ac0   :  { %v4688_v25 = vpop.xlane.xlu0 %4687 }
0x2ac1   :  { %v4692_v29 = vsub.f32 %v4684_v0, %v4688_v25  ;;  %v6728_v0 = vld [vmem:[#allocation5 + $0x8] sm:$0xff]  ;;  %v4934_v25 = vld [vmem:[#allocation11 + $0x118] sm:$0xff] }
0x2ac3   :  { %v4694_v2 = vmul.f32 1.442695, %v4692_v29  ;;  %v4933_v29 = vld [vmem:[#allocation11 + $0x110] sm:$0xff] }
0x2ac5   :  { %6663 = vpow2.f32 %v4694_v2  ;;  %v4932_v2 = vld [vmem:[#allocation11 + $0x108] sm:$0xff] }
0x2ac6   :  { %v4691_v3 = vpop.xlane.xlu1 %4690 }
0x2ac7   :  { %v4693_v6 = vsub.f32 %v4685_v61, %v4691_v3  ;;  %v4931_v3 = vld [vmem:[#allocation11 + $0x100] sm:$0xff] }
0x2ac9   :  { %v4696_v31 = vmul.f32 1.442695, %v4693_v6  ;;  %v4856_v6 = vld [vmem:[#allocation11 + $0xd8] sm:$0xff] }
0x2acb   :  { %v6664_v13 = vpop.eup %6663  ;;  %6665 = vpow2.f32 %v4696_v31  ;;  %v4537_v20 = vpop.xlane.xlu2 %4536  ;;  %v4855_v31 = vld [vmem:[#allocation11 + $0xd0] sm:$0xff] }
0x2acc   :  { %v4698_v36 = vsel %vm387_vm1, %v6664_v13, 0.0  ;;  %6667 = vrcp.f32 %v4537_v20 }
0x2acd   :  { %4699 = vadd.xlane.f32.xlu0 %v4698_v36  ;;  %v4853_v36 = vld [vmem:[#allocation11 + $0xc0] sm:$0xff] }
0x2ad1   :  { %v6666_v14 = vpop.eup %6665 }
0x2ad2   :  { %v4701_v49 = vsel %vm387_vm1, %v6666_v14, 0.0  ;;  %v6668_v38 = vpop.eup %6667 }
0x2ad3   :  { %4702 = vadd.xlane.f32.xlu2 %v4701_v49  ;;  %v4541_v41 = vmul.f32 %v6668_v38, %v6662_v12  ;;  %v6476_v38 = vld [vmem:[#allocation13 + $0x7] ss:$0 sm:$0xff] }
0x2ade   :  { %v4569_v4 = vpop.permute.xlu1 %4568 }
0x2adf   :  { %4589 = vmatpush.msra.mxu0 %v4569_v4 }
0x2ae0   :  { %6224 = vmatmul.msk.f32.vlgmr.msra.gmra.mxu0 %vm387_vm1, %v4541_v41 }
0x2ae1   :  { %6402 = vrot.lane.b32.xlu0 %v6401_v60, %s7104_s7 }
0x2b40   :  { %v4700_v32 = vpop.xlane.xlu0 %4699 }
0x2b41   :  { %6669 = vrcp.f32 %v4700_v32 }
0x2b46   :  { %v4703_v34 = vpop.xlane.xlu2 %4702 }
0x2b47   :  { %6671 = vrcp.f32 %v4703_v34  ;;  %v6670_v57 = vpop.eup %6669 }
0x2b48   :  { %v4706_v21 = vmul.f32 %v6670_v57, %v6664_v13  ;;  %v4854_v13 = vld [vmem:[#allocation11 + $0xc8] sm:$0xff] }
0x2b4d   :  { %v6672_v35 = vpop.eup %6671 }
0x2b4e   :  { %v4707_v63 = vmul.f32 %v6672_v35, %v6666_v14 }
0x2b53   :  { %v6403_v18 = vpop.permute.xlu0 %6402 }
0x2b54   :  { %v6405_v17 = vunpack.i.h.bf16 %v6403_v18  ;;  %v6404_v30 = vunpack.i.l.bf16 %v6403_v18 }
0x2b56   :  { %4729 = vmatpush.msrb.mxu0 %v6404_v30  ;;  %4755 = vmatpush.msra.mxu2 %v6405_v17 }
0x2b57   :  { %6232 = vmatmul.msk.f32.vlgmr.msrb.gmra.mxu0 %vm387_vm1, %v4706_v21  ;;  %6233 = vmatmul.msk.f32.vlgmr.msra.gmra.mxu2 %vm387_vm1, %v4707_v63 }
0x2b58   :  { %4952 = vmatpush.msrb.mxu2 %v4934_v25  ;;  %4880 = vmatpush.msra.mxu0 %v4856_v6  ;;  %v8526_v6 = vld [vmem:[%s8783_s5 + $0x1] ss:$0 sm:$0xff] }
0x2b5a   :  { %4953 = vmatpush.msrb.mxu2 %v4933_v29  ;;  %4881 = vmatpush.msra.mxu0 %v4855_v31  ;;  %v8518_v29 = vld [vmem:[%s8783_s5] ss:$0 sm:$0xff] }
0x2b5c   :  { %4954 = vmatpush.msrb.mxu2 %v4932_v2  ;;  %4882 = vmatpush.msra.mxu0 %v4854_v13 }
0x2b5d   :  { %v4591_v56 = vpop.f32.mrf.mxu0 }
0x2b5e   :  { %6227 = vmatmul.msk.f32.gmra.mxu1 %vm387_vm1, %v4591_v56  ;;  %4955 = vmatpush.msrb.mxu2 %v4931_v3 }
0x2b5f   :  { %6244 = vmatmul.msk.f32.vlgmr.msrb.gmra.mxu2 %vm286_vm0, %v6727_v39  ;;  %4883 = vmatpush.msra.mxu0 %v4853_v36 }
0x2b67   :  { %6245 = vmatmul.msk.f32.gmra.mxu2 %vm286_vm0, %v6728_v0 }
0x2b6f   :  { %6246 = vmatmul.msk.f32.gmra.mxu2 %vm286_vm0, %v6729_v58 }
0x2b77   :  { %6247 = vmatmul.msk.f32.gmra.mxu2 %vm286_vm0, %v6730_v1 }
0x2bd4   :  { %v4731_v54 = vpop.f32.mrf.mxu0 }
0x2bd5   :  { %6235 = vmatmul.msk.f32.vlgmr.msra.gmra.mxu3 %vm387_vm1, %v4731_v54 }
0x2bda   :  { %v4757_v50 = vpop.f32.mrf.mxu2 }
0x2bdb   :  { %v4621_v43 = vpop.f32.mrf.mxu1 }
0x2bdc   :  { %v4625_v27 = vadd.f32 %v4621_v43, %v4459_v11 }
0x2bdd   :  { %6236 = vmatmul.msk.f32.gmra.mxu3 %vm387_vm1, %v4757_v50  ;;  %v6474_v50 = vld [vmem:[%s8767_s16 + $0x6] ss:$0 sm:$0xff] }
0x2be2   :  { %v4957_v45 = vpop.f32.mrf.mxu2 }
0x2bea   :  { %v4960_v24 = vpop.f32.mrf.mxu2 }
0x2c58   :  { %v4784_v15 = vpop.f32.mrf.mxu3 }
0x2c59   :  { %v4790_v51 = vadd.f32 %v4784_v15, %v4624_v53 }
0x2c5b   :  { %v4792_v42 = vadd.f32 %v4790_v51, %v8283_v62  ;;  %v4892_v62 = vld [vmem:[#allocation11 + $0xe0] sm:$0xff] }
0x2c5c   :  { %4916 = vmatpush.msrb.mxu1 %v4892_v62  ;;  %v4961_v62 = vadd.f32 %v6477_v48, %v4960_v24 }
0x2c5d   :  { %v4798_v26 = vsel %vm286_vm0, %v4792_v42, 0.0  ;;  %6240 = vmatmul.msk.f32.vlgmr.msrb.gmra.mxu1 %vm286_vm0, %v6727_v39  ;;  %v4958_v39 = vadd.f32 %v6477_v48, %v4957_v45 }
0x2c5e   :  { %4799 = vadd.xlane.f32.xlu2 %v4798_v26 }
0x2c60   :  { %v4787_v10 = vpop.f32.mrf.mxu3 }
0x2c61   :  { %v4791_v28 = vadd.f32 %v4787_v10, %v4625_v27 }
0x2c63   :  { %v4793_v46 = vadd.f32 %v4791_v28, %v8305_v23 }
0x2c65   :  { %v4801_v33 = vsel %vm286_vm0, %v4793_v46, 0.0  ;;  %6241 = vmatmul.msk.f32.gmra.mxu1 %vm286_vm0, %v6728_v0 }
0x2c66   :  { %4802 = vadd.xlane.f32.xlu2 %v4801_v33 }
0x2c6d   :  { %6242 = vmatmul.msk.f32.gmra.mxu1 %vm286_vm0, %v6729_v58 }
0x2c75   :  { %6243 = vmatmul.msk.f32.gmra.mxu1 %vm286_vm0, %v6730_v1 }
0x2cd1   :  { %v4800_v44 = vpop.xlane.xlu2 %4799 }
0x2cd2   :  { %v4804_v23 = vmul.f32 %v4800_v44, %v7484_v5  ;;  %v6478_v44 = vld [vmem:[#allocation13 + $0x6] ss:$0 sm:$0xff] }
0x2cd4   :  { %v8444_v22 = vsub.f32 %v4792_v42, %v4804_v23 }
0x2cd6   :  { %v4808_v52 = vmul.f32 %v8444_v22, %v8444_v22 }
0x2cd8   :  { %v4810_v55 = vsel %vm286_vm0, %v4808_v52, 0.0 }
0x2cd9   :  { %4811 = vadd.xlane.f32.xlu0 %v4810_v55  ;;  %v4803_v8 = vpop.xlane.xlu2 %4802 }
0x2cda   :  { %v4805_v59 = vmul.f32 %v4803_v8, %v7484_v5  ;;  %v4918_v41 = vpop.f32.mrf.mxu1 }
0x2cdb   :  { %v8461_v4 = vadd.f32 %v6476_v38, %v4918_v41 }
0x2cdc   :  { %v8451_v61 = vsub.f32 %v4793_v46, %v4805_v59 }
0x2cde   :  { %v4809_v47 = vmul.f32 %v8451_v61, %v8451_v61 }
0x2ce0   :  { %v4813_v12 = vsel %vm286_vm0, %v4809_v47, 0.0 }
0x2ce1   :  { %4814 = vadd.xlane.f32.xlu1 %v4813_v12 }
0x2ce2   :  { %v4921_v18 = vpop.f32.mrf.mxu1 }
0x2ce3   :  { %v8466_v30 = vadd.f32 %v6476_v38, %v4921_v18 }
0x2ce5   :  { %6248 = vmatpush.xpose.msk.msrb.mxu3 %vm387_vm1, %v8466_v30 }
0x2ce9   :  { %6249 = vmatpush.xpose.msk.msrb.mxu3 %vm387_vm1, %v8461_v4 }
0x2cea   :  { %v4924_v19 = vpop.f32.mrf.mxu1 }
0x2ceb   :  { %v8484_v28 = vadd.f32 %v6476_v38, %v4924_v19 }
0x2ced   :  { %5140 = vrot.lane.b32.xlu0 %v8461_v4, %s7102_s24  ;;  %5076 = vmatpush.msra.mxu3 %v4961_v62 }
0x2cef   :  { %5077 = vmatpush.msra.mxu3 %v4958_v39 }
0x2cf2   :  { %v4927_v11 = vpop.f32.mrf.mxu1 }
0x2cf3   :  { %v8481_v27 = vadd.f32 %v6476_v38, %v4927_v11 }
0x2cf5   :  { %6251 = vmatpush.xpose.msk.msrb.mxu0 %vm387_vm1, %v8481_v27 }
0x2cf9   :  { %6252 = vmatpush.xpose.msk.msrb.mxu0 %vm387_vm1, %v8484_v28 }
0x2d4c   :  { %v4812_v14 = vpop.xlane.xlu0 %4811 }
0x2d4d   :  { %v4816_v20 = vmul.f32 %v4812_v14, %v7484_v5 }
0x2d4f   :  { %v4818_v49 = vadd.f32 1e-05, %v4816_v20 }
0x2d51   :  { %6673 = vrsqrt.f32 %v4818_v49  ;;  %vm4826_vm15 = vweird.f32 %v4818_v49 }
0x2d54   :  { %v4815_v60 = vpop.xlane.xlu1 %4814 }
0x2d55   :  { %v4817_v32 = vmul.f32 %v4815_v60, %v7484_v5 }
0x2d57   :  { %v6674_v34 = vpop.eup %6673  ;;  %v4819_v57 = vadd.f32 1e-05, %v4817_v32 }
0x2d58   :  { %v4821_v35 = vmul.f32 %v6674_v34, %v4818_v49  ;;  %vm4827_vm14 = vweird.f32 %v6674_v34 }
0x2d59   :  { %6675 = vrsqrt.f32 %v4819_v57  ;;  %vm4828_vm2 = vmor %vm4826_vm15, %vm4827_vm14  ;;  %vm4836_vm4 = vweird.f32 %v4819_v57 }
0x2d5a   :  { %v4822_v17 = vmul.f32 %v6674_v34, %v4821_v35 }
0x2d5c   :  { %v4823_v21 = vmul.f32 0.5, %v4822_v17 }
0x2d5e   :  { %v4824_v63 = vsub.f32 1.5, %v4823_v21 }
0x2d5f   :  { %v6676_v56 = vpop.eup %6675 }
0x2d60   :  { %v4825_v7 = vmul.f32 %v6674_v34, %v4824_v63  ;;  %v4831_v54 = vmul.f32 %v6676_v56, %v4819_v57  ;;  %vm4837_vm3 = vweird.f32 %v6676_v56 }
0x2d61   :  { %vm4838_vm5 = vmor %vm4836_vm4, %vm4837_vm3 }
0x2d62   :  { %v4829_v37 = vsel %vm4828_vm2, %v6674_v34, %v4825_v7  ;;  %v4832_v9 = vmul.f32 %v6676_v56, %v4831_v54  ;;  %v5141_v54 = vpop.permute.xlu0 %5140 }
0x2d63   :  { %v4840_v53 = vmul.f32 %v4829_v37, %v8444_v22  ;;  %v8500_v22 = vpack.i.bf16 %v4958_v39, %v4961_v62 }
0x2d64   :  { %v4833_v15 = vmul.f32 0.5, %v4832_v9  ;;  %v6267_v9 = vld [vmem:[%s8761_s10 + $0x48] sm:$0xff] }
0x2d65   :  { %v4845_v51 = vmul.f32 %v6474_v50, %v4840_v53 }
0x2d66   :  { %v4834_v16 = vsub.f32 1.5, %v4833_v15 }
0x2d67   :  { %v8477_v42 = vadd.f32 %v6475_v40, %v4845_v51 }
0x2d68   :  { %v4835_v43 = vmul.f32 %v6676_v56, %v4834_v16 }
0x2d69   :  { %6238 = vmatmul.msk.f32.vlgmr.msra.gmra.mxu0 %vm286_vm0, %v8477_v42 }
0x2d6a   :  { %v4839_v26 = vsel %vm4838_vm5, %v6676_v56, %v4835_v43 }
0x2d6b   :  { %v4841_v10 = vmul.f32 %v4839_v26, %v8451_v61 }
0x2d6d   :  { %v4846_v46 = vmul.f32 %v6474_v50, %v4841_v10 }
0x2d6f   :  { %v8488_v33 = vadd.f32 %v6475_v40, %v4846_v46 }
0x2d71   :  { %6239 = vmatmul.msk.f32.gmra.mxu0 %vm286_vm0, %v8488_v33 }
0x2de6   :  { %v4885_v0 = vpop.f32.mrf.mxu0 }
0x2de7   :  { %v8494_v23 = vadd.f32 %v6478_v44, %v4885_v0 }
0x2de9   :  { %6250 = vmatmul.msk.f32.vlgmr.msrb.gmra.mxu3 %vm387_vm1, %v8494_v23  ;;  %5138 = vrot.lane.b32.xlu1 %v8494_v23, %s7102_s24 }
0x2dee   :  { %v4888_v52 = vpop.f32.mrf.mxu0 }
0x2def   :  { %v8502_v55 = vadd.f32 %v6478_v44, %v4888_v52 }
0x2df1   :  { %6407 = vrot.lane.b32.xlu1 %v8500_v22, %s7102_s24  ;;  %6253 = vmatmul.msk.f32.vlgmr.msrb.gmra.mxu0 %vm387_vm1, %v8502_v55 }
0x2df9   :  { %5326 = vrot.lane.b32.xlu1 %v8466_v30, %s7103_s26 }
0x2e01   :  { %5324 = vrot.lane.b32.xlu1 %v8461_v4, %s7103_s26 }
0x2e09   :  { %5322 = vrot.lane.b32.xlu1 %v8494_v23, %s7103_s26 }
0x2e5b   :  { %v5139_v8 = vpop.permute.xlu1 %5138 }
0x2e63   :  { %v6408_v58 = vpop.permute.xlu1 %6407 }
0x2e64   :  { %v6410_v59 = vunpack.i.h.bf16 %v6408_v58  ;;  %v6409_v61 = vunpack.i.l.bf16 %v6408_v58 }
0x2e66   :  { %5253 = vmatpush.msra.mxu2 %v6409_v61 }
0x2e68   :  { %5254 = vmatpush.msra.mxu2 %v6410_v59 }
0x2e6b   :  { %v5327_v47 = vpop.permute.xlu1 %5326 }
0x2e6c   :  { %v5001_v12 = vpop.f32.mrf.mxu3  ;;  %6270 = vmatpush.xpose.msk.msrb.mxu2 %vm387_vm1, %v5327_v47 }
0x2e6d   :  { %v5033_v1 = vmul.f32 0.35355338, %v5001_v12 }
0x2e6e   :  { %v5030_v25 = vpop.f32.mrf.mxu0 }
0x2e6f   :  { %v8521_v2 = vadd.f32 %v8518_v29, %v5033_v1  ;;  %v5034_v3 = vmul.f32 0.35355338, %v5030_v25 }
0x2e71   :  { %v5036_v31 = vadd.f32 %v8526_v6, %v5034_v3  ;;  %v5037_v13 = vsel %vm1309_vm9, %v8521_v2, -inf }
0x2e72   :  { %5038 = vmax.xlane.f32.xlu1 %v5037_v13 }
0x2e73   :  { %v5325_v36 = vpop.permute.xlu1 %5324  ;;  %v5040_v14 = vsel %vm1309_vm9, %v5036_v31, -inf }
0x2e74   :  { %5041 = vmax.xlane.f32.xlu2 %v5040_v14  ;;  %6271 = vmatpush.xpose.msk.msrb.mxu2 %vm387_vm1, %v5325_v36 }
0x2e7b   :  { %v8550_v18 = vpop.permute.xlu1 %5322 }
0x2e8b   :  { %5356 = vrot.lane.b32.xlu1 %v8484_v28, %s7103_s26 }
0x2e93   :  { %5504 = vrot.lane.b32.xlu1 %v8461_v4, %s7104_s7  ;;  %v4963_v4 = vpop.f32.mrf.mxu2 }
0x2e94   :  { %v4964_v34 = vadd.f32 %v6477_v48, %v4963_v4 }
0x2e9b   :  { %5538 = vrot.lane.b32.xlu1 %v8481_v27, %s7104_s7  ;;  %v4966_v32 = vpop.f32.mrf.mxu2 }
0x2e9c   :  { %v4967_v57 = vadd.f32 %v6477_v48, %v4966_v32  ;;  %v6256_v32 = vld [vmem:[%s8761_s10 + $0x40] sm:$0xff] }
0x2e9d   :  { %5128 = vmatpush.msrb.mxu3 %v6256_v32 }
0x2e9e   :  { %5099 = vmatpush.msra.mxu0 %v4967_v57  ;;  %v8548_v35 = vpack.i.bf16 %v4964_v34, %v4967_v57 }
0x2ea0   :  { %5100 = vmatpush.msra.mxu0 %v4964_v34 }
0x2ee5   :  { %v5039_v21 = vpop.xlane.xlu1 %5038 }
0x2ee6   :  { %v5043_v39 = vsub.f32 %v8521_v2, %v5039_v21 }
0x2ee7   :  { %v5042_v20 = vpop.xlane.xlu2 %5041 }
0x2ee8   :  { %v5044_v49 = vsub.f32 %v5036_v31, %v5042_v20  ;;  %v5045_v0 = vmul.f32 1.442695, %v5043_v39 }
0x2eea   :  { %v5047_v38 = vmul.f32 1.442695, %v5044_v49 }
0x2eec   :  { %6677 = vpow2.f32 %v5047_v38 }
0x2ef2   :  { %v6678_v41 = vpop.eup %6677 }
0x2ef3   :  { %v5052_v60 = vsel %vm1309_vm9, %v6678_v41, 0.0 }
0x2ef4   :  { %5053 = vadd.xlane.f32.xlu2 %v5052_v60 }
0x2efd   :  { %v8554_v50 = vpop.permute.xlu1 %5356 }
0x2f05   :  { %v8559_v37 = vpop.permute.xlu1 %5504 }
0x2f0c   :  { %5142 = vrot.lane.b32.xlu2 %v8466_v30, %s7102_s24 }
0x2f0d   :  { %v5539_v15 = vpop.permute.xlu1 %5538 }
0x2f14   :  { %5174 = vrot.lane.b32.xlu2 %v8481_v27, %s7102_s24 }
0x2f1c   :  { %5172 = vrot.lane.b32.xlu2 %v8484_v28, %s7102_s24 }
0x2f24   :  { %5170 = vrot.lane.b32.xlu2 %v8502_v55, %s7102_s24 }
0x2f67   :  { %v5054_v17 = vpop.xlane.xlu2 %5053 }
0x2f68   :  { %6679 = vrcp.f32 %v5054_v17 }
0x2f6e   :  { %v6680_v63 = vpop.eup %6679 }
0x2f6f   :  { %v5058_v56 = vmul.f32 %v6680_v63, %v6678_v41  ;;  %v5143_v7 = vpop.permute.xlu2 %5142 }
0x2f70   :  { %6259 = vmatpush.xpose.msk.msrb.mxu0 %vm387_vm1, %v5143_v7 }
0x2f71   :  { %6255 = vmatmul.msk.f32.vlgmr.msra.gmra.mxu0 %vm1309_vm9, %v5058_v56 }
0x2f74   :  { %6260 = vmatpush.xpose.msk.msrb.mxu0 %vm387_vm1, %v5141_v54 }
0x2f77   :  { %v5175_v19 = vpop.permute.xlu2 %5174 }
0x2f78   :  { %6262 = vmatpush.xpose.msk.msra.mxu1 %vm387_vm1, %v5175_v19 }
0x2f79   :  { %6261 = vmatmul.msk.f32.vlgmr.msrb.gmra.mxu0 %vm387_vm1, %v5139_v8 }
0x2f7f   :  { %v5173_v40 = vpop.permute.xlu2 %5172 }
0x2f80   :  { %6263 = vmatpush.xpose.msk.msra.mxu1 %vm387_vm1, %v5173_v40 }
0x2f84   :  { %5312 = vmatpush.msrb.mxu1 %v6267_v9 }
0x2f87   :  { %v5171_v53 = vpop.permute.xlu2 %5170 }
0x2f88   :  { %6264 = vmatmul.msk.f32.vlgmr.msra.gmra.mxu1 %vm387_vm1, %v5171_v53 }
0x2f89   :  { %6284 = vmatpush.xpose.msk.msra.mxu1 %vm387_vm1, %v5539_v15 }
0x2fee   :  { %v8567_v51 = vpop.f32.mrf.mxu0 }
0x2ff6   :  { %v5167_v16 = vpop.f32.mrf.mxu0 }
0x2ff7   :  { %v5202_v43 = vmul.f32 0.35355338, %v5167_v16 }
0x2ff9   :  { %v5204_v11 = vadd.f32 %v8518_v29, %v5202_v43 }
0x2ffb   :  { %v5206_v26 = vsel %vm1309_vm9, %v5204_v11, -inf }
0x2ffc   :  { %5207 = vmax.xlane.f32.xlu0 %v5206_v26 }
0x3005   :  { %v5199_v10 = vpop.f32.mrf.mxu1 }
0x3006   :  { %v5203_v46 = vmul.f32 0.35355338, %v5199_v10 }
0x3008   :  { %v5205_v45 = vadd.f32 %v8526_v6, %v5203_v46 }
0x300a   :  { %v5209_v48 = vsel %vm1309_vm9, %v5205_v45, -inf }
0x300b   :  { %5210 = vmax.xlane.f32.xlu0 %v5209_v48 }
0x306f   :  { %v5208_v24 = vpop.xlane.xlu0 %5207 }
0x3070   :  { %v5212_v62 = vsub.f32 %v5204_v11, %v5208_v24 }
0x3072   :  { %v5214_v44 = vmul.f32 1.442695, %v5212_v62 }
0x3074   :  { %6681 = vpow2.f32 %v5214_v44 }
0x3075   :  { %6683 = vpow2.f32 %v5045_v0  ;;  %v6278_v0 = vld [vmem:[%s8761_s10 + $0x50] sm:$0xff] }
0x307a   :  { %v6682_v52 = vpop.eup %6681 }
0x307b   :  { %v5218_v8 = vsel %vm1309_vm9, %v6682_v52, 0.0  ;;  %v6684_v61 = vpop.eup %6683 }
0x307c   :  { %5219 = vadd.xlane.f32.xlu2 %v5218_v8  ;;  %v5049_v12 = vsel %vm1309_vm9, %v6684_v61, 0.0 }
0x307e   :  { %v5211_v58 = vpop.xlane.xlu0 %5210 }
0x307f   :  { %v5213_v59 = vsub.f32 %v5205_v45, %v5211_v58 }
0x3081   :  { %v5216_v47 = vmul.f32 1.442695, %v5213_v59 }
0x3083   :  { %6685 = vpow2.f32 %v5216_v47 }
0x3084   :  { %5050 = vadd.xlane.f32.xlu2 %v5049_v12 }
0x3089   :  { %v6686_v1 = vpop.eup %6685 }
0x308a   :  { %v5221_v25 = vsel %vm1309_vm9, %v6686_v1, 0.0 }
0x308b   :  { %5222 = vadd.xlane.f32.xlu0 %v5221_v25 }
0x309c   :  { %6412 = vrot.lane.b32.xlu2 %v8548_v35, %s7102_s24 }
0x30ef   :  { %v5220_v2 = vpop.xlane.xlu2 %5219 }
0x30f0   :  { %6687 = vrcp.f32 %v5220_v2 }
0x30f6   :  { %v6688_v3 = vpop.eup %6687 }
0x30f7   :  { %v5226_v31 = vmul.f32 %v6688_v3, %v6682_v52  ;;  %v5051_v13 = vpop.xlane.xlu2 %5050 }
0x30f8   :  { %6689 = vrcp.f32 %v5051_v13 }
0x30f9   :  { %6265 = vmatmul.msk.f32.vlgmr.msra.gmra.mxu2 %vm1309_vm9, %v5226_v31 }
0x30fe   :  { %v6690_v36 = vpop.eup %6689  ;;  %v5223_v14 = vpop.xlane.xlu0 %5222 }
0x30ff   :  { %v5057_v20 = vmul.f32 %v6690_v36, %v6684_v61  ;;  %6691 = vrcp.f32 %v5223_v14  ;;  %v6413_v49 = vpop.permute.xlu2 %6412 }
0x3100   :  { %v6414_v38 = vunpack.i.l.bf16 %v6413_v49  ;;  %v6415_v41 = vunpack.i.h.bf16 %v6413_v49 }
0x3101   :  { %6254 = vmatmul.msk.f32.vlgmr.msra.gmra.mxu3 %vm1309_vm9, %v5057_v20  ;;  %6272 = vmatmul.msk.f32.vlgmr.msrb.gmra.mxu2 %vm387_vm1, %v8550_v18 }
0x3102   :  { %5284 = vmatpush.msra.mxu0 %v6414_v38 }
0x3104   :  { %5285 = vmatpush.msra.mxu0 %v6415_v41 }
0x3105   :  { %v6692_v60 = vpop.eup %6691 }
0x3106   :  { %v5227_v4 = vmul.f32 %v6692_v60, %v6686_v1 }
0x3108   :  { %6266 = vmatmul.msk.f32.vlgmr.msra.gmra.mxu0 %vm1309_vm9, %v5227_v4 }
0x317c   :  { %v5256_v34 = vpop.f32.mrf.mxu2 }
0x317d   :  { %6268 = vmatmul.msk.f32.vlgmr.msrb.gmra.mxu1 %vm387_vm1, %v5256_v34 }
0x3184   :  { %v5079_v57 = vpop.f32.mrf.mxu3  ;;  %v5351_v17 = vpop.f32.mrf.mxu2 }
0x3185   :  { %v5386_v21 = vmul.f32 0.35355338, %v5351_v17  ;;  %6257 = vmatmul.msk.f32.vlgmr.msrb.gmra.mxu3 %vm387_vm1, %v5079_v57  ;;  %v5287_v18 = vpop.f32.mrf.mxu0 }
0x3186   :  { %6269 = vmatmul.msk.f32.gmra.mxu1 %vm387_vm1, %v5287_v18 }
0x3187   :  { %v5388_v63 = vadd.f32 %v8518_v29, %v5386_v21 }
0x3189   :  { %v5390_v56 = vsel %vm1309_vm9, %v5388_v63, -inf }
0x318a   :  { %5391 = vmax.xlane.f32.xlu0 %v5390_v56 }
0x318d   :  { %6258 = vmatmul.msk.f32.gmra.mxu3 %vm387_vm1, %v8567_v51 }
0x319e   :  { %5358 = vrot.lane.b32.xlu0 %v8481_v27, %s7103_s26  ;;  %v8606_v27 = vld [vmem:[#allocation14 + $0x2] ss:$0 sm:$0xff] }
0x31a6   :  { %5354 = vrot.lane.b32.xlu0 %v8502_v55, %s7103_s26 }
0x31ae   :  { %6417 = vrot.lane.b32.xlu0 %v8500_v22, %s7103_s26 }
0x31b6   :  { %5506 = vrot.lane.b32.xlu0 %v8466_v30, %s7104_s7 }
0x31be   :  { %5502 = vrot.lane.b32.xlu0 %v8494_v23, %s7104_s7 }
0x31c6   :  { %5536 = vrot.lane.b32.xlu0 %v8484_v28, %s7104_s7 }
0x31fa   :  { %v5314_v51 = vpop.f32.mrf.mxu1 }
0x31fd   :  { %v5392_v7 = vpop.xlane.xlu0 %5391 }
0x31fe   :  { %v5396_v54 = vsub.f32 %v5388_v63, %v5392_v7 }
0x3200   :  { %v5398_v19 = vmul.f32 1.442695, %v5396_v54 }
0x3202   :  { %6693 = vpow2.f32 %v5398_v19 }
0x3203   :  { %v8632_v52 = vpop.f32.mrf.mxu1 }
0x3208   :  { %v6694_v9 = vpop.eup %6693  ;;  %v5130_v40 = vpop.f32.mrf.mxu3 }
0x3209   :  { %v5136_v53 = vadd.f32 %v8606_v27, %v5130_v40  ;;  %v5402_v15 = vsel %vm1309_vm9, %v6694_v9, 0.0 }
0x320a   :  { %5403 = vadd.xlane.f32.xlu2 %v5402_v15 }
0x320b   :  { %v8610_v30 = vadd.f32 %v5314_v51, %v5136_v53 }
0x3210   :  { %v5359_v23 = vpop.permute.xlu0 %5358 }
0x3211   :  { %6273 = vmatpush.xpose.msk.msra.mxu3 %vm387_vm1, %v5359_v23 }
0x3215   :  { %6274 = vmatpush.xpose.msk.msra.mxu3 %vm387_vm1, %v8554_v50 }
0x3218   :  { %v5355_v28 = vpop.permute.xlu0 %5354 }
0x3219   :  { %6275 = vmatmul.msk.f32.vlgmr.msra.gmra.mxu3 %vm387_vm1, %v5355_v28 }
0x321a   :  { %5492 = vmatpush.msrb.mxu3 %v6278_v0 }
0x3220   :  { %v6418_v16 = vpop.permute.xlu0 %6417 }
0x3221   :  { %v6419_v43 = vunpack.i.l.bf16 %v6418_v16  ;;  %v6420_v11 = vunpack.i.h.bf16 %v6418_v16 }
0x3222   :  { %5534 = vrot.lane.b32.xlu2 %v8502_v55, %s7104_s7  ;;  %v8625_v55 = vpop.f32.mrf.mxu3 }
0x3223   :  { %5435 = vmatpush.msrb.mxu0 %v6419_v43 }
0x3225   :  { %5436 = vmatpush.msrb.mxu0 %v6420_v11 }
0x3228   :  { %v5507_v26 = vpop.permute.xlu0 %5506 }
0x3229   :  { %6281 = vmatpush.xpose.msk.msra.mxu0 %vm387_vm1, %v5507_v26 }
0x322d   :  { %6282 = vmatpush.xpose.msk.msra.mxu0 %vm387_vm1, %v8559_v37 }
0x3230   :  { %v5503_v10 = vpop.permute.xlu0 %5502 }
0x3238   :  { %v5537_v46 = vpop.permute.xlu0 %5536 }
0x3239   :  { %6285 = vmatpush.xpose.msk.msra.mxu1 %vm387_vm1, %v5537_v46 }
0x327d   :  { %v5404_v50 = vpop.xlane.xlu2 %5403 }
0x327e   :  { %6695 = vrcp.f32 %v5404_v50 }
0x3284   :  { %v6696_v45 = vpop.eup %6695 }
0x3285   :  { %v5410_v48 = vmul.f32 %v6696_v45, %v6694_v9  ;;  %v5535_v24 = vpop.permute.xlu2 %5534  ;;  %v5137_v45 = vadd.f32 %v8606_v27, %v8625_v55 }
0x3286   :  { %6286 = vmatmul.msk.f32.vlgmr.msra.gmra.mxu1 %vm387_vm1, %v5535_v24 }
0x3287   :  { %6276 = vmatmul.msk.f32.vlgmr.msrb.gmra.mxu0 %vm1309_vm9, %v5410_v48 }
0x328f   :  { %6283 = vmatmul.msk.f32.vlgmr.msra.gmra.mxu0 %vm387_vm1, %v5503_v10 }
0x329c   :  { %v5383_v62 = vpop.f32.mrf.mxu3 }
0x329d   :  { %v5387_v39 = vmul.f32 0.35355338, %v5383_v62 }
0x329f   :  { %v5389_v37 = vadd.f32 %v8526_v6, %v5387_v39  ;;  %v5321_v39 = vadd.f32 %v8632_v52, %v5137_v45 }
0x32a1   :  { %v5393_v44 = vsel %vm1309_vm9, %v5389_v37, -inf }
0x32a2   :  { %5394 = vmax.xlane.f32.xlu1 %v5393_v44 }
0x3303   :  { %v5563_v8 = vpop.f32.mrf.mxu1 }
0x3304   :  { %v5567_v58 = vmul.f32 0.35355338, %v5563_v8  ;;  %v5438_v59 = vpop.f32.mrf.mxu0 }
0x3305   :  { %6279 = vmatmul.msk.f32.vlgmr.msrb.gmra.mxu3 %vm387_vm1, %v5438_v59 }
0x3306   :  { %v5569_v61 = vadd.f32 %v8526_v6, %v5567_v58 }
0x3308   :  { %v5573_v47 = vsel %vm1309_vm9, %v5569_v61, -inf }
0x3309   :  { %5574 = vmax.xlane.f32.xlu2 %v5573_v47 }
0x330c   :  { %v5531_v12 = vpop.f32.mrf.mxu0 }
0x330d   :  { %v5566_v1 = vmul.f32 0.35355338, %v5531_v12 }
0x330f   :  { %v5568_v25 = vadd.f32 %v8518_v29, %v5566_v1 }
0x3311   :  { %v5570_v2 = vsel %vm1309_vm9, %v5568_v25, -inf }
0x3312   :  { %5571 = vmax.xlane.f32.xlu0 %v5570_v2  ;;  %v5745_v2 = vld [vmem:[#allocation16 + $0x50] sm:$0xff] }
0x3315   :  { %v5395_v3 = vpop.xlane.xlu1 %5394 }
0x3316   :  { %v5397_v31 = vsub.f32 %v5389_v37, %v5395_v3  ;;  %v5744_v3 = vld [vmem:[#allocation16 + $0x48] sm:$0xff] }
0x3318   :  { %v5400_v13 = vmul.f32 1.442695, %v5397_v31  ;;  %v5743_v31 = vld [vmem:[#allocation16 + $0x40] sm:$0xff] }
0x331a   :  { %6697 = vpow2.f32 %v5400_v13 }
0x3320   :  { %v6698_v36 = vpop.eup %6697 }
0x3321   :  { %v5405_v14 = vsel %vm1309_vm9, %v6698_v36, 0.0 }
0x3322   :  { %5406 = vadd.xlane.f32.xlu1 %v5405_v14 }
0x3326   :  { %6422 = vrot.lane.b32.xlu0 %v8548_v35, %s7103_s26 }
0x332e   :  { %6432 = vrot.lane.b32.xlu0 %v8548_v35, %s7104_s7 }
0x337c   :  { %v5575_v6 = vpop.xlane.xlu2 %5574 }
0x337d   :  { %v5577_v20 = vsub.f32 %v5569_v61, %v5575_v6  ;;  %v6310_v6 = vld [vmem:[%s8765_s14 + $0x178] sm:$0xff] }
0x337e   :  { %5800 = vmatpush.msra.mxu3 %v6310_v6 }
0x337f   :  { %v5580_v29 = vmul.f32 1.442695, %v5577_v20  ;;  %v6309_v20 = vld [vmem:[%s8765_s14 + $0x170] sm:$0xff] }
0x3380   :  { %5801 = vmatpush.msra.mxu3 %v6309_v20 }
0x3381   :  { %6699 = vpow2.f32 %v5580_v29  ;;  %v6308_v29 = vld [vmem:[%s8765_s14 + $0x168] sm:$0xff] }
0x3382   :  { %5802 = vmatpush.msra.mxu3 %v6308_v29 }
0x3385   :  { %v5572_v49 = vpop.xlane.xlu0 %5571 }
0x3386   :  { %v5576_v38 = vsub.f32 %v5568_v25, %v5572_v49  ;;  %v5746_v25 = vld [vmem:[#allocation16 + $0x58] sm:$0xff] }
0x3387   :  { %v6700_v41 = vpop.eup %6699 }
0x3388   :  { %v5578_v60 = vmul.f32 1.442695, %v5576_v38  ;;  %v5585_v4 = vsel %vm1309_vm9, %v6700_v41, 0.0  ;;  %v5494_v10 = vpop.f32.mrf.mxu3 }
0x3389   :  { %5586 = vadd.xlane.f32.xlu2 %v5585_v4  ;;  %v5500_v46 = vadd.f32 %v5494_v10, %v8610_v30  ;;  %v6298_v10 = vld [vmem:[%s8765_s14 + $0x118] sm:$0xff] }
0x338a   :  { %6701 = vpow2.f32 %v5578_v60 }
0x3390   :  { %v6702_v32 = vpop.eup %6701 }
0x3391   :  { %v5582_v34 = vsel %vm1309_vm9, %v6702_v32, 0.0 }
0x3392   :  { %5583 = vadd.xlane.f32.xlu1 %v5582_v34 }
0x3395   :  { %v5407_v57 = vpop.xlane.xlu1 %5406 }
0x3396   :  { %6703 = vrcp.f32 %v5407_v57  ;;  %v6305_v57 = vld [vmem:[%s8765_s14 + $0x150] sm:$0xff] }
0x3398   :  { %v6423_v17 = vpop.permute.xlu0 %6422 }
0x3399   :  { %v6424_v35 = vunpack.i.l.bf16 %v6423_v17  ;;  %v6425_v21 = vunpack.i.h.bf16 %v6423_v17 }
0x339b   :  { %5464 = vmatpush.msra.mxu2 %v6424_v35  ;;  %v6304_v35 = vld [vmem:[%s8765_s14 + $0x148] sm:$0xff] }
0x339c   :  { %v6704_v18 = vpop.eup %6703 }
0x339d   :  { %v5411_v63 = vmul.f32 %v6704_v18, %v6698_v36  ;;  %5465 = vmatpush.msra.mxu2 %v6425_v21  ;;  %v6303_v18 = vld [vmem:[%s8765_s14 + $0x140] sm:$0xff] }
0x339f   :  { %6277 = vmatmul.msk.f32.vlgmr.msra.gmra.mxu2 %vm1309_vm9, %v5411_v63 }
0x33a0   :  { %v6433_v56 = vpop.permute.xlu0 %6432 }
0x33a1   :  { %v6434_v7 = vunpack.i.l.bf16 %v6433_v56  ;;  %v6435_v54 = vunpack.i.h.bf16 %v6433_v56 }
0x33a3   :  { %5644 = vmatpush.msrb.mxu0 %v6434_v7  ;;  %v6302_v7 = vld [vmem:[%s8765_s14 + $0x138] sm:$0xff] }
0x33a5   :  { %5645 = vmatpush.msrb.mxu0 %v6435_v54 }
0x33ab   :  { %6427 = vrot.lane.b32.xlu1 %v8500_v22, %s7104_s7  ;;  %v6289_v22 = vld [vmem:[%s8761_s10 + $0x58] sm:$0xff] }
0x33ac   :  { %5672 = vmatpush.msrb.mxu1 %v6289_v22  ;;  %v6299_v22 = vld [vmem:[%s8765_s14 + $0x120] sm:$0xff] }
0x33fc   :  { %v5587_v19 = vpop.xlane.xlu2 %5586 }
0x33fd   :  { %6705 = vrcp.f32 %v5587_v19 }
0x3403   :  { %v6706_v9 = vpop.eup %6705 }
0x3404   :  { %v5591_v40 = vmul.f32 %v6706_v9, %v6700_v41  ;;  %v6307_v41 = vld [vmem:[%s8765_s14 + $0x160] sm:$0xff] }
0x3405   :  { %v5584_v53 = vpop.xlane.xlu1 %5583  ;;  %5803 = vmatpush.msra.mxu3 %v6307_v41  ;;  %v6480_v9 = vld [vmem:[%s8767_s16 + $0x7] ss:$0 sm:$0xff]  ;;  %v5892_v41 = vld [vmem:[#allocation22 + $0x10] sm:$0xff] }
0x3406   :  { %6288 = vmatmul.msk.f32.vlgmr.msrb.gmra.mxu0 %vm1309_vm9, %v5591_v40  ;;  %6707 = vrcp.f32 %v5584_v53  ;;  %v6301_v40 = vld [vmem:[%s8765_s14 + $0x130] sm:$0xff] }
0x340c   :  { %v6708_v51 = vpop.eup %6707 }
0x340d   :  { %v5590_v16 = vmul.f32 %v6708_v51, %v6702_v32  ;;  %v6306_v32 = vld [vmem:[%s8765_s14 + $0x158] sm:$0xff]  ;;  %v6481_v51 = vld [vmem:[#allocation20 + $0x7] ss:$0 sm:$0xff] }
0x340e   :  { %5804 = vmatpush.msra.mxu3 %v6306_v32 }
0x3410   :  { %5805 = vmatpush.msra.mxu3 %v6305_v57 }
0x3412   :  { %5806 = vmatpush.msra.mxu3 %v6304_v35 }
0x3414   :  { %5807 = vmatpush.msra.mxu3 %v6303_v18 }
0x3416   :  { %5808 = vmatpush.msra.mxu3 %v6302_v7 }
0x3418   :  { %5809 = vmatpush.msra.mxu3 %v6301_v40 }
0x341d   :  { %v6428_v15 = vpop.permute.xlu1 %6427 }
0x341e   :  { %v6429_v23 = vunpack.i.l.bf16 %v6428_v15  ;;  %v6430_v28 = vunpack.i.h.bf16 %v6428_v15 }
0x3420   :  { %5615 = vmatpush.msrb.mxu2 %v6429_v23 }
0x3422   :  { %v5467_v43 = vpop.f32.mrf.mxu2  ;;  %5616 = vmatpush.msrb.mxu2 %v6430_v28  ;;  %v6300_v28 = vld [vmem:[%s8765_s14 + $0x128] sm:$0xff] }
0x3423   :  { %6280 = vmatmul.msk.f32.gmra.mxu3 %vm387_vm1, %v5467_v43  ;;  %6287 = vmatmul.msk.f32.vlgmr.msrb.gmra.mxu2 %vm1309_vm9, %v5590_v16 }
0x3424   :  { %5770 = vmatpush.msra.mxu2 %v5746_v25  ;;  %5810 = vmatpush.msra.mxu3 %v6300_v28 }
0x3426   :  { %5771 = vmatpush.msra.mxu2 %v5745_v2  ;;  %5811 = vmatpush.msra.mxu3 %v6299_v22 }
0x3428   :  { %5772 = vmatpush.msra.mxu2 %v5744_v3  ;;  %5812 = vmatpush.msra.mxu3 %v6298_v10 }
0x342a   :  { %5773 = vmatpush.msra.mxu2 %v5743_v31 }
0x3483   :  { %v5647_v26 = vpop.f32.mrf.mxu0 }
0x34a6   :  { %v5618_v11 = vpop.f32.mrf.mxu2  ;;  %v5497_v62 = vpop.f32.mrf.mxu3 }
0x34a7   :  { %6290 = vmatmul.msk.f32.vlgmr.msrb.gmra.mxu1 %vm387_vm1, %v5618_v11  ;;  %v5501_v44 = vadd.f32 %v5497_v62, %v5321_v39  ;;  %v6297_v62 = vld [vmem:[%s8765_s14 + $0x110] sm:$0xff]  ;;  %v6296_v39 = vld [vmem:[%s8765_s14 + $0x108] sm:$0xff] }
0x34a8   :  { %5813 = vmatpush.msra.mxu3 %v6297_v62 }
0x34aa   :  { %5814 = vmatpush.msra.mxu3 %v6296_v39 }
0x34af   :  { %6291 = vmatmul.msk.f32.gmra.mxu1 %vm387_vm1, %v5647_v26 }
0x3524   :  { %v5674_v50 = vpop.f32.mrf.mxu1 }
0x3525   :  { %v5680_v48 = vadd.f32 %v5674_v50, %v5500_v46 }
0x3527   :  { %v5682_v24 = vadd.f32 %v5680_v48, %v8477_v42 }
0x3529   :  { %v5688_v37 = vsel %vm286_vm0, %v5682_v24, 0.0 }
0x352a   :  { %5689 = vadd.xlane.f32.xlu2 %v5688_v37  ;;  %v6295_v37 = vld [vmem:[%s8765_s14 + $0x100] sm:$0xff] }
0x352b   :  { %5815 = vmatpush.msra.mxu3 %v6295_v37 }
0x352c   :  { %v5677_v0 = vpop.f32.mrf.mxu1 }
0x352d   :  { %v5681_v8 = vadd.f32 %v5677_v0, %v5501_v44  ;;  %v6482_v44 = vld [vmem:[#allocation17 + $0x2] ss:$0 sm:$0xff] }
0x352f   :  { %v5683_v58 = vadd.f32 %v5681_v8, %v8488_v33 }
0x3531   :  { %v5691_v30 = vsel %vm286_vm0, %v5683_v58, 0.0 }
0x3532   :  { %5692 = vadd.xlane.f32.xlu0 %v5691_v30 }
0x359d   :  { %v5690_v59 = vpop.xlane.xlu2 %5689 }
0x359e   :  { %v5694_v27 = vmul.f32 %v5690_v59, %v7484_v5 }
0x35a0   :  { %v5696_v55 = vsub.f32 %v5682_v24, %v5694_v27 }
0x35a2   :  { %v5698_v61 = vmul.f32 %v5696_v55, %v5696_v55 }
0x35a4   :  { %v5700_v42 = vsel %vm286_vm0, %v5698_v61, 0.0 }
0x35a5   :  { %5701 = vadd.xlane.f32.xlu2 %v5700_v42  ;;  %v5693_v52 = vpop.xlane.xlu0 %5692 }
0x35a6   :  { %v5695_v47 = vmul.f32 %v5693_v52, %v7484_v5 }
0x35a8   :  { %v8668_v12 = vsub.f32 %v5683_v58, %v5695_v47 }
0x35aa   :  { %v5699_v1 = vmul.f32 %v8668_v12, %v8668_v12 }
0x35ac   :  { %v5703_v33 = vsel %vm286_vm0, %v5699_v1, 0.0 }
0x35ad   :  { %5704 = vadd.xlane.f32.xlu1 %v5703_v33 }
0x3618   :  { %v5702_v13 = vpop.xlane.xlu2 %5701 }
0x3619   :  { %v5706_v36 = vmul.f32 %v5702_v13, %v7484_v5 }
0x361b   :  { %v5708_v14 = vadd.f32 1e-05, %v5706_v36 }
0x361d   :  { %6709 = vrsqrt.f32 %v5708_v14  ;;  %vm5716_vm9 = vweird.f32 %v5708_v14 }
0x3620   :  { %v5705_v49 = vpop.xlane.xlu1 %5704 }
0x3621   :  { %v5707_v38 = vmul.f32 %v5705_v49, %v7484_v5 }
0x3623   :  { %v6710_v60 = vpop.eup %6709  ;;  %v5709_v4 = vadd.f32 1e-05, %v5707_v38  ;;  %v5893_v38 = vld [vmem:[#allocation22 + $0x18] sm:$0xff] }
0x3624   :  { %v5711_v34 = vmul.f32 %v6710_v60, %v5708_v14  ;;  %vm5717_vm1 = vweird.f32 %v6710_v60  ;;  %5916 = vmatpush.msra.mxu0 %v5893_v38 }
0x3625   :  { %6711 = vrsqrt.f32 %v5709_v4  ;;  %vm5718_vm6 = vmor %vm5716_vm9, %vm5717_vm1  ;;  %vm5726_vm8 = vweird.f32 %v5709_v4 }
0x3626   :  { %v5712_v17 = vmul.f32 %v6710_v60, %v5711_v34  ;;  %5917 = vmatpush.msra.mxu0 %v5892_v41 }
0x3628   :  { %v5713_v21 = vmul.f32 0.5, %v5712_v17 }
0x362a   :  { %v5714_v63 = vsub.f32 1.5, %v5713_v21 }
0x362b   :  { %v6712_v56 = vpop.eup %6711 }
0x362c   :  { %v5715_v54 = vmul.f32 %v6710_v60, %v5714_v63  ;;  %v5721_v19 = vmul.f32 %v6712_v56, %v5709_v4  ;;  %vm5727_vm7 = vweird.f32 %v6712_v56  ;;  %v5890_v4 = vld [vmem:[#allocation22] sm:$0xff] }
0x362d   :  { %vm5728_vm10 = vmor %vm5726_vm8, %vm5727_vm7 }
0x362e   :  { %v5719_v53 = vsel %vm5718_vm6, %v6710_v60, %v5715_v54  ;;  %v5722_v15 = vmul.f32 %v6712_v56, %v5721_v19  ;;  %v5891_v60 = vld [vmem:[#allocation22 + $0x8] sm:$0xff] }
0x362f   :  { %v5730_v23 = vmul.f32 %v5719_v53, %v5696_v55  ;;  %v6483_v55 = vld [vmem:[#allocation19 + $0x2] ss:$0 sm:$0xff]  ;;  %5918 = vmatpush.msra.mxu0 %v5891_v60  ;;  %v6484_v53 = vld [vmem:[%s8767_s16 + $0x8] ss:$0 sm:$0xff] }
0x3630   :  { %v5723_v16 = vmul.f32 0.5, %v5722_v15 }
0x3631   :  { %v5735_v43 = vmul.f32 %v6480_v9, %v5730_v23  ;;  %5919 = vmatpush.msra.mxu0 %v5890_v4 }
0x3632   :  { %v5724_v11 = vsub.f32 1.5, %v5723_v16 }
0x3633   :  { %v5740_v26 = vadd.f32 %v6481_v51, %v5735_v43 }
0x3634   :  { %v5725_v46 = vmul.f32 %v6712_v56, %v5724_v11 }
0x3635   :  { %6293 = vmatmul.msk.f32.vlgmr.msra.gmra.mxu2 %vm286_vm0, %v5740_v26 }
0x3636   :  { %v5729_v50 = vsel %vm5728_vm10, %v6712_v56, %v5725_v46 }
0x3637   :  { %v5731_v45 = vmul.f32 %v5729_v50, %v8668_v12 }
0x3639   :  { %v5736_v48 = vmul.f32 %v6480_v9, %v5731_v45  ;;  %v6486_v45 = vld [vmem:[%s8770_s19] ss:$0 sm:$0xff] }
0x363b   :  { %v5741_v24 = vadd.f32 %v6481_v51, %v5736_v48 }
0x363d   :  { %6294 = vmatmul.msk.f32.gmra.mxu2 %vm286_vm0, %v5741_v24 }
0x36b8   :  { %v5775_v0 = vpop.f32.mrf.mxu2 }
0x36b9   :  { %v5776_v8 = vadd.f32 %v6482_v44, %v5775_v0 }
0x36bb   :  { %v5781_v58 = vmax.f32 %v5776_v8, 0.0 }
0x36bd   :  { %5816 = vmatmul.f32.vlgmr.msra.gmra.mxu3 %v5781_v58 }
0x36c0   :  { %v5778_v30 = vpop.f32.mrf.mxu2 }
0x36c1   :  { %v5779_v59 = vadd.f32 %v6482_v44, %v5778_v30 }
0x36c3   :  { %v5782_v27 = vmax.f32 %v5779_v59, 0.0 }
0x36c5   :  { %5819 = vmatmul.f32.gmra.mxu3 %v5782_v27 }
0x3740   :  { %v5817_v61 = vpop.f32.mrf.mxu3 }
0x3741   :  { %v5823_v42 = vadd.f32 %v5817_v61, %v5740_v26 }
0x3743   :  { %v5830_v52 = vadd.f32 %v6483_v55, %v5823_v42 }
0x3745   :  { %v5836_v47 = vsel %vm286_vm0, %v5830_v52, 0.0 }
0x3746   :  { %5837 = vadd.xlane.f32.xlu2 %v5836_v47 }
0x3748   :  { %v5820_v12 = vpop.f32.mrf.mxu3 }
0x3749   :  { %v5824_v1 = vadd.f32 %v5820_v12, %v5741_v24 }
0x374b   :  { %v5831_v33 = vadd.f32 %v6483_v55, %v5824_v1 }
0x374d   :  { %v5839_v25 = vsel %vm286_vm0, %v5831_v33, 0.0 }
0x374e   :  { %5840 = vadd.xlane.f32.xlu2 %v5839_v25 }
0x37b9   :  { %v5838_v2 = vpop.xlane.xlu2 %5837 }
0x37ba   :  { %v5842_v3 = vmul.f32 %v5838_v2, %v7484_v5 }
0x37bc   :  { %v5844_v31 = vsub.f32 %v5830_v52, %v5842_v3 }
0x37be   :  { %v5846_v13 = vmul.f32 %v5844_v31, %v5844_v31 }
0x37c0   :  { %v5848_v36 = vsel %vm286_vm0, %v5846_v13, 0.0 }
0x37c1   :  { %5849 = vadd.xlane.f32.xlu2 %v5848_v36  ;;  %v5841_v14 = vpop.xlane.xlu2 %5840 }
0x37c2   :  { %v5843_v6 = vmul.f32 %v5841_v14, %v7484_v5 }
0x37c4   :  { %v5845_v20 = vsub.f32 %v5831_v33, %v5843_v6 }
0x37c6   :  { %v5847_v29 = vmul.f32 %v5845_v20, %v5845_v20 }
0x37c8   :  { %v5851_v49 = vsel %vm286_vm0, %v5847_v29, 0.0 }
0x37c9   :  { %5852 = vadd.xlane.f32.xlu2 %v5851_v49 }
0x3834   :  { %v5850_v32 = vpop.xlane.xlu2 %5849 }
0x3835   :  { %v5854_v34 = vmul.f32 %v5850_v32, %v7484_v5 }
0x3837   :  { %v5856_v57 = vadd.f32 1e-05, %v5854_v34 }
0x3839   :  { %6713 = vrsqrt.f32 %v5856_v57  ;;  %vm5864_vm12 = vweird.f32 %v5856_v57 }
0x383c   :  { %v5853_v17 = vpop.xlane.xlu2 %5852 }
0x383d   :  { %v5855_v35 = vmul.f32 %v5853_v17, %v7484_v5  ;;  %v6485_v5 = vld [vmem:[#allocation20 + $0x8] ss:$0 sm:$0xff] }
0x383f   :  { %v6714_v21 = vpop.eup %6713  ;;  %v5857_v18 = vadd.f32 1e-05, %v5855_v35 }
0x3840   :  { %v5859_v63 = vmul.f32 %v6714_v21, %v5856_v57  ;;  %vm5865_vm11 = vweird.f32 %v6714_v21 }
0x3841   :  { %6715 = vrsqrt.f32 %v5857_v18  ;;  %vm5866_vm13 = vmor %vm5864_vm12, %vm5865_vm11  ;;  %vm5874_vm15 = vweird.f32 %v5857_v18 }
0x3842   :  { %v5860_v56 = vmul.f32 %v6714_v21, %v5859_v63 }
0x3844   :  { %v5861_v7 = vmul.f32 0.5, %v5860_v56 }
0x3846   :  { %v5862_v54 = vsub.f32 1.5, %v5861_v7 }
0x3847   :  { %v6716_v19 = vpop.eup %6715 }
0x3848   :  { %v5863_v9 = vmul.f32 %v6714_v21, %v5862_v54  ;;  %v5869_v40 = vmul.f32 %v6716_v19, %v5857_v18  ;;  %vm5875_vm14 = vweird.f32 %v6716_v19 }
0x3849   :  { %vm5876_vm2 = vmor %vm5874_vm15, %vm5875_vm14 }
0x384a   :  { %v5867_v15 = vsel %vm5866_vm13, %v6714_v21, %v5863_v9  ;;  %v5870_v51 = vmul.f32 %v6716_v19, %v5869_v40 }
0x384b   :  { %v5878_v23 = vmul.f32 %v5867_v15, %v5844_v31 }
0x384c   :  { %v5871_v28 = vmul.f32 0.5, %v5870_v51 }
0x384d   :  { %v5883_v16 = vmul.f32 %v6484_v53, %v5878_v23 }
0x384e   :  { %v5872_v43 = vsub.f32 1.5, %v5871_v28 }
0x384f   :  { %v5888_v22 = vadd.f32 %v6485_v5, %v5883_v16 }
0x3850   :  { %v5873_v11 = vmul.f32 %v6716_v19, %v5872_v43 }
0x3851   :  { %6312 = vmatmul.msk.f32.vlgmr.msra.gmra.mxu0 %vm286_vm0, %v5888_v22 }
0x3852   :  { %v5877_v26 = vsel %vm5876_vm2, %v6716_v19, %v5873_v11 }
0x3853   :  { %v5879_v10 = vmul.f32 %v5877_v26, %v5845_v20 }
0x3855   :  { %v5884_v46 = vmul.f32 %v6484_v53, %v5879_v10 }
0x3857   :  { %v5889_v50 = vadd.f32 %v6485_v5, %v5884_v46 }
0x3859   :  { %6313 = vmatmul.msk.f32.gmra.mxu0 %vm286_vm0, %v5889_v50 }
0x38ce   :  { %v5921_v48 = vpop.f32.mrf.mxu0 }
0x38cf   :  { %v5922_v24 = vadd.f32 %v6486_v45, %v5921_v48 }
0x38d1   :  { %5927 = vst [vmem:[#allocation23] sm:$0xff] %v5922_v24 }
0x38d6   :  { %v5924_v62 = vpop.f32.mrf.mxu0 }
0x38d7   :  { %v5925_v39 = vadd.f32 %v6486_v45, %v5924_v62 }
0x38d9   :  { %5928 = vst [vmem:[#allocation23 + $0x8] sm:$0xff] %v5925_v39 }
0x38da   :  { %5941 = dma.vmem_to_hbm [thread:$0]  %s5934_s23, 256, %s5936_s2, [#allocation4], %s7086_s28, %s7086_s28, %s7087_s4  }
0x38db   :  { %7083 = dma.done.wait [#allocation4], 256  }
0x38dc   :  { %7084 = vsyncadd [#allocation4], 4294967040 }
0x38dd   :  { %5946 = vsyncpa [#allocation3], 1 }
0x38de   :  { %5947 = vsyncpa [#allocation6], 1 }
0x38df   :  { %5948 = vsyncpa [#allocation9], 1 }
0x38e0   :  { %5949 = vsyncpa [#allocation12], 1 }
0x38e1   :  { %5950 = vsyncpa [#allocation15], 1 }
0x38e2   :  { %5951 = vsyncpa [#allocation18], 1 }
0x38e3   :  { %5952 = vsyncpa [#allocation21], 1 }
0x38e4   :  { %5953 = vsyncpa [#allocation4], 1 }

</bundles_post_ra>
